<compile_context>
chip_gen: v5e
topology: v5e:2x2
jax: 0.10.0
libtpu: 0.0.40
codegen_flags: <defaults>
</compile_context>

<pallas_src>
import functools

import numpy as np
import jax
import jax.numpy as jnp
from jax import lax
from jax.experimental import pallas as pl
from jax.experimental.pallas import tpu as pltpu

_EPS = 1e-5


# --------------------------------------------------------------------------
# per-tap boundary masks for the 3x3 'same' depthwise conv on flattened tokens
# --------------------------------------------------------------------------
def _tap_masks(H, W):
    """mask[l, t] == 1 iff tap t = (dh, dw) reads in-bounds at token l=(h, w)."""
    L = H * W
    m = np.zeros((L, 9), np.float32)
    t = 0
    for dh in (-1, 0, 1):
        for dw in (-1, 0, 1):
            for h in range(H):
                for w in range(W):
                    if 0 <= h + dh < H and 0 <= w + dw < W:
                        m[h * W + w, t] = 1.0
            t += 1
    return jnp.asarray(m)


# --------------------------------------------------------------------------
# fused EfficientViMBlock kernel (one batch-chunk of bpb images per grid step)
# --------------------------------------------------------------------------
def _block_kernel(x_ref, mask_ref, alpha_ref,
                  dw1w_ref, dw1b_ref, lng_ref, lnb_ref,
                  wbcdt_ref, dwbcdt_ref, arow_ref,
                  whz_ref, d_ref, wout_ref,
                  dw2w_ref, dw2b_ref,
                  w1_ref, b1_ref, w2_ref, b2_ref,
                  y_ref, h_ref, *, S, di, W, L, bpb):
    f32, bf16 = jnp.float32, jnp.bfloat16
    M = bpb * L
    C = x_ref.shape[-1]
    # tap t = (dh+1)*3 + (dw+1)  (same order as the PyTorch 3x3 kernel taps)
    offs = tuple(dh * W + dw for dh in (-1, 0, 1) for dw in (-1, 0, 1))
    masks = mask_ref[...]                                       # (M, 9) f32

    def dwconv(v, w_ref, b_ref):
        # depthwise 3x3 on a (tokens, channels) tile:
        #   XLU roll along the token/sublane axis + VPU mask & tap-weight FMAs.
        # Wrap-around across image-row / batch boundaries is zeroed by masks.
        acc = None
        for t, off in enumerate(offs):
            if off == 0:
                term = v * w_ref[t]
            else:
                vs = pltpu.roll(v, shift=(-off) % M, axis=0)
                term = (vs * masks[:, t:t + 1]) * w_ref[t]
            acc = term if acc is None else acc + term
        if b_ref is not None:
            acc = acc + b_ref[...]
        return acc

    x = x_ref[...]                                              # (M, C) f32
    a0, a1, a2, a3 = alpha_ref[0], alpha_ref[1], alpha_ref[2], alpha_ref[3]

    # x = (1 - a0) * x + a0 * dwconv1(x)
    x = (1.0 - a0) * x + a0 * dwconv(x, dw1w_ref, dw1b_ref)
    x_prev = x

    # LayerNorm over the channel (lane) axis
    mu = jnp.mean(x, axis=-1, keepdims=True)
    xc = x - mu
    var = jnp.mean(xc * xc, axis=-1, keepdims=True)
    xn = xc * lax.rsqrt(var + _EPS) * lng_ref[...] + lnb_ref[...]

    # ---------------- HSMSSD mixer (token-major, fused projections) --------
    bcdt = jnp.dot(xn.astype(bf16), wbcdt_ref[...],
                   preferred_element_type=f32)                  # (M, 3S)
    bcdt = dwconv(bcdt, dwbcdt_ref, None)

    b3 = bcdt[:, 0:S].reshape(bpb, L, S)
    c3 = bcdt[:, S:2 * S].reshape(bpb, L, S)
    dt3 = bcdt[:, 2 * S:3 * S].reshape(bpb, L, S)

    # softmax over the L tokens of each image (axis=1), per state channel
    logits = dt3 + arow_ref[...]
    logits = logits - jnp.max(logits, axis=1, keepdims=True)
    e = jnp.exp(logits)
    denom = jnp.sum(e, axis=1, keepdims=True)
    attn = e * pl.reciprocal(denom, approx=True)
    ab3 = attn * b3                                             # (bpb, L, S)

    xn3 = xn.reshape(bpb, L, C)
    h_b = jnp.einsum('bls,blc->bsc', ab3.astype(bf16), xn3.astype(bf16),
                     preferred_element_type=f32)                # (bpb, S, C)

    hm = h_b.reshape(bpb * S, C)
    hz = jnp.dot(hm.astype(bf16), whz_ref[...],
                 preferred_element_type=f32)                    # (bpb*S, 2*di)
    h1, z = hz[:, :di], hz[:, di:]
    hg = h1 * (z * jax.nn.sigmoid(z) + d_ref[...])              # h*silu(z) + h*D
    ho = jnp.dot(hg.astype(bf16), wout_ref[...],
                 preferred_element_type=f32)                    # (bpb*S, C)
    ho3 = ho.reshape(bpb, S, C)
    h_ref[...] = ho3

    y = jnp.einsum('bls,bsc->blc', c3.astype(bf16), ho3.astype(bf16),
                   preferred_element_type=f32).reshape(M, C)    # (M, C)

    # residual mixes, dwconv2, FFN (all resident in VMEM/vregs)
    x = (1.0 - a1) * x_prev + a1 * y
    x = (1.0 - a2) * x + a2 * dwconv(x, dw2w_ref, dw2b_ref)
    f1 = jnp.maximum(
        jnp.dot(x.astype(bf16), w1_ref[...], preferred_element_type=f32)
        + b1_ref[...], 0.0)
    f2 = jnp.dot(f1.astype(bf16), w2_ref[...], preferred_element_type=f32) + b2_ref[...]
    x = (1.0 - a3) * x + a3 * f2

    y_ref[...] = x


# --------------------------------------------------------------------------
# wrapper: layout plumbing + pallas_call
# --------------------------------------------------------------------------
def prepare_block_params(p, H, W):
    """Repack PyTorch-layout parameters into fused-kernel layouts (done once)."""
    bf = jnp.bfloat16
    return {
        'mask': _tap_masks(H, W),                                   # (L, 9)
        'alpha': jax.nn.sigmoid(p['alpha'])[:, None, :],            # (4,1,C) pre-activated
        'dw1_w': p['dw1_w'].T[:, None, :], 'dw1_b': p['dw1_b'][None, :],
        'dw2_w': p['dw2_w'].T[:, None, :], 'dw2_b': p['dw2_b'][None, :],
        'ln_g': p['ln_g'][None, :], 'ln_b': p['ln_b'][None, :],     # (1,C)
        'w_bcdt': p['bcdt_w'].T.astype(bf),                         # (C, 3S) fused B/C/dt
        'dw_bcdt': p['mdw_w'].T[:, None, :],                        # (9, 1, 3S)
        'a_row': p['A'][None, :],                                   # (1, S)
        'w_hz': p['hz_w'].T.astype(bf),                             # (C, 2*di) fused h/z
        'd': p['D'].reshape(1, 1),                                  # (1, 1)
        'w_out': p['out_w'].T.astype(bf),                           # (di, C)
        'w1': p['fc1_w'].T.astype(bf), 'b1': p['fc1_b'][None, :],   # (C,hid),(1,hid)
        'w2': p['fc2_w'].T.astype(bf), 'b2': p['fc2_b'][None, :],   # (hid,C),(1,C)
    }


def efficientvim_block(x, kp, batch_blocks=1):
    """batch_blocks=1: single grid step (best on v5e/v6e, single TensorCore).
    batch_blocks=2: 2-way 'parallel' grid so v7x's two TensorCores split the batch."""
    B, C, H, W = x.shape
    L = H * W
    S = kp['a_row'].shape[1]
    di = kp['w_out'].shape[0]
    hid = kp['b1'].shape[1]
    nb = batch_blocks
    assert B % nb == 0
    bpb = B // nb
    Mblk = bpb * L

    # (B, C, H, W) -> (B*L, C): channels on lanes, batch*tokens on sublanes
    x_tok = jnp.transpose(x.reshape(B, C, L), (0, 2, 1)).reshape(B * L, C)
    mask = jnp.tile(kp['mask'], (bpb, 1))                         # (Mblk, 9)

    def fixed2(shape): return pl.BlockSpec(shape, lambda i: (0, 0))
    def fixed3(shape): return pl.BlockSpec(shape, lambda i: (0, 0, 0))

    in_specs = [
        pl.BlockSpec((Mblk, C), lambda i: (i, 0)),                # x tokens
        fixed2((Mblk, 9)),                                        # boundary masks
        fixed3((4, 1, C)),                                        # sigmoid(alpha)
        fixed3((9, 1, C)), fixed2((1, C)),                        # dwconv1 w, b
        fixed2((1, C)), fixed2((1, C)),                           # LN gamma, beta
        fixed2((C, 3 * S)), fixed3((9, 1, 3 * S)),                # BCdt proj, dw taps
        fixed2((1, S)),                                           # A
        fixed2((C, 2 * di)), fixed2((1, 1)), fixed2((di, C)),     # hz proj, D, out proj
        fixed3((9, 1, C)), fixed2((1, C)),                        # dwconv2 w, b
        fixed2((C, hid)), fixed2((1, hid)), fixed2((hid, C)), fixed2((1, C)),  # FFN
    ]
    out_specs = (pl.BlockSpec((Mblk, C), lambda i: (i, 0)),
                 pl.BlockSpec((bpb, S, C), lambda i: (i, 0, 0)))

    y_flat, h_sc = pl.pallas_call(
        functools.partial(_block_kernel, S=S, di=di, W=W, L=L, bpb=bpb),
        out_shape=(jax.ShapeDtypeStruct((B * L, C), jnp.float32),
                   jax.ShapeDtypeStruct((B, S, C), jnp.float32)),
        grid=(nb,),
        in_specs=in_specs,
        out_specs=out_specs,
        compiler_params=pltpu.CompilerParams(dimension_semantics=("parallel",)),
    )(x_tok, mask, kp['alpha'],
      kp['dw1_w'], kp['dw1_b'], kp['ln_g'], kp['ln_b'],
      kp['w_bcdt'], kp['dw_bcdt'], kp['a_row'],
      kp['w_hz'], kp['d'], kp['w_out'],
      kp['dw2_w'], kp['dw2_b'],
      kp['w1'], kp['b1'], kp['w2'], kp['b2'])

    y = jnp.transpose(y_flat.reshape(B, L, C), (0, 2, 1)).reshape(B, C, H, W)
    h = jnp.transpose(h_sc, (0, 2, 1))                            # (B, d_model, state_dim)
    return y, h


# --------------------------------------------------------------------------
# pure-JAX reference (PyTorch orientation) for correctness checking
# --------------------------------------------------------------------------
def reference_block(x, p, S, di):
    B, C, H, W = x.shape
    L = H * W
    hp = lax.Precision.HIGHEST
    alpha = jax.nn.sigmoid(p['alpha'])                            # (4, C)

    def dw3x3(inp, w9, b):
        wt = w9.reshape(-1, 1, 3, 3)
        y = lax.conv_general_dilated(
            inp, wt, (1, 1), [(1, 1), (1, 1)],
            feature_group_count=inp.shape[1],
            dimension_numbers=('NCHW', 'OIHW', 'NCHW'), precision=hp)
        if b is not None:
            y = y + b[None, :, None, None]
        return y

    def mix(a_row, u, v):
        a = a_row[None, :, None, None]
        return (1.0 - a) * u + a * v

    x = mix(alpha[0], x, dw3x3(x, p['dw1_w'], p['dw1_b']))
    x_prev = x

    xt = x.reshape(B, C, L)
    mu = jnp.mean(xt, axis=1, keepdims=True)
    var = jnp.mean((xt - mu) ** 2, axis=1, keepdims=True)
    xn = (xt - mu) / jnp.sqrt(var + _EPS) * p['ln_g'][None, :, None] + p['ln_b'][None, :, None]

    bcdt = jnp.einsum('oc,bcl->bol', p['bcdt_w'], xn, precision=hp)
    bcdt = dw3x3(bcdt.reshape(B, 3 * S, H, W), p['mdw_w'], None).reshape(B, 3 * S, L)
    Bm, Cm, dt = bcdt[:, :S], bcdt[:, S:2 * S], bcdt[:, 2 * S:]
    attn = jax.nn.softmax(dt + p['A'][None, :, None], axis=-1)
    AB = attn * Bm
    h = jnp.einsum('bcl,bsl->bcs', xn, AB, precision=hp)
    hz = jnp.einsum('oc,bcs->bos', p['hz_w'], h, precision=hp)
    h1, z = hz[:, :di], hz[:, di:]
    hg = h1 * jax.nn.silu(z) + h1 * p['D'][0]
    ho = jnp.einsum('oi,bis->bos', p['out_w'], hg, precision=hp)  # (B, C, S)
    y = jnp.einsum('bcs,bsl->bcl', ho, Cm, precision=hp).reshape(B, C, H, W)

    x = mix(alpha[1], x_prev, y)
    x = mix(alpha[2], x, dw3x3(x, p['dw2_w'], p['dw2_b']))
    xt = x.reshape(B, C, L)
    f1 = jnp.maximum(jnp.einsum('oc,bcl->bol', p['fc1_w'], xt, precision=hp)
                     + p['fc1_b'][None, :, None], 0.0)
    f2 = (jnp.einsum('co,bol->bcl', p['fc2_w'], f1, precision=hp)
          + p['fc2_b'][None, :, None])
    x = mix(alpha[3], x, f2.reshape(B, C, H, W))
    return x, ho


# --------------------------------------------------------------------------
# parameter init (PyTorch-like shapes; eval-mode BN folded into weight/bias)
# --------------------------------------------------------------------------
class KeyGen:
    def __init__(self, key):
        self.key = key

    def __call__(self):
        self.key, sub = jax.random.split(self.key)
        return sub


def init_block_params(key, dim, state_dim, ssd_expand, mlp_ratio):
    S = state_dim
    di = int(ssd_expand * dim)
    hid = int(dim * mlp_ratio)
    kg = KeyGen(key)

    def n(shape, s=0.1):
        return s * jax.random.normal(kg(), shape, jnp.float32)

    return {
        'alpha': 1e-4 + 0.01 * jax.random.normal(kg(), (4, dim), jnp.float32),
        'dw1_w': n((dim, 9), 0.2), 'dw1_b': n((dim,), 0.05),
        'dw2_w': n((dim, 9), 0.2), 'dw2_b': n((dim,), 0.05),
        'ln_g': jnp.ones((dim,), jnp.float32) + n((dim,), 0.05),
        'ln_b': n((dim,), 0.05),
        'bcdt_w': n((3 * S, dim), 0.1),
        'mdw_w': n((3 * S, 9), 0.2),
        'A': jax.random.uniform(kg(), (S,), jnp.float32, 1.0, 16.0),
        'D': jnp.ones((1,), jnp.float32),
        'hz_w': n((2 * di, dim), 0.1),
        'out_w': n((dim, di), 0.1),
        'fc1_w': n((hid, dim), 0.1), 'fc1_b': n((hid,), 0.05),
        'fc2_w': n((dim, hid), 0.1), 'fc2_b': n((dim,), 0.05),
    }


# --------------------------------------------------------------------------
if __name__ == "__main__":
    BATCH, DIM, STATE, H, W = 2, 32, 16, 8, 8
    SSD_EXPAND, MLP_RATIO = 1, 4.0

    root = jax.random.PRNGKey(0)
    k_param, k_input = jax.random.split(root)
    params = init_block_params(k_param, DIM, STATE, SSD_EXPAND, MLP_RATIO)
    x = jax.random.normal(k_input, (BATCH, DIM, H, W), jnp.float32)

    kparams = prepare_block_params(params, H, W)    # one-time layout packing
    fwd = jax.jit(efficientvim_block)               # batch_blocks=1 (set 2 on v7x)
    y, h = jax.block_until_ready(fwd(x, kparams))

    assert y.shape == (BATCH, DIM, H, W), y.shape
    assert h.shape == (BATCH, DIM, STATE), h.shape
    assert bool(jnp.all(jnp.isfinite(y))) and bool(jnp.all(jnp.isfinite(h)))

    # correctness vs. pure-JAX f32 reference (bf16 matmul operands set the floor)
    y_ref, h_ref = reference_block(x, params, STATE, int(SSD_EXPAND * DIM))
    dy = float(jnp.max(jnp.abs(y - y_ref)))
    dh = float(jnp.max(jnp.abs(h - h_ref)))
    assert dy < 3e-2 and dh < 3e-2, (dy, dh)

    print("KERNEL_OK")
</pallas_src>

<mosaic_0001>
module attributes {stable_mosaic.version = 11 : i64} {
  func.func @_block_kernel(%arg0: i32, %arg1: memref<128x32xf32, #tpu.memory_space<vmem>>, %arg2: memref<128x9xf32, #tpu.memory_space<vmem>>, %arg3: memref<4x1x32xf32, #tpu.memory_space<vmem>>, %arg4: memref<9x1x32xf32, #tpu.memory_space<vmem>>, %arg5: memref<1x32xf32, #tpu.memory_space<vmem>>, %arg6: memref<1x32xf32, #tpu.memory_space<vmem>>, %arg7: memref<1x32xf32, #tpu.memory_space<vmem>>, %arg8: memref<32x48xbf16, #tpu.memory_space<vmem>>, %arg9: memref<9x1x48xf32, #tpu.memory_space<vmem>>, %arg10: memref<1x16xf32, #tpu.memory_space<vmem>>, %arg11: memref<32x64xbf16, #tpu.memory_space<vmem>>, %arg12: memref<1x1xf32, #tpu.memory_space<vmem>>, %arg13: memref<32x32xbf16, #tpu.memory_space<vmem>>, %arg14: memref<9x1x32xf32, #tpu.memory_space<vmem>>, %arg15: memref<1x32xf32, #tpu.memory_space<vmem>>, %arg16: memref<32x128xbf16, #tpu.memory_space<vmem>>, %arg17: memref<1x128xf32, #tpu.memory_space<vmem>>, %arg18: memref<128x32xbf16, #tpu.memory_space<vmem>>, %arg19: memref<1x32xf32, #tpu.memory_space<vmem>>, %arg20: memref<128x32xf32, #tpu.memory_space<vmem>>, %arg21: memref<2x16x32xf32, #tpu.memory_space<vmem>>) attributes {dimension_semantics = [#tpu.dimension_semantics<parallel>], iteration_bounds = array<i64: 1>, scalar_prefetch = 0 : i64, scratch_operands = 0 : i64, tpu.core_type = #tpu.core_type<tc>, window_params = [{transform_indices = @transform_0, window_bounds = array<i64: 128, 32>}, {pipeline_mode = #tpu.pipeline_mode<synchronous>, transform_indices = @transform_1, window_bounds = array<i64: 128, 9>}, {pipeline_mode = #tpu.pipeline_mode<synchronous>, transform_indices = @transform_2, window_bounds = array<i64: 4, 1, 32>}, {pipeline_mode = #tpu.pipeline_mode<synchronous>, transform_indices = @transform_3, window_bounds = array<i64: 9, 1, 32>}, {pipeline_mode = #tpu.pipeline_mode<synchronous>, transform_indices = @transform_4, window_bounds = array<i64: 1, 32>}, {pipeline_mode = #tpu.pipeline_mode<synchronous>, transform_indices = @transform_5, window_bounds = array<i64: 1, 32>}, {pipeline_mode = #tpu.pipeline_mode<synchronous>, transform_indices = @transform_6, window_bounds = array<i64: 1, 32>}, {pipeline_mode = #tpu.pipeline_mode<synchronous>, transform_indices = @transform_7, window_bounds = array<i64: 32, 48>}, {pipeline_mode = #tpu.pipeline_mode<synchronous>, transform_indices = @transform_8, window_bounds = array<i64: 9, 1, 48>}, {pipeline_mode = #tpu.pipeline_mode<synchronous>, transform_indices = @transform_9, window_bounds = array<i64: 1, 16>}, {pipeline_mode = #tpu.pipeline_mode<synchronous>, transform_indices = @transform_10, window_bounds = array<i64: 32, 64>}, {pipeline_mode = #tpu.pipeline_mode<synchronous>, transform_indices = @transform_11, window_bounds = array<i64: 1, 1>}, {pipeline_mode = #tpu.pipeline_mode<synchronous>, transform_indices = @transform_12, window_bounds = array<i64: 32, 32>}, {pipeline_mode = #tpu.pipeline_mode<synchronous>, transform_indices = @transform_13, window_bounds = array<i64: 9, 1, 32>}, {pipeline_mode = #tpu.pipeline_mode<synchronous>, transform_indices = @transform_14, window_bounds = array<i64: 1, 32>}, {pipeline_mode = #tpu.pipeline_mode<synchronous>, transform_indices = @transform_15, window_bounds = array<i64: 32, 128>}, {pipeline_mode = #tpu.pipeline_mode<synchronous>, transform_indices = @transform_16, window_bounds = array<i64: 1, 128>}, {pipeline_mode = #tpu.pipeline_mode<synchronous>, transform_indices = @transform_17, window_bounds = array<i64: 128, 32>}, {pipeline_mode = #tpu.pipeline_mode<synchronous>, transform_indices = @transform_18, window_bounds = array<i64: 1, 32>}, {transform_indices = @transform_19, window_bounds = array<i64: 128, 32>}, {transform_indices = @transform_20, window_bounds = array<i64: 2, 16, 32>}]} {
    %c0 = arith.constant 0 : index
    %c0_0 = arith.constant 0 : index
    %0 = vector.load %arg2[%c0, %c0_0] : memref<128x9xf32, #tpu.memory_space<vmem>>, vector<128x9xf32>
    %c0_1 = arith.constant 0 : index
    %c0_2 = arith.constant 0 : index
    %1 = vector.load %arg1[%c0_1, %c0_2] : memref<128x32xf32, #tpu.memory_space<vmem>>, vector<128x32xf32>
    %c0_3 = arith.constant 0 : index
    %c0_4 = arith.constant 0 : index
    %c0_5 = arith.constant 0 : index
    %2 = vector.load %arg3[%c0_3, %c0_4, %c0_5] : memref<4x1x32xf32, #tpu.memory_space<vmem>>, vector<1x1x32xf32>
    %3 = vector.shape_cast %2 : vector<1x1x32xf32> to vector<1x32xf32>
    %c1 = arith.constant 1 : index
    %c0_6 = arith.constant 0 : index
    %c0_7 = arith.constant 0 : index
    %4 = vector.load %arg3[%c1, %c0_6, %c0_7] : memref<4x1x32xf32, #tpu.memory_space<vmem>>, vector<1x1x32xf32>
    %5 = vector.shape_cast %4 : vector<1x1x32xf32> to vector<1x32xf32>
    %c2 = arith.constant 2 : index
    %c0_8 = arith.constant 0 : index
    %c0_9 = arith.constant 0 : index
    %6 = vector.load %arg3[%c2, %c0_8, %c0_9] : memref<4x1x32xf32, #tpu.memory_space<vmem>>, vector<1x1x32xf32>
    %7 = vector.shape_cast %6 : vector<1x1x32xf32> to vector<1x32xf32>
    %c3 = arith.constant 3 : index
    %c0_10 = arith.constant 0 : index
    %c0_11 = arith.constant 0 : index
    %8 = vector.load %arg3[%c3, %c0_10, %c0_11] : memref<4x1x32xf32, #tpu.memory_space<vmem>>, vector<1x1x32xf32>
    %9 = vector.shape_cast %8 : vector<1x1x32xf32> to vector<1x32xf32>
    %cst = arith.constant 1.000000e+00 : f32
    %10 = vector.broadcast %cst : f32 to vector<1x32xf32>
    %11 = arith.subf %10, %3 : vector<1x32xf32>
    %12 = vector.broadcast %11 : vector<1x32xf32> to vector<128x32xf32>
    %13 = arith.mulf %12, %1 : vector<128x32xf32>
    %c9_i32 = arith.constant 9 : i32
    %14 = tpu.dynamic_rotate %1 by %c9_i32 dim 0 : vector<128x32xf32>, i32 -> vector<128x32xf32>
    %15 = vector.extract_strided_slice %0 {offsets = [0, 0], sizes = [128, 1], strides = [1, 1]} : vector<128x9xf32> to vector<128x1xf32>
    %16 = vector.broadcast %15 : vector<128x1xf32> to vector<128x32xf32>
    %17 = arith.mulf %14, %16 : vector<128x32xf32>
    %c0_12 = arith.constant 0 : index
    %c0_13 = arith.constant 0 : index
    %c0_14 = arith.constant 0 : index
    %18 = vector.load %arg4[%c0_12, %c0_13, %c0_14] : memref<9x1x32xf32, #tpu.memory_space<vmem>>, vector<1x1x32xf32>
    %19 = vector.shape_cast %18 : vector<1x1x32xf32> to vector<1x32xf32>
    %20 = vector.broadcast %19 : vector<1x32xf32> to vector<128x32xf32>
    %21 = arith.mulf %17, %20 : vector<128x32xf32>
    %c8_i32 = arith.constant 8 : i32
    %22 = tpu.dynamic_rotate %1 by %c8_i32 dim 0 : vector<128x32xf32>, i32 -> vector<128x32xf32>
    %23 = vector.extract_strided_slice %0 {offsets = [0, 1], sizes = [128, 1], strides = [1, 1]} : vector<128x9xf32> to vector<128x1xf32>
    %24 = vector.broadcast %23 : vector<128x1xf32> to vector<128x32xf32>
    %25 = arith.mulf %22, %24 : vector<128x32xf32>
    %c1_15 = arith.constant 1 : index
    %c0_16 = arith.constant 0 : index
    %c0_17 = arith.constant 0 : index
    %26 = vector.load %arg4[%c1_15, %c0_16, %c0_17] : memref<9x1x32xf32, #tpu.memory_space<vmem>>, vector<1x1x32xf32>
    %27 = vector.shape_cast %26 : vector<1x1x32xf32> to vector<1x32xf32>
    %28 = vector.broadcast %27 : vector<1x32xf32> to vector<128x32xf32>
    %29 = arith.mulf %25, %28 : vector<128x32xf32>
    %30 = arith.addf %21, %29 : vector<128x32xf32>
    %c7_i32 = arith.constant 7 : i32
    %31 = tpu.dynamic_rotate %1 by %c7_i32 dim 0 : vector<128x32xf32>, i32 -> vector<128x32xf32>
    %32 = vector.extract_strided_slice %0 {offsets = [0, 2], sizes = [128, 1], strides = [1, 1]} : vector<128x9xf32> to vector<128x1xf32>
    %33 = vector.broadcast %32 : vector<128x1xf32> to vector<128x32xf32>
    %34 = arith.mulf %31, %33 : vector<128x32xf32>
    %c2_18 = arith.constant 2 : index
    %c0_19 = arith.constant 0 : index
    %c0_20 = arith.constant 0 : index
    %35 = vector.load %arg4[%c2_18, %c0_19, %c0_20] : memref<9x1x32xf32, #tpu.memory_space<vmem>>, vector<1x1x32xf32>
    %36 = vector.shape_cast %35 : vector<1x1x32xf32> to vector<1x32xf32>
    %37 = vector.broadcast %36 : vector<1x32xf32> to vector<128x32xf32>
    %38 = arith.mulf %34, %37 : vector<128x32xf32>
    %39 = arith.addf %30, %38 : vector<128x32xf32>
    %c1_i32 = arith.constant 1 : i32
    %40 = tpu.dynamic_rotate %1 by %c1_i32 dim 0 : vector<128x32xf32>, i32 -> vector<128x32xf32>
    %41 = vector.extract_strided_slice %0 {offsets = [0, 3], sizes = [128, 1], strides = [1, 1]} : vector<128x9xf32> to vector<128x1xf32>
    %42 = vector.broadcast %41 : vector<128x1xf32> to vector<128x32xf32>
    %43 = arith.mulf %40, %42 : vector<128x32xf32>
    %c3_21 = arith.constant 3 : index
    %c0_22 = arith.constant 0 : index
    %c0_23 = arith.constant 0 : index
    %44 = vector.load %arg4[%c3_21, %c0_22, %c0_23] : memref<9x1x32xf32, #tpu.memory_space<vmem>>, vector<1x1x32xf32>
    %45 = vector.shape_cast %44 : vector<1x1x32xf32> to vector<1x32xf32>
    %46 = vector.broadcast %45 : vector<1x32xf32> to vector<128x32xf32>
    %47 = arith.mulf %43, %46 : vector<128x32xf32>
    %48 = arith.addf %39, %47 : vector<128x32xf32>
    %c4 = arith.constant 4 : index
    %c0_24 = arith.constant 0 : index
    %c0_25 = arith.constant 0 : index
    %49 = vector.load %arg4[%c4, %c0_24, %c0_25] : memref<9x1x32xf32, #tpu.memory_space<vmem>>, vector<1x1x32xf32>
    %50 = vector.shape_cast %49 : vector<1x1x32xf32> to vector<1x32xf32>
    %51 = vector.broadcast %50 : vector<1x32xf32> to vector<128x32xf32>
    %52 = arith.mulf %1, %51 : vector<128x32xf32>
    %53 = arith.addf %48, %52 : vector<128x32xf32>
    %c127_i32 = arith.constant 127 : i32
    %54 = tpu.dynamic_rotate %1 by %c127_i32 dim 0 : vector<128x32xf32>, i32 -> vector<128x32xf32>
    %55 = vector.extract_strided_slice %0 {offsets = [0, 5], sizes = [128, 1], strides = [1, 1]} : vector<128x9xf32> to vector<128x1xf32>
    %56 = vector.broadcast %55 : vector<128x1xf32> to vector<128x32xf32>
    %57 = arith.mulf %54, %56 : vector<128x32xf32>
    %c5 = arith.constant 5 : index
    %c0_26 = arith.constant 0 : index
    %c0_27 = arith.constant 0 : index
    %58 = vector.load %arg4[%c5, %c0_26, %c0_27] : memref<9x1x32xf32, #tpu.memory_space<vmem>>, vector<1x1x32xf32>
    %59 = vector.shape_cast %58 : vector<1x1x32xf32> to vector<1x32xf32>
    %60 = vector.broadcast %59 : vector<1x32xf32> to vector<128x32xf32>
    %61 = arith.mulf %57, %60 : vector<128x32xf32>
    %62 = arith.addf %53, %61 : vector<128x32xf32>
    %c121_i32 = arith.constant 121 : i32
    %63 = tpu.dynamic_rotate %1 by %c121_i32 dim 0 : vector<128x32xf32>, i32 -> vector<128x32xf32>
    %64 = vector.extract_strided_slice %0 {offsets = [0, 6], sizes = [128, 1], strides = [1, 1]} : vector<128x9xf32> to vector<128x1xf32>
    %65 = vector.broadcast %64 : vector<128x1xf32> to vector<128x32xf32>
    %66 = arith.mulf %63, %65 : vector<128x32xf32>
    %c6 = arith.constant 6 : index
    %c0_28 = arith.constant 0 : index
    %c0_29 = arith.constant 0 : index
    %67 = vector.load %arg4[%c6, %c0_28, %c0_29] : memref<9x1x32xf32, #tpu.memory_space<vmem>>, vector<1x1x32xf32>
    %68 = vector.shape_cast %67 : vector<1x1x32xf32> to vector<1x32xf32>
    %69 = vector.broadcast %68 : vector<1x32xf32> to vector<128x32xf32>
    %70 = arith.mulf %66, %69 : vector<128x32xf32>
    %71 = arith.addf %62, %70 : vector<128x32xf32>
    %c120_i32 = arith.constant 120 : i32
    %72 = tpu.dynamic_rotate %1 by %c120_i32 dim 0 : vector<128x32xf32>, i32 -> vector<128x32xf32>
    %73 = vector.extract_strided_slice %0 {offsets = [0, 7], sizes = [128, 1], strides = [1, 1]} : vector<128x9xf32> to vector<128x1xf32>
    %74 = vector.broadcast %73 : vector<128x1xf32> to vector<128x32xf32>
    %75 = arith.mulf %72, %74 : vector<128x32xf32>
    %c7 = arith.constant 7 : index
    %c0_30 = arith.constant 0 : index
    %c0_31 = arith.constant 0 : index
    %76 = vector.load %arg4[%c7, %c0_30, %c0_31] : memref<9x1x32xf32, #tpu.memory_space<vmem>>, vector<1x1x32xf32>
    %77 = vector.shape_cast %76 : vector<1x1x32xf32> to vector<1x32xf32>
    %78 = vector.broadcast %77 : vector<1x32xf32> to vector<128x32xf32>
    %79 = arith.mulf %75, %78 : vector<128x32xf32>
    %80 = arith.addf %71, %79 : vector<128x32xf32>
    %c119_i32 = arith.constant 119 : i32
    %81 = tpu.dynamic_rotate %1 by %c119_i32 dim 0 : vector<128x32xf32>, i32 -> vector<128x32xf32>
    %82 = vector.extract_strided_slice %0 {offsets = [0, 8], sizes = [128, 1], strides = [1, 1]} : vector<128x9xf32> to vector<128x1xf32>
    %83 = vector.broadcast %82 : vector<128x1xf32> to vector<128x32xf32>
    %84 = arith.mulf %81, %83 : vector<128x32xf32>
    %c8 = arith.constant 8 : index
    %c0_32 = arith.constant 0 : index
    %c0_33 = arith.constant 0 : index
    %85 = vector.load %arg4[%c8, %c0_32, %c0_33] : memref<9x1x32xf32, #tpu.memory_space<vmem>>, vector<1x1x32xf32>
    %86 = vector.shape_cast %85 : vector<1x1x32xf32> to vector<1x32xf32>
    %87 = vector.broadcast %86 : vector<1x32xf32> to vector<128x32xf32>
    %88 = arith.mulf %84, %87 : vector<128x32xf32>
    %89 = arith.addf %80, %88 : vector<128x32xf32>
    %c0_34 = arith.constant 0 : index
    %c0_35 = arith.constant 0 : index
    %90 = vector.load %arg5[%c0_34, %c0_35] : memref<1x32xf32, #tpu.memory_space<vmem>>, vector<1x32xf32>
    %91 = vector.broadcast %90 : vector<1x32xf32> to vector<128x32xf32>
    %92 = arith.addf %89, %91 : vector<128x32xf32>
    %93 = vector.broadcast %3 : vector<1x32xf32> to vector<128x32xf32>
    %94 = arith.mulf %93, %92 : vector<128x32xf32>
    %95 = arith.addf %13, %94 : vector<128x32xf32>
    %cst_36 = arith.constant dense<0.000000e+00> : vector<128xf32>
    %96 = vector.multi_reduction <add>, %95, %cst_36 [1] : vector<128x32xf32> to vector<128xf32>
    %97 = vector.shape_cast %96 : vector<128xf32> to vector<128x1xf32>
    %cst_37 = arith.constant 3.200000e+01 : f32
    %98 = vector.broadcast %cst_37 : f32 to vector<128x1xf32>
    %99 = arith.divf %97, %98 : vector<128x1xf32>
    %100 = vector.broadcast %99 : vector<128x1xf32> to vector<128x32xf32>
    %101 = arith.subf %95, %100 : vector<128x32xf32>
    %102 = arith.mulf %101, %101 : vector<128x32xf32>
    %cst_38 = arith.constant dense<0.000000e+00> : vector<128xf32>
    %103 = vector.multi_reduction <add>, %102, %cst_38 [1] : vector<128x32xf32> to vector<128xf32>
    %104 = vector.shape_cast %103 : vector<128xf32> to vector<128x1xf32>
    %cst_39 = arith.constant 3.200000e+01 : f32
    %105 = vector.broadcast %cst_39 : f32 to vector<128x1xf32>
    %106 = arith.divf %104, %105 : vector<128x1xf32>
    %cst_40 = arith.constant 9.99999974E-6 : f32
    %107 = vector.broadcast %cst_40 : f32 to vector<128x1xf32>
    %108 = arith.addf %106, %107 : vector<128x1xf32>
    %109 = math.rsqrt %108 : vector<128x1xf32>
    %110 = vector.broadcast %109 : vector<128x1xf32> to vector<128x32xf32>
    %111 = arith.mulf %101, %110 : vector<128x32xf32>
    %c0_41 = arith.constant 0 : index
    %c0_42 = arith.constant 0 : index
    %112 = vector.load %arg6[%c0_41, %c0_42] : memref<1x32xf32, #tpu.memory_space<vmem>>, vector<1x32xf32>
    %113 = vector.broadcast %112 : vector<1x32xf32> to vector<128x32xf32>
    %114 = arith.mulf %111, %113 : vector<128x32xf32>
    %c0_43 = arith.constant 0 : index
    %c0_44 = arith.constant 0 : index
    %115 = vector.load %arg7[%c0_43, %c0_44] : memref<1x32xf32, #tpu.memory_space<vmem>>, vector<1x32xf32>
    %116 = vector.broadcast %115 : vector<1x32xf32> to vector<128x32xf32>
    %117 = arith.addf %114, %116 : vector<128x32xf32>
    %118 = arith.truncf %117 : vector<128x32xf32> to vector<128x32xbf16>
    %c0_45 = arith.constant 0 : index
    %c0_46 = arith.constant 0 : index
    %119 = vector.load %arg8[%c0_45, %c0_46] : memref<32x48xbf16, #tpu.memory_space<vmem>>, vector<32x48xbf16>
    %cst_47 = arith.constant dense<0.000000e+00> : vector<128x48xf32>
    %120 = tpu.matmul %118, %119, %cst_47 {dimension_numbers = #tpu.dot_dimension_numbers<[1], [0], [0], [1], [0, 0, 1, 1], [], []>} : vector<128x32xbf16>, vector<32x48xbf16>, vector<128x48xf32> -> vector<128x48xf32>
    %c9_i32_48 = arith.constant 9 : i32
    %121 = tpu.dynamic_rotate %120 by %c9_i32_48 dim 0 : vector<128x48xf32>, i32 -> vector<128x48xf32>
    %122 = vector.extract_strided_slice %0 {offsets = [0, 0], sizes = [128, 1], strides = [1, 1]} : vector<128x9xf32> to vector<128x1xf32>
    %123 = vector.broadcast %122 : vector<128x1xf32> to vector<128x48xf32>
    %124 = arith.mulf %121, %123 : vector<128x48xf32>
    %c0_49 = arith.constant 0 : index
    %c0_50 = arith.constant 0 : index
    %c0_51 = arith.constant 0 : index
    %125 = vector.load %arg9[%c0_49, %c0_50, %c0_51] : memref<9x1x48xf32, #tpu.memory_space<vmem>>, vector<1x1x48xf32>
    %126 = vector.shape_cast %125 : vector<1x1x48xf32> to vector<1x48xf32>
    %127 = vector.broadcast %126 : vector<1x48xf32> to vector<128x48xf32>
    %128 = arith.mulf %124, %127 : vector<128x48xf32>
    %c8_i32_52 = arith.constant 8 : i32
    %129 = tpu.dynamic_rotate %120 by %c8_i32_52 dim 0 : vector<128x48xf32>, i32 -> vector<128x48xf32>
    %130 = vector.extract_strided_slice %0 {offsets = [0, 1], sizes = [128, 1], strides = [1, 1]} : vector<128x9xf32> to vector<128x1xf32>
    %131 = vector.broadcast %130 : vector<128x1xf32> to vector<128x48xf32>
    %132 = arith.mulf %129, %131 : vector<128x48xf32>
    %c1_53 = arith.constant 1 : index
    %c0_54 = arith.constant 0 : index
    %c0_55 = arith.constant 0 : index
    %133 = vector.load %arg9[%c1_53, %c0_54, %c0_55] : memref<9x1x48xf32, #tpu.memory_space<vmem>>, vector<1x1x48xf32>
    %134 = vector.shape_cast %133 : vector<1x1x48xf32> to vector<1x48xf32>
    %135 = vector.broadcast %134 : vector<1x48xf32> to vector<128x48xf32>
    %136 = arith.mulf %132, %135 : vector<128x48xf32>
    %137 = arith.addf %128, %136 : vector<128x48xf32>
    %c7_i32_56 = arith.constant 7 : i32
    %138 = tpu.dynamic_rotate %120 by %c7_i32_56 dim 0 : vector<128x48xf32>, i32 -> vector<128x48xf32>
    %139 = vector.extract_strided_slice %0 {offsets = [0, 2], sizes = [128, 1], strides = [1, 1]} : vector<128x9xf32> to vector<128x1xf32>
    %140 = vector.broadcast %139 : vector<128x1xf32> to vector<128x48xf32>
    %141 = arith.mulf %138, %140 : vector<128x48xf32>
    %c2_57 = arith.constant 2 : index
    %c0_58 = arith.constant 0 : index
    %c0_59 = arith.constant 0 : index
    %142 = vector.load %arg9[%c2_57, %c0_58, %c0_59] : memref<9x1x48xf32, #tpu.memory_space<vmem>>, vector<1x1x48xf32>
    %143 = vector.shape_cast %142 : vector<1x1x48xf32> to vector<1x48xf32>
    %144 = vector.broadcast %143 : vector<1x48xf32> to vector<128x48xf32>
    %145 = arith.mulf %141, %144 : vector<128x48xf32>
    %146 = arith.addf %137, %145 : vector<128x48xf32>
    %c1_i32_60 = arith.constant 1 : i32
    %147 = tpu.dynamic_rotate %120 by %c1_i32_60 dim 0 : vector<128x48xf32>, i32 -> vector<128x48xf32>
    %148 = vector.extract_strided_slice %0 {offsets = [0, 3], sizes = [128, 1], strides = [1, 1]} : vector<128x9xf32> to vector<128x1xf32>
    %149 = vector.broadcast %148 : vector<128x1xf32> to vector<128x48xf32>
    %150 = arith.mulf %147, %149 : vector<128x48xf32>
    %c3_61 = arith.constant 3 : index
    %c0_62 = arith.constant 0 : index
    %c0_63 = arith.constant 0 : index
    %151 = vector.load %arg9[%c3_61, %c0_62, %c0_63] : memref<9x1x48xf32, #tpu.memory_space<vmem>>, vector<1x1x48xf32>
    %152 = vector.shape_cast %151 : vector<1x1x48xf32> to vector<1x48xf32>
    %153 = vector.broadcast %152 : vector<1x48xf32> to vector<128x48xf32>
    %154 = arith.mulf %150, %153 : vector<128x48xf32>
    %155 = arith.addf %146, %154 : vector<128x48xf32>
    %c4_64 = arith.constant 4 : index
    %c0_65 = arith.constant 0 : index
    %c0_66 = arith.constant 0 : index
    %156 = vector.load %arg9[%c4_64, %c0_65, %c0_66] : memref<9x1x48xf32, #tpu.memory_space<vmem>>, vector<1x1x48xf32>
    %157 = vector.shape_cast %156 : vector<1x1x48xf32> to vector<1x48xf32>
    %158 = vector.broadcast %157 : vector<1x48xf32> to vector<128x48xf32>
    %159 = arith.mulf %120, %158 : vector<128x48xf32>
    %160 = arith.addf %155, %159 : vector<128x48xf32>
    %c127_i32_67 = arith.constant 127 : i32
    %161 = tpu.dynamic_rotate %120 by %c127_i32_67 dim 0 : vector<128x48xf32>, i32 -> vector<128x48xf32>
    %162 = vector.extract_strided_slice %0 {offsets = [0, 5], sizes = [128, 1], strides = [1, 1]} : vector<128x9xf32> to vector<128x1xf32>
    %163 = vector.broadcast %162 : vector<128x1xf32> to vector<128x48xf32>
    %164 = arith.mulf %161, %163 : vector<128x48xf32>
    %c5_68 = arith.constant 5 : index
    %c0_69 = arith.constant 0 : index
    %c0_70 = arith.constant 0 : index
    %165 = vector.load %arg9[%c5_68, %c0_69, %c0_70] : memref<9x1x48xf32, #tpu.memory_space<vmem>>, vector<1x1x48xf32>
    %166 = vector.shape_cast %165 : vector<1x1x48xf32> to vector<1x48xf32>
    %167 = vector.broadcast %166 : vector<1x48xf32> to vector<128x48xf32>
    %168 = arith.mulf %164, %167 : vector<128x48xf32>
    %169 = arith.addf %160, %168 : vector<128x48xf32>
    %c121_i32_71 = arith.constant 121 : i32
    %170 = tpu.dynamic_rotate %120 by %c121_i32_71 dim 0 : vector<128x48xf32>, i32 -> vector<128x48xf32>
    %171 = vector.extract_strided_slice %0 {offsets = [0, 6], sizes = [128, 1], strides = [1, 1]} : vector<128x9xf32> to vector<128x1xf32>
    %172 = vector.broadcast %171 : vector<128x1xf32> to vector<128x48xf32>
    %173 = arith.mulf %170, %172 : vector<128x48xf32>
    %c6_72 = arith.constant 6 : index
    %c0_73 = arith.constant 0 : index
    %c0_74 = arith.constant 0 : index
    %174 = vector.load %arg9[%c6_72, %c0_73, %c0_74] : memref<9x1x48xf32, #tpu.memory_space<vmem>>, vector<1x1x48xf32>
    %175 = vector.shape_cast %174 : vector<1x1x48xf32> to vector<1x48xf32>
    %176 = vector.broadcast %175 : vector<1x48xf32> to vector<128x48xf32>
    %177 = arith.mulf %173, %176 : vector<128x48xf32>
    %178 = arith.addf %169, %177 : vector<128x48xf32>
    %c120_i32_75 = arith.constant 120 : i32
    %179 = tpu.dynamic_rotate %120 by %c120_i32_75 dim 0 : vector<128x48xf32>, i32 -> vector<128x48xf32>
    %180 = vector.extract_strided_slice %0 {offsets = [0, 7], sizes = [128, 1], strides = [1, 1]} : vector<128x9xf32> to vector<128x1xf32>
    %181 = vector.broadcast %180 : vector<128x1xf32> to vector<128x48xf32>
    %182 = arith.mulf %179, %181 : vector<128x48xf32>
    %c7_76 = arith.constant 7 : index
    %c0_77 = arith.constant 0 : index
    %c0_78 = arith.constant 0 : index
    %183 = vector.load %arg9[%c7_76, %c0_77, %c0_78] : memref<9x1x48xf32, #tpu.memory_space<vmem>>, vector<1x1x48xf32>
    %184 = vector.shape_cast %183 : vector<1x1x48xf32> to vector<1x48xf32>
    %185 = vector.broadcast %184 : vector<1x48xf32> to vector<128x48xf32>
    %186 = arith.mulf %182, %185 : vector<128x48xf32>
    %187 = arith.addf %178, %186 : vector<128x48xf32>
    %c119_i32_79 = arith.constant 119 : i32
    %188 = tpu.dynamic_rotate %120 by %c119_i32_79 dim 0 : vector<128x48xf32>, i32 -> vector<128x48xf32>
    %189 = vector.extract_strided_slice %0 {offsets = [0, 8], sizes = [128, 1], strides = [1, 1]} : vector<128x9xf32> to vector<128x1xf32>
    %190 = vector.broadcast %189 : vector<128x1xf32> to vector<128x48xf32>
    %191 = arith.mulf %188, %190 : vector<128x48xf32>
    %c8_80 = arith.constant 8 : index
    %c0_81 = arith.constant 0 : index
    %c0_82 = arith.constant 0 : index
    %192 = vector.load %arg9[%c8_80, %c0_81, %c0_82] : memref<9x1x48xf32, #tpu.memory_space<vmem>>, vector<1x1x48xf32>
    %193 = vector.shape_cast %192 : vector<1x1x48xf32> to vector<1x48xf32>
    %194 = vector.broadcast %193 : vector<1x48xf32> to vector<128x48xf32>
    %195 = arith.mulf %191, %194 : vector<128x48xf32>
    %196 = arith.addf %187, %195 : vector<128x48xf32>
    %197 = vector.extract_strided_slice %196 {offsets = [0, 0], sizes = [128, 16], strides = [1, 1]} : vector<128x48xf32> to vector<128x16xf32>
    %198 = vector.shape_cast %197 : vector<128x16xf32> to vector<2x64x16xf32>
    %199 = vector.extract_strided_slice %196 {offsets = [0, 16], sizes = [128, 16], strides = [1, 1]} : vector<128x48xf32> to vector<128x16xf32>
    %200 = vector.shape_cast %199 : vector<128x16xf32> to vector<2x64x16xf32>
    %201 = vector.extract_strided_slice %196 {offsets = [0, 32], sizes = [128, 16], strides = [1, 1]} : vector<128x48xf32> to vector<128x16xf32>
    %202 = vector.shape_cast %201 : vector<128x16xf32> to vector<2x64x16xf32>
    %c0_83 = arith.constant 0 : index
    %c0_84 = arith.constant 0 : index
    %203 = vector.load %arg10[%c0_83, %c0_84] : memref<1x16xf32, #tpu.memory_space<vmem>>, vector<1x16xf32>
    %204 = vector.shape_cast %203 : vector<1x16xf32> to vector<1x1x16xf32>
    %205 = vector.broadcast %204 : vector<1x1x16xf32> to vector<2x64x16xf32>
    %206 = arith.addf %202, %205 : vector<2x64x16xf32>
    %cst_85 = arith.constant dense<0xFF800000> : vector<2x16xf32>
    %207 = vector.multi_reduction <maximumf>, %206, %cst_85 [1] : vector<2x64x16xf32> to vector<2x16xf32>
    %208 = vector.shape_cast %207 : vector<2x16xf32> to vector<2x1x16xf32>
    %209 = vector.broadcast %208 : vector<2x1x16xf32> to vector<2x64x16xf32>
    %210 = arith.subf %206, %209 : vector<2x64x16xf32>
    %211 = math.exp %210 : vector<2x64x16xf32>
    %cst_86 = arith.constant dense<0.000000e+00> : vector<2x16xf32>
    %212 = vector.multi_reduction <add>, %211, %cst_86 [1] : vector<2x64x16xf32> to vector<2x16xf32>
    %213 = vector.shape_cast %212 : vector<2x16xf32> to vector<2x1x16xf32>
    %214 = tpu.reciprocal %213 {approx = true} : vector<2x1x16xf32> -> vector<2x1x16xf32>
    %215 = vector.broadcast %214 : vector<2x1x16xf32> to vector<2x64x16xf32>
    %216 = arith.mulf %211, %215 : vector<2x64x16xf32>
    %217 = arith.mulf %216, %198 : vector<2x64x16xf32>
    %218 = vector.shape_cast %117 : vector<128x32xf32> to vector<2x64x32xf32>
    %219 = arith.truncf %217 : vector<2x64x16xf32> to vector<2x64x16xbf16>
    %220 = arith.truncf %218 : vector<2x64x32xf32> to vector<2x64x32xbf16>
    "tpu.trace_start"() <{level = 10 : i32, message = "bls,blc->bsc"}> : () -> ()
    %cst_87 = arith.constant dense<0.000000e+00> : vector<2x16x32xf32>
    %221 = tpu.matmul %219, %220, %cst_87 {dimension_numbers = #tpu.dot_dimension_numbers<[1], [1], [2], [2], [0, 0, 0, 2, 1, 2], [0], [0]>} : vector<2x64x16xbf16>, vector<2x64x32xbf16>, vector<2x16x32xf32> -> vector<2x16x32xf32>
    "tpu.trace_stop"() : () -> ()
    %222 = vector.shape_cast %221 : vector<2x16x32xf32> to vector<32x32xf32>
    %223 = arith.truncf %222 : vector<32x32xf32> to vector<32x32xbf16>
    %c0_88 = arith.constant 0 : index
    %c0_89 = arith.constant 0 : index
    %224 = vector.load %arg11[%c0_88, %c0_89] : memref<32x64xbf16, #tpu.memory_space<vmem>>, vector<32x64xbf16>
    %cst_90 = arith.constant dense<0.000000e+00> : vector<32x64xf32>
    %225 = tpu.matmul %223, %224, %cst_90 {dimension_numbers = #tpu.dot_dimension_numbers<[1], [0], [0], [1], [0, 0, 1, 1], [], []>} : vector<32x32xbf16>, vector<32x64xbf16>, vector<32x64xf32> -> vector<32x64xf32>
    %226 = vector.extract_strided_slice %225 {offsets = [0, 0], sizes = [32, 32], strides = [1, 1]} : vector<32x64xf32> to vector<32x32xf32>
    %227 = vector.extract_strided_slice %225 {offsets = [0, 32], sizes = [32, 32], strides = [1, 1]} : vector<32x64xf32> to vector<32x32xf32>
    %228 = arith.negf %227 : vector<32x32xf32>
    %229 = math.exp %228 : vector<32x32xf32>
    %cst_91 = arith.constant 1.000000e+00 : f32
    %230 = vector.broadcast %cst_91 : f32 to vector<32x32xf32>
    %231 = arith.addf %230, %229 : vector<32x32xf32>
    %232 = arith.divf %230, %231 : vector<32x32xf32>
    %233 = arith.mulf %227, %232 : vector<32x32xf32>
    %c0_92 = arith.constant 0 : index
    %c0_93 = arith.constant 0 : index
    %234 = vector.load %arg12[%c0_92, %c0_93] : memref<1x1xf32, #tpu.memory_space<vmem>>, vector<1x1xf32>
    %235 = vector.broadcast %234 : vector<1x1xf32> to vector<32x32xf32>
    %236 = arith.addf %233, %235 : vector<32x32xf32>
    %237 = arith.mulf %226, %236 : vector<32x32xf32>
    %238 = arith.truncf %237 : vector<32x32xf32> to vector<32x32xbf16>
    %c0_94 = arith.constant 0 : index
    %c0_95 = arith.constant 0 : index
    %239 = vector.load %arg13[%c0_94, %c0_95] : memref<32x32xbf16, #tpu.memory_space<vmem>>, vector<32x32xbf16>
    %cst_96 = arith.constant dense<0.000000e+00> : vector<32x32xf32>
    %240 = tpu.matmul %238, %239, %cst_96 {dimension_numbers = #tpu.dot_dimension_numbers<[1], [0], [0], [1], [0, 0, 1, 1], [], []>} : vector<32x32xbf16>, vector<32x32xbf16>, vector<32x32xf32> -> vector<32x32xf32>
    %241 = vector.shape_cast %240 : vector<32x32xf32> to vector<2x16x32xf32>
    %c0_97 = arith.constant 0 : index
    %c0_98 = arith.constant 0 : index
    %c0_99 = arith.constant 0 : index
    %242 = vector.load %arg21[%c0_97, %c0_98, %c0_99] : memref<2x16x32xf32, #tpu.memory_space<vmem>>, vector<2x16x32xf32>
    tpu.vector_store %arg21[%c0_97, %c0_98, %c0_99], %241 {strides = array<i32>} : memref<2x16x32xf32, #tpu.memory_space<vmem>>, vector<2x16x32xf32>,
    %243 = arith.truncf %200 : vector<2x64x16xf32> to vector<2x64x16xbf16>
    %244 = arith.truncf %241 : vector<2x16x32xf32> to vector<2x16x32xbf16>
    "tpu.trace_start"() <{level = 10 : i32, message = "bls,bsc->blc"}> : () -> ()
    %cst_100 = arith.constant dense<0.000000e+00> : vector<2x64x32xf32>
    %245 = tpu.matmul %243, %244, %cst_100 {dimension_numbers = #tpu.dot_dimension_numbers<[2], [1], [1], [2], [0, 0, 0, 1, 1, 2], [0], [0]>} : vector<2x64x16xbf16>, vector<2x16x32xbf16>, vector<2x64x32xf32> -> vector<2x64x32xf32>
    "tpu.trace_stop"() : () -> ()
    %246 = vector.shape_cast %245 : vector<2x64x32xf32> to vector<128x32xf32>
    %cst_101 = arith.constant 1.000000e+00 : f32
    %247 = vector.broadcast %cst_101 : f32 to vector<1x32xf32>
    %248 = arith.subf %247, %5 : vector<1x32xf32>
    %249 = vector.broadcast %248 : vector<1x32xf32> to vector<128x32xf32>
    %250 = arith.mulf %249, %95 : vector<128x32xf32>
    %251 = vector.broadcast %5 : vector<1x32xf32> to vector<128x32xf32>
    %252 = arith.mulf %251, %246 : vector<128x32xf32>
    %253 = arith.addf %250, %252 : vector<128x32xf32>
    %cst_102 = arith.constant 1.000000e+00 : f32
    %254 = vector.broadcast %cst_102 : f32 to vector<1x32xf32>
    %255 = arith.subf %254, %7 : vector<1x32xf32>
    %256 = vector.broadcast %255 : vector<1x32xf32> to vector<128x32xf32>
    %257 = arith.mulf %256, %253 : vector<128x32xf32>
    %c9_i32_103 = arith.constant 9 : i32
    %258 = tpu.dynamic_rotate %253 by %c9_i32_103 dim 0 : vector<128x32xf32>, i32 -> vector<128x32xf32>
    %259 = vector.extract_strided_slice %0 {offsets = [0, 0], sizes = [128, 1], strides = [1, 1]} : vector<128x9xf32> to vector<128x1xf32>
    %260 = vector.broadcast %259 : vector<128x1xf32> to vector<128x32xf32>
    %261 = arith.mulf %258, %260 : vector<128x32xf32>
    %c0_104 = arith.constant 0 : index
    %c0_105 = arith.constant 0 : index
    %c0_106 = arith.constant 0 : index
    %262 = vector.load %arg14[%c0_104, %c0_105, %c0_106] : memref<9x1x32xf32, #tpu.memory_space<vmem>>, vector<1x1x32xf32>
    %263 = vector.shape_cast %262 : vector<1x1x32xf32> to vector<1x32xf32>
    %264 = vector.broadcast %263 : vector<1x32xf32> to vector<128x32xf32>
    %265 = arith.mulf %261, %264 : vector<128x32xf32>
    %c8_i32_107 = arith.constant 8 : i32
    %266 = tpu.dynamic_rotate %253 by %c8_i32_107 dim 0 : vector<128x32xf32>, i32 -> vector<128x32xf32>
    %267 = vector.extract_strided_slice %0 {offsets = [0, 1], sizes = [128, 1], strides = [1, 1]} : vector<128x9xf32> to vector<128x1xf32>
    %268 = vector.broadcast %267 : vector<128x1xf32> to vector<128x32xf32>
    %269 = arith.mulf %266, %268 : vector<128x32xf32>
    %c1_108 = arith.constant 1 : index
    %c0_109 = arith.constant 0 : index
    %c0_110 = arith.constant 0 : index
    %270 = vector.load %arg14[%c1_108, %c0_109, %c0_110] : memref<9x1x32xf32, #tpu.memory_space<vmem>>, vector<1x1x32xf32>
    %271 = vector.shape_cast %270 : vector<1x1x32xf32> to vector<1x32xf32>
    %272 = vector.broadcast %271 : vector<1x32xf32> to vector<128x32xf32>
    %273 = arith.mulf %269, %272 : vector<128x32xf32>
    %274 = arith.addf %265, %273 : vector<128x32xf32>
    %c7_i32_111 = arith.constant 7 : i32
    %275 = tpu.dynamic_rotate %253 by %c7_i32_111 dim 0 : vector<128x32xf32>, i32 -> vector<128x32xf32>
    %276 = vector.extract_strided_slice %0 {offsets = [0, 2], sizes = [128, 1], strides = [1, 1]} : vector<128x9xf32> to vector<128x1xf32>
    %277 = vector.broadcast %276 : vector<128x1xf32> to vector<128x32xf32>
    %278 = arith.mulf %275, %277 : vector<128x32xf32>
    %c2_112 = arith.constant 2 : index
    %c0_113 = arith.constant 0 : index
    %c0_114 = arith.constant 0 : index
    %279 = vector.load %arg14[%c2_112, %c0_113, %c0_114] : memref<9x1x32xf32, #tpu.memory_space<vmem>>, vector<1x1x32xf32>
    %280 = vector.shape_cast %279 : vector<1x1x32xf32> to vector<1x32xf32>
    %281 = vector.broadcast %280 : vector<1x32xf32> to vector<128x32xf32>
    %282 = arith.mulf %278, %281 : vector<128x32xf32>
    %283 = arith.addf %274, %282 : vector<128x32xf32>
    %c1_i32_115 = arith.constant 1 : i32
    %284 = tpu.dynamic_rotate %253 by %c1_i32_115 dim 0 : vector<128x32xf32>, i32 -> vector<128x32xf32>
    %285 = vector.extract_strided_slice %0 {offsets = [0, 3], sizes = [128, 1], strides = [1, 1]} : vector<128x9xf32> to vector<128x1xf32>
    %286 = vector.broadcast %285 : vector<128x1xf32> to vector<128x32xf32>
    %287 = arith.mulf %284, %286 : vector<128x32xf32>
    %c3_116 = arith.constant 3 : index
    %c0_117 = arith.constant 0 : index
    %c0_118 = arith.constant 0 : index
    %288 = vector.load %arg14[%c3_116, %c0_117, %c0_118] : memref<9x1x32xf32, #tpu.memory_space<vmem>>, vector<1x1x32xf32>
    %289 = vector.shape_cast %288 : vector<1x1x32xf32> to vector<1x32xf32>
    %290 = vector.broadcast %289 : vector<1x32xf32> to vector<128x32xf32>
    %291 = arith.mulf %287, %290 : vector<128x32xf32>
    %292 = arith.addf %283, %291 : vector<128x32xf32>
    %c4_119 = arith.constant 4 : index
    %c0_120 = arith.constant 0 : index
    %c0_121 = arith.constant 0 : index
    %293 = vector.load %arg14[%c4_119, %c0_120, %c0_121] : memref<9x1x32xf32, #tpu.memory_space<vmem>>, vector<1x1x32xf32>
    %294 = vector.shape_cast %293 : vector<1x1x32xf32> to vector<1x32xf32>
    %295 = vector.broadcast %294 : vector<1x32xf32> to vector<128x32xf32>
    %296 = arith.mulf %253, %295 : vector<128x32xf32>
    %297 = arith.addf %292, %296 : vector<128x32xf32>
    %c127_i32_122 = arith.constant 127 : i32
    %298 = tpu.dynamic_rotate %253 by %c127_i32_122 dim 0 : vector<128x32xf32>, i32 -> vector<128x32xf32>
    %299 = vector.extract_strided_slice %0 {offsets = [0, 5], sizes = [128, 1], strides = [1, 1]} : vector<128x9xf32> to vector<128x1xf32>
    %300 = vector.broadcast %299 : vector<128x1xf32> to vector<128x32xf32>
    %301 = arith.mulf %298, %300 : vector<128x32xf32>
    %c5_123 = arith.constant 5 : index
    %c0_124 = arith.constant 0 : index
    %c0_125 = arith.constant 0 : index
    %302 = vector.load %arg14[%c5_123, %c0_124, %c0_125] : memref<9x1x32xf32, #tpu.memory_space<vmem>>, vector<1x1x32xf32>
    %303 = vector.shape_cast %302 : vector<1x1x32xf32> to vector<1x32xf32>
    %304 = vector.broadcast %303 : vector<1x32xf32> to vector<128x32xf32>
    %305 = arith.mulf %301, %304 : vector<128x32xf32>
    %306 = arith.addf %297, %305 : vector<128x32xf32>
    %c121_i32_126 = arith.constant 121 : i32
    %307 = tpu.dynamic_rotate %253 by %c121_i32_126 dim 0 : vector<128x32xf32>, i32 -> vector<128x32xf32>
    %308 = vector.extract_strided_slice %0 {offsets = [0, 6], sizes = [128, 1], strides = [1, 1]} : vector<128x9xf32> to vector<128x1xf32>
    %309 = vector.broadcast %308 : vector<128x1xf32> to vector<128x32xf32>
    %310 = arith.mulf %307, %309 : vector<128x32xf32>
    %c6_127 = arith.constant 6 : index
    %c0_128 = arith.constant 0 : index
    %c0_129 = arith.constant 0 : index
    %311 = vector.load %arg14[%c6_127, %c0_128, %c0_129] : memref<9x1x32xf32, #tpu.memory_space<vmem>>, vector<1x1x32xf32>
    %312 = vector.shape_cast %311 : vector<1x1x32xf32> to vector<1x32xf32>
    %313 = vector.broadcast %312 : vector<1x32xf32> to vector<128x32xf32>
    %314 = arith.mulf %310, %313 : vector<128x32xf32>
    %315 = arith.addf %306, %314 : vector<128x32xf32>
    %c120_i32_130 = arith.constant 120 : i32
    %316 = tpu.dynamic_rotate %253 by %c120_i32_130 dim 0 : vector<128x32xf32>, i32 -> vector<128x32xf32>
    %317 = vector.extract_strided_slice %0 {offsets = [0, 7], sizes = [128, 1], strides = [1, 1]} : vector<128x9xf32> to vector<128x1xf32>
    %318 = vector.broadcast %317 : vector<128x1xf32> to vector<128x32xf32>
    %319 = arith.mulf %316, %318 : vector<128x32xf32>
    %c7_131 = arith.constant 7 : index
    %c0_132 = arith.constant 0 : index
    %c0_133 = arith.constant 0 : index
    %320 = vector.load %arg14[%c7_131, %c0_132, %c0_133] : memref<9x1x32xf32, #tpu.memory_space<vmem>>, vector<1x1x32xf32>
    %321 = vector.shape_cast %320 : vector<1x1x32xf32> to vector<1x32xf32>
    %322 = vector.broadcast %321 : vector<1x32xf32> to vector<128x32xf32>
    %323 = arith.mulf %319, %322 : vector<128x32xf32>
    %324 = arith.addf %315, %323 : vector<128x32xf32>
    %c119_i32_134 = arith.constant 119 : i32
    %325 = tpu.dynamic_rotate %253 by %c119_i32_134 dim 0 : vector<128x32xf32>, i32 -> vector<128x32xf32>
    %326 = vector.extract_strided_slice %0 {offsets = [0, 8], sizes = [128, 1], strides = [1, 1]} : vector<128x9xf32> to vector<128x1xf32>
    %327 = vector.broadcast %326 : vector<128x1xf32> to vector<128x32xf32>
    %328 = arith.mulf %325, %327 : vector<128x32xf32>
    %c8_135 = arith.constant 8 : index
    %c0_136 = arith.constant 0 : index
    %c0_137 = arith.constant 0 : index
    %329 = vector.load %arg14[%c8_135, %c0_136, %c0_137] : memref<9x1x32xf32, #tpu.memory_space<vmem>>, vector<1x1x32xf32>
    %330 = vector.shape_cast %329 : vector<1x1x32xf32> to vector<1x32xf32>
    %331 = vector.broadcast %330 : vector<1x32xf32> to vector<128x32xf32>
    %332 = arith.mulf %328, %331 : vector<128x32xf32>
    %333 = arith.addf %324, %332 : vector<128x32xf32>
    %c0_138 = arith.constant 0 : index
    %c0_139 = arith.constant 0 : index
    %334 = vector.load %arg15[%c0_138, %c0_139] : memref<1x32xf32, #tpu.memory_space<vmem>>, vector<1x32xf32>
    %335 = vector.broadcast %334 : vector<1x32xf32> to vector<128x32xf32>
    %336 = arith.addf %333, %335 : vector<128x32xf32>
    %337 = vector.broadcast %7 : vector<1x32xf32> to vector<128x32xf32>
    %338 = arith.mulf %337, %336 : vector<128x32xf32>
    %339 = arith.addf %257, %338 : vector<128x32xf32>
    %340 = arith.truncf %339 : vector<128x32xf32> to vector<128x32xbf16>
    %c0_140 = arith.constant 0 : index
    %c0_141 = arith.constant 0 : index
    %341 = vector.load %arg16[%c0_140, %c0_141] : memref<32x128xbf16, #tpu.memory_space<vmem>>, vector<32x128xbf16>
    %cst_142 = arith.constant dense<0.000000e+00> : vector<128x128xf32>
    %342 = tpu.matmul %340, %341, %cst_142 {dimension_numbers = #tpu.dot_dimension_numbers<[1], [0], [0], [1], [0, 0, 1, 1], [], []>} : vector<128x32xbf16>, vector<32x128xbf16>, vector<128x128xf32> -> vector<128x128xf32>
    %c0_143 = arith.constant 0 : index
    %c0_144 = arith.constant 0 : index
    %343 = vector.load %arg17[%c0_143, %c0_144] : memref<1x128xf32, #tpu.memory_space<vmem>>, vector<1x128xf32>
    %344 = vector.broadcast %343 : vector<1x128xf32> to vector<128x128xf32>
    %345 = arith.addf %342, %344 : vector<128x128xf32>
    %cst_145 = arith.constant 0.000000e+00 : f32
    %346 = vector.broadcast %cst_145 : f32 to vector<128x128xf32>
    %347 = arith.maximumf %345, %346 : vector<128x128xf32>
    %348 = arith.truncf %347 : vector<128x128xf32> to vector<128x128xbf16>
    %c0_146 = arith.constant 0 : index
    %c0_147 = arith.constant 0 : index
    %349 = vector.load %arg18[%c0_146, %c0_147] : memref<128x32xbf16, #tpu.memory_space<vmem>>, vector<128x32xbf16>
    %cst_148 = arith.constant dense<0.000000e+00> : vector<128x32xf32>
    %350 = tpu.matmul %348, %349, %cst_148 {dimension_numbers = #tpu.dot_dimension_numbers<[1], [0], [0], [1], [0, 0, 1, 1], [], []>} : vector<128x128xbf16>, vector<128x32xbf16>, vector<128x32xf32> -> vector<128x32xf32>
    %c0_149 = arith.constant 0 : index
    %c0_150 = arith.constant 0 : index
    %351 = vector.load %arg19[%c0_149, %c0_150] : memref<1x32xf32, #tpu.memory_space<vmem>>, vector<1x32xf32>
    %352 = vector.broadcast %351 : vector<1x32xf32> to vector<128x32xf32>
    %353 = arith.addf %350, %352 : vector<128x32xf32>
    %cst_151 = arith.constant 1.000000e+00 : f32
    %354 = vector.broadcast %cst_151 : f32 to vector<1x32xf32>
    %355 = arith.subf %354, %9 : vector<1x32xf32>
    %356 = vector.broadcast %355 : vector<1x32xf32> to vector<128x32xf32>
    %357 = arith.mulf %356, %339 : vector<128x32xf32>
    %358 = vector.broadcast %9 : vector<1x32xf32> to vector<128x32xf32>
    %359 = arith.mulf %358, %353 : vector<128x32xf32>
    %360 = arith.addf %357, %359 : vector<128x32xf32>
    %c0_152 = arith.constant 0 : index
    %c0_153 = arith.constant 0 : index
    %361 = vector.load %arg20[%c0_152, %c0_153] : memref<128x32xf32, #tpu.memory_space<vmem>>, vector<128x32xf32>
    tpu.vector_store %arg20[%c0_152, %c0_153], %360 {strides = array<i32>} : memref<128x32xf32, #tpu.memory_space<vmem>>, vector<128x32xf32>,
    return
  }
  func.func @transform_0(%arg0: i32) -> (i32, i32) {
    %c0_i32 = arith.constant 0 : i32
    %c0_i32_0 = arith.constant 0 : i32
    return %arg0, %c0_i32 : i32, i32
  }
  func.func @transform_1(%arg0: i32) -> (i32, i32) {
    %c0_i32 = arith.constant 0 : i32
    %c0_i32_0 = arith.constant 0 : i32
    %c0_i32_1 = arith.constant 0 : i32
    return %c0_i32, %c0_i32_0 : i32, i32
  }
  func.func @transform_2(%arg0: i32) -> (i32, i32, i32) {
    %c0_i32 = arith.constant 0 : i32
    %c0_i32_0 = arith.constant 0 : i32
    %c0_i32_1 = arith.constant 0 : i32
    %c0_i32_2 = arith.constant 0 : i32
    return %c0_i32, %c0_i32_0, %c0_i32_1 : i32, i32, i32
  }
  func.func @transform_3(%arg0: i32) -> (i32, i32, i32) {
    %c0_i32 = arith.constant 0 : i32
    %c0_i32_0 = arith.constant 0 : i32
    %c0_i32_1 = arith.constant 0 : i32
    %c0_i32_2 = arith.constant 0 : i32
    return %c0_i32, %c0_i32_0, %c0_i32_1 : i32, i32, i32
  }
  func.func @transform_4(%arg0: i32) -> (i32, i32) {
    %c0_i32 = arith.constant 0 : i32
    %c0_i32_0 = arith.constant 0 : i32
    %c0_i32_1 = arith.constant 0 : i32
    return %c0_i32, %c0_i32_0 : i32, i32
  }
  func.func @transform_5(%arg0: i32) -> (i32, i32) {
    %c0_i32 = arith.constant 0 : i32
    %c0_i32_0 = arith.constant 0 : i32
    %c0_i32_1 = arith.constant 0 : i32
    return %c0_i32, %c0_i32_0 : i32, i32
  }
  func.func @transform_6(%arg0: i32) -> (i32, i32) {
    %c0_i32 = arith.constant 0 : i32
    %c0_i32_0 = arith.constant 0 : i32
    %c0_i32_1 = arith.constant 0 : i32
    return %c0_i32, %c0_i32_0 : i32, i32
  }
  func.func @transform_7(%arg0: i32) -> (i32, i32) {
    %c0_i32 = arith.constant 0 : i32
    %c0_i32_0 = arith.constant 0 : i32
    %c0_i32_1 = arith.constant 0 : i32
    return %c0_i32, %c0_i32_0 : i32, i32
  }
  func.func @transform_8(%arg0: i32) -> (i32, i32, i32) {
    %c0_i32 = arith.constant 0 : i32
    %c0_i32_0 = arith.constant 0 : i32
    %c0_i32_1 = arith.constant 0 : i32
    %c0_i32_2 = arith.constant 0 : i32
    return %c0_i32, %c0_i32_0, %c0_i32_1 : i32, i32, i32
  }
  func.func @transform_9(%arg0: i32) -> (i32, i32) {
    %c0_i32 = arith.constant 0 : i32
    %c0_i32_0 = arith.constant 0 : i32
    %c0_i32_1 = arith.constant 0 : i32
    return %c0_i32, %c0_i32_0 : i32, i32
  }
  func.func @transform_10(%arg0: i32) -> (i32, i32) {
    %c0_i32 = arith.constant 0 : i32
    %c0_i32_0 = arith.constant 0 : i32
    %c0_i32_1 = arith.constant 0 : i32
    return %c0_i32, %c0_i32_0 : i32, i32
  }
  func.func @transform_11(%arg0: i32) -> (i32, i32) {
    %c0_i32 = arith.constant 0 : i32
    %c0_i32_0 = arith.constant 0 : i32
    %c0_i32_1 = arith.constant 0 : i32
    return %c0_i32, %c0_i32_0 : i32, i32
  }
  func.func @transform_12(%arg0: i32) -> (i32, i32) {
    %c0_i32 = arith.constant 0 : i32
    %c0_i32_0 = arith.constant 0 : i32
    %c0_i32_1 = arith.constant 0 : i32
    return %c0_i32, %c0_i32_0 : i32, i32
  }
  func.func @transform_13(%arg0: i32) -> (i32, i32, i32) {
    %c0_i32 = arith.constant 0 : i32
    %c0_i32_0 = arith.constant 0 : i32
    %c0_i32_1 = arith.constant 0 : i32
    %c0_i32_2 = arith.constant 0 : i32
    return %c0_i32, %c0_i32_0, %c0_i32_1 : i32, i32, i32
  }
  func.func @transform_14(%arg0: i32) -> (i32, i32) {
    %c0_i32 = arith.constant 0 : i32
    %c0_i32_0 = arith.constant 0 : i32
    %c0_i32_1 = arith.constant 0 : i32
    return %c0_i32, %c0_i32_0 : i32, i32
  }
  func.func @transform_15(%arg0: i32) -> (i32, i32) {
    %c0_i32 = arith.constant 0 : i32
    %c0_i32_0 = arith.constant 0 : i32
    %c0_i32_1 = arith.constant 0 : i32
    return %c0_i32, %c0_i32_0 : i32, i32
  }
  func.func @transform_16(%arg0: i32) -> (i32, i32) {
    %c0_i32 = arith.constant 0 : i32
    %c0_i32_0 = arith.constant 0 : i32
    %c0_i32_1 = arith.constant 0 : i32
    return %c0_i32, %c0_i32_0 : i32, i32
  }
  func.func @transform_17(%arg0: i32) -> (i32, i32) {
    %c0_i32 = arith.constant 0 : i32
    %c0_i32_0 = arith.constant 0 : i32
    %c0_i32_1 = arith.constant 0 : i32
    return %c0_i32, %c0_i32_0 : i32, i32
  }
  func.func @transform_18(%arg0: i32) -> (i32, i32) {
    %c0_i32 = arith.constant 0 : i32
    %c0_i32_0 = arith.constant 0 : i32
    %c0_i32_1 = arith.constant 0 : i32
    return %c0_i32, %c0_i32_0 : i32, i32
  }
  func.func @transform_19(%arg0: i32) -> (i32, i32) {
    %c0_i32 = arith.constant 0 : i32
    %c0_i32_0 = arith.constant 0 : i32
    return %arg0, %c0_i32 : i32, i32
  }
  func.func @transform_20(%arg0: i32) -> (i32, i32, i32) {
    %c0_i32 = arith.constant 0 : i32
    %c0_i32_0 = arith.constant 0 : i32
    %c0_i32_1 = arith.constant 0 : i32
    return %arg0, %c0_i32, %c0_i32_0 : i32, i32, i32
  }
}

</mosaic_0001>

<bundles_post_ra>
// kernel: efficientvim_block.1
= control target key start
LH: loop header
LB: loop body
LE: loop exit
PB: predicated region body
PF: predicated region fallthrough
CT: control target
= control target key end

     0   :  { %s8439_s0 = inlined_call_operand.vmem [shape: f32[128,32], index: 0, kind: input, shape index: {}]   ;;  %s8440_s1 = inlined_call_operand.vmem [shape: f32[128,9], index: 1, kind: input, shape index: {}]   ;;  %s8441_s2 = inlined_call_operand.vmem [shape: f32[4,1,32], index: 2, kind: input, shape index: {}]   ;;  %s8442_s3 = inlined_call_operand.vmem [shape: f32[9,1,32], index: 3, kind: input, shape index: {}]   ;;  %s8443_s4 = inlined_call_operand.vmem [shape: f32[1,32], index: 4, kind: input, shape index: {}]   ;;  %s8444_s5 = inlined_call_operand.vmem [shape: f32[1,32], index: 5, kind: input, shape index: {}]   ;;  %s8445_s6 = inlined_call_operand.vmem [shape: f32[1,32], index: 6, kind: input, shape index: {}]   ;;  %s8446_s7 = inlined_call_operand.vmem [shape: bf16[32,48], index: 7, kind: input, shape index: {}]   ;;  %s8447_s8 = inlined_call_operand.vmem [shape: f32[9,1,48], index: 8, kind: input, shape index: {}]   ;;  %s8448_s9 = inlined_call_operand.vmem [shape: f32[1,16], index: 9, kind: input, shape index: {}]   ;;  %s8449_s10 = inlined_call_operand.vmem [shape: bf16[32,64], index: 10, kind: input, shape index: {}]   ;;  %s8450_s11 = inlined_call_operand.<no memory space> [shape: f32[1,1], index: 11, kind: input, shape index: {}]   ;;  %s8451_s12 = inlined_call_operand.vmem [shape: bf16[32,32], index: 12, kind: input, shape index: {}]   ;;  %s8452_s13 = inlined_call_operand.vmem [shape: f32[9,1,32], index: 13, kind: input, shape index: {}]   ;;  %s8453_s14 = inlined_call_operand.vmem [shape: f32[1,32], index: 14, kind: input, shape index: {}]   ;;  %s8454_s15 = inlined_call_operand.vmem [shape: bf16[32,128], index: 15, kind: input, shape index: {}]   ;;  %s8455_s16 = inlined_call_operand.vmem [shape: f32[1,128], index: 16, kind: input, shape index: {}]   ;;  %s8456_s17 = inlined_call_operand.vmem [shape: bf16[128,32], index: 17, kind: input, shape index: {}]   ;;  %s8457_s18 = inlined_call_operand.vmem [shape: f32[1,32], index: 18, kind: input, shape index: {}]   ;;  %s8458_s19 = inlined_call_operand.hbm [shape: f32[128,32], index: 19, kind: output, shape index: {0}]   ;;  %s8459_s20 = inlined_call_operand.hbm [shape: f32[2,16,32], index: 20, kind: output, shape index: {1}]  }
   0x1   :  { %8791 = sst [smem:[#allocation161_spill]] %s8439_s0  ;;  %v26_v0 = vstv %s8450_s11 }
   0x2   :  { %8792 = sst [smem:[#allocation162_spill]] %s8440_s1  ;;  %27 = vst [vmem:[#allocation2] sm:$0x1] %v26_v0 }
   0x3   :  { %8793 = sst [smem:[#allocation163_spill]] %s8441_s2 }
   0x4   :  { %8794 = sst [smem:[#allocation164_spill]] %s8442_s3 }
   0x5   :  { %8795 = sst [smem:[#allocation165_spill]] %s8443_s4 }
   0x6   :  { %28 = vsyncpa [#allocation4], 0  ;;  %s8796_s2 = sld [smem:[#allocation162_spill]]  ;;  %v8479_v2 = vmov 3   ;;  %v8485_v3 = vmov 2   ;;  %v8469_v4 = vmov 1  }
   0x7   :  { %4210 = vset.pattern.permute.xlu0 %v8479_v2  ;;  %4209 = vset.pattern.permute.xlu2 %v8485_v3  ;;  %v8475_v6 = vmov 0  }
   0x8   :  { %4208 = vset.pattern.permute.xlu1 %v8469_v4 }
   0xc   :  { %v69_v1 = vld [vmem:[%s8796_s2] sm:$0xff]  ;;  %v70_v5 = vld [vmem:[%s8796_s2 + $0x8] sm:$0xff] }
   0xd   :  { %547 = vperm.xlu0 %4210, %v69_v1   ;;  %430 = vperm.xlu2 %4209, %v69_v1  }
   0xe   :  { %280 = vperm.xlu1 %4208, %v69_v1  }
  0x15   :  { %4211 = vset.pattern.permute.xlu0 %v8475_v6  ;;  %434 = vperm.xlu2 %4209, %v70_v5  }
  0x16   :  { %284 = vperm.xlu1 %4208, %v70_v5   ;;  %165 = vperm.xlu0 %4211, %v69_v1  }
  0x17   :  { %29 = vsyncpa [#allocation6], 0  ;;  %v8473_v7 = vmov 5   ;;  %v71_v8 = vld [vmem:[%s8796_s2 + $0x10] sm:$0xff]  ;;  %v8467_v9 = vmov 6   ;;  %v8487_v10 = vmov 7   ;;  %v144_v21 = vlaneseq }
  0x18   :  { %v8477_v11 = vmov 8   ;;  %v72_v12 = vld [vmem:[%s8796_s2 + $0x18] sm:$0xff]  ;;  %v4664_v13 = vld [vmem:[%s8796_s2 + $0x20] sm:$0xff]  ;;  %v4672_v14 = vld [vmem:[%s8796_s2 + $0x28] sm:$0xff]  ;;  %s8803_s22 = sld [smem:[#allocation161_spill]]  ;;  %vm1223_vm2 = vcmask 261120  }
  0x19   :  { %v4730_v28 = vshrl.u32 %v144_v21, 7  ;;  %s8811_s4 = sld [smem:[#allocation164_spill]]  ;;  %s4521_s27 = smov [#allocation5]  }
  0x1a   :  { %s8821_s23 = sld [smem:[#allocation163_spill]] }
  0x1b   :  { %vm146_vm0 = vcmp.lt.s32.totalorder %v4730_v28, 1  ;;  %vm412_vm1 = vcmp.lt.s32.totalorder %v4730_v28, 7  ;;  %s8825_s21 = sld [smem:[#allocation165_spill]] }
  0x1d   :  { %4213 = vset.pattern.permute.xlu2 %v8473_v7 }
  0x1e   :  { %4212 = vset.pattern.permute.xlu1 %v8479_v2  ;;  %170 = vperm.xlu0 %4211, %v70_v5   ;;  %v4708_v22 = vld [vmem:[%s8803_s22 + $0x70] sm:$0xff]  ;;  %v4715_v24 = vld [vmem:[%s8803_s22 + $0x8] sm:$0xff]  ;;  %v4722_v26 = vld [vmem:[%s8803_s22 + $0x78] sm:$0xff] }
  0x1f   :  { %701 = vperm.xlu2 %4213, %v69_v1   ;;  %551 = vperm.xlu1 %4212, %v70_v5   ;;  %8804 = vst [vmem:[#allocation15_spill] sm:$0xff] %v4708_v22  ;;  %v4728_v27 = vld [vmem:[%s8803_s22] sm:$0xff]  ;;  %v143_v29 = vrot.slane %v4722_v26, 7  ;;  %v8466_v30 = vrot.slane %v4708_v22, 7  ;;  %v397_v32 = vrot.slane %v4715_v24, 1  ;;  %v129_v38 = vrot.slane %v4715_v24, 7 }
  0x20   :  { %8807 = vst [vmem:[#allocation18_spill] sm:$0xff] %v4722_v26  ;;  %v396_v33 = vrot.slane %v4728_v27, 1  ;;  %v128_v35 = vrot.slane %v4728_v27, 7  ;;  %v4760_v39 = vld [vmem:[%s8811_s4 + $0x1] ss:$0 sm:$0xff]  ;;  %v8465_v40 = vrot.slane %v4722_v26, 1 }
  0x21   :  { %v4750_v36 = vsel %vm146_vm0, %v8466_v30, %v143_v29  ;;  %v4774_v44 = vld [vmem:[%s8811_s4] ss:$0 sm:$0xff]  ;;  %v4804_v54 = vld [vmem:[%s8811_s4 + $0x2] ss:$0 sm:$0xff]  ;;  %v4815_v60 = vld [vmem:[%s8811_s4 + $0x3] ss:$0 sm:$0xff] }
  0x22   :  { %8809 = vst [vmem:[#allocation20_spill] sm:$0xff] %v4750_v36  ;;  %v4754_v37 = vsel %vm412_vm1, %v396_v33, %v397_v32  ;;  %v4765_v41 = vsel %vm146_vm0, %v143_v29, %v128_v35  ;;  %v4788_v50 = vsel %vm146_vm0, %v128_v35, %v129_v38  ;;  %v4799_v53 = vsel %vm412_vm1, %v8465_v40, %v396_v33  ;;  %v4820_v61 = vld [vmem:[%s8803_s22 + $0x10] sm:$0xff] }
  0x23   :  { %8810 = vst [vmem:[#allocation21_spill] sm:$0xff] %v4754_v37  ;;  %v398_v63 = vrot.slane %v4820_v61, 1  ;;  %v4842_v33 = vld [vmem:[%s8796_s2 + $0x30] sm:$0xff] }
  0x24   :  { %8812 = vst [vmem:[#allocation22_spill] sm:$0xff] %v4765_v41  ;;  %v5311_v22 = vld [vmem:[%s8803_s22 + $0x30] sm:$0xff] }
  0x25   :  { %8816 = vst [vmem:[#allocation26_spill] sm:$0xff] %v4799_v53  ;;  %v4837_v29 = vsel %vm412_vm1, %v397_v32, %v398_v63  ;;  %v8472_v32 = vrot.slane %v4820_v61, 7 }
  0x26   :  { %175 = vperm.xlu0 %4211, %v71_v8   ;;  %8818 = vst [vmem:[#allocation28_spill] sm:$0xff] %v4842_v33 }
  0x27   :  { %4215 = vset.pattern.permute.xlu2 %v8467_v9  ;;  %4214 = vset.pattern.permute.xlu1 %v8473_v7 }
  0x28   :  { %818 = vperm.xlu2 %4215, %v69_v1   ;;  %705 = vperm.xlu1 %4214, %v70_v5  }
  0x2e   :  { %4220 = vset.pattern.permute.xlu0 %v8467_v9 }
  0x2f   :  { %822 = vperm.xlu0 %4220, %v70_v5  }
  0x30   :  { %4217 = vset.pattern.permute.xlu2 %v8487_v10  ;;  %4216 = vset.pattern.permute.xlu1 %v8487_v10 }
  0x31   :  { %939 = vperm.xlu2 %4217, %v70_v5   ;;  %935 = vperm.xlu1 %4216, %v69_v1  }
  0x37   :  { %826 = vperm.xlu0 %4220, %v71_v8  }
  0x39   :  { %4219 = vset.pattern.permute.xlu2 %v8477_v11  ;;  %4218 = vset.pattern.permute.xlu1 %v8477_v11 }
  0x3a   :  { %1056 = vperm.xlu2 %4219, %v70_v5   ;;  %1052 = vperm.xlu1 %4218, %v69_v1   ;;  %v4829_v5 = vld [vmem:[%s8803_s22 + $0x18] sm:$0xff] }
  0x3f   :  { %4229 = vset.pattern.permute.xlu0 %v8485_v3 }
  0x40   :  { %442 = vperm.xlu0 %4229, %v72_v12  }
  0x42   :  { %4222 = vset.pattern.permute.xlu2 %v8469_v4  ;;  %4221 = vset.pattern.permute.xlu1 %v8475_v6 }
  0x43   :  { %288 = vperm.xlu2 %4222, %v71_v8   ;;  %180 = vperm.xlu1 %4221, %v72_v12  }
  0x48   :  { %446 = vperm.xlu0 %4229, %v4664_v13  }
  0x4b   :  { %4224 = vset.pattern.permute.xlu2 %v8485_v3  ;;  %4223 = vset.pattern.permute.xlu1 %v8469_v4 }
  0x4c   :  { %438 = vperm.xlu2 %4224, %v71_v8   ;;  %292 = vperm.xlu1 %4223, %v72_v12  }
  0x50   :  { %4241 = vset.pattern.permute.xlu0 %v8473_v7 }
  0x51   :  { %721 = vperm.xlu0 %4241, %v4672_v14  }
  0x54   :  { %4226 = vset.pattern.permute.xlu2 %v8479_v2  ;;  %4225 = vset.pattern.permute.xlu1 %v8479_v2 }
  0x55   :  { %559 = vperm.xlu2 %4226, %v72_v12   ;;  %555 = vperm.xlu1 %4225, %v71_v8  }
  0x59   :  { %4242 = vset.pattern.permute.xlu0 %v8477_v11 }
  0x5a   :  { %1064 = vperm.xlu0 %4242, %v72_v12  }
  0x5d   :  { %4228 = vset.pattern.permute.xlu2 %v8473_v7  ;;  %4227 = vset.pattern.permute.xlu1 %v8473_v7 }
  0x5e   :  { %713 = vperm.xlu2 %4228, %v72_v12   ;;  %709 = vperm.xlu1 %4227, %v71_v8  }
  0x66   :  { %4231 = vset.pattern.permute.xlu2 %v8487_v10  ;;  %4230 = vset.pattern.permute.xlu1 %v8467_v9 }
  0x67   :  { %943 = vperm.xlu2 %4231, %v71_v8   ;;  %830 = vperm.xlu1 %4230, %v72_v12   ;;  %v4683_v15 = vpop.permute.xlu2 %430 }
  0x68   :  { %8797 = vst [vmem:[#allocation9_spill] sm:$0xff] %v4683_v15  ;;  %v493_v62 = vmul.f32 %v4683_v15, %v4799_v53 }
  0x6f   :  { %4233 = vset.pattern.permute.xlu2 %v8477_v11  ;;  %4232 = vset.pattern.permute.xlu1 %v8487_v10  ;;  %v4687_v16 = vpop.permute.xlu2 %434 }
  0x70   :  { %1060 = vperm.xlu2 %4233, %v71_v8   ;;  %8798 = vst [vmem:[#allocation10_spill] sm:$0xff] %v4687_v16  ;;  %947 = vperm.xlu1 %4232, %v72_v12   ;;  %v494_v49 = vmul.f32 %v4687_v16, %v4754_v37 }
  0x72   :  { %v515_v59 = vmul.f32 %v4804_v54, %v494_v49 }
  0x78   :  { %4236 = vset.pattern.permute.xlu2 %v8469_v4  ;;  %4234 = vset.pattern.permute.xlu1 %v8475_v6 }
  0x79   :  { %300 = vperm.xlu2 %4236, %v4672_v14   ;;  %v4692_v17 = vpop.permute.xlu2 %701  ;;  %185 = vperm.xlu1 %4234, %v4664_v13  }
  0x7a   :  { %8799 = vst [vmem:[#allocation11_spill] sm:$0xff] %v4692_v17 }
  0x7f   :  { %v4695_v18 = vpop.permute.xlu0 %547 }
  0x80   :  { %8800 = vst [vmem:[#allocation12_spill] sm:$0xff] %v4695_v18  ;;  %v4697_v19 = vpop.permute.xlu1 %280  ;;  %v610_v12 = vmul.f32 %v4695_v18, %v4765_v41 }
  0x81   :  { %8801 = vst [vmem:[#allocation13_spill] sm:$0xff] %v4697_v19  ;;  %4238 = vset.pattern.permute.xlu2 %v8479_v2  ;;  %4235 = vset.pattern.permute.xlu1 %v8469_v4  ;;  %v343_v43 = vmul.f32 %v4697_v19, %v4722_v26 }
  0x82   :  { %563 = vperm.xlu2 %4238, %v4664_v13   ;;  %v4702_v20 = vpop.permute.xlu2 %818  ;;  %296 = vperm.xlu1 %4235, %v4664_v13  }
  0x83   :  { %8802 = vst [vmem:[#allocation14_spill] sm:$0xff] %v4702_v20  ;;  %v364_v56 = vmul.f32 %v4760_v39, %v343_v43  ;;  %v514_v43 = vmul.f32 %v4804_v54, %v493_v62 }
  0x88   :  { %v4710_v23 = vpop.permute.xlu1 %284  ;;  %v4717_v25 = vpop.permute.xlu0 %165 }
  0x89   :  { %8805 = vst [vmem:[#allocation16_spill] sm:$0xff] %v4710_v23  ;;  %v344_v34 = vmul.f32 %v4710_v23, %v4728_v27  ;;  %v243_v45 = vmul.f32 %v4717_v25, %v4750_v36 }
  0x8a   :  { %8806 = vst [vmem:[#allocation17_spill] sm:$0xff] %v4717_v25  ;;  %4240 = vset.pattern.permute.xlu2 %v8473_v7  ;;  %4237 = vset.pattern.permute.xlu1 %v8485_v3 }
  0x8b   :  { %717 = vperm.xlu2 %4240, %v4664_v13   ;;  %v4736_v31 = vpop.permute.xlu2 %939  ;;  %450 = vperm.xlu1 %4237, %v4672_v14   ;;  %v365_v46 = vmul.f32 %v4760_v39, %v344_v34  ;;  %v263_v57 = vmul.f32 %v4774_v44, %v243_v45  ;;  %v4847_v34 = vld [vmem:[%s8811_s4 + $0x4] ss:$0 sm:$0xff]  ;;  %v8471_v45 = vrot.slane %v4829_v5, 1 }
  0x8c   :  { %8808 = vst [vmem:[#allocation19_spill] sm:$0xff] %v4736_v31 }
  0x8d   :  { %v380_v21 = vadd.f32 %v364_v56, %v263_v57  ;;  %v4868_v57 = vld [vmem:[%s8811_s4 + $0x5] ss:$0 sm:$0xff] }
  0x8f   :  { %v530_v56 = vadd.f32 %v514_v43, %v380_v21  ;;  %v668_v21 = vmul.f32 %v4847_v34, %v4728_v27 }
  0x90   :  { %v4767_v42 = vpop.permute.xlu0 %170 }
  0x91   :  { %8813 = vst [vmem:[#allocation23_spill] sm:$0xff] %v4767_v42  ;;  %v244_v47 = vmul.f32 %v4767_v42, %v4765_v41  ;;  %v4781_v48 = vpop.permute.xlu1 %551 }
  0x92   :  { %8814 = vst [vmem:[#allocation24_spill] sm:$0xff] %v4781_v48  ;;  %v611_v55 = vmul.f32 %v4781_v48, %v4788_v50 }
  0x93   :  { %4245 = vset.pattern.permute.xlu2 %v8487_v10  ;;  %v264_v51 = vmul.f32 %v4774_v44, %v244_v47  ;;  %4239 = vset.pattern.permute.xlu1 %v8479_v2 }
  0x94   :  { %955 = vperm.xlu2 %4245, %v4672_v14   ;;  %v4793_v52 = vpop.permute.xlu2 %1056  ;;  %567 = vperm.xlu1 %4239, %v4672_v14   ;;  %v632_v1 = vmul.f32 %v4815_v60, %v611_v55  ;;  %v631_v55 = vmul.f32 %v4815_v60, %v610_v12 }
  0x95   :  { %8815 = vst [vmem:[#allocation25_spill] sm:$0xff] %v4793_v52  ;;  %v381_v58 = vadd.f32 %v365_v46, %v264_v51  ;;  %v669_v51 = vmul.f32 %v4847_v34, %v4715_v24 }
  0x96   :  { %v647_v43 = vadd.f32 %v631_v55, %v530_v56  ;;  %v4911_v55 = vld [vmem:[%s8796_s2 + $0x38] sm:$0xff]  ;;  %v764_v56 = vmul.f32 %v4692_v17, %v4754_v37 }
  0x97   :  { %v531_v0 = vadd.f32 %v515_v59, %v381_v58  ;;  %v4874_v58 = vsel %vm412_vm1, %v398_v63, %v8471_v45  ;;  %v4880_v59 = vsel %vm146_vm0, %v129_v38, %v8472_v32  ;;  %v101_v63 = vld [vmem:[%s8821_s23] sm:$0x1]  ;;  %v4897_v38 = vld [vmem:[%s8811_s4 + $0x6] ss:$0 sm:$0xff]  ;;  %v4922_v45 = vld [vmem:[%s8811_s4 + $0x8] ss:$0 sm:$0xff] }
  0x98   :  { %v4831_v8 = vpop.permute.xlu0 %175  ;;  %v1116_v30 = vmul.f32 %v4793_v52, %v4874_v58  ;;  %v684_v2 = vadd.f32 %v668_v21, %v647_v43 }
  0x99   :  { %8817 = vst [vmem:[#allocation27_spill] sm:$0xff] %v4831_v8  ;;  %v648_v46 = vadd.f32 %v632_v1, %v531_v0  ;;  %v245_v62 = vmul.f32 %v4831_v8, %v4788_v50 }
  0x9a   :  { %v4849_v35 = vpop.permute.xlu1 %705  ;;  %v1137_v43 = vmul.f32 %v4922_v45, %v1116_v30 }
  0x9b   :  { %8819 = vst [vmem:[#allocation29_spill] sm:$0xff] %v4849_v35  ;;  %v765_v47 = vmul.f32 %v4849_v35, %v4837_v29  ;;  %v685_v12 = vadd.f32 %v669_v51, %v648_v46  ;;  %v999_v46 = vmul.f32 %v4736_v31, %v4820_v61  ;;  %v265_v32 = vmul.f32 %v4774_v44, %v245_v62 }
  0x9c   :  { %4248 = vset.pattern.permute.xlu2 %v8469_v4  ;;  %4243 = vset.pattern.permute.xlu1 %v8467_v9  ;;  %v108_v4 = vsub.f32 1.0, %v101_v63 }
  0x9d   :  { %304 = vperm.xlu2 %4248, %v4842_v33   ;;  %v4859_v49 = vpop.permute.xlu2 %288  ;;  %834 = vperm.xlu1 %4243, %v4664_v13   ;;  %v786_v0 = vmul.f32 %v4868_v57, %v765_v47  ;;  %v4902_v47 = vld [vmem:[%s8811_s4 + $0x7] ss:$0 sm:$0xff] }
  0x9e   :  { %8820 = vst [vmem:[#allocation30_spill] sm:$0xff] %v4859_v49  ;;  %v345_v1 = vmul.f32 %v4859_v49, %v4715_v24  ;;  %v1020_v18 = vmul.f32 %v4902_v47, %v999_v46  ;;  %v4941_v21 = vperm.slane %v108_v4, 0 }
  0x9f   :  { %v802_v6 = vadd.f32 %v786_v0, %v685_v12  ;;  %v785_v0 = vmul.f32 %v4868_v57, %v764_v56 }
  0xa0   :  { %v366_v7 = vmul.f32 %v4760_v39, %v345_v1  ;;  %v881_v1 = vmul.f32 %v4702_v20, %v4788_v50  ;;  %v4953_v50 = vld [vmem:[%s8821_s23] ss:$0 sm:$0xff] }
  0xa1   :  { %v4892_v40 = vpop.permute.xlu0 %822  ;;  %v801_v56 = vadd.f32 %v785_v0, %v684_v2 }
  0xa2   :  { %8822 = vst [vmem:[#allocation31_spill] sm:$0xff] %v4892_v40  ;;  %v882_v51 = vmul.f32 %v4892_v40, %v4880_v59  ;;  %v902_v4 = vmul.f32 %v4897_v38, %v881_v1  ;;  %v8828_v1 = vmov 8   ;;  %v8843_v40 = vrot.slane %v4820_v61, 7 }
  0xa3   :  { %v4917_v9 = vpop.permute.xlu1 %935 }
  0xa4   :  { %8823 = vst [vmem:[#allocation32_spill] sm:$0xff] %v4917_v9  ;;  %v903_v11 = vmul.f32 %v4897_v38, %v882_v51  ;;  %v998_v12 = vmul.f32 %v4917_v9, %v4715_v24  ;;  %v382_v51 = vadd.f32 %v366_v7, %v265_v32  ;;  %v918_v32 = vadd.f32 %v902_v4, %v801_v56 }
  0xa5   :  { %4250 = vset.pattern.permute.xlu2 %v8485_v3  ;;  %4244 = vset.pattern.permute.xlu1 %v8487_v10  ;;  %v8833_v56 = vmov 0  }
  0xa6   :  { %458 = vperm.xlu2 %4250, %v4911_v55   ;;  %v4930_v63 = vpop.permute.xlu2 %438  ;;  %v919_v15 = vadd.f32 %v903_v11, %v802_v6  ;;  %951 = vperm.xlu1 %4244, %v4664_v13   ;;  %v4948_v11 = vld [vmem:[%s8825_s21] ss:$0 sm:$0xff]  ;;  %v1019_v7 = vmul.f32 %v4902_v47, %v998_v12 }
  0xa7   :  { %8824 = vst [vmem:[#allocation33_spill] sm:$0xff] %v4930_v63  ;;  %v495_v62 = vmul.f32 %v4930_v63, %v4837_v29 }
  0xa8   :  { %v1036_v46 = vadd.f32 %v1020_v18, %v919_v15  ;;  %v113_v18 = vmul.f32 %v4941_v21, %v4715_v24  ;;  %v1035_v12 = vadd.f32 %v1019_v7, %v918_v32 }
  0xa9   :  { %v516_v6 = vmul.f32 %v4804_v54, %v495_v62  ;;  %v8827_v62 = vmov 3   ;;  %v4983_v4 = vpop.permute.xlu0 %826 }
  0xaa   :  { %v1153_v10 = vadd.f32 %v1137_v43, %v1036_v46  ;;  %8834 = vst [vmem:[#allocation38_spill] sm:$0xff] %v4983_v4 }
  0xab   :  { %v532_v3 = vadd.f32 %v516_v6, %v382_v51  ;;  %v8832_v6 = vmov 7  }
  0xac   :  { %v4957_v15 = vpop.permute.xlu1 %1052  ;;  %v1173_v30 = vadd.f32 %v4948_v11, %v1153_v10 }
  0xad   :  { %8826 = vst [vmem:[#allocation34_spill] sm:$0xff] %v4957_v15  ;;  %v1115_v2 = vmul.f32 %v4957_v15, %v4837_v29  ;;  %v8841_v15 = vmov 5  }
  0xae   :  { %4251 = vset.pattern.permute.xlu2 %v8827_v62  ;;  %v1192_v0 = vmul.f32 %v4953_v50, %v1173_v30  ;;  %4246 = vset.pattern.permute.xlu1 %v8828_v1  ;;  %v8837_v30 = vmov 2  }
  0xaf   :  { %575 = vperm.xlu2 %4251, %v4911_v55   ;;  %v1136_v43 = vmul.f32 %v4922_v45, %v1115_v2  ;;  %1072 = vperm.xlu1 %4246, %v4672_v14   ;;  %v4976_v51 = vpop.permute.xlu2 %559  ;;  %v4999_v2 = vld [vmem:[%s8796_s2 + $0x40] sm:$0xff] }
  0xb0   :  { %v4970_v24 = vadd.f32 %v1192_v0, %v113_v18  ;;  %8830 = vst [vmem:[#allocation36_spill] sm:$0xff] %v4976_v51 }
  0xb1   :  { %v4972_v10 = vadd.f32 %v1136_v43, %v1035_v12 }
  0xb2   :  { %8829 = vst [vmem:[#allocation35_spill] sm:$0xff] %v4970_v24  ;;  %v1227_v29 = vsel %vm1223_vm2, %v4970_v24, 0.0  ;;  %v4994_v32 = vpop.permute.xlu0 %442 }
  0xb3   :  { %1228 = vadd.xlane.f32.xlu0 %v1227_v29  ;;  %8838 = vst [vmem:[#allocation41_spill] sm:$0xff] %v4994_v32  ;;  %v131_v29 = vrot.slane %v4829_v5, 7 }
  0xb5   :  { %v4978_v46 = vpop.permute.xlu1 %180  ;;  %v5023_v35 = vsel %vm146_vm0, %v8843_v40, %v131_v29 }
  0xb6   :  { %8831 = vst [vmem:[#allocation37_spill] sm:$0xff] %v4978_v46  ;;  %v246_v19 = vmul.f32 %v4978_v46, %v4880_v59  ;;  %v883_v20 = vmul.f32 %v4983_v4, %v5023_v35 }
  0xb7   :  { %4253 = vset.pattern.permute.xlu2 %v8832_v6  ;;  %4247 = vset.pattern.permute.xlu1 %v8833_v56 }
  0xb8   :  { %959 = vperm.xlu2 %4253, %v4842_v33   ;;  %200 = vperm.xlu1 %4247, %v4911_v55   ;;  %v4986_v7 = vpop.permute.xlu2 %713  ;;  %v266_v17 = vmul.f32 %v4774_v44, %v246_v19  ;;  %v904_v16 = vmul.f32 %v4897_v38, %v883_v20 }
  0xb9   :  { %8835 = vst [vmem:[#allocation39_spill] sm:$0xff] %v4986_v7 }
  0xba   :  { %v5012_v25 = vpop.permute.xlu0 %446 }
  0xbb   :  { %8842 = vst [vmem:[#allocation44_spill] sm:$0xff] %v5012_v25 }
  0xbe   :  { %v4988_v18 = vpop.permute.xlu1 %292 }
  0xbf   :  { %8836 = vst [vmem:[#allocation40_spill] sm:$0xff] %v4988_v18  ;;  %v346_v52 = vmul.f32 %v4988_v18, %v4820_v61 }
  0xc0   :  { %4255 = vset.pattern.permute.xlu2 %v8828_v1  ;;  %4249 = vset.pattern.permute.xlu1 %v8837_v30 }
  0xc1   :  { %1080 = vperm.xlu2 %4255, %v4911_v55   ;;  %454 = vperm.xlu1 %4249, %v4842_v33   ;;  %v5003_v12 = vpop.permute.xlu2 %943 }
  0xc2   :  { %8840 = vst [vmem:[#allocation43_spill] sm:$0xff] %v5003_v12 }
  0xc3   :  { %v5057_v4 = vpop.permute.xlu0 %721 }
  0xc4   :  { %8847 = vst [vmem:[#allocation47_spill] sm:$0xff] %v5057_v4 }
  0xc7   :  { %v5001_v0 = vpop.permute.xlu1 %555 }
  0xc8   :  { %8839 = vst [vmem:[#allocation42_spill] sm:$0xff] %v5001_v0  ;;  %v612_v43 = vmul.f32 %v5001_v0, %v4880_v59  ;;  %v496_v59 = vmul.f32 %v4994_v32, %v4874_v58 }
  0xc9   :  { %4258 = vset.pattern.permute.xlu2 %v8837_v30  ;;  %4252 = vset.pattern.permute.xlu1 %v8841_v15 }
  0xca   :  { %462 = vperm.xlu2 %4258, %v4999_v2   ;;  %v633_v42 = vmul.f32 %v4815_v60, %v612_v43  ;;  %729 = vperm.xlu1 %4252, %v4911_v55   ;;  %v5028_v43 = vld [vmem:[%s8803_s22 + $0x20] sm:$0xff]  ;;  %v517_v23 = vmul.f32 %v4804_v54, %v496_v59  ;;  %v5046_v32 = vpop.permute.xlu2 %1060  ;;  %v613_v59 = vmul.f32 %v4976_v51, %v5023_v35 }
  0xcb   :  { %v400_v40 = vrot.slane %v5028_v43, 1  ;;  %8845 = vst [vmem:[#allocation46_spill] sm:$0xff] %v5046_v32  ;;  %v8880_v36 = vrot.slane %v5028_v43, 7 }
  0xcc   :  { %v649_v31 = vadd.f32 %v633_v42, %v532_v3  ;;  %v367_v3 = vmul.f32 %v4760_v39, %v346_v52  ;;  %v670_v42 = vmul.f32 %v4847_v34, %v4820_v61  ;;  %v1000_v52 = vmul.f32 %v5003_v12, %v4829_v5 }
  0xcd   :  { %v8536_v12 = vrot.slane %v5028_v43, 7 }
  0xce   :  { %v383_v19 = vadd.f32 %v367_v3, %v266_v17  ;;  %v686_v18 = vadd.f32 %v670_v42, %v649_v31 }
  0xd0   :  { %v5039_v9 = vpop.permute.xlu1 %709  ;;  %v533_v31 = vadd.f32 %v517_v23, %v383_v19  ;;  %v5077_v23 = vsel %vm146_vm0, %v131_v29, %v8536_v12  ;;  %v1172_v12 = vadd.f32 %v4948_v11, %v4972_v10 }
  0xd1   :  { %8844 = vst [vmem:[#allocation45_spill] sm:$0xff] %v5039_v9  ;;  %v766_v48 = vmul.f32 %v5039_v9, %v4874_v58  ;;  %v8846_v58 = vrot.slane %v4829_v5, 1  ;;  %v5067_v9 = vld [vmem:[%s8803_s22 + $0x28] sm:$0xff] }
  0xd2   :  { %4260 = vset.pattern.permute.xlu2 %v8833_v56  ;;  %4254 = vset.pattern.permute.xlu1 %v8828_v1  ;;  %v133_v8 = vrot.slane %v5067_v9, 7 }
  0xd3   :  { %v787_v46 = vmul.f32 %v4868_v57, %v766_v48  ;;  %1076 = vperm.xlu1 %4254, %v4842_v33   ;;  %v424_v20 = vsel %vm412_vm1, %v8846_v58, %v400_v40  ;;  %v1021_v48 = vmul.f32 %v4902_v47, %v1000_v52  ;;  %v634_v58 = vmul.f32 %v4815_v60, %v613_v59 }
  0xd4   :  { %v1117_v17 = vmul.f32 %v5046_v32, %v424_v20  ;;  %v767_v52 = vmul.f32 %v4986_v7, %v424_v20  ;;  %v5269_v7 = vld [vmem:[%s8796_s2 + $0x70] sm:$0xff]  ;;  %v5304_v53 = vsel %vm146_vm0, %v8880_v36, %v133_v8  ;;  %v8883_v36 = vrot.slane %v5067_v9, 1 }
  0xd5   :  { %v803_v3 = vadd.f32 %v787_v46, %v686_v18  ;;  %v671_v46 = vmul.f32 %v4847_v34, %v4829_v5  ;;  %v650_v18 = vadd.f32 %v634_v58, %v533_v31 }
  0xd6   :  { %v1138_v0 = vmul.f32 %v4922_v45, %v1117_v17  ;;  %v5095_v17 = vpop.permute.xlu0 %1064  ;;  %v788_v31 = vmul.f32 %v4868_v57, %v767_v52 }
  0xd7   :  { %v920_v42 = vadd.f32 %v904_v16, %v803_v3  ;;  %v8535_v16 = vrot.slane %v5067_v9, 1  ;;  %8849 = vst [vmem:[#allocation49_spill] sm:$0xff] %v5095_v17  ;;  %v687_v3 = vadd.f32 %v671_v46, %v650_v18  ;;  %v8853_v46 = vmov 1  }
  0xd9   :  { %v5071_v63 = vpop.permute.xlu1 %830  ;;  %v1037_v51 = vadd.f32 %v1021_v48, %v920_v42  ;;  %v5093_v29 = vsel %vm412_vm1, %v400_v40, %v8535_v16  ;;  %v5106_v42 = vld [vmem:[%s8796_s2 + $0x48] sm:$0xff]  ;;  %v804_v58 = vadd.f32 %v788_v31, %v687_v3  ;;  %v5110_v16 = vpop.permute.xlu2 %300  ;;  %v112_v3 = vmul.f32 %v4941_v21, %v4728_v27 }
  0xda   :  { %8848 = vst [vmem:[#allocation48_spill] sm:$0xff] %v5071_v63  ;;  %v884_v59 = vmul.f32 %v5071_v63, %v5077_v23  ;;  %v1191_v31 = vmul.f32 %v4953_v50, %v1172_v12 }
  0xdb   :  { %4256 = vset.pattern.permute.xlu1 %v8833_v56  ;;  %v5083_v19 = vadd.f32 %v1138_v0, %v1037_v51  ;;  %v1118_v0 = vmul.f32 %v5095_v17, %v5093_v29  ;;  %8851 = vst [vmem:[#allocation51_spill] sm:$0xff] %v5106_v42 }
  0xdc   :  { %205 = vperm.xlu1 %4256, %v4999_v2   ;;  %v905_v51 = vmul.f32 %v4897_v38, %v884_v59  ;;  %8852 = vst [vmem:[#allocation52_spill] sm:$0xff] %v5110_v16 }
  0xdd   :  { %v1139_v59 = vmul.f32 %v4922_v45, %v1118_v0 }
  0xde   :  { %v921_v18 = vadd.f32 %v905_v51, %v804_v58  ;;  %v115_v51 = vmul.f32 %v4941_v21, %v4829_v5 }
  0xe1   :  { %v5130_v10 = vpop.permute.xlu2 %563 }
  0xe2   :  { %v5101_v48 = vpop.permute.xlu1 %947  ;;  %8856 = vst [vmem:[#allocation55_spill] sm:$0xff] %v5130_v10 }
  0xe3   :  { %8850 = vst [vmem:[#allocation50_spill] sm:$0xff] %v5101_v48  ;;  %v1001_v40 = vmul.f32 %v5101_v48, %v5028_v43 }
  0xe4   :  { %4257 = vset.pattern.permute.xlu1 %v8853_v46 }
  0xe5   :  { %v1022_v52 = vmul.f32 %v4902_v47, %v1001_v40  ;;  %316 = vperm.xlu1 %4257, %v5106_v42   ;;  %v5127_v40 = vadd.f32 %v1191_v31, %v112_v3  ;;  %v614_v31 = vmul.f32 %v5130_v10, %v5077_v23 }
  0xe7   :  { %v1038_v17 = vadd.f32 %v1022_v52, %v921_v18  ;;  %8855 = vst [vmem:[#allocation54_spill] sm:$0xff] %v5127_v40  ;;  %v497_v18 = vmul.f32 %v5012_v25, %v424_v20 }
  0xe9   :  { %v1155_v32 = vadd.f32 %v1139_v59, %v1038_v17 }
  0xeb   :  { %v5121_v48 = vpop.permute.xlu1 %185  ;;  %v1175_v58 = vadd.f32 %v4948_v11, %v1155_v32  ;;  %v1224_v32 = vsel %vm1223_vm2, %v5127_v40, 0.0 }
  0xec   :  { %8854 = vst [vmem:[#allocation53_spill] sm:$0xff] %v5121_v48  ;;  %v247_v12 = vmul.f32 %v5121_v48, %v5023_v35  ;;  %v518_v35 = vmul.f32 %v4804_v54, %v497_v18 }
  0xed   :  { %v1194_v0 = vmul.f32 %v4953_v50, %v1175_v58  ;;  %4259 = vset.pattern.permute.xlu1 %v8837_v30  ;;  %v5153_v58 = vpop.permute.xlu2 %717 }
  0xee   :  { %466 = vperm.xlu1 %4259, %v5106_v42   ;;  %v267_v59 = vmul.f32 %v4774_v44, %v247_v12  ;;  %8859 = vst [vmem:[#allocation58_spill] sm:$0xff] %v5153_v58  ;;  %v768_v12 = vmul.f32 %v5153_v58, %v5093_v29 }
  0xef   :  { %v5133_v27 = vadd.f32 %v1194_v0, %v115_v51  ;;  %v635_v0 = vmul.f32 %v4815_v60, %v614_v31  ;;  %v8861_v31 = vmov 6  }
  0xf0   :  { %v789_v18 = vmul.f32 %v4868_v57, %v768_v12  ;;  %v114_v12 = vmul.f32 %v4941_v21, %v4820_v61 }
  0xf1   :  { %8857 = vst [vmem:[#allocation56_spill] sm:$0xff] %v5133_v27  ;;  %v1233_v17 = vsel %vm1223_vm2, %v5133_v27, 0.0 }
  0xf2   :  { %1234 = vadd.xlane.f32.xlu0 %v1233_v17  ;;  %v672_v17 = vmul.f32 %v4847_v34, %v5028_v43 }
  0xf3   :  { %1225 = vadd.xlane.f32.xlu2 %v1224_v32 }
  0xf4   :  { %v5142_v52 = vpop.permute.xlu1 %296 }
  0xf5   :  { %8858 = vst [vmem:[#allocation57_spill] sm:$0xff] %v5142_v52  ;;  %v347_v3 = vmul.f32 %v5142_v52, %v4829_v5 }
  0xf6   :  { %4261 = vset.pattern.permute.xlu1 %v8841_v15 }
  0xf7   :  { %v368_v51 = vmul.f32 %v4760_v39, %v347_v3  ;;  %733 = vperm.xlu1 %4261, %v4999_v2  }
  0xf9   :  { %v384_v20 = vadd.f32 %v368_v51, %v267_v59  ;;  %v5171_v59 = vld [vmem:[%s8796_s2 + $0x58] sm:$0xff]  ;;  %v5218_v51 = vpop.permute.xlu2 %955 }
  0xfa   :  { %8860 = vst [vmem:[#allocation59_spill] sm:$0xff] %v5171_v59 }
  0xfb   :  { %v534_v5 = vadd.f32 %v518_v35, %v384_v20  ;;  %v5195_v35 = vld [vmem:[%s8796_s2 + $0x50] sm:$0xff]  ;;  %8862 = vst [vmem:[#allocation60_spill] sm:$0xff] %v5218_v51  ;;  %v1174_v20 = vadd.f32 %v4948_v11, %v5083_v19 }
  0xfd   :  { %v651_v32 = vadd.f32 %v635_v0, %v534_v5  ;;  %v1193_v5 = vmul.f32 %v4953_v50, %v1174_v20 }
  0xff   :  { %v688_v63 = vadd.f32 %v672_v17, %v651_v32  ;;  %737 = vperm.xlu1 %4261, %v5106_v42   ;;  %v5233_v17 = vadd.f32 %v1193_v5, %v114_v12 }
 0x101   :  { %v5162_v3 = vadd.f32 %v789_v18, %v688_v63  ;;  %v5189_v63 = vld [vmem:[%s8796_s2 + $0x68] sm:$0xff]  ;;  %v5226_v0 = vpop.permute.xlu2 %304  ;;  %8864 = vst [vmem:[#allocation62_spill] sm:$0xff] %v5233_v17  ;;  %v1230_v32 = vsel %vm1223_vm2, %v5233_v17, 0.0  ;;  %v5248_v18 = vpop.permute.xlu1 %450 }
 0x102   :  { %8863 = vst [vmem:[#allocation61_spill] sm:$0xff] %v5226_v0 }
 0x103   :  { %8867 = vst [vmem:[#allocation65_spill] sm:$0xff] %v5248_v18 }
 0x106   :  { %1068 = vperm.xlu0 %4242, %v4664_v13   ;;  %v5180_v13 = vld [vmem:[%s8796_s2 + $0x60] sm:$0xff] }
 0x107   :  { %4262 = vset.pattern.permute.xlu1 %v8832_v6 }
 0x108   :  { %967 = vperm.xlu1 %4262, %v4999_v2  }
 0x109   :  { %v5237_v19 = vpop.permute.xlu2 %458  ;;  %v5254_v12 = vpop.permute.xlu1 %567 }
 0x10a   :  { %8865 = vst [vmem:[#allocation63_spill] sm:$0xff] %v5237_v19 }
 0x10b   :  { %190 = vperm.xlu2 %4260, %v4672_v14   ;;  %8869 = vst [vmem:[#allocation67_spill] sm:$0xff] %v5254_v12 }
 0x10e   :  { %1096 = vperm.xlu0 %4242, %v5171_v59  }
 0x110   :  { %4263 = vset.pattern.permute.xlu1 %v8828_v1 }
 0x111   :  { %1084 = vperm.xlu1 %4263, %v4999_v2   ;;  %v5244_v61 = vpop.permute.xlu2 %575 }
 0x112   :  { %8866 = vst [vmem:[#allocation64_spill] sm:$0xff] %v5244_v61 }
 0x113   :  { %195 = vperm.xlu2 %4260, %v4842_v33  }
 0x116   :  { %4279 = vset.pattern.permute.xlu0 %v8827_v62 }
 0x117   :  { %595 = vperm.xlu0 %4279, %v5180_v13  }
 0x119   :  { %1088 = vperm.xlu1 %4263, %v5106_v42   ;;  %v5250_v20 = vpop.permute.xlu2 %959 }
 0x11a   :  { %8868 = vst [vmem:[#allocation66_spill] sm:$0xff] %v5250_v20 }
 0x11b   :  { %210 = vperm.xlu2 %4260, %v5106_v42  }
 0x11f   :  { %599 = vperm.xlu0 %4279, %v5189_v63  }
 0x121   :  { %4264 = vset.pattern.permute.xlu1 %v8833_v56  ;;  %v5257_v5 = vpop.permute.xlu2 %1080 }
 0x122   :  { %220 = vperm.xlu1 %4264, %v5171_v59   ;;  %8870 = vst [vmem:[#allocation68_spill] sm:$0xff] %v5257_v5  ;;  %v116_v5 = vmul.f32 %v4941_v21, %v5028_v43 }
 0x123   :  { %215 = vperm.xlu2 %4260, %v5195_v35  }
 0x126   :  { %v5288_v49 = vpop.xlane.xlu0 %1228 }
 0x127   :  { %4280 = vset.pattern.permute.xlu0 %v8841_v15 }
 0x128   :  { %725 = vperm.xlu0 %4280, %v4842_v33  }
 0x129   :  { %v5263_v58 = vpop.permute.xlu2 %462 }
 0x12a   :  { %4266 = vset.pattern.permute.xlu1 %v8853_v46  ;;  %8872 = vst [vmem:[#allocation70_spill] sm:$0xff] %v5263_v58 }
 0x12b   :  { %4265 = vset.pattern.permute.xlu2 %v8853_v46  ;;  %324 = vperm.xlu1 %4266, %v5171_v59  }
 0x12c   :  { %320 = vperm.xlu2 %4265, %v5195_v35  }
 0x130   :  { %749 = vperm.xlu0 %4280, %v5180_v13  }
 0x133   :  { %4268 = vset.pattern.permute.xlu1 %v8837_v30 }
 0x134   :  { %4267 = vset.pattern.permute.xlu2 %v8837_v30  ;;  %474 = vperm.xlu1 %4268, %v5171_v59  }
 0x135   :  { %470 = vperm.xlu2 %4267, %v5195_v35  }
 0x138   :  { %4281 = vset.pattern.permute.xlu0 %v8832_v6 }
 0x139   :  { %963 = vperm.xlu0 %4281, %v4911_v55  }
 0x13c   :  { %4270 = vset.pattern.permute.xlu1 %v8841_v15 }
 0x13d   :  { %4269 = vset.pattern.permute.xlu2 %v8861_v31  ;;  %741 = vperm.xlu1 %4270, %v5195_v35  }
 0x141   :  { %971 = vperm.xlu0 %4281, %v5106_v42  }
 0x145   :  { %745 = vperm.xlu1 %4270, %v5171_v59  }
 0x149   :  { %975 = vperm.xlu0 %4281, %v5195_v35  }
 0x14d   :  { %4271 = vset.pattern.permute.xlu1 %v8832_v6 }
 0x14e   :  { %979 = vperm.xlu1 %4271, %v5171_v59  }
 0x151   :  { %987 = vperm.xlu0 %4281, %v5189_v63  }
 0x156   :  { %4272 = vset.pattern.permute.xlu1 %v8828_v1 }
 0x157   :  { %1092 = vperm.xlu1 %4272, %v5195_v35  }
 0x159   :  { %4284 = vset.pattern.permute.xlu0 %v8853_v46 }
 0x15a   :  { %308 = vperm.xlu0 %4284, %v4911_v55  }
 0x15e   :  { %1231 = vadd.xlane.f32.xlu2 %v1230_v32  ;;  %v5261_v32 = vpop.permute.xlu1 %834 }
 0x15f   :  { %4273 = vset.pattern.permute.xlu1 %v8833_v56  ;;  %8871 = vst [vmem:[#allocation69_spill] sm:$0xff] %v5261_v32  ;;  %v885_v58 = vmul.f32 %v5261_v32, %v5304_v53 }
 0x160   :  { %225 = vperm.xlu1 %4273, %v5180_v13  }
 0x161   :  { %v906_v0 = vmul.f32 %v4897_v38, %v885_v58 }
 0x162   :  { %312 = vperm.xlu0 %4284, %v4999_v2  }
 0x163   :  { %v922_v17 = vadd.f32 %v906_v0, %v5162_v3 }
 0x165   :  { %v5295_v37 = vpop.xlane.xlu0 %1234 }
 0x166   :  { %v5274_v10 = vpop.xlane.xlu2 %1225  ;;  %8878 = vst [vmem:[#allocation76_spill] sm:$0xff] %v5295_v37 }
 0x168   :  { %4275 = vset.pattern.permute.xlu1 %v8853_v46 }
 0x169   :  { %328 = vperm.xlu1 %4275, %v5180_v13  }
 0x16a   :  { %336 = vperm.xlu0 %4284, %v5269_v7  }
 0x16e   :  { %v5282_v48 = vpop.permute.xlu2 %190 }
 0x16f   :  { %8875 = vst [vmem:[#allocation73_spill] sm:$0xff] %v5282_v48 }
 0x171   :  { %4277 = vset.pattern.permute.xlu1 %v8837_v30 }
 0x172   :  { %482 = vperm.xlu1 %4277, %v5189_v63   ;;  %4289 = vset.pattern.permute.xlu0 %v8837_v30 }
 0x173   :  { %478 = vperm.xlu0 %4289, %v5180_v13  }
 0x176   :  { %838 = vperm.xlu2 %4269, %v4672_v14   ;;  %v5272_v14 = vpop.permute.xlu1 %951  ;;  %v5292_v30 = vpop.permute.xlu2 %195 }
 0x177   :  { %8873 = vst [vmem:[#allocation71_spill] sm:$0xff] %v5272_v14  ;;  %v1002_v27 = vmul.f32 %v5272_v14, %v5067_v9 }
 0x178   :  { %8877 = vst [vmem:[#allocation75_spill] sm:$0xff] %v5292_v30  ;;  %v5316_v20 = vpop.permute.xlu0 %1068 }
 0x179   :  { %8882 = vst [vmem:[#allocation79_spill] sm:$0xff] %v5316_v20  ;;  %v1023_v37 = vmul.f32 %v4902_v47, %v1002_v27  ;;  %v248_v27 = vmul.f32 %v5282_v48, %v5077_v23  ;;  %v498_v23 = vmul.f32 %v5248_v18, %v5093_v29  ;;  %v5373_v29 = vld [vmem:[%s8803_s22 + $0x38] sm:$0xff] }
 0x17a   :  { %4278 = vset.pattern.permute.xlu1 %v8861_v31 }
 0x17b   :  { %486 = vperm.xlu0 %4289, %v5269_v7  }
 0x17e   :  { %842 = vperm.xlu2 %4269, %v4842_v33   ;;  %v5279_v25 = vpop.permute.xlu1 %1072  ;;  %v5306_v26 = vpop.permute.xlu2 %210 }
 0x17f   :  { %8874 = vst [vmem:[#allocation72_spill] sm:$0xff] %v5279_v25 }
 0x180   :  { %8881 = vst [vmem:[#allocation78_spill] sm:$0xff] %v5306_v26 }
 0x186   :  { %854 = vperm.xlu2 %4269, %v5106_v42   ;;  %v5286_v52 = vpop.permute.xlu1 %200  ;;  %v5334_v14 = vpop.permute.xlu2 %215 }
 0x187   :  { %8876 = vst [vmem:[#allocation74_spill] sm:$0xff] %v5286_v52 }
 0x188   :  { %8885 = vst [vmem:[#allocation81_spill] sm:$0xff] %v5334_v14 }
 0x18e   :  { %862 = vperm.xlu2 %4269, %v5171_v59   ;;  %v5297_v41 = vpop.permute.xlu1 %454  ;;  %v1039_v59 = vadd.f32 %v1023_v37, %v922_v17  ;;  %v5339_v58 = vpop.permute.xlu2 %320  ;;  %v348_v37 = vmul.f32 %v5110_v16, %v5028_v43 }
 0x18f   :  { %8879 = vst [vmem:[#allocation77_spill] sm:$0xff] %v5297_v41  ;;  %v402_v41 = vrot.slane %v5311_v22, 1 }
 0x190   :  { %8887 = vst [vmem:[#allocation83_spill] sm:$0xff] %v5339_v58  ;;  %v369_v17 = vmul.f32 %v4760_v39, %v348_v37  ;;  %v673_v37 = vmul.f32 %v4847_v34, %v5067_v9 }
 0x191   :  { %v5324_v26 = vsel %vm412_vm1, %v8883_v36, %v402_v41 }
 0x192   :  { %v1119_v32 = vmul.f32 %v5316_v20, %v5324_v26 }
 0x196   :  { %4274 = vset.pattern.permute.xlu2 %v8833_v56  ;;  %v5327_v30 = vpop.permute.xlu1 %729 }
 0x197   :  { %230 = vperm.xlu2 %4274, %v5189_v63   ;;  %8884 = vst [vmem:[#allocation80_spill] sm:$0xff] %v5327_v30 }
 0x19e   :  { %v5336_v33 = vpop.permute.xlu1 %1076 }
 0x19f   :  { %4276 = vset.pattern.permute.xlu2 %v8853_v46  ;;  %8886 = vst [vmem:[#allocation82_spill] sm:$0xff] %v5336_v33 }
 0x1a0   :  { %332 = vperm.xlu2 %4276, %v5189_v63  }
 0x1a6   :  { %v5346_v3 = vpop.permute.xlu1 %205 }
 0x1a7   :  { %8888 = vst [vmem:[#allocation84_spill] sm:$0xff] %v5346_v3 }
 0x1a8   :  { %4282 = vset.pattern.permute.xlu2 %v8841_v15  ;;  %v1140_v15 = vmul.f32 %v4922_v45, %v1119_v32 }
 0x1aa   :  { %v1156_v42 = vadd.f32 %v1140_v15, %v1039_v59  ;;  %v268_v15 = vmul.f32 %v4774_v44, %v248_v27  ;;  %v5355_v59 = vpop.permute.xlu2 %470 }
 0x1ab   :  { %8890 = vst [vmem:[#allocation86_spill] sm:$0xff] %v5355_v59  ;;  %v117_v59 = vmul.f32 %v4941_v21, %v5067_v9 }
 0x1ac   :  { %v1176_v36 = vadd.f32 %v4948_v11, %v1156_v42  ;;  %v385_v32 = vadd.f32 %v369_v17, %v268_v15  ;;  %v8603_v17 = vrot.slane %v5373_v29, 1 }
 0x1ae   :  { %v1195_v20 = vmul.f32 %v4953_v50, %v1176_v36  ;;  %v5363_v43 = vpop.permute.xlu1 %316 }
 0x1af   :  { %8891 = vst [vmem:[#allocation87_spill] sm:$0xff] %v5363_v43 }
 0x1b0   :  { %v5348_v0 = vadd.f32 %v1195_v20, %v116_v5  ;;  %v519_v20 = vmul.f32 %v4804_v54, %v498_v23  ;;  %v615_v5 = vmul.f32 %v5254_v12, %v5304_v53  ;;  %v8596_v23 = vrot.slane %v5311_v22, 7 }
 0x1b2   :  { %8889 = vst [vmem:[#allocation85_spill] sm:$0xff] %v5348_v0  ;;  %v1236_v42 = vsel %vm1223_vm2, %v5348_v0, 0.0  ;;  %v535_v36 = vadd.f32 %v519_v20, %v385_v32  ;;  %v636_v48 = vmul.f32 %v4815_v60, %v615_v5 }
 0x1b4   :  { %v652_v15 = vadd.f32 %v636_v48, %v535_v36  ;;  %v1003_v48 = vmul.f32 %v5218_v51, %v5311_v22 }
 0x1b6   :  { %v5380_v20 = vpop.permute.xlu1 %466  ;;  %v689_v5 = vadd.f32 %v673_v37, %v652_v15  ;;  %v5403_v37 = vld [vmem:[%s8796_s2 + $0x78] sm:$0xff]  ;;  %v1024_v51 = vmul.f32 %v4902_v47, %v1003_v48 }
 0x1b7   :  { %8892 = vst [vmem:[#allocation88_spill] sm:$0xff] %v5380_v20  ;;  %490 = vperm.xlu0 %4289, %v5403_v37  }
 0x1bf   :  { %4292 = vset.pattern.permute.xlu0 %v8861_v31 }
 0x1c9   :  { %1237 = vadd.xlane.f32.xlu2 %v1236_v42  ;;  %v769_v42 = vmul.f32 %v5057_v4, %v5324_v26  ;;  %v5386_v4 = vsel %vm146_vm0, %v133_v8, %v8596_v23 }
 0x1cb   :  { %v790_v32 = vmul.f32 %v4868_v57, %v769_v42  ;;  %v5398_v42 = vsel %vm412_vm1, %v402_v41, %v8603_v17  ;;  %v5411_v41 = vpop.permute.xlu1 %733 }
 0x1cc   :  { %v1120_v8 = vmul.f32 %v5279_v25, %v5398_v42  ;;  %8894 = vst [vmem:[#allocation90_spill] sm:$0xff] %v5411_v41 }
 0x1cd   :  { %v806_v15 = vadd.f32 %v790_v32, %v689_v5 }
 0x1ce   :  { %v1141_v18 = vmul.f32 %v4922_v45, %v1120_v8 }
 0x1d1   :  { %v5365_v27 = vpop.xlane.xlu2 %1231 }
 0x1d9   :  { %v5388_v12 = vpop.permute.xlu2 %838 }
 0x1da   :  { %8893 = vst [vmem:[#allocation89_spill] sm:$0xff] %v5388_v12  ;;  %v886_v36 = vmul.f32 %v5388_v12, %v5386_v4 }
 0x1dc   :  { %v907_v23 = vmul.f32 %v4897_v38, %v886_v36 }
 0x1de   :  { %v923_v12 = vadd.f32 %v907_v23, %v806_v15  ;;  %v5422_v23 = vpop.permute.xlu1 %737 }
 0x1df   :  { %8896 = vst [vmem:[#allocation92_spill] sm:$0xff] %v5422_v23 }
 0x1e0   :  { %v1040_v17 = vadd.f32 %v1024_v51, %v923_v12 }
 0x1e1   :  { %753 = vperm.xlu2 %4282, %v5189_v63  }
 0x1e2   :  { %v1157_v16 = vadd.f32 %v1141_v18, %v1040_v17  ;;  %v4517_v18 = vmov 32.0   ;;  %v5435_v17 = vpop.permute.xlu0 %1096 }
 0x1e3   :  { %4342 = vrcp.f32 %v4517_v18  ;;  %8899 = vst [vmem:[#allocation95_spill] sm:$0xff] %v5435_v17 }
 0x1e4   :  { %v1177_v32 = vadd.f32 %v4948_v11, %v1157_v16 }
 0x1e6   :  { %v1196_v5 = vmul.f32 %v4953_v50, %v1177_v32  ;;  %v5429_v16 = vpop.permute.xlu1 %967 }
 0x1e7   :  { %8897 = vst [vmem:[#allocation93_spill] sm:$0xff] %v5429_v16 }
 0x1e8   :  { %v5419_v36 = vadd.f32 %v1196_v5, %v117_v59 }
 0x1e9   :  { %4283 = vset.pattern.permute.xlu2 %v8832_v6  ;;  %v4343_v59 = vpop.eup %4342 }
 0x1ea   :  { %8895 = vst [vmem:[#allocation91_spill] sm:$0xff] %v5419_v36  ;;  %983 = vperm.xlu2 %4283, %v5180_v13   ;;  %v1239_v51 = vsel %vm1223_vm2, %v5419_v36, 0.0  ;;  %v1273_v48 = vmul.f32 32.0, %v4343_v59  ;;  %v5442_v15 = vpop.permute.xlu0 %595  ;;  %vm1277_vm3 = vweird.f32 %v4343_v59 }
 0x1eb   :  { %1240 = vadd.xlane.f32.xlu1 %v1239_v51  ;;  %8901 = vst [vmem:[#allocation97_spill] sm:$0xff] %v5442_v15 }
 0x1ee   :  { %v5433_v12 = vpop.permute.xlu1 %1084 }
 0x1ef   :  { %8898 = vst [vmem:[#allocation94_spill] sm:$0xff] %v5433_v12 }
 0x1f2   :  { %4286 = vset.pattern.permute.xlu2 %v8828_v1  ;;  %v5451_v25 = vpop.permute.xlu0 %599 }
 0x1f3   :  { %1104 = vperm.xlu2 %4286, %v5189_v63   ;;  %v1274_v63 = vsub.f32 1.0, %v1273_v48  ;;  %8903 = vst [vmem:[#allocation99_spill] sm:$0xff] %v5451_v25 }
 0x1f5   :  { %v1275_v32 = vmul.f32 %v4343_v59, %v1274_v63 }
 0x1f6   :  { %v5439_v8 = vpop.permute.xlu1 %1088 }
 0x1f7   :  { %8900 = vst [vmem:[#allocation96_spill] sm:$0xff] %v5439_v8  ;;  %v1276_v51 = vadd.f32 %v4343_v59, %v1275_v32 }
 0x1f9   :  { %v5447_v18 = vsel %vm1277_vm3, %v4343_v59, %v1276_v51 }
 0x1fa   :  { %v5461_v32 = vpop.permute.xlu0 %725  ;;  %v1280_v17 = vmul.f32 %v5447_v18, %v5288_v49 }
 0x1fb   :  { %4288 = vset.pattern.permute.xlu2 %v8833_v56  ;;  %8905 = vst [vmem:[#allocation101_spill] sm:$0xff] %v5461_v32 }
 0x1fc   :  { %240 = vperm.xlu2 %4288, %v5403_v37  }
 0x1fe   :  { %v5444_v5 = vpop.permute.xlu1 %220 }
 0x1ff   :  { %8902 = vst [vmem:[#allocation98_spill] sm:$0xff] %v5444_v5 }
 0x202   :  { %v5468_v51 = vpop.permute.xlu0 %749 }
 0x203   :  { %8907 = vst [vmem:[#allocation103_spill] sm:$0xff] %v5468_v51  ;;  %v500_v51 = vmul.f32 %v5237_v19, %v5398_v42 }
 0x204   :  { %846 = vperm.xlu1 %4278, %v4911_v55   ;;  %4293 = vset.pattern.permute.xlu2 %v8827_v62  ;;  %v1279_v55 = vmul.f32 %v5447_v18, %v5274_v10 }
 0x206   :  { %v5454_v48 = vsub.f32 %v5127_v40, %v1279_v55  ;;  %v5456_v12 = vpop.permute.xlu1 %324 }
 0x207   :  { %8904 = vst [vmem:[#allocation100_spill] sm:$0xff] %v5456_v12  ;;  %v8922_v12 = vrot.slane %v5311_v22, 7 }
 0x208   :  { %v1311_v63 = vmul.f32 %v5454_v48, %v5454_v48 }
 0x20a   :  { %v1327_v59 = vsel %vm1223_vm2, %v1311_v63, 0.0  ;;  %v5474_v40 = vpop.permute.xlu0 %963 }
 0x20b   :  { %8909 = vst [vmem:[#allocation105_spill] sm:$0xff] %v5474_v40 }
 0x20c   :  { %850 = vperm.xlu1 %4278, %v4999_v2  }
 0x20e   :  { %v5466_v10 = vpop.permute.xlu1 %474 }
 0x20f   :  { %8906 = vst [vmem:[#allocation102_spill] sm:$0xff] %v5466_v10 }
 0x214   :  { %858 = vperm.xlu1 %4278, %v5195_v35  }
 0x216   :  { %v5471_v55 = vpop.permute.xlu1 %741 }
 0x217   :  { %8908 = vst [vmem:[#allocation104_spill] sm:$0xff] %v5471_v55  ;;  %v5496_v55 = vsub.f32 %v4970_v24, %v1280_v17  ;;  %v135_v17 = vrot.slane %v5373_v29, 7 }
 0x21c   :  { %866 = vperm.xlu1 %4278, %v5180_v13  }
 0x21e   :  { %v5478_v63 = vpop.permute.xlu1 %745 }
 0x21f   :  { %8910 = vst [vmem:[#allocation106_spill] sm:$0xff] %v5478_v63  ;;  %v5498_v63 = vpop.permute.xlu2 %842 }
 0x220   :  { %8917 = vst [vmem:[#allocation113_spill] sm:$0xff] %v5498_v63 }
 0x224   :  { %4285 = vset.pattern.permute.xlu1 %v8828_v1 }
 0x225   :  { %1328 = vadd.xlane.f32.xlu2 %v1327_v59  ;;  %1100 = vperm.xlu1 %4285, %v5180_v13   ;;  %v5481_v13 = vpop.permute.xlu0 %971 }
 0x226   :  { %8911 = vst [vmem:[#allocation107_spill] sm:$0xff] %v5481_v13  ;;  %v5483_v59 = vpop.permute.xlu1 %979 }
 0x227   :  { %8912 = vst [vmem:[#allocation108_spill] sm:$0xff] %v5483_v59  ;;  %v5512_v24 = vpop.permute.xlu2 %854 }
 0x228   :  { %8920 = vst [vmem:[#allocation116_spill] sm:$0xff] %v5512_v24 }
 0x22d   :  { %4287 = vset.pattern.permute.xlu1 %v8833_v56  ;;  %v5485_v25 = vpop.permute.xlu0 %975 }
 0x22e   :  { %235 = vperm.xlu1 %4287, %v5269_v7   ;;  %8913 = vst [vmem:[#allocation109_spill] sm:$0xff] %v5485_v25  ;;  %v5487_v16 = vpop.permute.xlu1 %1092 }
 0x22f   :  { %8914 = vst [vmem:[#allocation110_spill] sm:$0xff] %v5487_v16  ;;  %v5534_v19 = vpop.permute.xlu2 %862 }
 0x230   :  { %8923 = vst [vmem:[#allocation118_spill] sm:$0xff] %v5534_v19 }
 0x235   :  { %v5491_v36 = vpop.permute.xlu0 %987 }
 0x236   :  { %4290 = vset.pattern.permute.xlu1 %v8853_v46  ;;  %8915 = vst [vmem:[#allocation111_spill] sm:$0xff] %v5491_v36  ;;  %v5493_v46 = vpop.permute.xlu1 %225  ;;  %v250_v36 = vmul.f32 %v5286_v52, %v5386_v4 }
 0x237   :  { %340 = vperm.xlu1 %4290, %v5403_v37   ;;  %8916 = vst [vmem:[#allocation112_spill] sm:$0xff] %v5493_v46 }
 0x23d   :  { %v5502_v59 = vpop.permute.xlu0 %308 }
 0x23e   :  { %8918 = vst [vmem:[#allocation114_spill] sm:$0xff] %v5502_v59  ;;  %v5504_v10 = vpop.permute.xlu1 %328  ;;  %v350_v49 = vmul.f32 %v5502_v59, %v5311_v22  ;;  %v521_v59 = vmul.f32 %v4804_v54, %v500_v51  ;;  %v675_v51 = vmul.f32 %v4847_v34, %v5373_v29 }
 0x23f   :  { %4291 = vset.pattern.permute.xlu1 %v8827_v62  ;;  %v1312_v62 = vmul.f32 %v5496_v55, %v5496_v55  ;;  %8919 = vst [vmem:[#allocation115_spill] sm:$0xff] %v5504_v10 }
 0x240   :  { %v371_v25 = vmul.f32 %v4760_v39, %v350_v49  ;;  %v5532_v39 = vld [vmem:[%s8803_s22 + $0x40] sm:$0xff] }
 0x241   :  { %v1330_v16 = vsel %vm1223_vm2, %v1312_v62, 0.0  ;;  %v270_v62 = vmul.f32 %v4774_v44, %v250_v36  ;;  %v404_v54 = vrot.slane %v5532_v39, 1 }
 0x243   :  { %v387_v52 = vadd.f32 %v371_v25, %v270_v62  ;;  %v5542_v25 = vld [vmem:[%s8803_s22 + $0x48] sm:$0xff] }
 0x244   :  { %v8641_v62 = vrot.slane %v5542_v25, 1 }
 0x245   :  { %v537_v49 = vadd.f32 %v521_v59, %v387_v52  ;;  %v8925_v52 = vrot.slane %v5373_v29, 1 }
 0x246   :  { %v5515_v8 = vpop.permute.xlu1 %482  ;;  %v5563_v34 = vsel %vm412_vm1, %v404_v54, %v8641_v62 }
 0x247   :  { %8921 = vst [vmem:[#allocation117_spill] sm:$0xff] %v5515_v8  ;;  %v5552_v59 = vsel %vm412_vm1, %v8925_v52, %v404_v54  ;;  %v5571_v52 = vpop.permute.xlu2 %230 }
 0x248   :  { %8926 = vst [vmem:[#allocation120_spill] sm:$0xff] %v5571_v52 }
 0x24f   :  { %v5584_v13 = vpop.permute.xlu2 %332 }
 0x25e   :  { %v5536_v44 = vpop.xlane.xlu1 %1240 }
 0x25f   :  { %8924 = vst [vmem:[#allocation119_spill] sm:$0xff] %v5536_v44  ;;  %v8929_v44 = vld [vmem:[#allocation28_spill] sm:$0xff] }
 0x260   :  { %8930 = vst [vmem:[#allocation28_spill] sm:$0xff] %v5584_v13  ;;  %v5806_v13 = vld [vmem:[%s8811_s4 + $0x5] ss:$0 sm:$0xff] }
 0x261   :  { %1331 = vadd.xlane.f32.xlu1 %v1330_v16  ;;  %v5524_v16 = vsel %vm146_vm0, %v8922_v12, %v135_v17 }
 0x262   :  { %v617_v5 = vmul.f32 %v5244_v61, %v5524_v16  ;;  %v1005_v61 = vmul.f32 %v5474_v40, %v5532_v39 }
 0x264   :  { %v638_v36 = vmul.f32 %v4815_v60, %v617_v5  ;;  %v8643_v60 = vrot.slane %v5532_v39, 7  ;;  %v771_v5 = vmul.f32 %v5327_v30, %v5552_v59  ;;  %v1026_v54 = vmul.f32 %v4902_v47, %v1005_v61 }
 0x266   :  { %v654_v12 = vadd.f32 %v638_v36, %v537_v49  ;;  %v5569_v36 = vsel %vm146_vm0, %v135_v17, %v8643_v60  ;;  %v792_v30 = vmul.f32 %v4868_v57, %v771_v5  ;;  %v119_v57 = vmul.f32 %v4941_v21, %v5373_v29 }
 0x268   :  { %v691_v49 = vadd.f32 %v675_v51, %v654_v12  ;;  %v8928_v51 = vld [vmem:[#allocation68_spill] sm:$0xff] }
 0x269   :  { %v1122_v40 = vmul.f32 %v8928_v51, %v5563_v34 }
 0x26a   :  { %v808_v62 = vadd.f32 %v792_v30, %v691_v49 }
 0x26b   :  { %v1143_v60 = vmul.f32 %v4922_v45, %v1122_v40  ;;  %v8932_v45 = vld [vmem:[#allocation51_spill] sm:$0xff] }
 0x276   :  { %v5573_v8 = vpop.permute.xlu1 %846 }
 0x277   :  { %8927 = vst [vmem:[#allocation121_spill] sm:$0xff] %v5573_v8  ;;  %v888_v12 = vmul.f32 %v5573_v8, %v5569_v36 }
 0x279   :  { %v909_v19 = vmul.f32 %v4897_v38, %v888_v12 }
 0x27a   :  { %571 = vperm.xlu1 %4291, %v8929_v44   ;;  %v8939_v44 = vmov 5  }
 0x27b   :  { %v925_v17 = vadd.f32 %v909_v19, %v808_v62  ;;  %v5595_v19 = vpop.xlane.xlu2 %1237 }
 0x27d   :  { %v1042_v52 = vadd.f32 %v1026_v54, %v925_v17 }
 0x27e   :  { %v5601_v30 = vpop.permute.xlu1 %850 }
 0x27f   :  { %v1159_v24 = vadd.f32 %v1143_v60, %v1042_v52  ;;  %8934 = vst [vmem:[#allocation123_spill] sm:$0xff] %v5601_v30 }
 0x281   :  { %v1179_v5 = vadd.f32 %v4948_v11, %v1159_v24  ;;  %v8936_v24 = vld [vmem:[#allocation59_spill] sm:$0xff] }
 0x282   :  { %579 = vperm.xlu1 %4291, %v4999_v2  }
 0x283   :  { %v1198_v47 = vmul.f32 %v4953_v50, %v1179_v5  ;;  %v5598_v40 = vpop.permute.xlu2 %753  ;;  %v4176_v5 = vld [vmem:[%s8446_s7] sm:$0xff] }
 0x284   :  { %8933 = vst [vmem:[#allocation51_spill] sm:$0xff] %v5598_v40 }
 0x285   :  { %v5591_v61 = vadd.f32 %v1198_v47, %v119_v57 }
 0x286   :  { %v5608_v50 = vpop.permute.xlu1 %858 }
 0x287   :  { %8931 = vst [vmem:[#allocation122_spill] sm:$0xff] %v5591_v61  ;;  %v1245_v38 = vsel %vm1223_vm2, %v5591_v61, 0.0 }
 0x288   :  { %1246 = vadd.xlane.f32.xlu2 %v1245_v38  ;;  %8937 = vst [vmem:[#allocation59_spill] sm:$0xff] %v5608_v50 }
 0x28a   :  { %583 = vperm.xlu1 %4291, %v8932_v45  }
 0x28b   :  { %v5603_v11 = vpop.permute.xlu2 %983 }
 0x28c   :  { %8935 = vst [vmem:[#allocation124_spill] sm:$0xff] %v5603_v11 }
 0x292   :  { %587 = vperm.xlu1 %4291, %v5195_v35   ;;  %v5616_v35 = vpop.permute.xlu1 %866 }
 0x293   :  { %v5610_v2 = vpop.permute.xlu2 %1104  ;;  %8940 = vst [vmem:[#allocation126_spill] sm:$0xff] %v5616_v35 }
 0x294   :  { %8938 = vst [vmem:[#allocation125_spill] sm:$0xff] %v5610_v2 }
 0x29a   :  { %591 = vperm.xlu1 %4291, %v8936_v24   ;;  %v5624_v60 = vpop.permute.xlu1 %1100 }
 0x29b   :  { %v5618_v62 = vpop.permute.xlu2 %240  ;;  %8942 = vst [vmem:[#allocation128_spill] sm:$0xff] %v5624_v60 }
 0x29c   :  { %8941 = vst [vmem:[#allocation127_spill] sm:$0xff] %v5618_v62 }
 0x2a0   :  { %603 = vperm.xlu2 %4293, %v5269_v7  }
 0x2a2   :  { %607 = vperm.xlu1 %4291, %v5403_v37   ;;  %v5631_v12 = vpop.permute.xlu1 %235 }
 0x2a3   :  { %v1329_v49 = vpop.xlane.xlu2 %1328  ;;  %8943 = vst [vmem:[#allocation129_spill] sm:$0xff] %v5631_v12 }
 0x2a4   :  { %v1375_v52 = vmul.f32 %v1329_v49, %v5447_v18 }
 0x2a8   :  { %4294 = vset.pattern.permute.xlu2 %v8939_v44 }
 0x2a9   :  { %757 = vperm.xlu2 %4294, %v5269_v7  }
 0x2aa   :  { %4295 = vset.pattern.permute.xlu1 %v8939_v44  ;;  %v5638_v57 = vpop.permute.xlu1 %340  ;;  %v1281_v44 = vmul.f32 %v5447_v18, %v5365_v27 }
 0x2ab   :  { %761 = vperm.xlu1 %4295, %v5403_v37   ;;  %8944 = vst [vmem:[#allocation130_spill] sm:$0xff] %v5638_v57 }
 0x2b1   :  { %4296 = vset.pattern.permute.xlu2 %v8861_v31  ;;  %v1391_v31 = vadd.f32 1e-05, %v1375_v52  ;;  %v8945_v52 = vld [vmem:[#allocation62_spill] sm:$0xff] }
 0x2b2   :  { %878 = vperm.xlu2 %4296, %v5403_v37  }
 0x2b3   :  { %4297 = vset.pattern.permute.xlu1 %v8832_v6  ;;  %4344 = vrsqrt.f32 %v1391_v31  ;;  %vm1413_vm5 = vweird.f32 %v1391_v31 }
 0x2b4   :  { %991 = vperm.xlu1 %4297, %v5269_v7  }
 0x2b9   :  { %v4345_v54 = vpop.eup %4344 }
 0x2ba   :  { %4298 = vset.pattern.permute.xlu2 %v8832_v6  ;;  %v4177_v6 = vld [vmem:[%s8446_s7 + $0x8] sm:$0xff]  ;;  %v1408_v17 = vmul.f32 %v4345_v54, %v1391_v31  ;;  %vm1414_vm4 = vweird.f32 %v4345_v54  ;;  %v5662_v31 = vld [vmem:[%s8444_s5] ss:$0 sm:$0xff] }
 0x2bb   :  { %995 = vperm.xlu2 %4298, %v5403_v37   ;;  %1677 = vmatpush.bf16.msra.mxu0 %v4177_v6  ;;  %v5648_v6 = vsub.f32 %v8945_v52, %v1281_v44  ;;  %vm1415_vm6 = vmor %vm1413_vm5, %vm1414_vm4  ;;  %v8953_v52 = vld [vmem:[#allocation77_spill] sm:$0xff] }
 0x2bc   :  { %4299 = vset.pattern.permute.xlu1 %v8828_v1  ;;  %v1409_v47 = vmul.f32 %v4345_v54, %v1408_v17  ;;  %v8946_v17 = vld [vmem:[#allocation76_spill] sm:$0xff] }
 0x2bd   :  { %1108 = vperm.xlu1 %4299, %v5269_v7   ;;  %v1313_v27 = vmul.f32 %v5648_v6, %v5648_v6  ;;  %8949 = vst [vmem:[#allocation76_spill] sm:$0xff] %v5662_v31 }
 0x2bf   :  { %1678 = vmatpush.bf16.msra.mxu0 %v4176_v5  ;;  %v1282_v5 = vmul.f32 %v5447_v18, %v8946_v17  ;;  %v8950_v17 = vld [vmem:[#allocation56_spill] sm:$0xff] }
 0x2c3   :  { %4300 = vset.pattern.permute.xlu2 %v8828_v1  ;;  %v1410_v1 = vmul.f32 0.5, %v1409_v47 }
 0x2c4   :  { %1112 = vperm.xlu2 %4300, %v5403_v37  }
 0x2c5   :  { %v1411_v24 = vsub.f32 1.5, %v1410_v1 }
 0x2c7   :  { %v1412_v49 = vmul.f32 %v4345_v54, %v1411_v24  ;;  %v8948_v24 = vld [vmem:[#allocation61_spill] sm:$0xff] }
 0x2c8   :  { %v349_v8 = vmul.f32 %v8948_v24, %v5067_v9  ;;  %v5674_v9 = vld [vmem:[%s8811_s4] ss:$0 sm:$0xff]  ;;  %v1333_v24 = vsel %vm1223_vm2, %v1313_v27, 0.0 }
 0x2c9   :  { %v1416_v47 = vsel %vm1415_vm6, %v4345_v54, %v1412_v49  ;;  %v5665_v54 = vsub.f32 %v8950_v17, %v1282_v5  ;;  %v5681_v5 = vld [vmem:[%s8811_s4 + $0x1] ss:$0 sm:$0xff]  ;;  %v5694_v27 = vld [vmem:[%s8445_s6] ss:$0 sm:$0xff] }
 0x2ca   :  { %v1567_v44 = vmul.f32 %v1416_v47, %v5454_v48  ;;  %8956 = vst [vmem:[#allocation133_spill] sm:$0xff] %v5694_v27 }
 0x2cb   :  { %8951 = vst [vmem:[#allocation131_spill] sm:$0xff] %v5665_v54 }
 0x2cc   :  { %4301 = vset.pattern.permute.xlu2 %v8833_v56 }
 0x2d4   :  { %v1332_v38 = vpop.xlane.xlu1 %1331 }
 0x2d5   :  { %v1376_v37 = vmul.f32 %v1332_v38, %v5447_v18  ;;  %v8947_v38 = vld [vmem:[#allocation75_spill] sm:$0xff] }
 0x2d6   :  { %v249_v1 = vmul.f32 %v8947_v38, %v5304_v53  ;;  %v8952_v53 = vld [vmem:[#allocation66_spill] sm:$0xff]  ;;  %v499_v38 = vmul.f32 %v8953_v52, %v5324_v26  ;;  %v5688_v52 = vpop.permute.xlu0 %312 }
 0x2d7   :  { %v1392_v45 = vadd.f32 1e-05, %v1376_v37  ;;  %v8954_v26 = vld [vmem:[#allocation70_spill] sm:$0xff]  ;;  %8955 = vst [vmem:[#allocation132_spill] sm:$0xff] %v5688_v52  ;;  %v351_v57 = vmul.f32 %v5688_v52, %v5373_v29 }
 0x2d8   :  { %v269_v48 = vmul.f32 %v5674_v9, %v249_v1  ;;  %v501_v17 = vmul.f32 %v8954_v26, %v5552_v59  ;;  %v1587_v1 = vmul.f32 %v5662_v31, %v1567_v44  ;;  %v1314_v26 = vmul.f32 %v5665_v54, %v5665_v54  ;;  %v5711_v44 = vld [vmem:[%s8811_s4 + $0x2] ss:$0 sm:$0xff] }
 0x2d9   :  { %4346 = vrsqrt.f32 %v1392_v45  ;;  %vm1423_vm8 = vweird.f32 %v1392_v45 }
 0x2da   :  { %v522_v2 = vmul.f32 %v5711_v44, %v501_v17 }
 0x2df   :  { %v4347_v56 = vpop.eup %4346 }
 0x2e0   :  { %v1418_v51 = vmul.f32 %v4347_v56, %v1392_v45  ;;  %vm1424_vm7 = vweird.f32 %v4347_v56  ;;  %v251_v45 = vmul.f32 %v5346_v3, %v5524_v16 }
 0x2e1   :  { %vm1425_vm9 = vmor %vm1423_vm8, %vm1424_vm7 }
 0x2e2   :  { %v1419_v37 = vmul.f32 %v4347_v56, %v1418_v51  ;;  %v1004_v51 = vmul.f32 %v8952_v53, %v5373_v29  ;;  %v1121_v53 = vmul.f32 %v5336_v33, %v5552_v59  ;;  %v5703_v59 = vld [vmem:[%s8811_s4 + $0x7] ss:$0 sm:$0xff]  ;;  %v271_v52 = vmul.f32 %v5674_v9, %v251_v45 }
 0x2e3   :  { %v372_v45 = vmul.f32 %v5681_v5, %v351_v57 }
 0x2e4   :  { %v1420_v49 = vmul.f32 0.5, %v1419_v37  ;;  %v370_v37 = vmul.f32 %v5681_v5, %v349_v8 }
 0x2e6   :  { %v1421_v47 = vsub.f32 1.5, %v1420_v49  ;;  %v1283_v49 = vmul.f32 %v5447_v18, %v5595_v19  ;;  %v520_v19 = vmul.f32 %v5711_v44, %v499_v38  ;;  %v386_v33 = vadd.f32 %v370_v37, %v269_v48  ;;  %v5727_v38 = vld [vmem:[%s8811_s4 + $0x8] ss:$0 sm:$0xff]  ;;  %v8957_v37 = vld [vmem:[#allocation78_spill] sm:$0xff] }
 0x2e7   :  { %1334 = vadd.xlane.f32.xlu1 %v1333_v24  ;;  %v5706_v24 = vmul.f32 %v5703_v59, %v1004_v51  ;;  %v502_v51 = vmul.f32 %v5380_v20, %v5563_v34  ;;  %v5730_v3 = vmul.f32 %v5727_v38, %v1121_v53  ;;  %v1607_v48 = vadd.f32 %v5694_v27, %v1587_v1 }
 0x2e8   :  { %v1422_v8 = vmul.f32 %v4347_v56, %v1421_v47  ;;  %v352_v47 = vmul.f32 %v5363_v43, %v5532_v39  ;;  %v252_v20 = vmul.f32 %v8957_v37, %v5569_v36  ;;  %v536_v29 = vadd.f32 %v520_v19, %v386_v33  ;;  %v5777_v33 = vld [vmem:[%s8811_s4 + $0x3] ss:$0 sm:$0xff] }
 0x2e9   :  { %v8960_v37 = vrot.slane %v5542_v25, 7 }
 0x2ea   :  { %v1426_v62 = vsel %vm1425_vm9, %v4347_v56, %v1422_v8  ;;  %v5738_v56 = vsub.f32 %v5348_v0, %v1283_v49  ;;  %v1336_v8 = vsel %vm1223_vm2, %v1314_v26, 0.0  ;;  %v373_v53 = vmul.f32 %v5681_v5, %v352_v47  ;;  %v5760_v47 = vld [vmem:[%s8803_s22 + $0x60] sm:$0xff] }
 0x2eb   :  { %v1568_v43 = vmul.f32 %v1426_v62, %v5496_v55  ;;  %v5748_v55 = vld [vmem:[%s8803_s22 + $0x68] sm:$0xff]  ;;  %v523_v49 = vmul.f32 %v5711_v44, %v502_v51  ;;  %v770_v26 = vmul.f32 %v5461_v32, %v5398_v42  ;;  %v2497_v51 = vpack.c.bf16 %v1607_v48, %v1607_v48 }
 0x2ec   :  { %8958 = vst [vmem:[#allocation134_spill] sm:$0xff] %v5738_v56  ;;  %v5740_v17 = vpop.permute.xlu1 %571  ;;  %v8961_v32 = vrot.slane %v5532_v39, 7  ;;  %v1315_v40 = vmul.f32 %v5738_v56, %v5738_v56  ;;  %v388_v56 = vadd.f32 %v372_v45, %v271_v52 }
 0x2ed   :  { %8959 = vst [vmem:[#allocation135_spill] sm:$0xff] %v5740_v17  ;;  %v616_v62 = vmul.f32 %v5740_v17, %v5386_v4  ;;  %1337 = vadd.xlane.f32.xlu2 %v1336_v8  ;;  %v1588_v1 = vmul.f32 %v5662_v31, %v1568_v43  ;;  %v5765_v4 = vld [vmem:[%s8803_s22 + $0x50] sm:$0xff]  ;;  %v5770_v43 = vld [vmem:[%s8811_s4 + $0x4] ss:$0 sm:$0xff]  ;;  %v272_v8 = vmul.f32 %v5674_v9, %v252_v20 }
 0x2ee   :  { %v674_v42 = vmul.f32 %v5770_v43, %v5311_v22  ;;  %v153_v17 = vsel %vm146_vm0, %v8961_v32, %v8960_v37  ;;  %v887_v20 = vmul.f32 %v5498_v63, %v5524_v16  ;;  %v8681_v32 = vrot.slane %v5760_v47, 7  ;;  %v8977_v63 = vld [vmem:[#allocation98_spill] sm:$0xff] }
 0x2ef   :  { %v637_v57 = vmul.f32 %v5777_v33, %v616_v62  ;;  %v1608_v19 = vadd.f32 %v5694_v27, %v1588_v1  ;;  %v5794_v62 = vld [vmem:[%s8803_s22 + $0x58] sm:$0xff]  ;;  %v5798_v1 = vpop.permute.xlu0 %336  ;;  %v791_v31 = vmul.f32 %v5806_v13, %v770_v26  ;;  %v138_v37 = vrot.slane %v5765_v4, 7  ;;  %v5822_v26 = vld [vmem:[%s8811_s4 + $0x6] ss:$0 sm:$0xff] }
 0x2f0   :  { %8962 = vst [vmem:[#allocation136_spill] sm:$0xff] %v5798_v1  ;;  %v139_v54 = vrot.slane %v5794_v62, 7  ;;  %v1339_v45 = vsel %vm1223_vm2, %v1315_v40, 0.0  ;;  %v353_v40 = vmul.f32 %v5339_v58, %v5542_v25 }
 0x2f1   :  { %v653_v0 = vadd.f32 %v637_v57, %v536_v29  ;;  %v1623_v12 = vpack.c.bf16 %v1608_v19, %v1607_v48  ;;  %v2498_v27 = vpack.c.bf16 %v1608_v19, %v1608_v19  ;;  %v5810_v29 = vunpack.c.l.b16 %v2497_v51 }
 0x2f2   :  { %v389_v57 = vadd.f32 %v373_v53, %v272_v8  ;;  %v253_v19 = vmul.f32 %v5334_v14, %v153_v17  ;;  %v772_v51 = vmul.f32 %v5411_v41, %v5563_v34  ;;  %v538_v8 = vadd.f32 %v522_v2, %v388_v56 }
 0x2f3   :  { %v690_v16 = vadd.f32 %v674_v42, %v653_v0  ;;  %4070 = vmatmul.msk.bf16.vlgmr.msra.gmra.mxu0 %vm1223_vm2, %v1623_v12  ;;  %8963 = vst [vmem:[#allocation137_spill] sm:$0xff] %v5810_v29  ;;  %v5812_v48 = vunpack.c.l.b16 %v2498_v27  ;;  %v908_v0 = vmul.f32 %v5822_v26, %v887_v20  ;;  %v408_v42 = vrot.slane %v5760_v47, 1 }
 0x2f4   :  { %v5816_v52 = vpop.permute.xlu1 %579  ;;  %v5836_v20 = vsel %vm146_vm0, %v138_v37, %v139_v54  ;;  %v5851_v34 = vsel %vm146_vm0, %v139_v54, %v8681_v32  ;;  %v8967_v2 = vrot.slane %v5765_v4, 1  ;;  %v8968_v56 = vrot.slane %v5542_v25, 1 }
 0x2f5   :  { %8964 = vst [vmem:[#allocation138_spill] sm:$0xff] %v5812_v48  ;;  %v807_v12 = vadd.f32 %v791_v31, %v690_v16  ;;  %v618_v27 = vmul.f32 %v5816_v52, %v5569_v36  ;;  %1340 = vadd.xlane.f32.xlu2 %v1339_v45  ;;  %v676_v36 = vmul.f32 %v5770_v43, %v5532_v39  ;;  %v8966_v45 = vrot.slane %v5748_v55, 1 }
 0x2f6   :  { %8965 = vst [vmem:[#allocation139_spill] sm:$0xff] %v5816_v52  ;;  %v539_v41 = vadd.f32 %v523_v49, %v389_v57  ;;  %v622_v54 = vmul.f32 %v5442_v15, %v5851_v34  ;;  %v407_v32 = vrot.slane %v5794_v62, 1  ;;  %v255_v58 = vmul.f32 %v5493_v46, %v5836_v20  ;;  %v8970_v57 = vld [vmem:[#allocation86_spill] sm:$0xff] }
 0x2f7   :  { %v924_v31 = vadd.f32 %v908_v0, %v807_v12  ;;  %v639_v16 = vmul.f32 %v5777_v33, %v618_v27  ;;  %v5845_v53 = vsel %vm412_vm1, %v408_v42, %v8966_v45  ;;  %v5859_v0 = vsel %vm412_vm1, %v8968_v56, %v8967_v2 }
 0x2f8   :  { %v889_v12 = vmul.f32 %v5601_v30, %v153_v17  ;;  %v273_v27 = vmul.f32 %v5674_v9, %v253_v19  ;;  %v355_v2 = vmul.f32 %v5504_v10, %v5794_v62  ;;  %v374_v56 = vmul.f32 %v5681_v5, %v353_v40  ;;  %v5873_v19 = vpop.permute.xlu0 %478 }
 0x2f9   :  { %v655_v45 = vadd.f32 %v639_v16, %v538_v8  ;;  %v1041_v14 = vadd.f32 %v5706_v24, %v924_v31  ;;  %v793_v30 = vmul.f32 %v5806_v13, %v772_v51  ;;  %8969 = vst [vmem:[#allocation140_spill] sm:$0xff] %v5873_v19  ;;  %v503_v8 = vmul.f32 %v8970_v57, %v5859_v0 }
 0x2fa   :  { %v773_v31 = vmul.f32 %v5422_v23, %v5859_v0  ;;  %v5882_v16 = vsel %vm412_vm1, %v407_v32, %v408_v42  ;;  %v910_v15 = vmul.f32 %v5822_v26, %v889_v12  ;;  %v8972_v42 = vrot.slane %v5542_v25, 7  ;;  %v8975_v23 = vld [vmem:[#allocation116_spill] sm:$0xff] }
 0x2fb   :  { %v692_v49 = vadd.f32 %v676_v36, %v655_v45  ;;  %v1158_v24 = vadd.f32 %v5730_v3, %v1041_v14  ;;  %v118_v14 = vmul.f32 %v4941_v21, %v5311_v22  ;;  %v5893_v3 = vld [vmem:[%s8825_s21] ss:$0 sm:$0xff]  ;;  %v275_v45 = vmul.f32 %v5674_v9, %v255_v58  ;;  %s4523_s21 = smov 8  }
 0x2fc   :  { %v5885_v40 = vpop.permute.xlu1 %583  ;;  %v152_v12 = vsel %vm146_vm0, %v8972_v42, %v138_v37  ;;  %v524_v42 = vmul.f32 %v5711_v44, %v503_v8  ;;  %v8978_v58 = vld [vmem:[#allocation100_spill] sm:$0xff]  ;;  %v794_v29 = vmul.f32 %v5806_v13, %v773_v31 }
 0x2fd   :  { %8971 = vst [vmem:[#allocation141_spill] sm:$0xff] %v5885_v40  ;;  %v809_v51 = vadd.f32 %v793_v30, %v692_v49  ;;  %v619_v46 = vmul.f32 %v5885_v40, %v153_v17  ;;  %v1178_v36 = vadd.f32 %v5893_v3, %v1158_v24  ;;  %v376_v30 = vmul.f32 %v5681_v5, %v355_v2  ;;  %v5912_v24 = vld [vmem:[%s8821_s23] ss:$0 sm:$0xff] }
 0x2fe   :  { %v505_v17 = vmul.f32 %v5873_v19, %v5882_v16  ;;  %v677_v49 = vmul.f32 %v5770_v43, %v5542_v25  ;;  %v390_v2 = vadd.f32 %v374_v56, %v273_v27  ;;  %v8974_v19 = vrot.slane %v5765_v4, 1 }
 0x2ff   :  { %v5904_v22 = vadd.f32 %v910_v15, %v809_v51  ;;  %v640_v10 = vmul.f32 %v5777_v33, %v619_v46  ;;  %v1197_v37 = vmul.f32 %v5912_v24, %v1178_v36  ;;  %v8973_v15 = vld [vmem:[#allocation107_spill] sm:$0xff]  ;;  %v890_v57 = vmul.f32 %v8975_v23, %v152_v12 }
 0x300   :  { %v1007_v51 = vmul.f32 %v8973_v15, %v5765_v4  ;;  %v417_v46 = vsel %vm412_vm1, %v8974_v19, %v407_v32  ;;  %v254_v36 = vmul.f32 %v8977_v63, %v152_v12  ;;  %v354_v27 = vmul.f32 %v8978_v58, %v5765_v4  ;;  %v8984_v63 = vld [vmem:[#allocation104_spill] sm:$0xff] }
 0x301   :  { %v656_v40 = vadd.f32 %v640_v10, %v539_v41  ;;  %v5924_v52 = vadd.f32 %v1197_v37, %v118_v14  ;;  %v392_v56 = vadd.f32 %v376_v30, %v275_v45  ;;  %v526_v8 = vmul.f32 %v5711_v44, %v505_v17  ;;  %v8979_v41 = vld [vmem:[#allocation103_spill] sm:$0xff]  ;;  %v8980_v37 = vld [vmem:[#allocation96_spill] sm:$0xff]  ;;  %v8982_v30 = vld [vmem:[#allocation109_spill] sm:$0xff] }
 0x302   :  { %v643_v15 = vmul.f32 %v5777_v33, %v622_v54  ;;  %v540_v19 = vadd.f32 %v524_v42, %v390_v2  ;;  %v776_v10 = vmul.f32 %v8979_v41, %v5845_v53  ;;  %v1028_v14 = vmul.f32 %v5703_v59, %v1007_v51  ;;  %v8983_v42 = vld [vmem:[#allocation102_spill] sm:$0xff] }
 0x303   :  { %8976 = vst [vmem:[#allocation142_spill] sm:$0xff] %v5924_v52  ;;  %v693_v48 = vadd.f32 %v677_v49, %v656_v40  ;;  %v1242_v32 = vsel %vm1223_vm2, %v5924_v52, 0.0  ;;  %v1124_v23 = vmul.f32 %v8980_v37, %v417_v46  ;;  %v1008_v54 = vmul.f32 %v8982_v30, %v5794_v62 }
 0x304   :  { %1243 = vadd.xlane.f32.xlu0 %v1242_v32  ;;  %v5938_v45 = vpop.permute.xlu1 %587  ;;  %v911_v31 = vmul.f32 %v5822_v26, %v890_v57  ;;  %v274_v49 = vmul.f32 %v5674_v9, %v254_v36  ;;  %v375_v2 = vmul.f32 %v5681_v5, %v354_v27  ;;  %v504_v41 = vmul.f32 %v8983_v42, %v417_v46 }
 0x305   :  { %8981 = vst [vmem:[#allocation143_spill] sm:$0xff] %v5938_v45  ;;  %v810_v40 = vadd.f32 %v794_v29, %v693_v48  ;;  %v620_v17 = vmul.f32 %v5938_v45, %v152_v12  ;;  %v542_v51 = vadd.f32 %v526_v8, %v392_v56  ;;  %v774_v37 = vmul.f32 %v8984_v63, %v417_v46 }
 0x306   :  { %v678_v58 = vmul.f32 %v5770_v43, %v5765_v4  ;;  %v8985_v57 = vrot.slane %v5748_v55, 7  ;;  %v8986_v29 = vrot.slane %v5760_v47, 7  ;;  %v891_v12 = vmul.f32 %v5608_v50, %v5836_v20  ;;  %v8987_v50 = vld [vmem:[#allocation106_spill] sm:$0xff] }
 0x307   :  { %v927_v32 = vadd.f32 %v911_v31, %v810_v40  ;;  %v641_v30 = vmul.f32 %v5777_v33, %v620_v17  ;;  %v797_v36 = vmul.f32 %v5806_v13, %v776_v10  ;;  %v1145_v46 = vmul.f32 %v5727_v38, %v1124_v23  ;;  %v8988_v23 = vld [vmem:[#allocation110_spill] sm:$0xff] }
 0x308   :  { %v5957_v48 = vsel %vm146_vm0, %v8986_v29, %v8985_v57  ;;  %v391_v8 = vadd.f32 %v375_v2, %v274_v49  ;;  %v525_v31 = vmul.f32 %v5711_v44, %v504_v41  ;;  %v659_v40 = vadd.f32 %v643_v15, %v542_v51  ;;  %v8990_v51 = vld [vmem:[#allocation119_spill] sm:$0xff] }
 0x309   :  { %v657_v27 = vadd.f32 %v641_v30, %v540_v19  ;;  %v1044_v56 = vadd.f32 %v1028_v14, %v927_v32  ;;  %v680_v17 = vmul.f32 %v5770_v43, %v5760_v47  ;;  %v1029_v63 = vmul.f32 %v5703_v59, %v1008_v54 }
 0x30a   :  { %v795_v57 = vmul.f32 %v5806_v13, %v774_v37  ;;  %v775_v10 = vmul.f32 %v8987_v50, %v5882_v16  ;;  %v1125_v19 = vmul.f32 %v8988_v23, %v5882_v16  ;;  %v912_v14 = vmul.f32 %v5822_v26, %v891_v12  ;;  %v5985_v16 = vld [vmem:[%s8803_s22 + $0x70] sm:$0xff]  ;;  %v9016_v50 = vld [vmem:[#allocation28_spill] sm:$0xff] }
 0x30b   :  { %v694_v29 = vadd.f32 %v678_v58, %v657_v27  ;;  %v1161_v42 = vadd.f32 %v1145_v46, %v1044_v56  ;;  %v893_v15 = vmul.f32 %v5616_v35, %v5957_v48  ;;  %v121_v58 = vmul.f32 %v4941_v21, %v5542_v25  ;;  %v8991_v56 = vld [vmem:[#allocation118_spill] sm:$0xff] }
 0x30c   :  { %v5975_v41 = vpop.permute.xlu1 %591  ;;  %v541_v49 = vadd.f32 %v525_v31, %v391_v8  ;;  %v8710_v2 = vrot.slane %v5985_v16, 1  ;;  %v1284_v32 = vmul.f32 %v5447_v18, %v8990_v51  ;;  %v696_v12 = vadd.f32 %v680_v17, %v659_v40 }
 0x30d   :  { %8989 = vst [vmem:[#allocation144_spill] sm:$0xff] %v5975_v41  ;;  %v811_v30 = vadd.f32 %v795_v57, %v694_v29  ;;  %v621_v54 = vmul.f32 %v5975_v41, %v5836_v20  ;;  %v1181_v37 = vadd.f32 %v5893_v3, %v1161_v42  ;;  %v679_v20 = vmul.f32 %v5770_v43, %v5794_v62 }
 0x30e   :  { %v892_v8 = vmul.f32 %v8991_v56, %v5851_v34  ;;  %v796_v31 = vmul.f32 %v5806_v13, %v775_v10  ;;  %v1146_v57 = vmul.f32 %v5727_v38, %v1125_v19  ;;  %v1010_v29 = vmul.f32 %v5603_v11, %v5748_v55  ;;  %v8995_v19 = vld [vmem:[#allocation91_spill] sm:$0xff] }
 0x30f   :  { %v928_v46 = vadd.f32 %v912_v14, %v811_v30  ;;  %v642_v27 = vmul.f32 %v5777_v33, %v621_v54  ;;  %v1200_v42 = vmul.f32 %v5912_v24, %v1181_v37  ;;  %v914_v40 = vmul.f32 %v5822_v26, %v893_v15  ;;  %v8993_v54 = vld [vmem:[#allocation108_spill] sm:$0xff] }
 0x310   :  { %v1009_v51 = vmul.f32 %v8993_v54, %v5760_v47  ;;  %v8994_v37 = vrot.slane %v5748_v55, 1  ;;  %v6014_v35 = vsub.f32 %v8995_v19, %v1284_v32  ;;  %v813_v11 = vadd.f32 %v797_v36, %v696_v12 }
 0x311   :  { %v658_v17 = vadd.f32 %v642_v27, %v541_v49  ;;  %v6001_v14 = vadd.f32 %v1200_v42, %v121_v58  ;;  %v1045_v30 = vadd.f32 %v1029_v63, %v928_v46  ;;  %v8996_v46 = vld [vmem:[#allocation95_spill] sm:$0xff]  ;;  %v913_v42 = vmul.f32 %v5822_v26, %v892_v8 }
 0x312   :  { %v6011_v10 = vsel %vm412_vm1, %v8994_v37, %v8710_v2  ;;  %v1126_v27 = vmul.f32 %v8996_v46, %v5845_v53  ;;  %v1031_v37 = vmul.f32 %v5703_v59, %v1010_v29  ;;  %v1247_v2 = vpop.xlane.xlu2 %1246  ;;  %v930_v32 = vadd.f32 %v914_v40, %v813_v11  ;;  %v4440_v11 = vld [vmem:[%s8796_s2 + $0x68] sm:$0xff] }
 0x313   :  { %8992 = vst [vmem:[#allocation119_spill] sm:$0xff] %v6001_v14  ;;  %v1127_v15 = vmul.f32 %v5624_v60, %v6011_v10  ;;  %v695_v58 = vadd.f32 %v679_v20, %v658_v17  ;;  %v1251_v63 = vsel %vm1223_vm2, %v6001_v14, 0.0  ;;  %v1162_v49 = vadd.f32 %v1146_v57, %v1045_v30 }
 0x314   :  { %1252 = vadd.xlane.f32.xlu1 %v1251_v63  ;;  %v122_v36 = vmul.f32 %v4941_v21, %v5765_v4  ;;  %v1030_v20 = vmul.f32 %v5703_v59, %v1009_v51  ;;  %v1316_v57 = vmul.f32 %v6014_v35, %v6014_v35  ;;  %v1286_v8 = vmul.f32 %v5447_v18, %v1247_v2 }
 0x315   :  { %v812_v19 = vadd.f32 %v796_v31, %v695_v58  ;;  %v1182_v12 = vadd.f32 %v5893_v3, %v1162_v49  ;;  %v1148_v17 = vmul.f32 %v5727_v38, %v1127_v15  ;;  %v1147_v4 = vmul.f32 %v5727_v38, %v1126_v27 }
 0x316   :  { %v1047_v31 = vadd.f32 %v1031_v37, %v930_v32  ;;  %v1342_v58 = vsel %vm1223_vm2, %v1316_v57, 0.0  ;;  %v6041_v15 = vsub.f32 %v5591_v61, %v1286_v8  ;;  %v123_v49 = vmul.f32 %v4941_v21, %v5794_v62 }
 0x317   :  { %v929_v30 = vadd.f32 %v913_v42, %v812_v19  ;;  %v1201_v29 = vmul.f32 %v5912_v24, %v1182_v12  ;;  %v124_v62 = vmul.f32 %v4941_v21, %v5760_v47 }
 0x318   :  { %870 = vperm.xlu0 %4292, %v4440_v11   ;;  %v1164_v63 = vadd.f32 %v1148_v17, %v1047_v31  ;;  %v1318_v37 = vmul.f32 %v6041_v15, %v6041_v15 }
 0x319   :  { %v6037_v40 = vadd.f32 %v1201_v29, %v122_v36  ;;  %v1046_v51 = vadd.f32 %v1030_v20, %v929_v30 }
 0x31a   :  { %v1184_v42 = vadd.f32 %v5893_v3, %v1164_v63  ;;  %v1348_v12 = vsel %vm1223_vm2, %v1318_v37, 0.0  ;;  %v6067_v29 = vpop.permute.xlu2 %603 }
 0x31b   :  { %8997 = vst [vmem:[#allocation145_spill] sm:$0xff] %v6037_v40  ;;  %v1254_v2 = vsel %vm1223_vm2, %v6037_v40, 0.0  ;;  %v1163_v19 = vadd.f32 %v1147_v4, %v1046_v51  ;;  %v9002_v4 = vld [vmem:[#allocation94_spill] sm:$0xff]  ;;  %v6072_v51 = vpop.permute.xlu1 %607 }
 0x31c   :  { %1343 = vadd.xlane.f32.xlu1 %v1342_v58  ;;  %1255 = vadd.xlane.f32.xlu2 %v1254_v2  ;;  %v1203_v57 = vmul.f32 %v5912_v24, %v1184_v42  ;;  %9001 = vst [vmem:[#allocation148_spill] sm:$0xff] %v6067_v29  ;;  %v1123_v31 = vmul.f32 %v9002_v4, %v5859_v0 }
 0x31d   :  { %v1183_v27 = vadd.f32 %v5893_v3, %v1163_v19  ;;  %9003 = vst [vmem:[#allocation149_spill] sm:$0xff] %v6072_v51 }
 0x31e   :  { %v6061_v17 = vadd.f32 %v1203_v57, %v124_v62  ;;  %v1144_v63 = vmul.f32 %v5727_v38, %v1123_v31 }
 0x31f   :  { %v1202_v32 = vmul.f32 %v5912_v24, %v1183_v27 }
 0x320   :  { %874 = vperm.xlu0 %4292, %v5269_v7   ;;  %8999 = vst [vmem:[#allocation147_spill] sm:$0xff] %v6061_v17  ;;  %v1260_v8 = vsel %vm1223_vm2, %v6061_v17, 0.0  ;;  %v9000_v7 = vld [vmem:[#allocation93_spill] sm:$0xff] }
 0x321   :  { %v6053_v36 = vadd.f32 %v1202_v32, %v123_v49  ;;  %v1006_v30 = vmul.f32 %v9000_v7, %v5542_v25  ;;  %v120_v25 = vmul.f32 %v4941_v21, %v5532_v39 }
 0x322   :  { %v6076_v19 = vpop.permute.xlu2 %757 }
 0x323   :  { %8998 = vst [vmem:[#allocation146_spill] sm:$0xff] %v6053_v36  ;;  %v1257_v20 = vsel %vm1223_vm2, %v6053_v36, 0.0  ;;  %v1027_v11 = vmul.f32 %v5703_v59, %v1006_v30  ;;  %v6079_v27 = vpop.permute.xlu1 %761 }
 0x324   :  { %1349 = vadd.xlane.f32.xlu2 %v1348_v12  ;;  %1258 = vadd.xlane.f32.xlu1 %v1257_v20  ;;  %9004 = vst [vmem:[#allocation150_spill] sm:$0xff] %v6076_v19 }
 0x325   :  { %v1043_v58 = vadd.f32 %v1027_v11, %v5904_v22  ;;  %9005 = vst [vmem:[#allocation151_spill] sm:$0xff] %v6079_v27 }
 0x327   :  { %v1160_v2 = vadd.f32 %v1144_v63, %v1043_v58  ;;  %v6100_v63 = vpop.permute.xlu0 %486 }
 0x328   :  { %9012 = vst [vmem:[#allocation158_spill] sm:$0xff] %v6100_v63 }
 0x329   :  { %v1180_v49 = vadd.f32 %v5893_v3, %v1160_v2 }
 0x32a   :  { %v6084_v37 = vpop.permute.xlu2 %878 }
 0x32b   :  { %v1199_v42 = vmul.f32 %v5912_v24, %v1180_v49  ;;  %9006 = vst [vmem:[#allocation152_spill] sm:$0xff] %v6084_v37  ;;  %v6088_v32 = vpop.permute.xlu1 %991 }
 0x32c   :  { %1261 = vadd.xlane.f32.xlu1 %v1260_v8  ;;  %9008 = vst [vmem:[#allocation154_spill] sm:$0xff] %v6088_v32 }
 0x32d   :  { %v6086_v0 = vadd.f32 %v1199_v42, %v120_v25 }
 0x32f   :  { %9007 = vst [vmem:[#allocation153_spill] sm:$0xff] %v6086_v0  ;;  %v1248_v22 = vsel %vm1223_vm2, %v6086_v0, 0.0 }
 0x332   :  { %v6092_v12 = vpop.permute.xlu2 %995 }
 0x333   :  { %9009 = vst [vmem:[#allocation155_spill] sm:$0xff] %v6092_v12  ;;  %v6094_v20 = vpop.permute.xlu1 %1108 }
 0x334   :  { %9010 = vst [vmem:[#allocation156_spill] sm:$0xff] %v6094_v20 }
 0x33a   :  { %v6096_v62 = vpop.permute.xlu2 %1112 }
 0x33b   :  { %9011 = vst [vmem:[#allocation157_spill] sm:$0xff] %v6096_v62 }
 0x34a   :  { %1249 = vadd.xlane.f32.xlu0 %v1248_v22 }
 0x35a   :  { %v1335_v57 = vpop.xlane.xlu1 %1334 }
 0x35b   :  { %v1377_v39 = vmul.f32 %v1335_v57, %v5447_v18 }
 0x35d   :  { %v1393_v8 = vadd.f32 1e-05, %v1377_v39  ;;  %v6102_v39 = vpop.permute.xlu0 %490 }
 0x35e   :  { %9013 = vst [vmem:[#allocation159_spill] sm:$0xff] %v6102_v39 }
 0x35f   :  { %4348 = vrsqrt.f32 %v1393_v8  ;;  %vm1433_vm11 = vweird.f32 %v1393_v8 }
 0x360   :  { %v1338_v30 = vpop.xlane.xlu2 %1337 }
 0x361   :  { %v1378_v11 = vmul.f32 %v1338_v30, %v5447_v18 }
 0x363   :  { %v1394_v31 = vadd.f32 1e-05, %v1378_v11 }
 0x365   :  { %v4349_v58 = vpop.eup %4348  ;;  %4350 = vrsqrt.f32 %v1394_v31  ;;  %vm1443_vm14 = vweird.f32 %v1394_v31  ;;  %v9354_v28 = vld [vmem:[#allocation159_spill] sm:$0xff] }
 0x366   :  { %v1428_v2 = vmul.f32 %v4349_v58, %v1393_v8  ;;  %vm1434_vm10 = vweird.f32 %v4349_v58 }
 0x367   :  { %vm1435_vm12 = vmor %vm1433_vm11, %vm1434_vm10 }
 0x368   :  { %v1429_v49 = vmul.f32 %v4349_v58, %v1428_v2  ;;  %v1341_v54 = vpop.xlane.xlu2 %1340 }
 0x36a   :  { %v1430_v25 = vmul.f32 0.5, %v1429_v49  ;;  %v1379_v49 = vmul.f32 %v1341_v54, %v5447_v18  ;;  %v9018_v54 = vld [vmem:[#allocation133_spill] sm:$0xff] }
 0x36b   :  { %v4351_v42 = vpop.eup %4350 }
 0x36c   :  { %v1431_v22 = vsub.f32 1.5, %v1430_v25  ;;  %v1438_v61 = vmul.f32 %v4351_v42, %v1394_v31  ;;  %vm1444_vm13 = vweird.f32 %v4351_v42  ;;  %v9014_v25 = vld [vmem:[#allocation76_spill] sm:$0xff] }
 0x36d   :  { %vm1445_vm15 = vmor %vm1443_vm14, %vm1444_vm13 }
 0x36e   :  { %v1432_v60 = vmul.f32 %v4349_v58, %v1431_v22  ;;  %v1439_v57 = vmul.f32 %v4351_v42, %v1438_v61  ;;  %v9015_v61 = vld [vmem:[#allocation120_spill] sm:$0xff] }
 0x36f   :  { %v256_v8 = vmul.f32 %v9015_v61, %v5851_v34 }
 0x370   :  { %v1436_v46 = vsel %vm1435_vm12, %v4349_v58, %v1432_v60  ;;  %v1440_v30 = vmul.f32 0.5, %v1439_v57  ;;  %v356_v60 = vmul.f32 %v9016_v50, %v5760_v47  ;;  %v9017_v58 = vld [vmem:[#allocation131_spill] sm:$0xff]  ;;  %v9019_v47 = vld [vmem:[#allocation117_spill] sm:$0xff]  ;;  %v9028_v50 = vld [vmem:[#allocation18_spill] sm:$0xff] }
 0x371   :  { %v1569_v11 = vmul.f32 %v1436_v46, %v5648_v6  ;;  %v9029_v41 = vrot.slane %v9028_v50, 1  ;;  %v9031_v50 = vld [vmem:[#allocation125_spill] sm:$0xff] }
 0x372   :  { %v1441_v23 = vsub.f32 1.5, %v1440_v30  ;;  %v6113_v30 = vadd.f32 1e-05, %v1379_v49  ;;  %v377_v34 = vmul.f32 %v5681_v5, %v356_v60 }
 0x373   :  { %v1589_v22 = vmul.f32 %v9014_v25, %v1569_v11  ;;  %v506_v11 = vmul.f32 %v9019_v47, %v5845_v53  ;;  %v357_v53 = vmul.f32 %v5798_v1, %v5748_v55 }
 0x374   :  { %v1442_v56 = vmul.f32 %v4351_v42, %v1441_v23  ;;  %4352 = vrsqrt.f32 %v6113_v30  ;;  %vm1453_vm4 = vweird.f32 %v6113_v30 }
 0x375   :  { %v1609_v31 = vadd.f32 %v9018_v54, %v1589_v22  ;;  %v527_v22 = vmul.f32 %v5711_v44, %v506_v11 }
 0x376   :  { %v1446_v2 = vsel %vm1445_vm15, %v4351_v42, %v1442_v56  ;;  %v276_v42 = vmul.f32 %v5674_v9, %v256_v8 }
 0x377   :  { %v1570_v57 = vmul.f32 %v1446_v2, %v9017_v58  ;;  %v1244_v6 = vpop.xlane.xlu0 %1243  ;;  %v9020_v58 = vld [vmem:[#allocation99_spill] sm:$0xff] }
 0x378   :  { %v1285_v46 = vmul.f32 %v5447_v18, %v1244_v6  ;;  %v623_v6 = vmul.f32 %v9020_v58, %v5957_v48 }
 0x379   :  { %v1590_v56 = vmul.f32 %v9014_v25, %v1570_v57  ;;  %v2499_v57 = vpack.c.bf16 %v1609_v31, %v1609_v31 }
 0x37a   :  { %v6116_v23 = vsub.f32 %v5924_v52, %v1285_v46  ;;  %v393_v46 = vadd.f32 %v377_v34, %v276_v42  ;;  %v9021_v52 = vld [vmem:[#allocation129_spill] sm:$0xff]  ;;  %v644_v42 = vmul.f32 %v5777_v33, %v623_v6  ;;  %v6142_v11 = vpop.eup %4352  ;;  %v9025_v6 = vrot.slane %v5748_v55, 7 }
 0x37b   :  { %v1610_v49 = vadd.f32 %v9018_v54, %v1590_v56  ;;  %v257_v47 = vmul.f32 %v9021_v52, %v5957_v48  ;;  %v6137_v58 = vunpack.c.l.b16 %v2499_v57  ;;  %v507_v48 = vmul.f32 %v6100_v63, %v6011_v10  ;;  %v9022_v57 = vld [vmem:[#allocation51_spill] sm:$0xff] }
 0x37c   :  { %v1317_v2 = vmul.f32 %v6116_v23, %v6116_v23  ;;  %v543_v34 = vadd.f32 %v527_v22, %v393_v46  ;;  %vm1454_vm3 = vweird.f32 %v6142_v11 }
 0x37d   :  { %v1624_v60 = vpack.c.bf16 %v1610_v49, %v1609_v31  ;;  %v2500_v56 = vpack.c.bf16 %v1610_v49, %v1610_v49  ;;  %v378_v31 = vmul.f32 %v5681_v5, %v357_v53  ;;  %v681_v53 = vmul.f32 %v5770_v43, %v5748_v55  ;;  %vm1455_vm5 = vmor %vm1453_vm4, %vm1454_vm3 }
 0x37e   :  { %v1345_v8 = vsel %vm1223_vm2, %v1317_v2, 0.0  ;;  %v277_v2 = vmul.f32 %v5674_v9, %v257_v47  ;;  %v660_v22 = vadd.f32 %v644_v42, %v543_v34  ;;  %v1448_v49 = vmul.f32 %v6142_v11, %v6113_v30 }
 0x37f   :  { %1346 = vadd.xlane.f32.xlu0 %v1345_v8  ;;  %4071 = vmatmul.msk.bf16.gmra.mxu0 %vm1223_vm2, %v1624_v60  ;;  %v6139_v61 = vunpack.c.l.b16 %v2500_v56  ;;  %v777_v8 = vmul.f32 %v9022_v57, %v6011_v10  ;;  %v9023_v60 = vld [vmem:[#allocation15_spill] sm:$0xff] }
 0x380   :  { %v9024_v56 = vrot.slane %v9023_v60, 7  ;;  %v394_v10 = vadd.f32 %v378_v31, %v277_v2  ;;  %v528_v60 = vmul.f32 %v5711_v44, %v507_v48  ;;  %v697_v1 = vadd.f32 %v681_v53, %v660_v22 }
 0x381   :  { %v798_v52 = vmul.f32 %v5806_v13, %v777_v8  ;;  %v9030_v31 = vrot.slane %v5985_v16, 1  ;;  %v1449_v2 = vmul.f32 %v6142_v11, %v1448_v49  ;;  %v682_v49 = vmul.f32 %v5985_v16, %v5770_v43 }
 0x382   :  { %v6158_v46 = vsel %vm146_vm0, %v9025_v6, %v9024_v56  ;;  %v9026_v56 = vld [vmem:[#allocation111_spill] sm:$0xff]  ;;  %v544_v8 = vadd.f32 %v528_v60, %v394_v10 }
 0x383   :  { %v624_v47 = vmul.f32 %v6067_v29, %v6158_v46  ;;  %v1011_v6 = vmul.f32 %v5985_v16, %v9026_v56  ;;  %v814_v22 = vadd.f32 %v798_v52, %v697_v1  ;;  %v1450_v60 = vmul.f32 0.5, %v1449_v2 }
 0x385   :  { %v645_v29 = vmul.f32 %v5777_v33, %v624_v47  ;;  %v1032_v10 = vmul.f32 %v5703_v59, %v1011_v6 }
 0x387   :  { %v1253_v63 = vpop.xlane.xlu1 %1252 }
 0x388   :  { %v1288_v57 = vmul.f32 %v5447_v18, %v1253_v63  ;;  %v6183_v63 = vsel %vm412_vm1, %v9030_v31, %v9029_v41  ;;  %v661_v41 = vadd.f32 %v645_v29, %v544_v8  ;;  %v9032_v8 = vld [vmem:[#allocation26_spill] sm:$0xff] }
 0x389   :  { %v1128_v53 = vmul.f32 %v9031_v50, %v6183_v63 }
 0x38a   :  { %v6173_v42 = vsub.f32 %v6001_v14, %v1288_v57  ;;  %v6175_v34 = vpop.permute.xlu0 %870  ;;  %v778_v57 = vmul.f32 %v6076_v19, %v6183_v63  ;;  %v698_v2 = vadd.f32 %v682_v49, %v661_v41 }
 0x38b   :  { %9027 = vst [vmem:[#allocation76_spill] sm:$0xff] %v6175_v34  ;;  %v894_v48 = vmul.f32 %v6175_v34, %v6158_v46  ;;  %v1149_v29 = vmul.f32 %v5727_v38, %v1128_v53  ;;  %v9034_v53 = vld [vmem:[#allocation20_spill] sm:$0xff] }
 0x38c   :  { %v1320_v47 = vmul.f32 %v6173_v42, %v6173_v42  ;;  %v799_v1 = vmul.f32 %v5806_v13, %v778_v57 }
 0x38d   :  { %v915_v14 = vmul.f32 %v5822_v26, %v894_v48  ;;  %v6206_v48 = vld [vmem:[%s8803_s22 + $0x78] sm:$0xff] }
 0x38e   :  { %v1354_v31 = vsel %vm1223_vm2, %v1320_v47, 0.0  ;;  %v1012_v6 = vmul.f32 %v6206_v48, %v6088_v32  ;;  %v1129_v47 = vmul.f32 %v6094_v20, %v9032_v8  ;;  %v815_v45 = vadd.f32 %v799_v1, %v698_v2  ;;  %v9068_v20 = vld [vmem:[#allocation55_spill] sm:$0xff] }
 0x38f   :  { %v931_v56 = vadd.f32 %v915_v14, %v814_v22  ;;  %v1256_v19 = vpop.xlane.xlu2 %1255  ;;  %1355 = vadd.xlane.f32.xlu1 %v1354_v31  ;;  %v1344_v34 = vpop.xlane.xlu1 %1343  ;;  %v1451_v22 = vsub.f32 1.5, %v1450_v60 }
 0x390   :  { %v1289_v52 = vmul.f32 %v5447_v18, %v1256_v19  ;;  %v1380_v50 = vmul.f32 %v1344_v34, %v5447_v18  ;;  %v1033_v41 = vmul.f32 %v5703_v59, %v1012_v6  ;;  %v1150_v60 = vmul.f32 %v5727_v38, %v1129_v47 }
 0x391   :  { %v1048_v14 = vadd.f32 %v1032_v10, %v931_v56  ;;  %v125_v10 = vmul.f32 %v4941_v21, %v5748_v55 }
 0x392   :  { %v6213_v57 = vsub.f32 %v6037_v40, %v1289_v52  ;;  %v1396_v19 = vadd.f32 1e-05, %v1380_v50  ;;  %v6215_v34 = vpop.permute.xlu0 %874 }
 0x393   :  { %9033 = vst [vmem:[#allocation131_spill] sm:$0xff] %v6215_v34  ;;  %v895_v31 = vmul.f32 %v6215_v34, %v9034_v53  ;;  %v1165_v4 = vadd.f32 %v1149_v29, %v1048_v14  ;;  %v1452_v29 = vmul.f32 %v6142_v11, %v1451_v22 }
 0x394   :  { %4354 = vrsqrt.f32 %v1396_v19  ;;  %v1321_v56 = vmul.f32 %v6213_v57, %v6213_v57  ;;  %vm1463_vm7 = vweird.f32 %v1396_v19 }
 0x395   :  { %v916_v49 = vmul.f32 %v5822_v26, %v895_v31  ;;  %v1185_v50 = vadd.f32 %v5893_v3, %v1165_v4  ;;  %v1456_v4 = vsel %vm1455_vm5, %v6142_v11, %v1452_v29  ;;  %v9038_v11 = vld [vmem:[#allocation134_spill] sm:$0xff] }
 0x396   :  { %v1357_v52 = vsel %vm1223_vm2, %v1321_v56, 0.0  ;;  %v9036_v56 = vld [vmem:[#allocation127_spill] sm:$0xff]  ;;  %v1571_v29 = vmul.f32 %v1456_v4, %v9038_v11 }
 0x397   :  { %v932_v1 = vadd.f32 %v916_v49, %v815_v45  ;;  %1358 = vadd.xlane.f32.xlu1 %v1357_v52  ;;  %v1204_v14 = vmul.f32 %v5912_v24, %v1185_v50  ;;  %v258_v45 = vmul.f32 %v9036_v56, %v6158_v46  ;;  %v9037_v49 = vld [vmem:[#allocation130_spill] sm:$0xff]  ;;  %v1259_v52 = vpop.xlane.xlu1 %1258 }
 0x398   :  { %v358_v50 = vmul.f32 %v5985_v16, %v9037_v49  ;;  %v1591_v4 = vmul.f32 %v9014_v25, %v1571_v29 }
 0x399   :  { %v1049_v6 = vadd.f32 %v1033_v41, %v932_v1  ;;  %v6232_v2 = vadd.f32 %v1204_v14, %v125_v10  ;;  %v126_v41 = vmul.f32 %v5985_v16, %v4941_v21  ;;  %v1290_v14 = vmul.f32 %v5447_v18, %v1259_v52 }
 0x39a   :  { %v4355_v55 = vpop.eup %4354  ;;  %v278_v46 = vmul.f32 %v5674_v9, %v258_v45  ;;  %v625_v16 = vmul.f32 %v6072_v51, %v9034_v53 }
 0x39b   :  { %9035 = vst [vmem:[#allocation133_spill] sm:$0xff] %v6232_v2  ;;  %v1458_v47 = vmul.f32 %v4355_v55, %v1396_v19  ;;  %v1263_v31 = vsel %vm1223_vm2, %v6232_v2, 0.0  ;;  %v1166_v22 = vadd.f32 %v1150_v60, %v1049_v6  ;;  %v379_v6 = vmul.f32 %v5681_v5, %v358_v50 }
 0x39c   :  { %1264 = vadd.xlane.f32.xlu0 %v1263_v31  ;;  %v508_v31 = vmul.f32 %v6102_v39, %v6183_v63  ;;  %vm1464_vm6 = vweird.f32 %v4355_v55  ;;  %v6257_v52 = vsub.f32 %v6053_v36, %v1290_v14  ;;  %v646_v50 = vmul.f32 %v5777_v33, %v625_v16  ;;  %v9069_v39 = vld [vmem:[#allocation39_spill] sm:$0xff] }
 0x39d   :  { %v1459_v30 = vmul.f32 %v4355_v55, %v1458_v47  ;;  %v1186_v10 = vadd.f32 %v5893_v3, %v1166_v22  ;;  %v395_v5 = vadd.f32 %v379_v6, %v278_v46  ;;  %vm1465_vm8 = vmor %vm1463_vm7, %vm1464_vm6 }
 0x39e   :  { %v529_v63 = vmul.f32 %v5711_v44, %v508_v31  ;;  %v1322_v19 = vmul.f32 %v6257_v52, %v6257_v52  ;;  %v683_v44 = vmul.f32 %v6206_v48, %v5770_v43 }
 0x39f   :  { %v1460_v1 = vmul.f32 0.5, %v1459_v30  ;;  %v1205_v60 = vmul.f32 %v5912_v24, %v1186_v10  ;;  %v1611_v30 = vadd.f32 %v9018_v54, %v1591_v4  ;;  %v779_v10 = vmul.f32 %v6079_v27, %v9032_v8 }
 0x3a1   :  { %v1461_v47 = vsub.f32 1.5, %v1460_v1  ;;  %v6251_v40 = vadd.f32 %v1205_v60, %v126_v41  ;;  %v545_v41 = vadd.f32 %v529_v63, %v395_v5  ;;  %v2501_v33 = vpack.c.bf16 %v1611_v30, %v1611_v30  ;;  %v9040_v1 = vld [vmem:[#allocation22_spill] sm:$0xff] }
 0x3a2   :  { %v896_v14 = vmul.f32 %v6084_v37, %v9040_v1  ;;  %v800_v60 = vmul.f32 %v5806_v13, %v779_v10  ;;  %v127_v10 = vmul.f32 %v6206_v48, %v4941_v21 }
 0x3a3   :  { %9039 = vst [vmem:[#allocation15_spill] sm:$0xff] %v6251_v40  ;;  %v1462_v22 = vmul.f32 %v4355_v55, %v1461_v47  ;;  %v1266_v9 = vsel %vm1223_vm2, %v6251_v40, 0.0  ;;  %v662_v29 = vadd.f32 %v646_v50, %v545_v41 }
 0x3a4   :  { %1267 = vadd.xlane.f32.xlu0 %v1266_v9  ;;  %v917_v43 = vmul.f32 %v5822_v26, %v896_v14  ;;  %v9041_v9 = vld [vmem:[#allocation21_spill] sm:$0xff]  ;;  %v6316_v14 = vpop.f32.mrf.mxu0 }
 0x3a5   :  { %v1466_v45 = vsel %vm1465_vm8, %v4355_v55, %v1462_v22  ;;  %v699_v8 = vadd.f32 %v683_v44, %v662_v29  ;;  %v1130_v5 = vmul.f32 %v6096_v62, %v9041_v9 }
 0x3a6   :  { %v1572_v53 = vmul.f32 %v1466_v45, %v6014_v35  ;;  %v1360_v35 = vsel %vm1223_vm2, %v1322_v19, 0.0 }
 0x3a7   :  { %v816_v16 = vadd.f32 %v800_v60, %v699_v8  ;;  %v1151_v45 = vmul.f32 %v5727_v38, %v1130_v5  ;;  %v1262_v38 = vpop.xlane.xlu1 %1261 }
 0x3a8   :  { %v1592_v11 = vmul.f32 %v9014_v25, %v1572_v53  ;;  %v6278_v25 = vunpack.c.l.b16 %v2501_v33  ;;  %v1291_v29 = vmul.f32 %v5447_v18, %v1262_v38 }
 0x3a9   :  { %v933_v22 = vadd.f32 %v917_v43, %v816_v16 }
 0x3aa   :  { %v1612_v55 = vadd.f32 %v9018_v54, %v1592_v11  ;;  %v4442_v54 = vld [vmem:[%s8803_s22] sm:$0xff] }
 0x3ab   :  { %v1013_v47 = vmul.f32 %v4442_v54, %v6092_v12 }
 0x3ac   :  { %1361 = vadd.xlane.f32.xlu0 %v1360_v35  ;;  %v1625_v46 = vpack.c.bf16 %v1612_v55, %v1611_v30  ;;  %v2502_v6 = vpack.c.bf16 %v1612_v55, %v1612_v55 }
 0x3ad   :  { %v1034_v4 = vmul.f32 %v5703_v59, %v1013_v47 }
 0x3ae   :  { %4072 = vmatmul.msk.bf16.gmra.mxu0 %vm1223_vm2, %v1625_v46  ;;  %v6280_v31 = vunpack.c.l.b16 %v2502_v6  ;;  %v6318_v6 = vpop.f32.mrf.mxu0 }
 0x3af   :  { %v1050_v63 = vadd.f32 %v1034_v4, %v933_v22  ;;  %v1721_v47 = vrot.slane %v6318_v6, 7  ;;  %v8731_v22 = vrot.slane %v6316_v14, 7  ;;  %v8732_v38 = vrot.slane %v6318_v6, 1 }
 0x3b1   :  { %v1167_v26 = vadd.f32 %v1151_v45, %v1050_v63  ;;  %v6327_v9 = vsel %vm146_vm0, %v8731_v22, %v1721_v47  ;;  %v9043_v63 = vld [vmem:[#allocation27_spill] sm:$0xff] }
 0x3b2   :  { %v1754_v45 = vmul.f32 %v6327_v9, %v9043_v63 }
 0x3b3   :  { %v1187_v30 = vadd.f32 %v5893_v3, %v1167_v26  ;;  %v6308_v3 = vsub.f32 %v6061_v17, %v1291_v29  ;;  %v6334_v26 = vld [vmem:[%s8447_s8] ss:$0 sm:$0xff] }
 0x3b5   :  { %v1206_v11 = vmul.f32 %v5912_v24, %v1187_v30  ;;  %v1323_v33 = vmul.f32 %v6308_v3, %v6308_v3  ;;  %v1350_v24 = vpop.xlane.xlu2 %1349  ;;  %v9045_v30 = vld [vmem:[#allocation30_spill] sm:$0xff] }
 0x3b6   :  { %v1382_v48 = vmul.f32 %v1350_v24, %v5447_v18 }
 0x3b7   :  { %v6305_v44 = vadd.f32 %v1206_v11, %v127_v10  ;;  %v1363_v21 = vsel %vm1223_vm2, %v1323_v33, 0.0  ;;  %v1774_v33 = vmul.f32 %v6334_v26, %v1754_v45 }
 0x3b8   :  { %v1398_v35 = vadd.f32 1e-05, %v1382_v48 }
 0x3b9   :  { %9042 = vst [vmem:[#allocation18_spill] sm:$0xff] %v6305_v44  ;;  %v1269_v55 = vsel %vm1223_vm2, %v6305_v44, 0.0 }
 0x3ba   :  { %4356 = vrsqrt.f32 %v1398_v35  ;;  %vm1483_vm10 = vweird.f32 %v1398_v35 }
 0x3bd   :  { %v1250_v50 = vpop.xlane.xlu0 %1249 }
 0x3be   :  { %v1287_v53 = vmul.f32 %v5447_v18, %v1250_v50 }
 0x3c0   :  { %v6296_v19 = vsub.f32 %v6086_v0, %v1287_v53  ;;  %v4357_v1 = vpop.eup %4356 }
 0x3c1   :  { %v1478_v60 = vmul.f32 %v4357_v1, %v1398_v35  ;;  %vm1484_vm9 = vweird.f32 %v4357_v1 }
 0x3c2   :  { %v1319_v41 = vmul.f32 %v6296_v19, %v6296_v19  ;;  %vm1485_vm11 = vmor %vm1483_vm10, %vm1484_vm9 }
 0x3c3   :  { %v1479_v46 = vmul.f32 %v4357_v1, %v1478_v60 }
 0x3c4   :  { %v1351_v59 = vsel %vm1223_vm2, %v1319_v41, 0.0  ;;  %v1790_v41 = vmul.f32 %v6318_v6, %v9045_v30 }
 0x3c5   :  { %1352 = vadd.xlane.f32.xlu2 %v1351_v59  ;;  %v1480_v8 = vmul.f32 0.5, %v1479_v46  ;;  %v6366_v46 = vld [vmem:[%s8447_s8 + $0x2] ss:$0 sm:$0xff] }
 0x3c7   :  { %v1481_v4 = vsub.f32 1.5, %v1480_v8 }
 0x3c9   :  { %v1482_v5 = vmul.f32 %v4357_v1, %v1481_v4 }
 0x3cb   :  { %v1486_v59 = vsel %vm1485_vm11, %v4357_v1, %v1482_v5  ;;  %v6375_v5 = vld [vmem:[%s8447_s8 + $0x3] ss:$0 sm:$0xff] }
 0x3cc   :  { %v1574_v48 = vmul.f32 %v1486_v59, %v6041_v15  ;;  %v9047_v15 = vld [vmem:[#allocation42_spill] sm:$0xff] }
 0x3cd   :  { %1270 = vadd.xlane.f32.xlu2 %v1269_v55  ;;  %v6346_v55 = vld [vmem:[%s8447_s8 + $0x1] ss:$0 sm:$0xff] }
 0x3ce   :  { %v1811_v60 = vmul.f32 %v6346_v55, %v1790_v41 }
 0x3d0   :  { %v1827_v4 = vadd.f32 %v1811_v60, %v1774_v33  ;;  %v6389_v33 = vld [vmem:[%s8447_s8 + $0x4] ss:$0 sm:$0xff] }
 0x3d5   :  { %1364 = vadd.xlane.f32.xlu2 %v1363_v21 }
 0x3f2   :  { %v1347_v43 = vpop.xlane.xlu0 %1346 }
 0x3f3   :  { %v1381_v54 = vmul.f32 %v1347_v43, %v5447_v18  ;;  %v9046_v43 = vld [vmem:[#allocation33_spill] sm:$0xff] }
 0x3f5   :  { %v1397_v16 = vadd.f32 1e-05, %v1381_v54 }
 0x3f7   :  { %4358 = vrsqrt.f32 %v1397_v16  ;;  %vm1473_vm13 = vweird.f32 %v1397_v16 }
 0x3fc   :  { %v6336_v53 = vpop.f32.mrf.mxu0 }
 0x3fd   :  { %v4359_v50 = vpop.eup %4358  ;;  %9044 = vst [vmem:[#allocation26_spill] sm:$0xff] %v6336_v53  ;;  %v1722_v11 = vrot.slane %v6336_v53, 7  ;;  %v1843_v29 = vrot.slane %v6336_v53, 1 }
 0x3fe   :  { %v1468_v10 = vmul.f32 %v4359_v50, %v1397_v16  ;;  %vm1474_vm12 = vweird.f32 %v4359_v50 }
 0x3ff   :  { %v6351_v24 = vsel %vm146_vm0, %v1721_v47, %v1722_v11  ;;  %v6358_v35 = vsel %vm412_vm1, %v8732_v38, %v1843_v29  ;;  %vm1475_vm14 = vmor %vm1473_vm13, %vm1474_vm12 }
 0x400   :  { %v1469_v21 = vmul.f32 %v4359_v50, %v1468_v10  ;;  %v1875_v54 = vmul.f32 %v6358_v35, %v9046_v43  ;;  %v1928_v47 = vmul.f32 %v6351_v24, %v9047_v15  ;;  %v6383_v10 = vld [vmem:[%s8444_s5] ss:$0 sm:$0xff] }
 0x402   :  { %v6360_v1 = vpop.xlane.xlu1 %1355  ;;  %v1470_v8 = vmul.f32 0.5, %v1469_v21  ;;  %v1896_v41 = vmul.f32 %v6366_v46, %v1875_v54  ;;  %v1594_v21 = vmul.f32 %v6383_v10, %v1574_v48  ;;  %v1949_v22 = vmul.f32 %v6375_v5, %v1928_v47  ;;  %v9048_v54 = vld [vmem:[#allocation57_spill] sm:$0xff] }
 0x403   :  { %v1986_v48 = vmul.f32 %v6389_v33, %v6336_v53 }
 0x404   :  { %v1471_v45 = vsub.f32 1.5, %v1470_v8  ;;  %v6378_v59 = vpop.f32.mrf.mxu0  ;;  %v1912_v8 = vadd.f32 %v1896_v41, %v1827_v4 }
 0x405   :  { %v8735_v16 = vrot.slane %v6378_v59, 7  ;;  %v1792_v38 = vmul.f32 %v6378_v59, %v9048_v54  ;;  %v8737_v13 = vrot.slane %v6378_v59, 1 }
 0x406   :  { %v1472_v60 = vmul.f32 %v4359_v50, %v1471_v45  ;;  %v1965_v17 = vadd.f32 %v1949_v22, %v1912_v8  ;;  %v9049_v45 = vld [vmem:[#allocation53_spill] sm:$0xff] }
 0x407   :  { %v6402_v4 = vsel %vm146_vm0, %v1722_v11, %v8735_v16  ;;  %v1813_v16 = vmul.f32 %v6346_v55, %v1792_v38  ;;  %v9052_v38 = vld [vmem:[#allocation38_spill] sm:$0xff] }
 0x408   :  { %v1476_v36 = vsel %vm1475_vm14, %v4359_v50, %v1472_v60  ;;  %v1756_v41 = vmul.f32 %v6402_v4, %v9049_v45  ;;  %v6411_v50 = vsel %vm412_vm1, %v1843_v29, %v8737_v13  ;;  %v6416_v60 = vld [vmem:[%s8445_s6] ss:$0 sm:$0xff]  ;;  %v2002_v8 = vadd.f32 %v1986_v48, %v1965_v17  ;;  %v9051_v29 = vld [vmem:[#allocation45_spill] sm:$0xff] }
 0x409   :  { %v1573_v47 = vmul.f32 %v1476_v36, %v6116_v23  ;;  %9050 = vst [vmem:[#allocation20_spill] sm:$0xff] %v6411_v50  ;;  %v1614_v11 = vadd.f32 %v6416_v60, %v1594_v21  ;;  %v2018_v13 = vmul.f32 %v6411_v50, %v9051_v29  ;;  %v6434_v21 = vld [vmem:[%s8447_s8 + $0x5] ss:$0 sm:$0xff]  ;;  %v2071_v48 = vmul.f32 %v6402_v4, %v9052_v38 }
 0x40a   :  { %v1359_v22 = vpop.xlane.xlu1 %1358  ;;  %v1776_v23 = vmul.f32 %v6334_v26, %v1756_v41 }
 0x40b   :  { %v1385_v36 = vmul.f32 %v1359_v22, %v5447_v18  ;;  %v1593_v0 = vmul.f32 %v6383_v10, %v1573_v47  ;;  %v2504_v43 = vpack.c.bf16 %v1614_v11, %v1614_v11 }
 0x40c   :  { %v6427_v54 = vadd.f32 %v1813_v16, %v1776_v23  ;;  %v9053_v16 = vld [vmem:[#allocation43_spill] sm:$0xff]  ;;  %v2039_v23 = vmul.f32 %v6434_v21, %v2018_v13 }
 0x40d   :  { %v6423_v45 = vadd.f32 1e-05, %v1385_v36  ;;  %v1613_v15 = vadd.f32 %v6416_v60, %v1593_v0  ;;  %v2124_v36 = vmul.f32 %v6378_v59, %v9053_v16  ;;  %v6444_v0 = vld [vmem:[%s8447_s8 + $0x6] ss:$0 sm:$0xff]  ;;  %v2576_v63 = vunpack.c.l.b16 %v2504_v43 }
 0x40f   :  { %4360 = vrsqrt.f32 %v6423_v45  ;;  %v1265_v17 = vpop.xlane.xlu0 %1264  ;;  %v1626_v41 = vpack.c.bf16 %v1614_v11, %v1613_v15  ;;  %v2503_v22 = vpack.c.bf16 %v1613_v15, %v1613_v15  ;;  %v6454_v15 = vld [vmem:[%s8447_s8 + $0x7] ss:$0 sm:$0xff]  ;;  %v2055_v11 = vadd.f32 %v2039_v23, %v2002_v8 }
 0x410   :  { %v1292_v47 = vmul.f32 %v5447_v18, %v1265_v17  ;;  %v2092_v17 = vmul.f32 %v6444_v0, %v2071_v48  ;;  %v9055_v23 = vld [vmem:[#allocation37_spill] sm:$0xff]  ;;  %vm1513_vm3 = vweird.f32 %v6423_v45 }
 0x411   :  { %4073 = vmatmul.msk.bf16.gmra.mxu0 %vm1223_vm2, %v1626_v41  ;;  %v2575_v38 = vunpack.c.l.b16 %v2503_v22  ;;  %v1384_v22 = vmul.f32 %v6360_v1, %v5447_v18 }
 0x412   :  { %v6448_v29 = vsub.f32 %v6232_v2, %v1292_v47  ;;  %v2108_v37 = vadd.f32 %v2092_v17, %v2055_v11  ;;  %v2145_v47 = vmul.f32 %v6454_v15, %v2124_v36  ;;  %v9054_v36 = vpack.c.b16 %v6280_v31, %v6278_v25  ;;  %v9057_v31 = vld [vmem:[#allocation40_spill] sm:$0xff] }
 0x413   :  { %v2580_v16 = vpack.c.b16 %v2576_v63, %v2575_v38  ;;  %v9056_v11 = vpack.c.b16 %v6139_v61, %v6137_v58  ;;  %v9059_v61 = vld [vmem:[#allocation138_spill] sm:$0xff]  ;;  %v9060_v58 = vld [vmem:[#allocation137_spill] sm:$0xff] }
 0x414   :  { %v1324_v30 = vmul.f32 %v6448_v29, %v6448_v29  ;;  %v6464_v8 = vadd.f32 %v2145_v47, %v2108_v37  ;;  %v1755_v37 = vmul.f32 %v6351_v24, %v9055_v23  ;;  %v1791_v47 = vmul.f32 %v6336_v53, %v9057_v31  ;;  %v9067_v31 = vld [vmem:[#allocation44_spill] sm:$0xff] }
 0x415   :  { %v4361_v13 = vpop.eup %4360  ;;  %2593 = vmatpush.bf16.msrb.mxu0 %v2580_v16  ;;  %v6473_v16 = vadd.f32 1e-05, %v1384_v22  ;;  %v9093_v53 = vld [vmem:[#allocation72_spill] sm:$0xff] }
 0x416   :  { %v1508_v41 = vmul.f32 %v4361_v13, %v6423_v45  ;;  %v1366_v43 = vsel %vm1223_vm2, %v1324_v30, 0.0  ;;  %vm1514_vm15 = vweird.f32 %v4361_v13 }
 0x417   :  { %v1268_v2 = vpop.xlane.xlu0 %1267  ;;  %1367 = vadd.xlane.f32.xlu1 %v1366_v43  ;;  %4362 = vrsqrt.f32 %v6473_v16  ;;  %vm1515_vm4 = vmor %vm1513_vm3, %vm1514_vm15  ;;  %vm1503_vm9 = vweird.f32 %v6473_v16 }
 0x418   :  { %v1509_v63 = vmul.f32 %v4361_v13, %v1508_v41  ;;  %v1293_v38 = vmul.f32 %v5447_v18, %v1268_v2  ;;  %v9058_v41 = vld [vmem:[#allocation41_spill] sm:$0xff] }
 0x419   :  { %2594 = vmatpush.bf16.msrb.mxu0 %v9054_v36  ;;  %v1876_v43 = vmul.f32 %v6411_v50, %v9058_v41  ;;  %v9061_v36 = vpack.c.b16 %v9059_v61, %v9060_v58  ;;  %v9088_v50 = vld [vmem:[#allocation132_spill] sm:$0xff] }
 0x41a   :  { %v6468_v48 = vsub.f32 %v6251_v40, %v1293_v38  ;;  %v1510_v30 = vmul.f32 0.5, %v1509_v63  ;;  %v1775_v63 = vmul.f32 %v6334_v26, %v1755_v37 }
 0x41c   :  { %v1325_v1 = vmul.f32 %v6468_v48, %v6468_v48  ;;  %v1511_v17 = vsub.f32 1.5, %v1510_v30  ;;  %v1812_v30 = vmul.f32 %v6346_v55, %v1791_v47 }
 0x41d   :  { %2595 = vmatpush.bf16.msrb.mxu0 %v9056_v11  ;;  %v1897_v11 = vmul.f32 %v6366_v46, %v1876_v43 }
 0x41e   :  { %v1369_v2 = vsel %vm1223_vm2, %v1325_v1, 0.0  ;;  %v1512_v1 = vmul.f32 %v4361_v13, %v1511_v17  ;;  %v1828_v40 = vadd.f32 %v1812_v30, %v1775_v63 }
 0x41f   :  { %1370 = vadd.xlane.f32.xlu0 %v1369_v2  ;;  %v1362_v25 = vpop.xlane.xlu0 %1361  ;;  %v6495_v2 = vpop.eup %4362 }
 0x420   :  { %v1386_v22 = vmul.f32 %v1362_v25, %v5447_v18  ;;  %v9062_v25 = vld [vmem:[#allocation36_spill] sm:$0xff]  ;;  %v1498_v61 = vmul.f32 %v6495_v2, %v6473_v16  ;;  %v1913_v17 = vadd.f32 %v1897_v11, %v1828_v40  ;;  %v1987_v40 = vmul.f32 %v6389_v33, %v6378_v59 }
 0x421   :  { %2596 = vmatpush.bf16.msrb.mxu0 %v9061_v36  ;;  %v1929_v37 = vmul.f32 %v6402_v4, %v9062_v25  ;;  %v4323_v4 = vld [vmem:[%s8448_s9] ss:$0 sm:$0xff]  ;;  %v9064_v11 = vrot.slane %v6378_v59, 7  ;;  %s4518_s9 = smov 32   ;;  %vm1504_vm8 = vweird.f32 %v6495_v2 }
 0x422   :  { %v1402_v38 = vadd.f32 1e-05, %v1386_v22  ;;  %v1516_v22 = vsel %vm1515_vm4, %v4361_v13, %v1512_v1  ;;  %v1499_v23 = vmul.f32 %v6495_v2, %v1498_v61  ;;  %v9063_v1 = vld [vmem:[#allocation52_spill] sm:$0xff]  ;;  %vm1505_vm10 = vmor %vm1503_vm9, %vm1504_vm8 }
 0x423   :  { %v1950_v47 = vmul.f32 %v6375_v5, %v1929_v37  ;;  %v1577_v43 = vmul.f32 %v1516_v22, %v6213_v57  ;;  %v9065_v37 = vrot.slane %v6378_v59, 1 }
 0x424   :  { %4364 = vrsqrt.f32 %v1402_v38  ;;  %v6523_v32 = vmul.f32 0.5, %v1499_v23  ;;  %vm1523_vm6 = vweird.f32 %v1402_v38 }
 0x425   :  { %v1966_v45 = vadd.f32 %v1950_v47, %v1913_v17  ;;  %v1597_v61 = vmul.f32 %v6383_v10, %v1577_v43  ;;  %v9066_v47 = vld [vmem:[#allocation73_spill] sm:$0xff] }
 0x427   :  { %v2003_v34 = vadd.f32 %v1987_v40, %v1966_v45  ;;  %v6533_v45 = vadd.f32 %v6416_v60, %v1597_v61 }
 0x42a   :  { %v4365_v58 = vpop.eup %4364 }
 0x42b   :  { %v1518_v36 = vmul.f32 %v4365_v58, %v1402_v38  ;;  %v1690_v41 = vpop.f32.mrf.mxu0  ;;  %vm1524_vm5 = vweird.f32 %v4365_v58 }
 0x42c   :  { %v1724_v63 = vrot.slane %v1690_v41, 7  ;;  %v1845_v30 = vrot.slane %v1690_v41, 1  ;;  %v1793_v25 = vmul.f32 %v1690_v41, %v9063_v1  ;;  %vm1525_vm7 = vmor %vm1523_vm6, %vm1524_vm5 }
 0x42d   :  { %v1519_v13 = vmul.f32 %v4365_v58, %v1518_v36 }
 0x42e   :  { %v1747_v57 = vsel %vm146_vm0, %v9064_v11, %v1724_v63  ;;  %v1868_v22 = vsel %vm412_vm1, %v9065_v37, %v1845_v30  ;;  %v1814_v43 = vmul.f32 %v6346_v55, %v1793_v25  ;;  %v1988_v25 = vmul.f32 %v6389_v33, %v1690_v41 }
 0x42f   :  { %v1520_v17 = vmul.f32 0.5, %v1519_v13  ;;  %v1757_v36 = vmul.f32 %v1747_v57, %v9066_v47  ;;  %v1877_v1 = vmul.f32 %v1868_v22, %v9067_v31  ;;  %v1930_v27 = vmul.f32 %v1747_v57, %v9068_v20  ;;  %v9070_v31 = vld [vmem:[#allocation48_spill] sm:$0xff] }
 0x430   :  { %v2019_v11 = vmul.f32 %v1868_v22, %v9069_v39  ;;  %2231 = vrot.lane.b32.xlu1 %v4323_v4, %s4518_s9  ;;  %v2072_v47 = vmul.f32 %v1747_v57, %v9070_v31  ;;  %v9071_v57 = vld [vmem:[#allocation46_spill] sm:$0xff] }
 0x431   :  { %v1521_v59 = vsub.f32 1.5, %v1520_v17  ;;  %v1777_v37 = vmul.f32 %v6334_v26, %v1757_v36  ;;  %v1898_v13 = vmul.f32 %v6366_v46, %v1877_v1  ;;  %v1951_v4 = vmul.f32 %v6375_v5, %v1930_v27  ;;  %v6548_v27 = vld [vmem:[%s8447_s8 + $0x8] ss:$0 sm:$0xff] }
 0x432   :  { %v2040_v23 = vmul.f32 %v6434_v21, %v2019_v11  ;;  %v2177_v36 = vmul.f32 %v1868_v22, %v9071_v57  ;;  %v9073_v22 = vld [vmem:[#allocation65_spill] sm:$0xff] }
 0x433   :  { %v1522_v40 = vmul.f32 %v4365_v58, %v1521_v59  ;;  %v1830_v39 = vadd.f32 %v1814_v43, %v1777_v37  ;;  %v1914_v20 = vadd.f32 %v1898_v13, %v6427_v54  ;;  %v6537_v17 = vpop.f32.mrf.mxu0  ;;  %v9072_v59 = vld [vmem:[#allocation50_spill] sm:$0xff] }
 0x434   :  { %v8752_v38 = vrot.slane %v6537_v17, 7  ;;  %v8753_v1 = vrot.slane %v6537_v17, 1  ;;  %v2125_v37 = vmul.f32 %v1690_v41, %v9072_v59  ;;  %v2056_v43 = vadd.f32 %v2040_v23, %v2003_v34  ;;  %v9076_v59 = vld [vmem:[#allocation69_spill] sm:$0xff] }
 0x435   :  { %v1526_v61 = vsel %vm1525_vm7, %v4365_v58, %v1522_v40  ;;  %v1967_v11 = vadd.f32 %v1951_v4, %v1914_v20  ;;  %v2093_v34 = vmul.f32 %v6444_v0, %v2072_v47  ;;  %v1501_v41 = vsub.f32 1.5, %v6523_v32  ;;  %v9074_v40 = vld [vmem:[#allocation67_spill] sm:$0xff]  ;;  %v9075_v4 = vld [vmem:[#allocation58_spill] sm:$0xff] }
 0x436   :  { %v1578_v54 = vmul.f32 %v1526_v61, %v6257_v52  ;;  %v6555_v13 = vsel %vm146_vm0, %v1724_v63, %v8752_v38  ;;  %v1867_v20 = vsel %vm412_vm1, %v1845_v30, %v8753_v1  ;;  %v2198_v31 = vmul.f32 %v6548_v27, %v2177_v36  ;;  %v9077_v1 = vld [vmem:[#allocation49_spill] sm:$0xff] }
 0x437   :  { %v2004_v58 = vadd.f32 %v1988_v25, %v1967_v11  ;;  %v1878_v23 = vmul.f32 %v1867_v20, %v9073_v22  ;;  %v1931_v52 = vmul.f32 %v6555_v13, %v9074_v40  ;;  %v2020_v61 = vmul.f32 %v1867_v20, %v9075_v4 }
 0x438   :  { %v2073_v63 = vmul.f32 %v6555_v13, %v9076_v59  ;;  %v1353_v38 = vpop.xlane.xlu2 %1352  ;;  %v2109_v57 = vadd.f32 %v2093_v34, %v2056_v43  ;;  %v2146_v30 = vmul.f32 %v6454_v15, %v2125_v37  ;;  %v2507_v25 = vpack.c.bf16 %v6533_v45, %v6533_v45 }
 0x439   :  { %v1899_v47 = vmul.f32 %v6366_v46, %v1878_v23  ;;  %v1383_v32 = vmul.f32 %v1353_v38, %v5447_v18  ;;  %v1952_v11 = vmul.f32 %v6375_v5, %v1931_v52  ;;  %v2178_v40 = vmul.f32 %v1867_v20, %v9077_v1 }
 0x43a   :  { %v1598_v4 = vmul.f32 %v6383_v10, %v1578_v54  ;;  %v2041_v59 = vmul.f32 %v6434_v21, %v2020_v61  ;;  %v2162_v36 = vadd.f32 %v2146_v30, %v2109_v57  ;;  %v2094_v37 = vmul.f32 %v6444_v0, %v2073_v63 }
 0x43b   :  { %v1915_v43 = vadd.f32 %v1899_v47, %v1830_v39  ;;  %v1399_v34 = vadd.f32 1e-05, %v1383_v32  ;;  %v2199_v23 = vmul.f32 %v6548_v27, %v2178_v40  ;;  %v6583_v51 = vadd.f32 %v2198_v31, %v6464_v8 }
 0x43c   :  { %v1618_v38 = vadd.f32 %v6416_v60, %v1598_v4  ;;  %v2057_v22 = vadd.f32 %v2041_v59, %v2004_v58  ;;  %v1502_v39 = vmul.f32 %v6495_v2, %v1501_v41  ;;  %v6595_v59 = vunpack.c.l.b16 %v2507_v25 }
 0x43d   :  { %9078 = vst [vmem:[#allocation134_spill] sm:$0xff] %v6583_v51  ;;  %v6585_v52 = vadd.f32 %v1952_v11, %v1915_v43  ;;  %4366 = vrsqrt.f32 %v1399_v34  ;;  %v6587_v20 = vadd.f32 %v2199_v23, %v2162_v36  ;;  %vm1493_vm12 = vweird.f32 %v1399_v34  ;;  %v9087_v51 = vld [vmem:[#allocation71_spill] sm:$0xff] }
 0x43e   :  { %v2508_v54 = vpack.c.bf16 %v1618_v38, %v1618_v38  ;;  %v6589_v61 = vadd.f32 %v2094_v37, %v2057_v22  ;;  %v1506_v40 = vsel %vm1505_vm10, %v6495_v2, %v1502_v39 }
 0x43f   :  { %9079 = vst [vmem:[#allocation22_spill] sm:$0xff] %v6587_v20  ;;  %2423 = vrot.lane.b32.xlu1 %v6587_v20, %s4518_s9  ;;  %v1576_v47 = vmul.f32 %v1506_v40, %v6173_v42  ;;  %v9086_v20 = vld [vmem:[#allocation60_spill] sm:$0xff] }
 0x440   :  { %v1271_v57 = vpop.xlane.xlu2 %1270  ;;  %v6597_v8 = vunpack.c.l.b16 %v2508_v54 }
 0x441   :  { %v1294_v31 = vmul.f32 %v5447_v18, %v1271_v57  ;;  %v1596_v11 = vmul.f32 %v6383_v10, %v1576_v47 }
 0x443   :  { %v4367_v22 = vpop.eup %4366  ;;  %v6604_v41 = vsub.f32 %v6305_v44, %v1294_v31  ;;  %v1616_v37 = vadd.f32 %v6416_v60, %v1596_v11 }
 0x444   :  { %v1488_v4 = vmul.f32 %v4367_v22, %v1399_v34  ;;  %vm1494_vm11 = vweird.f32 %v4367_v22 }
 0x445   :  { %v1326_v63 = vmul.f32 %v6604_v41, %v6604_v41  ;;  %vm1495_vm13 = vmor %vm1493_vm12, %vm1494_vm11  ;;  %v2506_v54 = vpack.c.bf16 %v1616_v37, %v1616_v37 }
 0x446   :  { %v1489_v30 = vmul.f32 %v4367_v22, %v1488_v4 }
 0x447   :  { %v1372_v32 = vsel %vm1223_vm2, %v1326_v63, 0.0  ;;  %v6619_v40 = vunpack.c.l.b16 %v2506_v54 }
 0x448   :  { %v1490_v16 = vmul.f32 0.5, %v1489_v30  ;;  %1373 = vadd.xlane.f32.xlu2 %v1372_v32 }
 0x44a   :  { %v1491_v25 = vsub.f32 1.5, %v1490_v16 }
 0x44c   :  { %v1492_v43 = vmul.f32 %v4367_v22, %v1491_v25 }
 0x44e   :  { %v1496_v36 = vsel %vm1495_vm13, %v4367_v22, %v1492_v43  ;;  %v1365_v22 = vpop.xlane.xlu2 %1364  ;;  %vm2250_vm13 = vcmask 392448  }
 0x44f   :  { %v1575_v2 = vmul.f32 %v1496_v36, %v6296_v19  ;;  %v1628_v19 = vpack.c.bf16 %v1618_v38, %v6533_v45  ;;  %v1387_v4 = vmul.f32 %v1365_v22, %v5447_v18  ;;  %v9083_v22 = vld [vmem:[#allocation74_spill] sm:$0xff] }
 0x451   :  { %v1595_v23 = vmul.f32 %v6383_v10, %v1575_v2  ;;  %v1403_v63 = vadd.f32 1e-05, %v1387_v4 }
 0x453   :  { %v1615_v42 = vadd.f32 %v6416_v60, %v1595_v23  ;;  %4368 = vrsqrt.f32 %v1403_v63  ;;  %vm1533_vm15 = vweird.f32 %v1403_v63 }
 0x455   :  { %v1627_v39 = vpack.c.bf16 %v1616_v37, %v1615_v42  ;;  %v2505_v57 = vpack.c.bf16 %v1615_v42, %v1615_v42  ;;  %v9080_v37 = vld [vmem:[#allocation114_spill] sm:$0xff]  ;;  %v9081_v42 = vrot.slane %v6537_v17, 7 }
 0x457   :  { %4074 = vmatmul.msk.bf16.gmra.mxu0 %vm1223_vm2, %v1627_v39  ;;  %v6617_v31 = vunpack.c.l.b16 %v2505_v57  ;;  %v9082_v39 = vrot.slane %v6537_v17, 1 }
 0x459   :  { %v4369_v30 = vpop.eup %4368 }
 0x45a   :  { %v1528_v47 = vmul.f32 %v4369_v30, %v1403_v63  ;;  %vm1534_vm14 = vweird.f32 %v4369_v30 }
 0x45b   :  { %vm1535_vm3 = vmor %vm1533_vm15, %vm1534_vm14  ;;  %vm2585_vm14 = vcmask 523264  }
 0x45c   :  { %v1529_v32 = vmul.f32 %v4369_v30, %v1528_v47  ;;  %v9084_v47 = vld [vmem:[#allocation47_spill] sm:$0xff] }
 0x45e   :  { %v1530_v25 = vmul.f32 0.5, %v1529_v32 }
 0x460   :  { %v1531_v36 = vsub.f32 1.5, %v1530_v25  ;;  %v1989_v25 = vmul.f32 %v6389_v33, %v6537_v17 }
 0x462   :  { %v2005_v34 = vadd.f32 %v1989_v25, %v6585_v52 }
 0x467   :  { %4075 = vmatmul.msk.bf16.gmra.mxu0 %vm1223_vm2, %v1628_v19  ;;  %v1532_v19 = vmul.f32 %v4369_v30, %v1531_v36 }
 0x469   :  { %v1536_v58 = vsel %vm1535_vm3, %v4369_v30, %v1532_v19 }
 0x46a   :  { %v1579_v19 = vmul.f32 %v1536_v58, %v6308_v3  ;;  %v9091_v3 = vld [vmem:[#allocation64_spill] sm:$0xff] }
 0x48a   :  { %v1368_v16 = vpop.xlane.xlu1 %1367 }
 0x48b   :  { %v1388_v11 = vmul.f32 %v1368_v16, %v5447_v18 }
 0x48d   :  { %v1404_v43 = vadd.f32 1e-05, %v1388_v11 }
 0x48e   :  { %v6627_v2 = vpop.f32.mrf.mxu0 }
 0x48f   :  { %4370 = vrsqrt.f32 %v1404_v43  ;;  %v1726_v45 = vrot.slane %v6627_v2, 7  ;;  %v1847_v38 = vrot.slane %v6627_v2, 1  ;;  %v1795_v23 = vmul.f32 %v6627_v2, %v9080_v37 }
 0x490   :  { %v2127_v63 = vmul.f32 %v6627_v2, %v9086_v20  ;;  %vm1543_vm5 = vweird.f32 %v1404_v43 }
 0x491   :  { %v6637_v54 = vsel %vm146_vm0, %v9081_v42, %v1726_v45  ;;  %v6643_v57 = vsel %vm412_vm1, %v9082_v39, %v1847_v38  ;;  %v1816_v42 = vmul.f32 %v6346_v55, %v1795_v23 }
 0x492   :  { %v1759_v4 = vmul.f32 %v6637_v54, %v9083_v22  ;;  %v2021_v32 = vmul.f32 %v6643_v57, %v9084_v47  ;;  %v9085_v47 = vld [vmem:[#allocation89_spill] sm:$0xff] }
 0x493   :  { %v2074_v37 = vmul.f32 %v6637_v54, %v9085_v47 }
 0x494   :  { %v1779_v11 = vmul.f32 %v6334_v26, %v1759_v4  ;;  %v2042_v36 = vmul.f32 %v6434_v21, %v2021_v32  ;;  %v2126_v32 = vmul.f32 %v6537_v17, %v9087_v51 }
 0x495   :  { %v4371_v16 = vpop.eup %4370  ;;  %v2095_v58 = vmul.f32 %v6444_v0, %v2074_v37  ;;  %v1371_v37 = vpop.xlane.xlu0 %1370 }
 0x496   :  { %v1538_v39 = vmul.f32 %v4371_v16, %v1404_v43  ;;  %v1832_v44 = vadd.f32 %v1816_v42, %v1779_v11  ;;  %v6655_v22 = vpop.f32.mrf.mxu0  ;;  %v2058_v30 = vadd.f32 %v2042_v36, %v2005_v34  ;;  %vm1544_vm4 = vweird.f32 %v4371_v16 }
 0x497   :  { %v8761_v4 = vrot.slane %v6655_v22, 7  ;;  %v8762_v23 = vrot.slane %v6655_v22, 1  ;;  %v1796_v52 = vmul.f32 %v6655_v22, %v9088_v50  ;;  %v9090_v50 = vld [vmem:[#allocation63_spill] sm:$0xff]  ;;  %vm1545_vm6 = vmor %vm1543_vm5, %vm1544_vm4  ;;  %v1991_v43 = vmul.f32 %v6389_v33, %v6655_v22 }
 0x498   :  { %v1539_v1 = vmul.f32 %v4371_v16, %v1538_v39  ;;  %v9089_v39 = vld [vmem:[#allocation84_spill] sm:$0xff]  ;;  %v2111_v51 = vadd.f32 %v2095_v58, %v2058_v30  ;;  %v9094_v58 = vld [vmem:[#allocation75_spill] sm:$0xff] }
 0x499   :  { %v6672_v11 = vsel %vm146_vm0, %v1726_v45, %v8761_v4  ;;  %v6678_v42 = vsel %vm412_vm1, %v1847_v38, %v8762_v23  ;;  %v2148_v45 = vmul.f32 %v6454_v15, %v2127_v63  ;;  %v9092_v4 = vld [vmem:[#allocation79_spill] sm:$0xff]  ;;  %v1817_v23 = vmul.f32 %v6346_v55, %v1796_v52 }
 0x49a   :  { %v1540_v25 = vmul.f32 0.5, %v1539_v1  ;;  %v1760_v20 = vmul.f32 %v6672_v11, %v9089_v39  ;;  %v1880_v34 = vmul.f32 %v6678_v42, %v9090_v50  ;;  %v1933_v1 = vmul.f32 %v6672_v11, %v9091_v3 }
 0x49b   :  { %v2179_v47 = vmul.f32 %v6643_v57, %v9092_v4  ;;  %v2147_v50 = vmul.f32 %v6454_v15, %v2126_v32  ;;  %v2164_v49 = vadd.f32 %v2148_v45, %v2111_v51  ;;  %v2180_v30 = vmul.f32 %v6678_v42, %v9093_v53 }
 0x49c   :  { %v1541_v36 = vsub.f32 1.5, %v1540_v25  ;;  %v1780_v38 = vmul.f32 %v6334_v26, %v1760_v20  ;;  %v1901_v39 = vmul.f32 %v6366_v46, %v1880_v34  ;;  %v1954_v63 = vmul.f32 %v6375_v5, %v1933_v1 }
 0x49d   :  { %v1599_v20 = vmul.f32 %v6383_v10, %v1579_v19  ;;  %v2163_v52 = vadd.f32 %v2147_v50, %v6589_v61  ;;  %v2201_v51 = vmul.f32 %v6548_v27, %v2180_v30 }
 0x49e   :  { %v1542_v56 = vmul.f32 %v4371_v16, %v1541_v36  ;;  %v6694_v25 = vadd.f32 %v1817_v23, %v1780_v38  ;;  %v1917_v3 = vadd.f32 %v1901_v39, %v1832_v44  ;;  %v2200_v23 = vmul.f32 %v6548_v27, %v2179_v47 }
 0x49f   :  { %v1389_v44 = vmul.f32 %v1371_v37, %v5447_v18  ;;  %v6712_v61 = vadd.f32 %v2201_v51, %v2164_v49  ;;  %v1758_v36 = vmul.f32 %v6555_v13, %v9094_v58  ;;  %v9095_v37 = vld [vmem:[#allocation61_spill] sm:$0xff] }
 0x4a0   :  { %v1546_v4 = vsel %vm1545_vm6, %v4371_v16, %v1542_v56  ;;  %v1970_v34 = vadd.f32 %v1954_v63, %v1917_v3  ;;  %v6710_v50 = vadd.f32 %v2200_v23, %v2163_v52  ;;  %v1794_v63 = vmul.f32 %v6537_v17, %v9095_v37 }
 0x4a1   :  { %v1580_v32 = vmul.f32 %v1546_v4, %v6448_v29  ;;  %v6715_v29 = vadd.f32 %v6416_v60, %v1599_v20  ;;  %v1405_v19 = vadd.f32 1e-05, %v1389_v44  ;;  %v9096_v20 = vld [vmem:[#allocation77_spill] sm:$0xff]  ;;  %v9097_v44 = vld [vmem:[#allocation135_spill] sm:$0xff] }
 0x4a2   :  { %v6707_v56 = vadd.f32 %v1991_v43, %v1970_v34  ;;  %v1879_v52 = vmul.f32 %v6643_v57, %v9096_v20  ;;  %v1815_v43 = vmul.f32 %v6346_v55, %v1794_v63  ;;  %v1932_v51 = vmul.f32 %v6637_v54, %v9097_v44 }
 0x4a3   :  { %v1600_v16 = vmul.f32 %v6383_v10, %v1580_v32  ;;  %4372 = vrsqrt.f32 %v1405_v19  ;;  %v1778_v32 = vmul.f32 %v6334_v26, %v1758_v36  ;;  %vm1553_vm8 = vweird.f32 %v1405_v19 }
 0x4a4   :  { %v1900_v23 = vmul.f32 %v6366_v46, %v1879_v52  ;;  %v1953_v57 = vmul.f32 %v6375_v5, %v1932_v51  ;;  %v1990_v54 = vmul.f32 %v6389_v33, %v6627_v2 }
 0x4a5   :  { %v1620_v4 = vadd.f32 %v6416_v60, %v1600_v16  ;;  %v1831_v13 = vadd.f32 %v1815_v43, %v1778_v32  ;;  %v9099_v32 = vld [vmem:[#allocation113_spill] sm:$0xff] }
 0x4a7   :  { %v1629_v47 = vpack.c.bf16 %v1620_v4, %v6715_v29  ;;  %v1916_v16 = vadd.f32 %v1900_v23, %v1831_v13  ;;  %v9100_v13 = vld [vmem:[#allocation66_spill] sm:$0xff] }
 0x4a9   :  { %4076 = vmatmul.msk.bf16.gmra.mxu0 %vm1223_vm2, %v1629_v47  ;;  %v4373_v39 = vpop.eup %4372 }
 0x4aa   :  { %v1548_v3 = vmul.f32 %v4373_v39, %v1405_v19  ;;  %vm1554_vm7 = vweird.f32 %v4373_v39 }
 0x4ab   :  { %vm1555_vm9 = vmor %vm1553_vm8, %vm1554_vm7 }
 0x4ac   :  { %v1549_v1 = vmul.f32 %v4373_v39, %v1548_v3  ;;  %v9098_v3 = vld [vmem:[#allocation101_spill] sm:$0xff] }
 0x4ae   :  { %v1550_v45 = vmul.f32 0.5, %v1549_v1  ;;  %v2022_v1 = vmul.f32 %v6678_v42, %v9098_v3  ;;  %v9177_v3 = vld [vmem:[#allocation20_spill] sm:$0xff] }
 0x4b0   :  { %v1551_v34 = vsub.f32 1.5, %v1550_v45  ;;  %v1969_v45 = vadd.f32 %v1953_v57, %v1916_v16  ;;  %v2043_v52 = vmul.f32 %v6434_v21, %v2022_v1  ;;  %v2510_v57 = vpack.c.bf16 %v1620_v4, %v1620_v4 }
 0x4b2   :  { %v2006_v19 = vadd.f32 %v1990_v54, %v1969_v45  ;;  %v2664_v54 = vunpack.c.l.b16 %v2510_v57 }
 0x4b4   :  { %v2059_v23 = vadd.f32 %v2043_v52, %v2006_v19  ;;  %v9103_v19 = vld [vmem:[#allocation87_spill] sm:$0xff] }
 0x4bb   :  { %v1374_v49 = vpop.xlane.xlu2 %1373 }
 0x4bc   :  { %v1390_v38 = vmul.f32 %v1374_v49, %v5447_v18  ;;  %v1552_v18 = vmul.f32 %v4373_v39, %v1551_v34  ;;  %v2075_v34 = vmul.f32 %v6672_v11, %v9099_v32 }
 0x4be   :  { %v1406_v30 = vadd.f32 1e-05, %v1390_v38  ;;  %v1556_v47 = vsel %vm1555_vm9, %v4373_v39, %v1552_v18  ;;  %v2096_v2 = vmul.f32 %v6444_v0, %v2075_v34 }
 0x4bf   :  { %v1581_v38 = vmul.f32 %v1556_v47, %v6468_v48  ;;  %v2128_v48 = vmul.f32 %v6655_v22, %v9100_v13  ;;  %v2509_v47 = vpack.c.bf16 %v6715_v29, %v6715_v29 }
 0x4c0   :  { %4374 = vrsqrt.f32 %v1406_v30  ;;  %vm1563_vm11 = vweird.f32 %v1406_v30  ;;  %v2112_v11 = vadd.f32 %v2096_v2, %v2059_v23  ;;  %v9106_v23 = vld [vmem:[#allocation80_spill] sm:$0xff] }
 0x4c1   :  { %v1601_v39 = vmul.f32 %v6383_v10, %v1581_v38 }
 0x4c3   :  { %v1621_v16 = vadd.f32 %v6416_v60, %v1601_v39 }
 0x4c5   :  { %v2511_v38 = vpack.c.bf16 %v1621_v16, %v1621_v16 }
 0x4c6   :  { %v4375_v17 = vpop.eup %4374 }
 0x4c7   :  { %v1558_v36 = vmul.f32 %v4375_v17, %v1406_v30  ;;  %vm1564_vm10 = vweird.f32 %v4375_v17  ;;  %v2665_v13 = vunpack.c.l.b16 %v2511_v38 }
 0x4c8   :  { %vm1565_vm12 = vmor %vm1563_vm11, %vm1564_vm10 }
 0x4c9   :  { %v1559_v49 = vmul.f32 %v4375_v17, %v1558_v36  ;;  %v2149_v36 = vmul.f32 %v6454_v15, %v2128_v48 }
 0x4cb   :  { %v1560_v63 = vmul.f32 0.5, %v1559_v49  ;;  %v2165_v52 = vadd.f32 %v2149_v36, %v2112_v11 }
 0x4cd   :  { %v1561_v43 = vsub.f32 1.5, %v1560_v63  ;;  %v9102_v63 = vrot.slane %v6655_v22, 1 }
 0x4cf   :  { %v1562_v42 = vmul.f32 %v4375_v17, %v1561_v43  ;;  %v9104_v43 = vld [vmem:[#allocation70_spill] sm:$0xff] }
 0x4d1   :  { %v1566_v51 = vsel %vm1565_vm12, %v4375_v17, %v1562_v42  ;;  %v9105_v42 = vld [vmem:[#allocation139_spill] sm:$0xff] }
 0x4d2   :  { %v1582_v18 = vmul.f32 %v1566_v51, %v6604_v41  ;;  %v9101_v41 = vrot.slane %v6655_v22, 7  ;;  %v9107_v51 = vld [vmem:[#allocation78_spill] sm:$0xff] }
 0x4d4   :  { %v1700_v1 = vpop.f32.mrf.mxu0  ;;  %v1602_v30 = vmul.f32 %v6383_v10, %v1582_v18  ;;  %v2663_v10 = vunpack.c.l.b16 %v2509_v47  ;;  %v9108_v18 = vld [vmem:[#allocation105_spill] sm:$0xff] }
 0x4d5   :  { %v1728_v45 = vrot.slane %v1700_v1, 7  ;;  %v1849_v49 = vrot.slane %v1700_v1, 1  ;;  %v1797_v34 = vmul.f32 %v1700_v1, %v9103_v19  ;;  %v2129_v57 = vmul.f32 %v1700_v1, %v9108_v18  ;;  %v9110_v19 = vld [vmem:[#allocation121_spill] sm:$0xff]  ;;  %v9113_v18 = vld [vmem:[#allocation88_spill] sm:$0xff] }
 0x4d6   :  { %v1622_v17 = vadd.f32 %v6416_v60, %v1602_v30  ;;  %v2669_v47 = vpack.c.b16 %v2664_v54, %v2663_v10  ;;  %v1992_v36 = vmul.f32 %v6389_v33, %v1700_v1 }
 0x4d7   :  { %v1743_v4 = vsel %vm146_vm0, %v9101_v41, %v1728_v45  ;;  %v1864_v29 = vsel %vm412_vm1, %v9102_v63, %v1849_v49  ;;  %v9109_v63 = vld [vmem:[#allocation82_spill] sm:$0xff]  ;;  %v2150_v1 = vmul.f32 %v6454_v15, %v2129_v57  ;;  %v9112_v57 = vld [vmem:[#allocation81_spill] sm:$0xff] }
 0x4d8   :  { %v1881_v39 = vmul.f32 %v1864_v29, %v9104_v43  ;;  %v1934_v60 = vmul.f32 %v1743_v4, %v9105_v42  ;;  %v2023_v48 = vmul.f32 %v1864_v29, %v9106_v23  ;;  %v1761_v2 = vmul.f32 %v1743_v4, %v9107_v51 }
 0x4d9   :  { %v1630_v30 = vpack.c.bf16 %v1622_v17, %v1621_v16  ;;  %v2512_v41 = vpack.c.bf16 %v1622_v17, %v1622_v17  ;;  %v2181_v11 = vmul.f32 %v1864_v29, %v9109_v63  ;;  %v2076_v43 = vmul.f32 %v1743_v4, %v9110_v19 }
 0x4da   :  { %v1902_v22 = vmul.f32 %v6366_v46, %v1881_v39  ;;  %v2044_v23 = vmul.f32 %v6434_v21, %v2023_v48  ;;  %v1818_v51 = vmul.f32 %v6346_v55, %v1797_v34  ;;  %v1955_v17 = vmul.f32 %v6375_v5, %v1934_v60 }
 0x4db   :  { %4077 = vmatmul.msk.bf16.gmra.mxu0 %vm1223_vm2, %v1630_v30  ;;  %v2666_v42 = vunpack.c.l.b16 %v2512_v41  ;;  %v2202_v38 = vmul.f32 %v6548_v27, %v2181_v11  ;;  %v1781_v54 = vmul.f32 %v6334_v26, %v1761_v2  ;;  %v9111_v30 = vld [vmem:[#allocation83_spill] sm:$0xff]  ;;  %v2097_v2 = vmul.f32 %v6444_v0, %v2076_v43 }
 0x4dc   :  { %v1918_v16 = vadd.f32 %v1902_v22, %v6694_v25  ;;  %v1702_v39 = vpop.f32.mrf.mxu0  ;;  %v2060_v60 = vadd.f32 %v2044_v23, %v6707_v56 }
 0x4dd   :  { %v1729_v29 = vrot.slane %v1702_v39, 7  ;;  %v1850_v4 = vrot.slane %v1702_v39, 1  ;;  %v1798_v41 = vmul.f32 %v1702_v39, %v9111_v30  ;;  %v2670_v63 = vpack.c.b16 %v2666_v42, %v2665_v13 }
 0x4de   :  { %v1971_v10 = vadd.f32 %v1955_v17, %v1918_v16  ;;  %v6779_v48 = vadd.f32 %v2202_v38, %v2165_v52  ;;  %v9114_v17 = vld [vmem:[#allocation141_spill] sm:$0xff]  ;;  %v1834_v13 = vadd.f32 %v1818_v51, %v1781_v54  ;;  %v9115_v52 = vld [vmem:[#allocation90_spill] sm:$0xff]  ;;  %v9116_v38 = vld [vmem:[#allocation123_spill] sm:$0xff]  ;;  %v2130_v19 = vmul.f32 %v1702_v39, %v9000_v7 }
 0x4df   :  { %v1742_v25 = vsel %vm146_vm0, %v1728_v45, %v1729_v29  ;;  %v1863_v34 = vsel %vm412_vm1, %v1849_v49, %v1850_v4  ;;  %2682 = vmatpush.bf16.msra.mxu0 %v2670_v63  ;;  %v1819_v49 = vmul.f32 %v6346_v55, %v1798_v41  ;;  %v2113_v23 = vadd.f32 %v2097_v2, %v2060_v60  ;;  %v9117_v63 = vld [vmem:[#allocation68_spill] sm:$0xff] }
 0x4e0   :  { %v2008_v22 = vadd.f32 %v1992_v36, %v1971_v10  ;;  %v1762_v11 = vmul.f32 %v1742_v25, %v9112_v57  ;;  %v1882_v16 = vmul.f32 %v1863_v34, %v9113_v18  ;;  %v1935_v30 = vmul.f32 %v1742_v25, %v9114_v17  ;;  %2429 = vrot.lane.b32.xlu1 %v6779_v48, %s4518_s9  ;;  %v9118_v60 = vld [vmem:[#allocation100_spill] sm:$0xff] }
 0x4e1   :  { %v2024_v42 = vmul.f32 %v1863_v34, %v9115_v52  ;;  %v2077_v45 = vmul.f32 %v1742_v25, %v9116_v38  ;;  %v2182_v51 = vmul.f32 %v1863_v34, %v9117_v63  ;;  %v2166_v38 = vadd.f32 %v2150_v1, %v2113_v23  ;;  %v9119_v1 = vld [vmem:[#allocation98_spill] sm:$0xff] }
 0x4e2   :  { %v1782_v56 = vmul.f32 %v6334_v26, %v1762_v11  ;;  %v1903_v43 = vmul.f32 %v6366_v46, %v1882_v16  ;;  %v1956_v25 = vmul.f32 %v6375_v5, %v1935_v30  ;;  %v2151_v16 = vmul.f32 %v6454_v15, %v2130_v19 }
 0x4e3   :  { %v2045_v36 = vmul.f32 %v6434_v21, %v2024_v42  ;;  %2683 = vmatpush.bf16.msra.mxu0 %v2669_v47  ;;  %v2098_v57 = vmul.f32 %v6444_v0, %v2077_v45  ;;  %v2203_v47 = vmul.f32 %v6548_v27, %v2182_v51  ;;  %v9122_v19 = vpack.c.b16 %v6597_v8, %v6595_v59  ;;  %v9124_v51 = vld [vmem:[#allocation94_spill] sm:$0xff] }
 0x4e4   :  { %v1835_v54 = vadd.f32 %v1819_v49, %v1782_v56  ;;  %v1919_v10 = vadd.f32 %v1903_v43, %v1834_v13  ;;  %v1705_v7 = vpop.f32.mrf.mxu0  ;;  %v9120_v13 = vld [vmem:[#allocation86_spill] sm:$0xff]  ;;  %v9121_v56 = vld [vmem:[#allocation143_spill] sm:$0xff]  ;;  %v9123_v43 = vld [vmem:[#allocation92_spill] sm:$0xff] }
 0x4e5   :  { %v2061_v17 = vadd.f32 %v2045_v36, %v2008_v22  ;;  %v1730_v11 = vrot.slane %v1705_v7, 7  ;;  %v1851_v52 = vrot.slane %v1705_v7, 1  ;;  %v1799_v2 = vmul.f32 %v1705_v7, %v9118_v60 }
 0x4e6   :  { %v1972_v41 = vadd.f32 %v1956_v25, %v1919_v10  ;;  %v6823_v59 = vadd.f32 %v2203_v47, %v2166_v38  ;;  %v9127_v38 = vld [vmem:[#allocation115_spill] sm:$0xff] }
 0x4e7   :  { %v2114_v42 = vadd.f32 %v2098_v57, %v2061_v17  ;;  %v1741_v34 = vsel %vm146_vm0, %v1729_v29, %v1730_v11  ;;  %v1862_v30 = vsel %vm412_vm1, %v1850_v4, %v1851_v52  ;;  %2684 = vmatpush.bf16.msra.mxu0 %v9122_v19  ;;  %v1993_v57 = vmul.f32 %v6389_v33, %v1702_v39 }
 0x4e8   :  { %v1763_v22 = vmul.f32 %v1741_v34, %v9119_v1  ;;  %v1883_v45 = vmul.f32 %v1862_v30, %v9120_v13  ;;  %v1936_v49 = vmul.f32 %v1741_v34, %v9121_v56  ;;  %v2025_v29 = vmul.f32 %v1862_v30, %v9123_v43  ;;  %v9125_v13 = vld [vmem:[#allocation116_spill] sm:$0xff]  ;;  %v7010_v43 = vld [vmem:[%s8447_s8 + $0x6] ss:$0 sm:$0xff] }
 0x4e9   :  { %v2167_v17 = vadd.f32 %v2151_v16, %v2114_v42  ;;  %v1820_v4 = vmul.f32 %v6346_v55, %v1799_v2  ;;  %v2183_v10 = vmul.f32 %v1862_v30, %v9124_v51  ;;  %v2009_v25 = vadd.f32 %v1993_v57, %v1972_v41 }
 0x4ea   :  { %v1783_v23 = vmul.f32 %v6334_v26, %v1763_v22  ;;  %v1904_v36 = vmul.f32 %v6366_v46, %v1883_v45  ;;  %v2078_v56 = vmul.f32 %v1741_v34, %v9125_v13  ;;  %v2046_v1 = vmul.f32 %v6434_v21, %v2025_v29 }
 0x4eb   :  { %v1957_v16 = vmul.f32 %v6375_v5, %v1936_v49  ;;  %v2204_v42 = vmul.f32 %v6548_v27, %v2183_v10  ;;  %v9126_v2 = vpack.c.b16 %v6619_v40, %v6617_v31  ;;  %v1994_v30 = vmul.f32 %v6389_v33, %v1705_v7 }
 0x4ec   :  { %v1836_v8 = vadd.f32 %v1820_v4, %v1783_v23  ;;  %v1920_v39 = vadd.f32 %v1904_v36, %v1835_v54  ;;  %v1707_v22 = vpop.f32.mrf.mxu0  ;;  %v2062_v57 = vadd.f32 %v2046_v1, %v2009_v25  ;;  %v9128_v54 = vld [vmem:[#allocation107_spill] sm:$0xff]  ;;  %v9129_v23 = vld [vmem:[#allocation112_spill] sm:$0xff]  ;;  %v9130_v36 = vld [vmem:[#allocation102_spill] sm:$0xff] }
 0x4ed   :  { %2685 = vmatpush.bf16.msra.mxu0 %v9126_v2  ;;  %v1731_v41 = vrot.slane %v1707_v22, 7  ;;  %v1852_v45 = vrot.slane %v1707_v22, 1  ;;  %v6831_v19 = vadd.f32 %v2204_v42, %v2167_v17  ;;  %v1800_v47 = vmul.f32 %v1707_v22, %v9127_v38  ;;  %v9131_v17 = vld [vmem:[#allocation144_spill] sm:$0xff]  ;;  %v9133_v1 = vld [vmem:[#allocation59_spill] sm:$0xff] }
 0x4ee   :  { %v1973_v34 = vadd.f32 %v1957_v16, %v1920_v39  ;;  %v2131_v29 = vmul.f32 %v1705_v7, %v9128_v54  ;;  %v2099_v39 = vmul.f32 %v6444_v0, %v2078_v56  ;;  %v9132_v42 = vld [vmem:[#allocation104_spill] sm:$0xff] }
 0x4ef   :  { %v1740_v49 = vsel %vm146_vm0, %v1730_v11, %v1731_v41  ;;  %v1861_v31 = vsel %vm412_vm1, %v1851_v52, %v1852_v45  ;;  %v1821_v11 = vmul.f32 %v6346_v55, %v1800_v47  ;;  %v9135_v56 = vld [vmem:[#allocation96_spill] sm:$0xff]  ;;  %v1995_v47 = vmul.f32 %v6389_v33, %v1707_v22 }
 0x4f0   :  { %v2010_v40 = vadd.f32 %v1994_v30, %v1973_v34  ;;  %v1764_v4 = vmul.f32 %v1740_v49, %v9129_v23  ;;  %v1884_v10 = vmul.f32 %v1861_v31, %v9130_v36  ;;  %v1937_v16 = vmul.f32 %v1740_v49, %v9131_v17  ;;  %v9134_v23 = vld [vmem:[#allocation109_spill] sm:$0xff] }
 0x4f1   :  { %v2026_v2 = vmul.f32 %v1861_v31, %v9132_v42  ;;  %v2079_v25 = vmul.f32 %v1740_v49, %v9133_v1  ;;  %v2115_v52 = vadd.f32 %v2099_v39, %v2062_v57  ;;  %v2152_v30 = vmul.f32 %v6454_v15, %v2131_v29 }
 0x4f2   :  { %v1784_v7 = vmul.f32 %v6334_v26, %v1764_v4  ;;  %v1905_v38 = vmul.f32 %v6366_v46, %v1884_v10  ;;  %v2132_v36 = vmul.f32 %v1707_v22, %v9134_v23  ;;  %v2184_v51 = vmul.f32 %v1861_v31, %v9135_v56 }
 0x4f3   :  { %v2047_v34 = vmul.f32 %v6434_v21, %v2026_v2  ;;  %v1958_v42 = vmul.f32 %v6375_v5, %v1937_v16  ;;  %v2100_v26 = vmul.f32 %v6444_v0, %v2079_v25  ;;  %v2168_v4 = vadd.f32 %v2152_v30, %v2115_v52  ;;  %v9140_v2 = vld [vmem:[#allocation97_spill] sm:$0xff]  ;;  %v9142_v52 = vld [vmem:[#allocation118_spill] sm:$0xff] }
 0x4f4   :  { %v1837_v17 = vadd.f32 %v1821_v11, %v1784_v7  ;;  %v1921_v13 = vadd.f32 %v1905_v38, %v1836_v8  ;;  %v2205_v55 = vmul.f32 %v6548_v27, %v2184_v51  ;;  %v2153_v29 = vmul.f32 %v6454_v15, %v2132_v36  ;;  %v9138_v51 = vld [vmem:[#allocation120_spill] sm:$0xff]  ;;  %v9141_v7 = vld [vmem:[#allocation106_spill] sm:$0xff] }
 0x4f5   :  { %v2063_v49 = vadd.f32 %v2047_v34, %v2010_v40  ;;  %v9137_v40 = vld [vmem:[#allocation28_spill] sm:$0xff] }
 0x4f6   :  { %v1974_v46 = vadd.f32 %v1958_v42, %v1921_v13  ;;  %v6857_v10 = vadd.f32 %v2205_v55, %v2168_v4  ;;  %v9139_v36 = vld [vmem:[#allocation140_spill] sm:$0xff]  ;;  %v6882_v55 = vld [vmem:[%s8447_s8 + $0x1] ss:$0 sm:$0xff] }
 0x4f7   :  { %v2116_v57 = vadd.f32 %v2100_v26, %v2063_v49  ;;  %v9143_v34 = vld [vmem:[#allocation108_spill] sm:$0xff]  ;;  %v9144_v26 = vld [vmem:[#allocation110_spill] sm:$0xff] }
 0x4f8   :  { %9136 = vst [vmem:[#allocation21_spill] sm:$0xff] %v6857_v10  ;;  %v2011_v39 = vadd.f32 %v1995_v47, %v1974_v46  ;;  %2435 = vrot.lane.b32.xlu1 %v6857_v10, %s4518_s9  ;;  %v6888_v47 = vld [vmem:[%s8447_s8 + $0x2] ss:$0 sm:$0xff] }
 0x4f9   :  { %v2169_v31 = vadd.f32 %v2153_v29, %v2116_v57 }
 0x526   :  { %v1710_v5 = vpop.f32.mrf.mxu0 }
 0x527   :  { %v1732_v8 = vrot.slane %v1710_v5, 7  ;;  %v1853_v38 = vrot.slane %v1710_v5, 1  ;;  %v1801_v16 = vmul.f32 %v1710_v5, %v9137_v40  ;;  %v2133_v49 = vmul.f32 %v1710_v5, %v9143_v34  ;;  %v9151_v40 = vld [vmem:[#allocation95_spill] sm:$0xff] }
 0x529   :  { %v1739_v13 = vsel %vm146_vm0, %v1731_v41, %v1732_v8  ;;  %v1860_v33 = vsel %vm412_vm1, %v1852_v45, %v1853_v38  ;;  %v6876_v41 = vld [vmem:[%s8447_s8] ss:$0 sm:$0xff]  ;;  %v1822_v46 = vmul.f32 %v6882_v55, %v1801_v16 }
 0x52a   :  { %v1765_v22 = vmul.f32 %v1739_v13, %v9138_v51  ;;  %v1885_v42 = vmul.f32 %v1860_v33, %v9139_v36  ;;  %v1938_v25 = vmul.f32 %v1739_v13, %v9140_v2  ;;  %v2027_v11 = vmul.f32 %v1860_v33, %v9141_v7  ;;  %v9149_v2 = vld [vmem:[#allocation103_spill] sm:$0xff]  ;;  %v9150_v36 = vld [vmem:[#allocation126_spill] sm:$0xff] }
 0x52b   :  { %v2080_v30 = vmul.f32 %v1739_v13, %v9142_v52  ;;  %v2185_v4 = vmul.f32 %v1860_v33, %v9144_v26  ;;  %v6895_v13 = vld [vmem:[%s8447_s8 + $0x3] ss:$0 sm:$0xff] }
 0x52c   :  { %v1785_v45 = vmul.f32 %v6876_v41, %v1765_v22  ;;  %v1906_v57 = vmul.f32 %v6888_v47, %v1885_v42  ;;  %v2048_v29 = vmul.f32 %v6434_v21, %v2027_v11  ;;  %v1959_v33 = vmul.f32 %v6895_v13, %v1938_v25  ;;  %v6905_v42 = vld [vmem:[%s8447_s8 + $0x4] ss:$0 sm:$0xff] }
 0x52d   :  { %v2206_v22 = vmul.f32 %v6548_v27, %v2185_v4  ;;  %v2101_v23 = vmul.f32 %v6444_v0, %v2080_v30  ;;  %v1996_v11 = vmul.f32 %v6905_v42, %v1710_v5  ;;  %v9145_v30 = vld [vmem:[#allocation136_spill] sm:$0xff] }
 0x52e   :  { %v1838_v26 = vadd.f32 %v1822_v46, %v1785_v45  ;;  %v1922_v16 = vadd.f32 %v1906_v57, %v1837_v17  ;;  %v2064_v34 = vadd.f32 %v2048_v29, %v2011_v39  ;;  %v6900_v52 = vpop.f32.mrf.mxu0  ;;  %v2154_v39 = vmul.f32 %v6454_v15, %v2133_v49  ;;  %v9148_v49 = vld [vmem:[#allocation99_spill] sm:$0xff] }
 0x52f   :  { %v6908_v7 = vadd.f32 %v2206_v22, %v2169_v31  ;;  %v8765_v25 = vrot.slane %v6900_v52, 7  ;;  %v8766_v4 = vrot.slane %v6900_v52, 1  ;;  %v1802_v46 = vmul.f32 %v6900_v52, %v9145_v30  ;;  %v9146_v22 = vld [vmem:[#allocation129_spill] sm:$0xff] }
 0x530   :  { %v1975_v45 = vadd.f32 %v1959_v33, %v1922_v16  ;;  %v2117_v17 = vadd.f32 %v2101_v23, %v2064_v34  ;;  %v9147_v23 = vld [vmem:[#allocation117_spill] sm:$0xff]  ;;  %v9166_v18 = vrot.slane %v6900_v52, 1 }
 0x531   :  { %v1738_v57 = vsel %vm146_vm0, %v1732_v8, %v8765_v25  ;;  %v1859_v31 = vsel %vm412_vm1, %v1853_v38, %v8766_v4  ;;  %v1823_v8 = vmul.f32 %v6882_v55, %v1802_v46  ;;  %v1997_v46 = vmul.f32 %v6905_v42, %v6900_v52 }
 0x532   :  { %v2012_v5 = vadd.f32 %v1996_v11, %v1975_v45  ;;  %v2170_v29 = vadd.f32 %v2154_v39, %v2117_v17  ;;  %v1766_v33 = vmul.f32 %v1738_v57, %v9146_v22  ;;  %v1886_v34 = vmul.f32 %v1859_v31, %v9147_v23  ;;  %v9152_v45 = vld [vmem:[#allocation124_spill] sm:$0xff] }
 0x533   :  { %v1939_v16 = vmul.f32 %v1738_v57, %v9148_v49  ;;  %v2028_v30 = vmul.f32 %v1859_v31, %v9149_v2  ;;  %v2081_v1 = vmul.f32 %v1738_v57, %v9150_v36  ;;  %v2186_v38 = vmul.f32 %v1859_v31, %v9151_v40  ;;  %v9162_v2 = vld [vmem:[#allocation31_spill] sm:$0xff] }
 0x534   :  { %v1786_v51 = vmul.f32 %v6876_v41, %v1766_v33  ;;  %v1907_v25 = vmul.f32 %v6888_v47, %v1886_v34  ;;  %v2134_v17 = vmul.f32 %v6900_v52, %v9152_v45  ;;  %v2070_v40 = vmul.f32 %v6351_v24, %v9162_v2 }
 0x535   :  { %v2049_v11 = vmul.f32 %v6434_v21, %v2028_v30  ;;  %v1960_v49 = vmul.f32 %v6895_v13, %v1939_v16  ;;  %v2207_v22 = vmul.f32 %v6548_v27, %v2186_v38  ;;  %v2102_v33 = vmul.f32 %v6444_v0, %v2081_v1  ;;  %v9155_v1 = vld [vmem:[#allocation16_spill] sm:$0xff] }
 0x536   :  { %v1839_v39 = vadd.f32 %v1823_v8, %v1786_v51  ;;  %v1923_v4 = vadd.f32 %v1907_v25, %v1838_v26  ;;  %v2155_v21 = vmul.f32 %v6454_v15, %v2134_v17  ;;  %v8767_v51 = vrot.slane %v6316_v14, 1  ;;  %v9159_v8 = vld [vmem:[#allocation11_spill] sm:$0xff] }
 0x537   :  { %v2065_v57 = vadd.f32 %v2049_v11, %v2012_v5  ;;  %v6940_v34 = vadd.f32 %v2207_v22, %v2170_v29  ;;  %v9154_v26 = vrot.slane %v6318_v6, 1  ;;  %v1789_v25 = vmul.f32 %v6316_v14, %v9155_v1  ;;  %v9156_v5 = vld [vmem:[#allocation10_spill] sm:$0xff]  ;;  %v9158_v22 = vld [vmem:[#allocation32_spill] sm:$0xff] }
 0x538   :  { %v1976_v36 = vadd.f32 %v1960_v49, %v1923_v4  ;;  %v2137_v4 = vmul.f32 %v6316_v14, %v6092_v12  ;;  %v2122_v49 = vmul.f32 %v6318_v6, %v9158_v22  ;;  %v9160_v11 = vld [vmem:[#allocation14_spill] sm:$0xff]  ;;  %v9172_v22 = vld [vmem:[#allocation76_spill] sm:$0xff] }
 0x539   :  { %9153 = vst [vmem:[#allocation138_spill] sm:$0xff] %v6940_v34  ;;  %v2118_v31 = vadd.f32 %v2102_v33, %v2065_v57  ;;  %v1871_v0 = vsel %vm412_vm1, %v8767_v51, %v9154_v26  ;;  %v2069_v17 = vmul.f32 %v6327_v9, %v9160_v11  ;;  %v6966_v57 = vmul.f32 %v6882_v55, %v1789_v25  ;;  %v9161_v25 = vld [vmem:[#allocation29_spill] sm:$0xff]  ;;  %v9169_v12 = vld [vmem:[#allocation158_spill] sm:$0xff]  ;;  %v9170_v11 = vld [vmem:[#allocation148_spill] sm:$0xff] }
 0x53a   :  { %v2013_v30 = vadd.f32 %v1997_v46, %v1976_v36  ;;  %v1874_v15 = vmul.f32 %v1871_v0, %v9156_v5  ;;  %v9157_v36 = vld [vmem:[#allocation24_spill] sm:$0xff]  ;;  %v2190_v16 = vmul.f32 %v1871_v0, %v6096_v62  ;;  %v2016_v38 = vmul.f32 %v1871_v0, %v9159_v8  ;;  %v6975_v46 = vld [vmem:[%s8447_s8 + $0x7] ss:$0 sm:$0xff]  ;;  %v9168_v62 = vld [vmem:[#allocation26_spill] sm:$0xff] }
 0x53b   :  { %v6943_v45 = vadd.f32 %v2155_v21, %v2118_v31  ;;  %v1927_v29 = vmul.f32 %v6327_v9, %v9157_v36  ;;  %v6970_v33 = vmul.f32 %v6905_v42, %v6316_v14  ;;  %v6978_v31 = vmul.f32 %v6975_v46, %v2137_v4  ;;  %v9171_v36 = vld [vmem:[#allocation51_spill] sm:$0xff] }
 0x53c   :  { %v6981_v21 = vmul.f32 %v6888_v47, %v1874_v15  ;;  %v6988_v26 = vmul.f32 %v6905_v42, %v6318_v6  ;;  %v2017_v51 = vmul.f32 %v6358_v35, %v9161_v25  ;;  %v6995_v56 = vmul.f32 %v6548_v27, %v2190_v16  ;;  %v6997_v15 = vpop.permute.xlu1 %2231 }
 0x53d   :  { %v6984_v9 = vmul.f32 %v6895_v13, %v1927_v29  ;;  %v7002_v29 = vld [vmem:[%s8447_s8 + $0x5] ss:$0 sm:$0xff]  ;;  %v7013_v24 = vmul.f32 %v7010_v43, %v2069_v17  ;;  %v7016_v16 = vmul.f32 %v6975_v46, %v2122_v49  ;;  %v7020_v54 = vadd.f32 %v6997_v15, %v6857_v10  ;;  %v9167_v49 = vld [vmem:[#allocation19_spill] sm:$0xff] }
 0x53e   :  { %v7005_v6 = vmul.f32 %v7002_v29, %v2016_v38  ;;  %v7024_v60 = vadd.f32 %v6997_v15, %v6940_v34  ;;  %v9165_v38 = vrot.slane %v6900_v52, 7  ;;  %v7036_v2 = vmul.f32 %v9168_v62, %v9167_v49  ;;  %v9178_v10 = vld [vmem:[#allocation13_spill] sm:$0xff] }
 0x53f   :  { %9163 = vst [vmem:[#allocation137_spill] sm:$0xff] %v7020_v54  ;;  %v7046_v52 = vmul.f32 %v7010_v43, %v2070_v40  ;;  %v9176_v40 = vld [vmem:[#allocation25_spill] sm:$0xff] }
 0x540   :  { %9164 = vst [vmem:[#allocation160_spill] sm:$0xff] %v7024_v60  ;;  %v7063_v44 = vmul.f32 %v9177_v3, %v9176_v40  ;;  %v9181_v40 = vld [vmem:[#allocation17_spill] sm:$0xff] }
 0x558   :  { %v1715_v0 = vpop.f32.mrf.mxu0 }
 0x559   :  { %v1734_v23 = vrot.slane %v1715_v0, 7  ;;  %v1855_v4 = vrot.slane %v1715_v0, 1  ;;  %v1998_v58 = vmul.f32 %v6905_v42, %v1715_v0 }
 0x55b   :  { %v1737_v63 = vsel %vm146_vm0, %v9165_v38, %v1734_v23  ;;  %v1858_v17 = vsel %vm412_vm1, %v9166_v18, %v1855_v4  ;;  %v7043_v38 = vmul.f32 %v7002_v29, %v2017_v51  ;;  %v9173_v18 = vld [vmem:[#allocation130_spill] sm:$0xff]  ;;  %v9175_v51 = vld [vmem:[#allocation127_spill] sm:$0xff] }
 0x55c   :  { %v1887_v25 = vmul.f32 %v1858_v17, %v9169_v12  ;;  %v1940_v8 = vmul.f32 %v1737_v63, %v9170_v11  ;;  %v2029_v5 = vmul.f32 %v1858_v17, %v9171_v36  ;;  %v2082_v1 = vmul.f32 %v1737_v63, %v9172_v22  ;;  %v9174_v12 = vld [vmem:[#allocation111_spill] sm:$0xff] }
 0x55d   :  { %v1803_v32 = vmul.f32 %v1715_v0, %v9173_v18  ;;  %v2135_v53 = vmul.f32 %v1715_v0, %v9174_v12  ;;  %v7054_v36 = vsel %vm2250_vm13, %v7020_v54, -inf  ;;  %v7058_v22 = vsel %vm2250_vm13, %v7024_v60, -inf }
 0x55e   :  { %v1908_v62 = vmul.f32 %v6888_v47, %v1887_v25  ;;  %v2050_v49 = vmul.f32 %v7002_v29, %v2029_v5  ;;  %v1767_v11 = vmul.f32 %v1737_v63, %v9175_v51  ;;  %v1961_v25 = vmul.f32 %v6895_v13, %v1940_v8 }
 0x55f   :  { %v2103_v12 = vmul.f32 %v7010_v43, %v2082_v1  ;;  %v1824_v54 = vmul.f32 %v6882_v55, %v1803_v32  ;;  %v2156_v3 = vmul.f32 %v6975_v46, %v2135_v53  ;;  %v9180_v1 = vrot.slane %v6316_v14, 7 }
 0x560   :  { %v1924_v18 = vadd.f32 %v1908_v62, %v1839_v39  ;;  %v2066_v5 = vadd.f32 %v2050_v49, %v2013_v30  ;;  %v1717_v20 = vpop.f32.mrf.mxu0  ;;  %v1787_v39 = vmul.f32 %v6876_v41, %v1767_v11  ;;  %v9179_v62 = vld [vmem:[#allocation128_spill] sm:$0xff] }
 0x561   :  { %v1735_v37 = vrot.slane %v1717_v20, 7  ;;  %v1788_v34 = vmul.f32 %v1717_v20, %v9178_v10  ;;  %v1856_v60 = vrot.slane %v1717_v20, 1  ;;  %v2187_v8 = vmul.f32 %v1858_v17, %v9179_v62 }
 0x562   :  { %v1977_v63 = vadd.f32 %v1961_v25, %v1924_v18  ;;  %v2119_v51 = vadd.f32 %v2103_v12, %v2066_v5  ;;  %v9182_v18 = vld [vmem:[#allocation23_spill] sm:$0xff]  ;;  %v9183_v17 = vrot.slane %v6316_v14, 1  ;;  %v9184_v25 = vld [vmem:[#allocation149_spill] sm:$0xff]  ;;  %v1840_v62 = vadd.f32 %v1824_v54, %v1787_v39  ;;  %v9190_v54 = vld [vmem:[#allocation154_spill] sm:$0xff] }
 0x563   :  { %v1736_v30 = vsel %vm146_vm0, %v1734_v23, %v1735_v37  ;;  %v1751_v0 = vsel %vm146_vm0, %v1735_v37, %v9180_v1  ;;  %v1809_v53 = vmul.f32 %v6882_v55, %v1788_v34  ;;  %v1857_v11 = vsel %vm412_vm1, %v1855_v4, %v1856_v60  ;;  %v9187_v34 = vld [vmem:[#allocation150_spill] sm:$0xff] }
 0x564   :  { %v2014_v49 = vadd.f32 %v1998_v58, %v1977_v63  ;;  %v2172_v10 = vadd.f32 %v2156_v3, %v2119_v51  ;;  %v1752_v32 = vmul.f32 %v1736_v30, %v9181_v40  ;;  %v1753_v12 = vmul.f32 %v1751_v0, %v9182_v18  ;;  %v9185_v51 = vld [vmem:[#allocation9_spill] sm:$0xff]  ;;  %v9186_v3 = vld [vmem:[#allocation159_spill] sm:$0xff] }
 0x565   :  { %v1872_v23 = vsel %vm412_vm1, %v1856_v60, %v9183_v17  ;;  %v1941_v5 = vmul.f32 %v1736_v30, %v9184_v25  ;;  %v1888_v1 = vmul.f32 %v1857_v11, %v9186_v3  ;;  %v2208_v55 = vmul.f32 %v6548_v27, %v2187_v8  ;;  %v9188_v18 = vld [vmem:[#allocation131_spill] sm:$0xff] }
 0x566   :  { %v1772_v37 = vmul.f32 %v6876_v41, %v1752_v32  ;;  %v1773_v58 = vmul.f32 %v6876_v41, %v1753_v12  ;;  %v1873_v63 = vmul.f32 %v1872_v23, %v9185_v51  ;;  %v2030_v4 = vmul.f32 %v1857_v11, %v9187_v34  ;;  %v9189_v12 = vld [vmem:[#allocation12_spill] sm:$0xff]  ;;  %v9191_v51 = vld [vmem:[#allocation151_spill] sm:$0xff] }
 0x567   :  { %v2083_v14 = vmul.f32 %v1736_v30, %v9188_v18  ;;  %v1909_v17 = vmul.f32 %v6888_v47, %v1888_v1  ;;  %v1999_v32 = vmul.f32 %v6905_v42, %v1717_v20  ;;  %v1926_v25 = vmul.f32 %v1751_v0, %v9189_v12  ;;  %v9193_v42 = vld [vmem:[#allocation156_spill] sm:$0xff] }
 0x568   :  { %v1825_v40 = vadd.f32 %v1809_v53, %v1772_v37  ;;  %v1826_v60 = vadd.f32 %v6966_v57, %v1773_v58  ;;  %v1894_v41 = vmul.f32 %v6888_v47, %v1873_v63  ;;  %v2051_v3 = vmul.f32 %v7002_v29, %v2030_v4  ;;  %v9192_v53 = vld [vmem:[#allocation125_spill] sm:$0xff]  ;;  %v9194_v63 = vld [vmem:[#allocation152_spill] sm:$0xff] }
 0x569   :  { %v2136_v39 = vmul.f32 %v1717_v20, %v9190_v54  ;;  %v1925_v8 = vadd.f32 %v1909_v17, %v1840_v62  ;;  %v1962_v34 = vmul.f32 %v6895_v13, %v1941_v5  ;;  %v2031_v30 = vmul.f32 %v1872_v23, %v9191_v51  ;;  %v9256_v54 = vld [vmem:[#allocation64_spill] sm:$0xff] }
 0x56a   :  { %v2188_v37 = vmul.f32 %v1857_v11, %v9192_v53  ;;  %v1910_v57 = vadd.f32 %v1894_v41, %v1825_v40  ;;  %v2067_v58 = vadd.f32 %v2051_v3, %v2014_v49  ;;  %v2104_v1 = vmul.f32 %v7010_v43, %v2083_v14 }
 0x56b   :  { %v2189_v18 = vmul.f32 %v1872_v23, %v9193_v42  ;;  %v1978_v47 = vadd.f32 %v1962_v34, %v1925_v8  ;;  %v2084_v12 = vmul.f32 %v1751_v0, %v9194_v63  ;;  %v1911_v20 = vadd.f32 %v6981_v21, %v1826_v60 }
 0x56c   :  { %v2209_v4 = vmul.f32 %v6548_v27, %v2188_v37  ;;  %v7112_v62 = vadd.f32 %v2208_v55, %v6943_v45  ;;  %v2120_v5 = vadd.f32 %v2104_v1, %v2067_v58  ;;  %v2157_v17 = vmul.f32 %v6975_v46, %v2136_v39  ;;  %v4453_v45 = vld [vmem:[%s8447_s8 + $0x8] ss:$0 sm:$0xff]  ;;  %s4519_s8 = smov 96  }
 0x56d   :  { %v1947_v40 = vmul.f32 %v6895_v13, %v1926_v25  ;;  %v2015_v49 = vadd.f32 %v1999_v32, %v1978_v47  ;;  %v2052_v11 = vmul.f32 %v7002_v29, %v2031_v30  ;;  %v1964_v23 = vadd.f32 %v6984_v9, %v1911_v20 }
 0x56e   :  { %v7117_v3 = vadd.f32 %v2209_v4, %v2172_v10  ;;  %v7122_v27 = vadd.f32 %v6997_v15, %v6908_v7  ;;  %v2173_v21 = vadd.f32 %v2157_v17, %v2120_v5  ;;  %v2210_v0 = vmul.f32 %v4453_v45, %v2189_v18 }
 0x56f   :  { %v1963_v55 = vadd.f32 %v1947_v40, %v1910_v57  ;;  %v2068_v34 = vadd.f32 %v2052_v11, %v2015_v49  ;;  %v2105_v13 = vmul.f32 %v7010_v43, %v2084_v12  ;;  %v2001_v9 = vadd.f32 %v6988_v26, %v1964_v23 }
 0x570   :  { %v7130_v10 = vadd.f32 %v6997_v15, %v7117_v3  ;;  %v7135_v29 = vadd.f32 %v6997_v15, %v6831_v19  ;;  %v2277_v25 = vmax.f32 %v7054_v36, %v7058_v22  ;;  %v7139_v14 = vadd.f32 %v2210_v0, %v2173_v21  ;;  %v9195_v22 = vld [vmem:[#allocation34_spill] sm:$0xff] }
 0x571   :  { %v2000_v18 = vadd.f32 %v6970_v33, %v1963_v55  ;;  %v7144_v43 = vadd.f32 %v6997_v15, %v7112_v62  ;;  %v2121_v60 = vadd.f32 %v2105_v13, %v2068_v34  ;;  %v2054_v26 = vadd.f32 %v7043_v38, %v2001_v9 }
 0x572   :  { %v2280_v32 = vsel %vm2250_vm13, %v7130_v10, -inf  ;;  %v2144_v41 = vmul.f32 %v6975_v46, %v7036_v2  ;;  %v2175_v39 = vmul.f32 %v6358_v35, %v9195_v22  ;;  %v2274_v33 = vsel %vm2250_vm13, %v7122_v27, -inf  ;;  %v9196_v46 = vld [vmem:[#allocation134_spill] sm:$0xff] }
 0x573   :  { %v2281_v12 = vmax.f32 %v2277_v25, %v2280_v32  ;;  %v2053_v36 = vadd.f32 %v7005_v6, %v2000_v18  ;;  %v2174_v8 = vadd.f32 %v6978_v31, %v2121_v60  ;;  %v7159_v30 = vadd.f32 %v6997_v15, %v7139_v14  ;;  %v9197_v35 = vld [vmem:[#allocation22_spill] sm:$0xff] }
 0x574   :  { %v2107_v38 = vadd.f32 %v7046_v52, %v2054_v26  ;;  %v2197_v37 = vmul.f32 %v4453_v45, %v7063_v44  ;;  %v7166_v6 = vadd.f32 %v6997_v15, %v9196_v46  ;;  %v7170_v57 = vadd.f32 %v6997_v15, %v9197_v35 }
 0x575   :  { %v2106_v2 = vadd.f32 %v7013_v24, %v2053_v36  ;;  %v2272_v31 = vsel %vm2250_vm13, %v7135_v29, -inf  ;;  %v7175_v58 = vadd.f32 %v6995_v56, %v2174_v8  ;;  %v2278_v52 = vsel %vm2250_vm13, %v7144_v43, -inf }
 0x576   :  { %v2160_v44 = vadd.f32 %v2144_v41, %v2107_v38  ;;  %v2275_v1 = vmax.f32 %v2272_v31, %v2274_v33  ;;  %v2196_v47 = vmul.f32 %v4453_v45, %v2175_v39  ;;  %v2282_v20 = vsel %vm2250_vm13, %v7159_v30, -inf }
 0x577   :  { %v2159_v24 = vadd.f32 %v7016_v16, %v2106_v2  ;;  %v7182_v4 = vadd.f32 %v6997_v15, %v7175_v58  ;;  %v7188_v56 = vadd.f32 %v6997_v15, %v6710_v50  ;;  %v7192_v49 = vadd.f32 %v6997_v15, %v6712_v61 }
 0x578   :  { %v2213_v5 = vadd.f32 %v2197_v37, %v2160_v44  ;;  %v2279_v17 = vmax.f32 %v2275_v1, %v2278_v52  ;;  %v2253_v16 = vsel %vm2250_vm13, %v7166_v6, -inf  ;;  %v2255_v21 = vsel %vm2250_vm13, %v7170_v57, -inf }
 0x579   :  { %v2212_v40 = vadd.f32 %v2196_v47, %v2159_v24  ;;  %v2284_v11 = vsel %vm2250_vm13, %v7182_v4, -inf  ;;  %v7208_v9 = vadd.f32 %v6997_v15, %v6779_v48  ;;  %v7214_v18 = vadd.f32 %v6997_v15, %v6823_v59 }
 0x57a   :  { %2419 = vrot.lane.b32.xlu2 %v2213_v5, %s4518_s9  ;;  %v7200_v23 = vadd.f32 %v6997_v15, %v2213_v5  ;;  %v2894_v45 = vpack.c.bf16 %v2213_v5, %v2213_v5  ;;  %v2283_v0 = vmax.f32 %v2279_v17, %v2282_v20  ;;  %v2285_v55 = vmax.f32 %v2281_v12, %v2284_v11 }
 0x57b   :  { %2417 = vrot.lane.b32.xlu0 %v2212_v40, %s4518_s9  ;;  %v2234_v34 = vadd.f32 %v6997_v15, %v2212_v40  ;;  %v2893_v13 = vpack.c.bf16 %v2212_v40, %v2212_v40  ;;  %v2259_v39 = vsel %vm2250_vm13, %v7192_v49, -inf  ;;  %v2257_v8 = vsel %vm2250_vm13, %v7188_v56, -inf }
 0x57c   :  { %v2252_v25 = vsel %vm2250_vm13, %v7200_v23, -inf  ;;  %v7216_v60 = vunpack.c.l.b16 %v2894_v45  ;;  %v2286_v32 = vmax.f32 %v2283_v0, %v2285_v55  ;;  %v2263_v2 = vsel %vm2250_vm13, %v7214_v18, -inf  ;;  %v9198_v55 = vld [vmem:[#allocation137_spill] sm:$0xff] }
 0x57d   :  { %v2251_v26 = vsel %vm2250_vm13, %v2234_v34, -inf  ;;  %v2256_v41 = vmax.f32 %v2252_v25, %v2255_v21  ;;  %v7219_v12 = vunpack.c.l.b16 %v2893_v13  ;;  %v2261_v31 = vsel %vm2250_vm13, %v7208_v9, -inf }
 0x57e   :  { %v2254_v36 = vmax.f32 %v2251_v26, %v2253_v16  ;;  %v2287_v33 = vrot.slane %v2286_v32, 4  ;;  %v9199_v26 = vld [vmem:[#allocation160_spill] sm:$0xff] }
 0x57f   :  { %v2260_v38 = vmax.f32 %v2256_v41, %v2259_v39  ;;  %v2929_v15 = vpack.c.b16 %v7216_v60, %v7219_v12  ;;  %v2901_v60 = vpack.c.bf16 %v6831_v19, %v6831_v19 }
 0x580   :  { %v2258_v37 = vmax.f32 %v2254_v36, %v2257_v8  ;;  %v2288_v52 = vmax.f32 %v2286_v32, %v2287_v33 }
 0x581   :  { %v2264_v44 = vmax.f32 %v2260_v38, %v2263_v2 }
 0x582   :  { %v2262_v1 = vmax.f32 %v2258_v37, %v2261_v31  ;;  %2425 = vrot.lane.b32.xlu2 %v6710_v50, %s4518_s9  ;;  %v2289_v24 = vrot.slane %v2288_v52, 2 }
 0x583   :  { %2421 = vrot.lane.b32.xlu0 %v9196_v46, %s4518_s9 }
 0x584   :  { %v2265_v47 = vmax.f32 %v2262_v1, %v2264_v44  ;;  %v2290_v20 = vmax.f32 %v2288_v52, %v2289_v24 }
 0x586   :  { %v2266_v5 = vrot.slane %v2265_v47, 4  ;;  %v2291_v17 = vrot.slane %v2290_v20, 1 }
 0x588   :  { %v2267_v40 = vmax.f32 %v2265_v47, %v2266_v5  ;;  %v2292_v16 = vmax.f32 %v2290_v20, %v2291_v17 }
 0x58a   :  { %v2268_v11 = vrot.slane %v2267_v40, 2  ;;  %2431 = vrot.lane.b32.xlu2 %v6823_v59, %s4518_s9  ;;  %v2303_v21 = vsub.f32 %v7122_v27, %v2292_v16  ;;  %v2306_v45 = vsub.f32 %v7130_v10, %v2292_v16  ;;  %v2301_v0 = vsub.f32 %v7135_v29, %v2292_v16 }
 0x58b   :  { %2427 = vrot.lane.b32.xlu0 %v6712_v61, %s4518_s9  ;;  %v2302_v13 = vsub.f32 %v9198_v55, %v2292_v16  ;;  %v2304_v41 = vsub.f32 %v9199_v26, %v2292_v16  ;;  %v2305_v33 = vsub.f32 %v7144_v43, %v2292_v16  ;;  %v2307_v10 = vsub.f32 %v7159_v30, %v2292_v16 }
 0x58c   :  { %v2269_v25 = vmax.f32 %v2267_v40, %v2268_v11  ;;  %v2329_v32 = vmul.f32 1.442695, %v2303_v21  ;;  %v2325_v36 = vmul.f32 1.442695, %v2301_v0  ;;  %v2308_v52 = vsub.f32 %v7182_v4, %v2292_v16 }
 0x58d   :  { %v2327_v8 = vmul.f32 1.442695, %v2302_v13  ;;  %v2331_v27 = vmul.f32 1.442695, %v2304_v41  ;;  %v2333_v29 = vmul.f32 1.442695, %v2305_v33 }
 0x58e   :  { %v2270_v39 = vrot.slane %v2269_v25, 1  ;;  %4376 = vpow2.f32 %v2329_v32  ;;  %v2335_v44 = vmul.f32 1.442695, %v2306_v45  ;;  %v2337_v43 = vmul.f32 1.442695, %v2307_v10 }
 0x58f   :  { %4378 = vpow2.f32 %v2325_v36  ;;  %v2339_v17 = vmul.f32 1.442695, %v2308_v52 }
 0x590   :  { %v2271_v38 = vmax.f32 %v2269_v25, %v2270_v39  ;;  %4380 = vpow2.f32 %v2327_v8 }
 0x591   :  { %4382 = vpow2.f32 %v2331_v27 }
 0x592   :  { %v2293_v37 = vsub.f32 %v2234_v34, %v2271_v38  ;;  %v2295_v2 = vsub.f32 %v7166_v6, %v2271_v38  ;;  %v2296_v1 = vsub.f32 %v7170_v57, %v2271_v38  ;;  %v2294_v24 = vsub.f32 %v7200_v23, %v2271_v38 }
 0x593   :  { %2433 = vrot.lane.b32.xlu0 %v6831_v19, %s4518_s9  ;;  %4384 = vpow2.f32 %v2333_v29  ;;  %v2299_v47 = vsub.f32 %v7208_v9, %v2271_v38  ;;  %v2297_v6 = vsub.f32 %v7188_v56, %v2271_v38  ;;  %v2298_v40 = vsub.f32 %v7192_v49, %v2271_v38 }
 0x594   :  { %v2309_v31 = vmul.f32 1.442695, %v2293_v37  ;;  %v7252_v30 = vpop.eup %4376  ;;  %v2313_v34 = vmul.f32 1.442695, %v2295_v2  ;;  %v2311_v5 = vmul.f32 1.442695, %v2294_v24  ;;  %v2300_v13 = vsub.f32 %v7214_v18, %v2271_v38 }
 0x595   :  { %v7255_v20 = vpop.eup %4378  ;;  %v2315_v9 = vmul.f32 1.442695, %v2296_v1  ;;  %v2365_v11 = vsel %vm2250_vm13, %v7252_v30, 0.0  ;;  %v2317_v21 = vmul.f32 1.442695, %v2297_v6  ;;  %v2905_v19 = vpack.c.bf16 %v7112_v62, %v7112_v62 }
 0x596   :  { %4386 = vpow2.f32 %v2309_v31  ;;  %v7258_v4 = vpop.eup %4380  ;;  %v2362_v57 = vsel %vm2250_vm13, %v7255_v20, 0.0  ;;  %v2319_v25 = vmul.f32 1.442695, %v2298_v40  ;;  %v2321_v39 = vmul.f32 1.442695, %v2299_v47 }
 0x597   :  { %4388 = vpow2.f32 %v2335_v44  ;;  %v2363_v23 = vsel %vm2250_vm13, %v7258_v4, 0.0  ;;  %v7267_v16 = vpop.eup %4382  ;;  %v2323_v18 = vmul.f32 1.442695, %v2300_v13 }
 0x598   :  { %4390 = vpow2.f32 %v2337_v43  ;;  %v2364_v56 = vadd.f32 %v2363_v23, %v2362_v57  ;;  %v2367_v49 = vsel %vm2250_vm13, %v7267_v16, 0.0 }
 0x599   :  { %4392 = vpow2.f32 %v2313_v34  ;;  %v7271_v45 = vpop.eup %4384 }
 0x59a   :  { %4394 = vpow2.f32 %v2311_v5  ;;  %v2366_v0 = vadd.f32 %v2365_v11, %v2364_v56  ;;  %v2369_v36 = vsel %vm2250_vm13, %v7271_v45, 0.0 }
 0x59b   :  { %2437 = vrot.lane.b32.xlu0 %v6908_v7, %s4518_s9  ;;  %4396 = vpow2.f32 %v2339_v17 }
 0x59c   :  { %v7273_v55 = vpop.eup %4386  ;;  %4398 = vpow2.f32 %v2315_v9  ;;  %v2368_v26 = vadd.f32 %v2367_v49, %v2366_v0 }
 0x59d   :  { %v4389_v32 = vpop.eup %4388  ;;  %4400 = vpow2.f32 %v2317_v21  ;;  %v2341_v27 = vsel %vm2250_vm13, %v7273_v55, 0.0 }
 0x59e   :  { %v4391_v41 = vpop.eup %4390  ;;  %v2370_v8 = vadd.f32 %v2369_v36, %v2368_v26  ;;  %v2371_v37 = vsel %vm2250_vm13, %v4389_v32, 0.0  ;;  %4402 = vpow2.f32 %v2319_v25 }
 0x59f   :  { %v7280_v33 = vpop.eup %4392  ;;  %v2373_v52 = vsel %vm2250_vm13, %v4391_v41, 0.0  ;;  %4404 = vpow2.f32 %v2321_v39 }
 0x5a0   :  { %v4395_v10 = vpop.eup %4394  ;;  %v2372_v29 = vadd.f32 %v2371_v37, %v2370_v8  ;;  %v2344_v1 = vsel %vm2250_vm13, %v7280_v33, 0.0  ;;  %4406 = vpow2.f32 %v2323_v18 }
 0x5a1   :  { %v4397_v38 = vpop.eup %4396  ;;  %v2342_v2 = vsel %vm2250_vm13, %v4395_v10, 0.0 }
 0x5a2   :  { %v4399_v31 = vpop.eup %4398  ;;  %v2343_v44 = vadd.f32 %v2342_v2, %v2341_v27  ;;  %v2374_v43 = vadd.f32 %v2373_v52, %v2372_v29  ;;  %v2375_v34 = vsel %vm2250_vm13, %v4397_v38, 0.0 }
 0x5a3   :  { %2443 = vrot.lane.b32.xlu0 %v7117_v3, %s4518_s9  ;;  %v4401_v24 = vpop.eup %4400  ;;  %v2346_v5 = vsel %vm2250_vm13, %v4399_v31, 0.0 }
 0x5a4   :  { %v2345_v47 = vadd.f32 %v2344_v1, %v2343_v44  ;;  %v2376_v6 = vadd.f32 %v2375_v34, %v2374_v43  ;;  %v4403_v17 = vpop.eup %4402  ;;  %v2348_v40 = vsel %vm2250_vm13, %v4401_v24, 0.0 }
 0x5a5   :  { %v4405_v9 = vpop.eup %4404  ;;  %v2350_v21 = vsel %vm2250_vm13, %v4403_v17, 0.0 }
 0x5a6   :  { %v2347_v57 = vadd.f32 %v2346_v5, %v2345_v47  ;;  %v2377_v23 = vrot.slane %v2376_v6, 4  ;;  %v4407_v0 = vpop.eup %4406  ;;  %v2352_v25 = vsel %vm2250_vm13, %v4405_v9, 0.0 }
 0x5a7   :  { %v2354_v39 = vsel %vm2250_vm13, %v4407_v0, 0.0 }
 0x5a8   :  { %v2349_v56 = vadd.f32 %v2348_v40, %v2347_v57  ;;  %v2378_v11 = vadd.f32 %v2377_v23, %v2376_v6 }
 0x5aa   :  { %v2351_v49 = vadd.f32 %v2350_v21, %v2349_v56  ;;  %v2379_v13 = vrot.slane %v2378_v11, 2 }
 0x5ac   :  { %v2353_v26 = vadd.f32 %v2352_v25, %v2351_v49  ;;  %v2380_v36 = vadd.f32 %v2379_v13, %v2378_v11 }
 0x5ae   :  { %v2355_v8 = vadd.f32 %v2354_v39, %v2353_v26  ;;  %v2381_v27 = vrot.slane %v2380_v36, 1 }
 0x5b0   :  { %v2356_v37 = vrot.slane %v2355_v8, 4  ;;  %v2382_v18 = vadd.f32 %v2381_v27, %v2380_v36 }
 0x5b2   :  { %v2357_v29 = vadd.f32 %v2356_v37, %v2355_v8  ;;  %4408 = vrcp.f32 %v2382_v18 }
 0x5b4   :  { %v2358_v2 = vrot.slane %v2357_v29, 2 }
 0x5b6   :  { %v2359_v52 = vadd.f32 %v2358_v2, %v2357_v29 }
 0x5b8   :  { %v2360_v44 = vrot.slane %v2359_v52, 1  ;;  %v4409_v43 = vpop.eup %4408 }
 0x5b9   :  { %v2394_v1 = vmul.f32 %v4409_v43, %v7258_v4  ;;  %v2393_v47 = vmul.f32 %v4409_v43, %v7255_v20  ;;  %v7300_v6 = vmul.f32 %v4409_v43, %v7252_v30  ;;  %v7302_v5 = vmul.f32 %v4409_v43, %v4389_v32 }
 0x5ba   :  { %v2361_v34 = vadd.f32 %v2360_v44, %v2359_v52  ;;  %v7305_v57 = vmul.f32 %v4409_v43, %v7271_v45  ;;  %v7307_v23 = vmul.f32 %v4409_v43, %v4397_v38  ;;  %v7310_v40 = vmul.f32 %v4409_v43, %v7267_v16  ;;  %v2424_v38 = vpop.permute.xlu1 %2423 }
 0x5bb   :  { %v7312_v56 = vmul.f32 %v4409_v43, %v4391_v41 }
 0x5bc   :  { %4410 = vrcp.f32 %v2361_v34 }
 0x5c2   :  { %v4411_v4 = vpop.eup %4410  ;;  %v2430_v36 = vpop.permute.xlu1 %2429 }
 0x5c3   :  { %v2386_v11 = vmul.f32 %v4411_v4, %v4395_v10  ;;  %v2389_v21 = vmul.f32 %v4411_v4, %v4401_v24  ;;  %v2391_v20 = vmul.f32 %v4411_v4, %v4405_v9  ;;  %v2392_v49 = vmul.f32 %v4411_v4, %v4407_v0 }
 0x5c4   :  { %v2385_v30 = vmul.f32 %v4411_v4, %v7273_v55  ;;  %v2387_v32 = vmul.f32 %v4411_v4, %v7280_v33  ;;  %v2388_v13 = vmul.f32 %v4411_v4, %v4399_v31  ;;  %v2390_v45 = vmul.f32 %v4411_v4, %v4403_v17 }
 0x5c5   :  { %v2471_v16 = vmul.f32 %v2430_v36, %v2391_v20 }
 0x5c6   :  { %v2468_v17 = vmul.f32 %v2424_v38, %v2388_v13 }
 0x5c7   :  { %v2487_v41 = vpack.c.bf16 %v2471_v16, %v2471_v16 }
 0x5c8   :  { %v2484_v43 = vpack.c.bf16 %v2468_v17, %v2468_v17 }
 0x5c9   :  { %v2527_v37 = vunpack.c.l.b16 %v2487_v41 }
 0x5d4   :  { %v2420_v25 = vpop.permute.xlu2 %2419 }
 0x5d5   :  { %v2466_v24 = vmul.f32 %v2420_v25, %v2386_v11 }
 0x5d7   :  { %v2482_v18 = vpack.c.bf16 %v2466_v24, %v2466_v24 }
 0x5d9   :  { %v2522_v33 = vunpack.c.l.b16 %v2482_v18 }
 0x5dc   :  { %v2426_v26 = vpop.permute.xlu2 %2425 }
 0x5dd   :  { %v2469_v4 = vmul.f32 %v2426_v26, %v2389_v21  ;;  %v9200_v21 = vld [vmem:[#allocation138_spill] sm:$0xff] }
 0x5df   :  { %v2485_v36 = vpack.c.bf16 %v2469_v4, %v2469_v4 }
 0x5e1   :  { %v2525_v38 = vunpack.c.l.b16 %v2485_v36 }
 0x5e4   :  { %v2432_v39 = vpop.permute.xlu2 %2431 }
 0x5e5   :  { %v2472_v8 = vmul.f32 %v2432_v39, %v2392_v49  ;;  %v2524_v49 = vunpack.c.l.b16 %v2484_v43  ;;  %v2436_v39 = vpop.permute.xlu1 %2435 }
 0x5e6   :  { %v2474_v13 = vmul.f32 %v2436_v39, %v2394_v1 }
 0x5e7   :  { %v2488_v27 = vpack.c.bf16 %v2472_v8, %v2472_v8 }
 0x5e9   :  { %v2528_v10 = vunpack.c.l.b16 %v2488_v27  ;;  %v2490_v27 = vpack.c.bf16 %v2474_v13, %v2474_v13 }
 0x5eb   :  { %v2532_v9 = vpack.c.b16 %v2528_v10, %v2527_v37  ;;  %v2612_v10 = vunpack.c.l.b16 %v2490_v27 }
 0x5ed   :  { %v2418_v0 = vpop.permute.xlu0 %2417 }
 0x5ee   :  { %v2465_v55 = vmul.f32 %v2418_v0, %v2385_v30 }
 0x5f0   :  { %v2481_v29 = vpack.c.bf16 %v2465_v55, %v2465_v55 }
 0x5f2   :  { %v2521_v31 = vunpack.c.l.b16 %v2481_v29 }
 0x5f4   :  { %v2529_v2 = vpack.c.b16 %v2522_v33, %v2521_v31 }
 0x5f5   :  { %v2422_v52 = vpop.permute.xlu0 %2421 }
 0x5f6   :  { %v2467_v44 = vmul.f32 %v2422_v52, %v2387_v32  ;;  %2533 = vrot.lane.b32.xlu0 %v2529_v2, %s4519_s8 }
 0x5f8   :  { %v2483_v34 = vpack.c.bf16 %v2467_v44, %v2467_v44 }
 0x5fa   :  { %v2523_v20 = vunpack.c.l.b16 %v2483_v34 }
 0x5fc   :  { %v2530_v11 = vpack.c.b16 %v2524_v49, %v2523_v20 }
 0x5fd   :  { %v2428_v25 = vpop.permute.xlu0 %2427 }
 0x5fe   :  { %v2470_v16 = vmul.f32 %v2428_v25, %v2390_v45  ;;  %2535 = vrot.lane.b32.xlu1 %v2530_v11, %s4519_s8 }
 0x600   :  { %v2486_v30 = vpack.c.bf16 %v2470_v16, %v2470_v16 }
 0x602   :  { %v2526_v8 = vunpack.c.l.b16 %v2486_v30 }
 0x604   :  { %v2531_v32 = vpack.c.b16 %v2526_v8, %v2525_v38 }
 0x605   :  { %v2434_v41 = vpop.permute.xlu0 %2433 }
 0x606   :  { %v2473_v37 = vmul.f32 %v2434_v41, %v2393_v47  ;;  %2537 = vrot.lane.b32.xlu2 %v2531_v32, %s4519_s8  ;;  %2439 = vrot.lane.b32.xlu1 %v9200_v21, %s4518_s9 }
 0x608   :  { %v2489_v26 = vpack.c.bf16 %v2473_v37, %v2473_v37  ;;  %v2899_v37 = vpack.c.bf16 %v6779_v48, %v6779_v48  ;;  %v4178_v48 = vld [vmem:[%s8449_s10] sm:$0xff] }
 0x60a   :  { %v2611_v24 = vunpack.c.l.b16 %v2489_v26  ;;  %v9201_v26 = vmov 0  }
 0x60c   :  { %v2619_v45 = vpack.c.b16 %v2612_v10, %v2611_v24  ;;  %v2927_v24 = vunpack.c.l.b16 %v2899_v37 }
 0x60d   :  { %v2438_v1 = vpop.permute.xlu0 %2437 }
 0x60e   :  { %2445 = vrot.lane.b32.xlu1 %v7139_v14, %s4518_s9  ;;  %2539 = vrot.lane.b32.xlu2 %v2532_v9, %s4519_s8  ;;  %v2475_v52 = vmul.f32 %v2438_v1, %v7300_v6 }
 0x610   :  { %v2491_v20 = vpack.c.bf16 %v2475_v52, %v2475_v52 }
 0x612   :  { %v2613_v25 = vunpack.c.l.b16 %v2491_v20 }
 0x615   :  { %v2444_v47 = vpop.permute.xlu0 %2443 }
 0x616   :  { %2441 = vrot.lane.b32.xlu2 %v7112_v62, %s4518_s9  ;;  %2623 = vrot.lane.b32.xlu1 %v2619_v45, %s4519_s8  ;;  %v2478_v29 = vmul.f32 %v2444_v47, %v7302_v5  ;;  %v4179_v47 = vld [vmem:[%s8449_s10 + $0x8] sm:$0xff]  ;;  %s4021_s10 = sshll.u32 %s8458_s19, 4  ;;  %s4022_s10 = int_to_ptr.hbm [resolvable:$true] %s4021_s10 }
 0x617   :  { %2722 = vmatpush.bf16.msra.mxu3 %v4179_v47 }
 0x618   :  { %v2494_v17 = vpack.c.bf16 %v2478_v29, %v2478_v29 }
 0x61a   :  { %v2616_v44 = vunpack.c.l.b16 %v2494_v17 }
 0x61b   :  { %2723 = vmatpush.bf16.msra.mxu3 %v4178_v48  ;;  %v4181_v48 = vld [vmem:[%s8451_s12 + $0x8] sm:$0xff] }
 0x61c   :  { %2876 = vmatpush.bf16.msra.mxu1 %v4181_v48  ;;  %v2898_v48 = vpack.c.bf16 %v6712_v61, %v6712_v61 }
 0x61e   :  { %2447 = vrot.lane.b32.xlu2 %v7175_v58, %s4518_s9  ;;  %s4520_s9 = smov 112  }
 0x660   :  { %v2538_v0 = vpop.permute.xlu2 %2537 }
 0x668   :  { %v2534_v18 = vpop.permute.xlu0 %2533  ;;  %v2540_v55 = vpop.permute.xlu2 %2539 }
 0x669   :  { %2545 = vxpose.xlu0.c.b16.start [1/4] (short) (narrow) %v2534_v18, 16 }
 0x670   :  { %v2442_v33 = vpop.permute.xlu2 %2441  ;;  %v2536_v31 = vpop.permute.xlu1 %2535 }
 0x671   :  { %v2477_v9 = vmul.f32 %v2442_v33, %v7305_v57 }
 0x673   :  { %v2493_v2 = vpack.c.bf16 %v2477_v9, %v2477_v9 }
 0x675   :  { %v2615_v43 = vunpack.c.l.b16 %v2493_v2 }
 0x677   :  { %v2621_v34 = vpack.c.b16 %v2616_v44, %v2615_v43 }
 0x678   :  { %v2440_v4 = vpop.permute.xlu1 %2439  ;;  %v2448_v11 = vpop.permute.xlu2 %2447 }
 0x679   :  { %v2476_v49 = vmul.f32 %v2440_v4, %v7310_v40  ;;  %2627 = vrot.lane.b32.xlu1 %v2621_v34, %s4519_s8  ;;  %2546 = vxpose.xlu0.c.b16.cont [2/4] (short) (narrow) %v2536_v31, 16  ;;  %v2480_v36 = vmul.f32 %v2448_v11, %v7307_v23 }
 0x67b   :  { %v2492_v5 = vpack.c.bf16 %v2476_v49, %v2476_v49  ;;  %v2496_v39 = vpack.c.bf16 %v2480_v36, %v2480_v36 }
 0x67d   :  { %v2614_v16 = vunpack.c.l.b16 %v2492_v5  ;;  %v2618_v38 = vunpack.c.l.b16 %v2496_v39 }
 0x67f   :  { %v2620_v57 = vpack.c.b16 %v2614_v16, %v2613_v25 }
 0x680   :  { %v2446_v30 = vpop.permute.xlu1 %2445 }
 0x681   :  { %v2479_v6 = vmul.f32 %v2446_v30, %v7312_v56  ;;  %2625 = vrot.lane.b32.xlu2 %v2620_v57, %s4519_s8  ;;  %v2900_v56 = vpack.c.bf16 %v6823_v59, %v6823_v59 }
 0x683   :  { %v2495_v13 = vpack.c.bf16 %v2479_v6, %v2479_v6  ;;  %v2928_v10 = vunpack.c.l.b16 %v2900_v56 }
 0x685   :  { %v2617_v8 = vunpack.c.l.b16 %v2495_v13  ;;  %v2932_v45 = vpack.c.b16 %v2928_v10, %v2927_v24 }
 0x687   :  { %v2622_v40 = vpack.c.b16 %v2618_v38, %v2617_v8 }
 0x688   :  { %v2624_v32 = vpop.permute.xlu1 %2623 }
 0x689   :  { %2547 = vxpose.xlu0.c.b16.cont [3/4] (short) (narrow) %v2538_v0, 16  ;;  %2629 = vrot.lane.b32.xlu2 %v2622_v40, %s4519_s8  ;;  %v4326_v0 = vld [vmem:[#allocation2] ss:$0 sm:$0xff] }
 0x691   :  { %2819 = vperm.xlu2 %4301, %v4326_v0  }
 0x699   :  { %2548 = vxpose.xlu0.c.b16.end [4/4] (short) (narrow) %v2540_v55, 16 }
 0x6ae   :  { %2635 = vxpose.xlu1.c.b16.start [1/4] (short) (narrow) %v2624_v32, 16 }
 0x6db   :  { %v2626_v41 = vpop.permute.xlu2 %2625 }
 0x6dc   :  { %2636 = vxpose.xlu1.c.b16.cont [2/4] (short) (narrow) %v2626_v41, 16 }
 0x6e3   :  { %v2630_v27 = vpop.permute.xlu2 %2629 }
 0x6eb   :  { %v2628_v23 = vpop.permute.xlu1 %2627  ;;  %v7358_v40 = vpop.permute.xlu2 %2819 }
 0x6ec   :  { %2637 = vxpose.xlu1.c.b16.cont [3/4] (short) (narrow) %v2628_v23, 16 }
 0x6fc   :  { %2638 = vxpose.xlu1.c.b16.end [4/4] (short) (narrow) %v2630_v27, 16 }
 0x700   :  { %4302 = vset.pattern.permute.xlu0 %v9201_v26 }
 0x707   :  { %2939 = vrot.lane.b32.xlu0 %v2932_v45, %s4520_s9 }
 0x715   :  { %v2553_v1 = vpop.trf.xlu0 }
 0x716   :  { %4086 = vmatmul.msk.bf16.vlgmr.msrb.gmra.mxu0 %vm2585_vm14, %v2553_v1 }
 0x778   :  { %v2643_v59 = vpop.trf.xlu1 }
 0x779   :  { %4087 = vmatmul.msk.bf16.vlgmr.msra.gmra.mxu0 %vm2585_vm14, %v2643_v59 }
 0x793   :  { %v2598_v18 = vpop.f32.mrf.mxu0 }
 0x79b   :  { %v2600_v55 = vpop.f32.mrf.mxu0 }
 0x79c   :  { %v2692_v29 = vpack.c.bf16 %v2600_v55, %v2598_v18 }
 0x79e   :  { %4096 = vmatmul.msk.bf16.vlgmr.msra.gmra.mxu3 %vm1223_vm2, %v2692_v29  ;;  %v4180_v29 = vld [vmem:[%s8451_s12] sm:$0xff] }
 0x79f   :  { %2877 = vmatpush.bf16.msra.mxu1 %v4180_v29 }
 0x7f6   :  { %v2687_v33 = vpop.f32.mrf.mxu0 }
 0x7fe   :  { %v2689_v31 = vpop.f32.mrf.mxu0 }
 0x7ff   :  { %v2693_v17 = vpack.c.bf16 %v2689_v31, %v2687_v33 }
 0x801   :  { %4097 = vmatmul.msk.bf16.gmra.mxu3 %vm1223_vm2, %v2693_v17 }
 0x821   :  { %v7352_v9 = vpop.f32.mrf.mxu3 }
 0x822   :  { %v4098_v2 = vmul.f32 -1.442695, %v7352_v9 }
 0x824   :  { %4412 = vpow2.f32 %v4098_v2 }
 0x829   :  { %v7355_v52 = vpop.f32.mrf.mxu3 }
 0x82a   :  { %v4413_v44 = vpop.eup %4412  ;;  %v4099_v43 = vmul.f32 -1.442695, %v7355_v52 }
 0x82b   :  { %v2747_v34 = vadd.f32 1.0, %v4413_v44 }
 0x82c   :  { %4414 = vpow2.f32 %v4099_v43 }
 0x82d   :  { %4416 = vrcp.f32 %v2747_v34  ;;  %v2762_v5 = vand.u32 2147483648, %v2747_v34  ;;  %vm2756_vm15 = vweird.f32 %v2747_v34  ;;  %v2760_v36 = vand.u32 2147483647, %v2747_v34 }
 0x82f   :  { %v2763_v57 = vor.u32 1.1754944e-38, %v2762_v5  ;;  %vm2761_vm5 = vcmp.eq.f32.partialorder %v2760_v36, 8.507059e+37 }
 0x832   :  { %v4415_v4 = vpop.eup %4414 }
 0x833   :  { %v4417_v20 = vpop.eup %4416  ;;  %v2748_v49 = vadd.f32 1.0, %v4415_v4 }
 0x834   :  { %v2752_v11 = vmul.f32 %v4417_v20, %v2747_v34  ;;  %vm2757_vm3 = vweird.f32 %v4417_v20 }
 0x835   :  { %4418 = vrcp.f32 %v2748_v49  ;;  %vm2758_vm4 = vmor %vm2756_vm15, %vm2757_vm3  ;;  %vm2771_vm6 = vweird.f32 %v2748_v49  ;;  %v2777_v8 = vand.u32 2147483648, %v2748_v49  ;;  %v2775_v23 = vand.u32 2147483647, %v2748_v49 }
 0x836   :  { %v2753_v25 = vsub.f32 1.0, %v2752_v11 }
 0x837   :  { %v2778_v37 = vor.u32 1.1754944e-38, %v2777_v8  ;;  %vm2776_vm9 = vcmp.eq.f32.partialorder %v2775_v23, 8.507059e+37 }
 0x838   :  { %v2754_v16 = vmul.f32 %v4417_v20, %v2753_v25 }
 0x83a   :  { %v2755_v30 = vadd.f32 %v4417_v20, %v2754_v16 }
 0x83b   :  { %v4419_v39 = vpop.eup %4418 }
 0x83c   :  { %v2759_v6 = vsel %vm2758_vm4, %v4417_v20, %v2755_v30  ;;  %v2767_v13 = vmul.f32 %v4419_v39, %v2748_v49  ;;  %vm2772_vm7 = vweird.f32 %v4419_v39 }
 0x83d   :  { %v2764_v38 = vsel %vm2761_vm5, %v2763_v57, %v2759_v6  ;;  %vm2773_vm8 = vmor %vm2771_vm6, %vm2772_vm7  ;;  %vm2947_vm5 = vcmask 130048  }
 0x83e   :  { %v2811_v32 = vmul.f32 %v2764_v38, %v7352_v9  ;;  %v2768_v41 = vsub.f32 1.0, %v2767_v13 }
 0x840   :  { %v2769_v27 = vmul.f32 %v4419_v39, %v2768_v41  ;;  %v2822_v56 = vadd.f32 %v7358_v40, %v2811_v32 }
 0x842   :  { %v2770_v26 = vadd.f32 %v4419_v39, %v2769_v27  ;;  %2830 = vrot.lane.b32.xlu2 %v2822_v56, %s4519_s8 }
 0x844   :  { %v2774_v10 = vsel %vm2773_vm8, %v4419_v39, %v2770_v26 }
 0x845   :  { %v2779_v24 = vsel %vm2776_vm9, %v2778_v37, %v2774_v10 }
 0x846   :  { %v2812_v45 = vmul.f32 %v2779_v24, %v7355_v52 }
 0x848   :  { %v2823_v1 = vadd.f32 %v7358_v40, %v2812_v45 }
 0x84a   :  { %2832 = vrot.lane.b32.xlu2 %v2823_v1, %s4519_s8 }
 0x884   :  { %v7366_v47 = vpop.f32.mrf.mxu3 }
 0x885   :  { %v4100_v59 = vmul.f32 -1.442695, %v7366_v47 }
 0x887   :  { %4420 = vpow2.f32 %v4100_v59 }
 0x88c   :  { %v7372_v0 = vpop.f32.mrf.mxu3 }
 0x88d   :  { %v4421_v18 = vpop.eup %4420  ;;  %v4101_v55 = vmul.f32 -1.442695, %v7372_v0 }
 0x88e   :  { %v2749_v33 = vadd.f32 1.0, %v4421_v18 }
 0x88f   :  { %4422 = vpow2.f32 %v4101_v55 }
 0x890   :  { %4424 = vrcp.f32 %v2749_v33  ;;  %v2792_v34 = vand.u32 2147483648, %v2749_v33  ;;  %v2790_v20 = vand.u32 2147483647, %v2749_v33  ;;  %vm2786_vm11 = vweird.f32 %v2749_v33 }
 0x892   :  { %v2793_v25 = vor.u32 1.1754944e-38, %v2792_v34  ;;  %vm2791_vm13 = vcmp.eq.f32.partialorder %v2790_v20, 8.507059e+37 }
 0x895   :  { %v4423_v31 = vpop.eup %4422 }
 0x896   :  { %v4425_v17 = vpop.eup %4424  ;;  %v2750_v2 = vadd.f32 1.0, %v4423_v31  ;;  %v2904_v31 = vpack.c.bf16 %v9200_v21, %v9200_v21  ;;  %v2908_v21 = vpack.c.bf16 %v7175_v58, %v7175_v58 }
 0x897   :  { %v2782_v44 = vmul.f32 %v4425_v17, %v2749_v33  ;;  %vm2787_vm10 = vweird.f32 %v4425_v17 }
 0x898   :  { %4426 = vrcp.f32 %v2750_v2  ;;  %vm2788_vm12 = vmor %vm2786_vm11, %vm2787_vm10  ;;  %v2807_v6 = vand.u32 2147483648, %v2750_v2  ;;  %v2805_v8 = vand.u32 2147483647, %v2750_v2  ;;  %vm2801_vm15 = vweird.f32 %v2750_v2 }
 0x899   :  { %v2783_v43 = vsub.f32 1.0, %v2782_v44 }
 0x89a   :  { %v2808_v56 = vor.u32 1.1754944e-38, %v2807_v6  ;;  %vm2806_vm4 = vcmp.eq.f32.partialorder %v2805_v8, 8.507059e+37  ;;  %v2940_v8 = vpop.permute.xlu0 %2939 }
 0x89b   :  { %v2784_v4 = vmul.f32 %v4425_v17, %v2783_v43  ;;  %v2906_v43 = vpack.c.bf16 %v7117_v3, %v7117_v3 }
 0x89c   :  { %v2831_v49 = vpop.permute.xlu2 %2830 }
 0x89d   :  { %v2785_v11 = vadd.f32 %v4425_v17, %v2784_v4  ;;  %v2842_v23 = vmul.f32 %v2831_v49, %v7352_v9  ;;  %v2896_v9 = vpack.c.bf16 %v9197_v35, %v9197_v35  ;;  %v2926_v35 = vunpack.c.l.b16 %v2898_v48 }
 0x89e   :  { %v4427_v5 = vpop.eup %4426  ;;  %v3002_v34 = vunpack.c.l.b16 %v2906_v43  ;;  %v3001_v4 = vunpack.c.l.b16 %v2905_v19  ;;  %v3004_v49 = vunpack.c.l.b16 %v2908_v21 }
 0x89f   :  { %v2789_v36 = vsel %vm2788_vm12, %v4425_v17, %v2785_v11  ;;  %v2797_v16 = vmul.f32 %v4427_v5, %v2750_v2  ;;  %vm2802_vm14 = vweird.f32 %v4427_v5  ;;  %v2924_v1 = vunpack.c.l.b16 %v2896_v9 }
 0x8a0   :  { %v2794_v57 = vsel %vm2791_vm13, %v2793_v25, %v2789_v36  ;;  %vm2803_vm3 = vmor %vm2801_vm15, %vm2802_vm14  ;;  %v3000_v17 = vunpack.c.l.b16 %v2904_v31  ;;  %v3007_v20 = vpack.c.b16 %v3002_v34, %v3001_v4  ;;  %v7481_v4 = vld [vmem:[%s8452_s13 + $0x1] ss:$0 sm:$0xff] }
 0x8a1   :  { %v2813_v30 = vmul.f32 %v2794_v57, %v7366_v47  ;;  %v2798_v39 = vsub.f32 1.0, %v2797_v16 }
 0x8a3   :  { %v2824_v13 = vadd.f32 %v7358_v40, %v2813_v30  ;;  %v2799_v38 = vmul.f32 %v4427_v5, %v2798_v39 }
 0x8a4   :  { %v2833_v32 = vpop.permute.xlu2 %2832 }
 0x8a5   :  { %v2800_v41 = vadd.f32 %v4427_v5, %v2799_v38  ;;  %v2843_v27 = vmul.f32 %v2833_v32, %v7355_v52  ;;  %2834 = vrot.lane.b32.xlu2 %v2824_v13, %s4519_s8  ;;  %v2895_v52 = vpack.c.bf16 %v9196_v46, %v9196_v46  ;;  %v9202_v46 = vld [vmem:[#allocation21_spill] sm:$0xff] }
 0x8a6   :  { %v2902_v33 = vpack.c.bf16 %v9202_v46, %v9202_v46  ;;  %v9204_v46 = vld [vmem:[#allocation35_spill] sm:$0xff] }
 0x8a7   :  { %v2804_v37 = vsel %vm2803_vm3, %v4427_v5, %v2800_v41  ;;  %v2846_v26 = vpack.c.bf16 %v2843_v27, %v2842_v23  ;;  %v2923_v59 = vunpack.c.l.b16 %v2895_v52 }
 0x8a8   :  { %v2809_v10 = vsel %vm2806_vm4, %v2808_v56, %v2804_v37  ;;  %v2998_v12 = vunpack.c.l.b16 %v2902_v33 }
 0x8a9   :  { %v2814_v24 = vmul.f32 %v2809_v10, %v7372_v0  ;;  %4110 = vmatmul.msk.bf16.vlgmr.msra.gmra.mxu1 %vm1223_vm2, %v2846_v26  ;;  %v2930_v18 = vpack.c.b16 %v2924_v1, %v2923_v59  ;;  %v7441_v59 = vld [vmem:[%s8821_s23 + $0x1] ss:$0 sm:$0xff] }
 0x8ab   :  { %v2825_v45 = vadd.f32 %v7358_v40, %v2814_v24  ;;  %v2897_v40 = vpack.c.bf16 %v6710_v50, %v6710_v50  ;;  %v2903_v50 = vpack.c.bf16 %v6908_v7, %v6908_v7  ;;  %v2907_v7 = vpack.c.bf16 %v7139_v14, %v7139_v14 }
 0x8ad   :  { %2836 = vrot.lane.b32.xlu2 %v2825_v45, %s4519_s8  ;;  %v2925_v55 = vunpack.c.l.b16 %v2897_v40  ;;  %v2999_v2 = vunpack.c.l.b16 %v2903_v50  ;;  %v3003_v11 = vunpack.c.l.b16 %v2907_v7  ;;  %v4051_v45 = vld [vmem:[%s8821_s23 + $0x1] sm:$0x1]  ;;  %v9203_v40 = vld [vmem:[#allocation54_spill] sm:$0xff]  ;;  %s4032_s8 = sshll.u32 %s4521_s27, 4  ;;  %s4033_s8 = int_to_ptr.vmem [resolvable:$true] %s4032_s8 }
 0x8ae   :  { %v3064_v1 = vsub.f32 1.0, %v4051_v45 }
 0x8af   :  { %v2931_v29 = vpack.c.b16 %v2926_v35, %v2925_v55  ;;  %v3006_v44 = vpack.c.b16 %v3000_v17, %v2999_v2  ;;  %v3008_v5 = vpack.c.b16 %v3004_v49, %v3003_v11  ;;  %v7462_v17 = vld [vmem:[%s8452_s13] ss:$0 sm:$0xff]  ;;  %v9206_v2 = vld [vmem:[#allocation30_spill] sm:$0xff] }
 0x8b0   :  { %v7443_v48 = vperm.slane %v3064_v1, 0  ;;  %v9208_v49 = vld [vmem:[#allocation62_spill] sm:$0xff] }
 0x8b2   :  { %v3068_v35 = vmul.f32 %v7443_v48, %v9203_v40  ;;  %v3069_v33 = vmul.f32 %v7443_v48, %v9204_v46  ;;  %v3070_v11 = vmul.f32 %v7443_v48, %v9208_v49  ;;  %v9214_v46 = vld [vmem:[#allocation57_spill] sm:$0xff] }
 0x8b5   :  { %2933 = vrot.lane.b32.xlu2 %v2929_v15, %s4520_s9  ;;  %v2997_v15 = vunpack.c.l.b16 %v2901_v60 }
 0x8b7   :  { %v3005_v61 = vpack.c.b16 %v2998_v12, %v2997_v15 }
 0x8bd   :  { %2935 = vrot.lane.b32.xlu2 %v2930_v18, %s4520_s9 }
 0x8c5   :  { %2937 = vrot.lane.b32.xlu2 %v2931_v29, %s4520_s9 }
 0x8cd   :  { %3009 = vrot.lane.b32.xlu2 %v3005_v61, %s4520_s9 }
 0x8d5   :  { %3011 = vrot.lane.b32.xlu2 %v3006_v44, %s4520_s9 }
 0x8dd   :  { %3013 = vrot.lane.b32.xlu2 %v3007_v20, %s4520_s9  ;;  %v9207_v20 = vld [vmem:[#allocation27_spill] sm:$0xff] }
 0x8e5   :  { %3015 = vrot.lane.b32.xlu2 %v3008_v5, %s4520_s9 }
 0x8ff   :  { %v2835_v3 = vpop.permute.xlu2 %2834 }
 0x900   :  { %v2844_v62 = vmul.f32 %v2835_v3, %v7366_v47 }
 0x907   :  { %v2837_v25 = vpop.permute.xlu2 %2836 }
 0x908   :  { %v2845_v36 = vmul.f32 %v2837_v25, %v7372_v0 }
 0x90a   :  { %v2847_v16 = vpack.c.bf16 %v2845_v36, %v2844_v62 }
 0x90c   :  { %4111 = vmatmul.msk.bf16.gmra.mxu1 %vm1223_vm2, %v2847_v16 }
 0x90f   :  { %v2934_v38 = vpop.permute.xlu2 %2933 }
 0x917   :  { %v2936_v47 = vpop.permute.xlu2 %2935 }
 0x91f   :  { %v2938_v0 = vpop.permute.xlu2 %2937 }
 0x926   :  { %v2879_v58 = vpop.f32.mrf.mxu1 }
 0x927   :  { %2889 = vst.msk [vmem:[#allocation5] sm:$0xff] %vm1223_vm2, %v2879_v58  ;;  %v2909_v57 = vpack.c.bf16 %v2879_v58, %v2879_v58  ;;  %v3010_v10 = vpop.permute.xlu2 %3009 }
 0x929   :  { %v2943_v39 = vunpack.c.l.b16 %v2909_v57  ;;  %v9209_v57 = vld [vmem:[#allocation40_spill] sm:$0xff] }
 0x92e   :  { %v2881_v30 = vpop.f32.mrf.mxu1 }
 0x92f   :  { %2890 = vst.msk [vmem:[#allocation5 + $0x8] sm:$0xff] %vm1223_vm2, %v2881_v30  ;;  %v2910_v14 = vpack.c.bf16 %v2881_v30, %v2881_v30  ;;  %v3012_v24 = vpop.permute.xlu2 %3011 }
 0x931   :  { %v2944_v6 = vunpack.c.l.b16 %v2910_v14 }
 0x933   :  { %v2945_v13 = vpack.c.b16 %v2944_v6, %v2943_v39  ;;  %v7508_v6 = vld [vmem:[%s8452_s13 + $0x2] ss:$0 sm:$0xff] }
 0x935   :  { %2967 = vmatpush.bf16.msrb.mxu3 %v2945_v13  ;;  %v9210_v13 = vld [vmem:[#allocation37_spill] sm:$0xff] }
 0x937   :  { %v3014_v9 = vpop.permute.xlu2 %3013 }
 0x938   :  { %4112 = vmatmul.msk.bf16.vlgmr.msrb.gmra.mxu3 %vm2947_vm5, %v2934_v38 }
 0x93f   :  { %v3016_v43 = vpop.permute.xlu2 %3015 }
 0x948   :  { %4113 = vmatmul.msk.bf16.gmra.mxu3 %vm2947_vm5, %v2936_v47 }
 0x958   :  { %4114 = vmatmul.msk.bf16.gmra.mxu3 %vm2947_vm5, %v2938_v0  ;;  %v9211_v0 = vld [vmem:[#allocation33_spill] sm:$0xff] }
 0x968   :  { %4115 = vmatmul.msk.bf16.gmra.mxu3 %vm2947_vm5, %v2940_v8 }
 0x989   :  { %v2884_v32 = vpop.f32.mrf.mxu1 }
 0x98a   :  { %2891 = vst.msk [vmem:[#allocation5 + $0x10] sm:$0xff] %vm1223_vm2, %v2884_v32  ;;  %v2911_v41 = vpack.c.bf16 %v2884_v32, %v2884_v32  ;;  %v9212_v32 = vld [vmem:[#allocation56_spill] sm:$0xff] }
 0x98c   :  { %v3019_v56 = vunpack.c.l.b16 %v2911_v41  ;;  %v3071_v41 = vmul.f32 %v7443_v48, %v9212_v32 }
 0x991   :  { %v2886_v23 = vpop.f32.mrf.mxu1 }
 0x992   :  { %2892 = vst.msk [vmem:[#allocation5 + $0x18] sm:$0xff] %vm1223_vm2, %v2886_v23  ;;  %v2912_v27 = vpack.c.bf16 %v2886_v23, %v2886_v23 }
 0x994   :  { %v3020_v37 = vunpack.c.l.b16 %v2912_v27  ;;  %v9213_v27 = vld [vmem:[#allocation42_spill] sm:$0xff] }
 0x996   :  { %v3021_v26 = vpack.c.b16 %v3020_v37, %v3019_v56 }
 0x998   :  { %3042 = vmatpush.bf16.msra.mxu3 %v3021_v26 }
 0x99b   :  { %4116 = vmatmul.msk.bf16.vlgmr.msra.gmra.mxu3 %vm2947_vm5, %v3010_v10  ;;  %v7524_v10 = vld [vmem:[%s8452_s13 + $0x3] ss:$0 sm:$0xff] }
 0x9ab   :  { %4117 = vmatmul.msk.bf16.gmra.mxu3 %vm2947_vm5, %v3012_v24 }
 0x9bb   :  { %v2969_v52 = vpop.f32.mrf.mxu3  ;;  %4118 = vmatmul.msk.bf16.gmra.mxu3 %vm2947_vm5, %v3014_v9 }
 0x9bc   :  { %v3087_v18 = vmul.f32 %v7441_v59, %v2969_v52 }
 0x9be   :  { %v7448_v29 = vadd.f32 %v3087_v18, %v3068_v35  ;;  %v7533_v18 = vld [vmem:[%s8452_s13 + $0x4] ss:$0 sm:$0xff] }
 0x9c0   :  { %v8776_v15 = vrot.slane %v7448_v29, 7  ;;  %v8775_v61 = vrot.slane %v7448_v29, 1 }
 0x9c3   :  { %v2971_v55 = vpop.f32.mrf.mxu3 }
 0x9c4   :  { %v3088_v60 = vmul.f32 %v7441_v59, %v2971_v55  ;;  %v4052_v55 = vld [vmem:[%s8821_s23 + $0x2] sm:$0x1] }
 0x9c6   :  { %v7453_v12 = vadd.f32 %v3088_v60, %v3069_v33 }
 0x9c8   :  { %9205 = vst [vmem:[#allocation26_spill] sm:$0xff] %v7453_v12  ;;  %v3140_v31 = vrot.slane %v7453_v12, 7  ;;  %v3261_v50 = vrot.slane %v7453_v12, 1  ;;  %v3209_v44 = vmul.f32 %v7453_v12, %v9206_v2 }
 0x9ca   :  { %v7470_v19 = vsel %vm146_vm0, %v8776_v15, %v3140_v31  ;;  %v7476_v34 = vsel %vm412_vm1, %v8775_v61, %v3261_v50  ;;  %v3230_v25 = vmul.f32 %v7481_v4, %v3209_v44 }
 0x9cb   :  { %v3173_v21 = vmul.f32 %v7470_v19, %v9207_v20  ;;  %v2974_v7 = vpop.f32.mrf.mxu3  ;;  %4119 = vmatmul.msk.bf16.gmra.mxu3 %vm2947_vm5, %v3016_v43 }
 0x9cc   :  { %v3089_v5 = vmul.f32 %v7441_v59, %v2974_v7  ;;  %v9216_v7 = vld [vmem:[#allocation41_spill] sm:$0xff] }
 0x9cd   :  { %v3193_v3 = vmul.f32 %v7462_v17, %v3173_v21  ;;  %v3119_v21 = vsub.f32 1.0, %v4052_v55 }
 0x9ce   :  { %v7491_v62 = vadd.f32 %v3089_v5, %v3070_v11  ;;  %v9217_v11 = vld [vmem:[#allocation53_spill] sm:$0xff] }
 0x9cf   :  { %v3246_v36 = vadd.f32 %v3230_v25, %v3193_v3  ;;  %v9218_v3 = vld [vmem:[#allocation36_spill] sm:$0xff] }
 0x9d0   :  { %v3141_v16 = vrot.slane %v7491_v62, 7  ;;  %v3262_v58 = vrot.slane %v7491_v62, 1  ;;  %v3210_v30 = vmul.f32 %v7491_v62, %v9209_v57  ;;  %v9219_v57 = vld [vmem:[#allocation91_spill] sm:$0xff] }
 0x9d2   :  { %v7499_v14 = vsel %vm146_vm0, %v3140_v31, %v3141_v16  ;;  %v7503_v39 = vsel %vm412_vm1, %v3261_v50, %v3262_v58  ;;  %v3231_v26 = vmul.f32 %v7481_v4, %v3210_v30  ;;  %v3405_v31 = vmul.f32 %v7533_v18, %v7491_v62  ;;  %v9215_v50 = vld [vmem:[#allocation85_spill] sm:$0xff] }
 0x9d3   :  { %v3174_v38 = vmul.f32 %v7499_v14, %v9210_v13  ;;  %v2976_v47 = vpop.f32.mrf.mxu3  ;;  %v3294_v8 = vmul.f32 %v7503_v39, %v9211_v0  ;;  %v3347_v56 = vmul.f32 %v7499_v14, %v9213_v27  ;;  %v3072_v2 = vmul.f32 %v7443_v48, %v9215_v50  ;;  %v9220_v13 = vld [vmem:[#allocation45_spill] sm:$0xff]  ;;  %v9221_v0 = vld [vmem:[#allocation122_spill] sm:$0xff] }
 0x9d4   :  { %v3090_v23 = vmul.f32 %v7441_v59, %v2976_v47  ;;  %v3073_v30 = vmul.f32 %v7443_v48, %v9219_v57 }
 0x9d5   :  { %v3194_v37 = vmul.f32 %v7462_v17, %v3174_v38  ;;  %v3315_v24 = vmul.f32 %v7508_v6, %v3294_v8  ;;  %v3368_v1 = vmul.f32 %v7524_v10, %v3347_v56  ;;  %v7569_v8 = vmul.f32 %v7443_v48, %v9221_v0  ;;  %v9222_v56 = vld [vmem:[#allocation38_spill] sm:$0xff] }
 0x9d6   :  { %v7527_v45 = vadd.f32 %v3090_v23, %v3071_v41 }
 0x9d7   :  { %v3247_v9 = vadd.f32 %v3231_v26, %v3194_v37  ;;  %v3331_v52 = vadd.f32 %v3315_v24, %v3246_v36  ;;  %v9223_v26 = vld [vmem:[#allocation43_spill] sm:$0xff] }
 0x9d8   :  { %v3142_v40 = vrot.slane %v7527_v45, 7  ;;  %v3263_v35 = vrot.slane %v7527_v45, 1  ;;  %v3211_v33 = vmul.f32 %v7527_v45, %v9214_v46  ;;  %v3543_v24 = vmul.f32 %v7527_v45, %v9223_v26 }
 0x9d9   :  { %v3384_v60 = vadd.f32 %v3368_v1, %v3331_v52  ;;  %v7577_v52 = vperm.slane %v3119_v21, 0  ;;  %v7591_v21 = vld [vmem:[%s8452_s13 + $0x7] ss:$0 sm:$0xff] }
 0x9da   :  { %v7548_v44 = vsel %vm412_vm1, %v3262_v58, %v3263_v35  ;;  %v3167_v43 = vsel %vm146_vm0, %v3141_v16, %v3142_v40  ;;  %v7562_v58 = vld [vmem:[%s8452_s13 + $0x5] ss:$0 sm:$0xff]  ;;  %v3232_v47 = vmul.f32 %v7481_v4, %v3211_v33 }
 0x9db   :  { %v2979_v20 = vpop.f32.mrf.mxu3  ;;  %v3295_v49 = vmul.f32 %v7548_v44, %v9216_v7  ;;  %v3175_v5 = vmul.f32 %v3167_v43, %v9217_v11  ;;  %v3348_v25 = vmul.f32 %v3167_v43, %v9218_v3  ;;  %v3421_v16 = vadd.f32 %v3405_v31, %v3384_v60  ;;  %v9224_v60 = vld [vmem:[#allocation52_spill] sm:$0xff] }
 0x9dc   :  { %v3091_v36 = vmul.f32 %v7441_v59, %v2979_v20  ;;  %v3437_v38 = vmul.f32 %v7548_v44, %v9220_v13  ;;  %v3490_v37 = vmul.f32 %v3167_v43, %v9222_v56  ;;  %v9225_v20 = vld [vmem:[#allocation142_spill] sm:$0xff]  ;;  %v7586_v43 = vld [vmem:[%s8452_s13 + $0x6] ss:$0 sm:$0xff]  ;;  %v7597_v7 = vmul.f32 %v7577_v52, %v7491_v62 }
 0x9dd   :  { %v3195_v32 = vmul.f32 %v7462_v17, %v3175_v5  ;;  %v3316_v41 = vmul.f32 %v7508_v6, %v3295_v49  ;;  %v3369_v55 = vmul.f32 %v7524_v10, %v3348_v25  ;;  %v9226_v13 = vld [vmem:[#allocation73_spill] sm:$0xff] }
 0x9de   :  { %v3107_v23 = vadd.f32 %v3091_v36, %v3072_v2  ;;  %v3458_v27 = vmul.f32 %v7562_v58, %v3437_v38  ;;  %v3074_v2 = vmul.f32 %v7443_v48, %v9225_v20  ;;  %v3511_v25 = vmul.f32 %v7586_v43, %v3490_v37  ;;  %v9231_v20 = vld [vmem:[#allocation46_spill] sm:$0xff] }
 0x9df   :  { %v3332_v1 = vadd.f32 %v3316_v41, %v3247_v9  ;;  %v3248_v46 = vadd.f32 %v3232_v47, %v3195_v32  ;;  %v3406_v9 = vmul.f32 %v7533_v18, %v7527_v45  ;;  %v3564_v36 = vmul.f32 %v7591_v21, %v3543_v24  ;;  %v9227_v47 = vld [vmem:[#allocation44_spill] sm:$0xff]  ;;  %v9228_v32 = vld [vmem:[#allocation55_spill] sm:$0xff] }
 0x9e0   :  { %v3143_v33 = vrot.slane %v3107_v23, 7  ;;  %v3212_v31 = vmul.f32 %v3107_v23, %v9224_v60  ;;  %v3264_v50 = vrot.slane %v3107_v23, 1  ;;  %v3474_v11 = vadd.f32 %v3458_v27, %v3421_v16 }
 0x9e1   :  { %v3385_v49 = vadd.f32 %v3369_v55, %v3332_v1  ;;  %v9230_v55 = vld [vmem:[#allocation48_spill] sm:$0xff] }
 0x9e2   :  { %v3166_v5 = vsel %vm146_vm0, %v3142_v40, %v3143_v33  ;;  %v3287_v3 = vsel %vm412_vm1, %v3263_v35, %v3264_v50  ;;  %v3233_v16 = vmul.f32 %v7481_v4, %v3212_v31  ;;  %v9229_v40 = vld [vmem:[#allocation39_spill] sm:$0xff]  ;;  %v3527_v1 = vadd.f32 %v3511_v25, %v3474_v11  ;;  %v7614_v35 = vld [vmem:[%s8452_s13 + $0x8] ss:$0 sm:$0xff] }
 0x9e3   :  { %v2981_v57 = vpop.f32.mrf.mxu3  ;;  %v3176_v38 = vmul.f32 %v3166_v5, %v9226_v13  ;;  %v3296_v0 = vmul.f32 %v3287_v3, %v9227_v47  ;;  %v3349_v41 = vmul.f32 %v3166_v5, %v9228_v32  ;;  %v3422_v56 = vadd.f32 %v3406_v9, %v3385_v49 }
 0x9e4   :  { %v3092_v27 = vmul.f32 %v7441_v59, %v2981_v57  ;;  %v3438_v26 = vmul.f32 %v3287_v3, %v9229_v40  ;;  %v3491_v60 = vmul.f32 %v3166_v5, %v9230_v55  ;;  %v3596_v9 = vmul.f32 %v3287_v3, %v9231_v20  ;;  %v9232_v57 = vld [vmem:[#allocation50_spill] sm:$0xff] }
 0x9e5   :  { %v3196_v37 = vmul.f32 %v7462_v17, %v3176_v38  ;;  %v3317_v24 = vmul.f32 %v7508_v6, %v3296_v0  ;;  %v3544_v13 = vmul.f32 %v3107_v23, %v9232_v57  ;;  %v3580_v11 = vadd.f32 %v3564_v36, %v3527_v1 }
 0x9e6   :  { %v7620_v49 = vadd.f32 %v3092_v27, %v3073_v30  ;;  %v3459_v31 = vmul.f32 %v7562_v58, %v3438_v26  ;;  %v3617_v25 = vmul.f32 %v7614_v35, %v3596_v9  ;;  %v3370_v40 = vmul.f32 %v7524_v10, %v3349_v41  ;;  %v7632_v30 = vld [vmem:[%s8453_s14] ss:$0 sm:$0xff]  ;;  %v7640_v41 = vld [vmem:[%s8821_s23 + $0x2] ss:$0 sm:$0xff] }
 0x9e7   :  { %v3249_v47 = vadd.f32 %v3233_v16, %v3196_v37  ;;  %v3333_v32 = vadd.f32 %v3317_v24, %v3248_v46  ;;  %v3407_v38 = vmul.f32 %v7533_v18, %v3107_v23  ;;  %v3126_v3 = vmul.f32 %v7577_v52, %v7527_v45  ;;  %v9233_v24 = vld [vmem:[#allocation65_spill] sm:$0xff] }
 0x9e8   :  { %v3144_v0 = vrot.slane %v7620_v49, 7  ;;  %v3265_v5 = vrot.slane %v7620_v49, 1  ;;  %v3475_v36 = vadd.f32 %v3459_v31, %v3422_v56  ;;  %v3512_v16 = vmul.f32 %v7586_v43, %v3491_v60  ;;  %v9234_v60 = vld [vmem:[#allocation58_spill] sm:$0xff]  ;;  %v9235_v31 = vld [vmem:[#allocation49_spill] sm:$0xff] }
 0x9e9   :  { %v3633_v46 = vadd.f32 %v3617_v25, %v3580_v11  ;;  %v3386_v27 = vadd.f32 %v3370_v40, %v3333_v32  ;;  %v3565_v1 = vmul.f32 %v7591_v21, %v3544_v13  ;;  %v7646_v37 = vmul.f32 %v7577_v52, %v3107_v23  ;;  %v9236_v11 = vld [vmem:[#allocation61_spill] sm:$0xff]  ;;  %v9237_v23 = vld [vmem:[#allocation67_spill] sm:$0xff] }
 0x9ea   :  { %v3286_v26 = vsel %vm412_vm1, %v3264_v50, %v3265_v5  ;;  %v3165_v45 = vsel %vm146_vm0, %v3143_v33, %v3144_v0  ;;  %v3528_v9 = vadd.f32 %v3512_v16, %v3475_v36  ;;  %v3213_v25 = vmul.f32 %v7620_v49, %v9236_v11  ;;  %v9238_v16 = vld [vmem:[#allocation75_spill] sm:$0xff]  ;;  %v9239_v11 = vld [vmem:[#allocation69_spill] sm:$0xff] }
 0x9eb   :  { %v2984_v56 = vpop.f32.mrf.mxu3  ;;  %v3297_v55 = vmul.f32 %v3286_v26, %v9233_v24  ;;  %v3439_v20 = vmul.f32 %v3286_v26, %v9234_v60  ;;  %v3597_v57 = vmul.f32 %v3286_v26, %v9235_v31  ;;  %v3653_v13 = vadd.f32 %v7632_v30, %v3633_v46 }
 0x9ec   :  { %v3093_v50 = vmul.f32 %v7441_v59, %v2984_v56  ;;  %v3350_v32 = vmul.f32 %v3165_v45, %v9237_v23  ;;  %v3581_v33 = vadd.f32 %v3565_v1, %v3528_v9  ;;  %v3423_v24 = vadd.f32 %v3407_v38, %v3386_v27 }
 0x9ed   :  { %v3318_v40 = vmul.f32 %v7508_v6, %v3297_v55  ;;  %v3618_v61 = vmul.f32 %v7614_v35, %v3597_v57  ;;  %v3672_v36 = vmul.f32 %v7640_v41, %v3653_v13  ;;  %v3177_v26 = vmul.f32 %v3165_v45, %v9238_v16  ;;  %v9241_v57 = vld [vmem:[#allocation114_spill] sm:$0xff] }
 0x9ee   :  { %v7660_v15 = vadd.f32 %v3093_v50, %v3074_v2  ;;  %v3371_v60 = vmul.f32 %v7524_v10, %v3350_v32  ;;  %v3460_v46 = vmul.f32 %v7562_v58, %v3439_v20  ;;  %v3492_v23 = vmul.f32 %v3165_v45, %v9239_v11  ;;  %v9242_v50 = vld [vmem:[#allocation71_spill] sm:$0xff] }
 0x9ef   :  { %v3634_v31 = vadd.f32 %v3618_v61, %v3581_v33  ;;  %v3334_v56 = vadd.f32 %v3318_v40, %v3249_v47  ;;  %v3234_v55 = vmul.f32 %v7481_v4, %v3213_v25  ;;  %v3408_v1 = vmul.f32 %v7533_v18, %v7620_v49  ;;  %v9243_v33 = vld [vmem:[#allocation74_spill] sm:$0xff] }
 0x9f0   :  { %v3145_v2 = vrot.slane %v7660_v15, 7  ;;  %v3266_v38 = vrot.slane %v7660_v15, 1  ;;  %v7674_v9 = vadd.f32 %v3672_v36, %v7597_v7  ;;  %v3476_v47 = vadd.f32 %v3460_v46, %v3423_v24 }
 0x9f1   :  { %v3654_v27 = vadd.f32 %v7632_v30, %v3634_v31  ;;  %v3387_v61 = vadd.f32 %v3371_v60, %v3334_v56  ;;  %v3214_v20 = vmul.f32 %v7660_v15, %v9241_v57  ;;  %v3545_v13 = vmul.f32 %v7620_v49, %v9242_v50  ;;  %v9244_v60 = vld [vmem:[#allocation77_spill] sm:$0xff]  ;;  %v9245_v56 = vld [vmem:[#allocation47_spill] sm:$0xff] }
 0x9f2   :  { %9240 = vst [vmem:[#allocation20_spill] sm:$0xff] %v7674_v9  ;;  %v3164_v45 = vsel %vm146_vm0, %v3144_v0, %v3145_v2  ;;  %v3285_v25 = vsel %vm412_vm1, %v3265_v5, %v3266_v38  ;;  %v3197_v36 = vmul.f32 %v7462_v17, %v3177_v26  ;;  %v3513_v24 = vmul.f32 %v7586_v43, %v3492_v23  ;;  %v9247_v57 = vld [vmem:[#allocation89_spill] sm:$0xff]  ;;  %v9251_v9 = vld [vmem:[#allocation132_spill] sm:$0xff] }
 0x9f3   :  { %v2986_v32 = vpop.f32.mrf.mxu3  ;;  %v3673_v40 = vmul.f32 %v7640_v41, %v3654_v27  ;;  %v3178_v7 = vmul.f32 %v3164_v45, %v9243_v33  ;;  %v3298_v31 = vmul.f32 %v3285_v25, %v9244_v60  ;;  %v3424_v0 = vadd.f32 %v3408_v1, %v3387_v61  ;;  %v9249_v60 = vld [vmem:[#allocation135_spill] sm:$0xff] }
 0x9f4   :  { %v3094_v16 = vmul.f32 %v7441_v59, %v2986_v32  ;;  %v3440_v46 = vmul.f32 %v3285_v25, %v9245_v56  ;;  %v3409_v5 = vmul.f32 %v7533_v18, %v7660_v15  ;;  %v3493_v27 = vmul.f32 %v3164_v45, %v9247_v57  ;;  %v9248_v32 = vld [vmem:[#allocation60_spill] sm:$0xff] }
 0x9f5   :  { %v7693_v11 = vadd.f32 %v3673_v40, %v3126_v3  ;;  %v3529_v50 = vadd.f32 %v3513_v24, %v3476_v47  ;;  %v3235_v33 = vmul.f32 %v7481_v4, %v3214_v20  ;;  %v3546_v1 = vmul.f32 %v7660_v15, %v9248_v32  ;;  %v9250_v40 = vld [vmem:[#allocation79_spill] sm:$0xff] }
 0x9f6   :  { %v7698_v26 = vadd.f32 %v3094_v16, %v7569_v8  ;;  %v3461_v23 = vmul.f32 %v7562_v58, %v3440_v46  ;;  %v3351_v56 = vmul.f32 %v3164_v45, %v9249_v60  ;;  %v3566_v3 = vmul.f32 %v7591_v21, %v3545_v13  ;;  %v9254_v60 = vld [vmem:[#allocation72_spill] sm:$0xff] }
 0x9f7   :  { %9246 = vst [vmem:[#allocation125_spill] sm:$0xff] %v7693_v11  ;;  %v3598_v57 = vmul.f32 %v3285_v25, %v9250_v40  ;;  %v3198_v8 = vmul.f32 %v7462_v17, %v3178_v7  ;;  %v3319_v24 = vmul.f32 %v7508_v6, %v3298_v31  ;;  %v3514_v46 = vmul.f32 %v7586_v43, %v3493_v27  ;;  %v9252_v31 = vld [vmem:[#allocation63_spill] sm:$0xff]  ;;  %v9253_v27 = vld [vmem:[#allocation101_spill] sm:$0xff]  ;;  %v9255_v40 = vld [vmem:[#allocation84_spill] sm:$0xff] }
 0x9f8   :  { %v3146_v47 = vrot.slane %v7698_v26, 7  ;;  %v8781_v20 = vrot.slane %v7698_v26, 1  ;;  %v3477_v16 = vadd.f32 %v3461_v23, %v3424_v0  ;;  %v3582_v32 = vadd.f32 %v3566_v3, %v3529_v50 }
 0x9f9   :  { %v3619_v61 = vmul.f32 %v7614_v35, %v3598_v57  ;;  %v3215_v45 = vmul.f32 %v7698_v26, %v9251_v9  ;;  %v3567_v13 = vmul.f32 %v7591_v21, %v3546_v1  ;;  %v3250_v11 = vadd.f32 %v3234_v55, %v3197_v36 }
 0x9fa   :  { %v3284_v25 = vsel %vm412_vm1, %v3266_v38, %v8781_v20  ;;  %v3163_v7 = vsel %vm146_vm0, %v3145_v2, %v3146_v47  ;;  %v3530_v23 = vadd.f32 %v3514_v46, %v3477_v16  ;;  %v3251_v42 = vadd.f32 %v3235_v33, %v3198_v8 }
 0x9fb   :  { %v3299_v0 = vmul.f32 %v3284_v25, %v9252_v31  ;;  %v3441_v50 = vmul.f32 %v3284_v25, %v9253_v27  ;;  %v3599_v3 = vmul.f32 %v3284_v25, %v9254_v60  ;;  %v3635_v9 = vadd.f32 %v3619_v61, %v3582_v32  ;;  %v9257_v25 = vld [vmem:[#allocation113_spill] sm:$0xff] }
 0x9fc   :  { %v3179_v57 = vmul.f32 %v3163_v7, %v9255_v40  ;;  %v3583_v1 = vadd.f32 %v3567_v13, %v3530_v23  ;;  %v3352_v63 = vmul.f32 %v3163_v7, %v9256_v54  ;;  %v3335_v27 = vadd.f32 %v3319_v24, %v3250_v11 }
 0x9fd   :  { %v3320_v38 = vmul.f32 %v7508_v6, %v3299_v0  ;;  %v3620_v20 = vmul.f32 %v7614_v35, %v3599_v3  ;;  %v3655_v2 = vadd.f32 %v7632_v30, %v3635_v9  ;;  %v3372_v16 = vmul.f32 %v7524_v10, %v3351_v56 }
 0x9fe   :  { %v3199_v31 = vmul.f32 %v7462_v17, %v3179_v57  ;;  %v3236_v61 = vmul.f32 %v7481_v4, %v3215_v45  ;;  %v3373_v55 = vmul.f32 %v7524_v10, %v3352_v63  ;;  %v3462_v8 = vmul.f32 %v7562_v58, %v3441_v50  ;;  %v9259_v63 = vld [vmem:[#allocation66_spill] sm:$0xff]  ;;  %v9261_v57 = vld [vmem:[#allocation153_spill] sm:$0xff] }
 0x9ff   :  { %v3636_v46 = vadd.f32 %v3620_v20, %v3583_v1  ;;  %v3336_v32 = vadd.f32 %v3320_v38, %v3251_v42  ;;  %v3674_v36 = vmul.f32 %v7640_v41, %v3655_v2  ;;  %v3388_v33 = vadd.f32 %v3372_v16, %v3335_v27  ;;  %v9262_v38 = vld [vmem:[#allocation119_spill] sm:$0xff]  ;;  %v9264_v27 = vld [vmem:[#allocation16_spill] sm:$0xff] }
 0xa00   :  { %v3494_v54 = vmul.f32 %v3163_v7, %v9257_v25  ;;  %v3410_v13 = vmul.f32 %v7533_v18, %v7698_v26  ;;  %v7743_v56 = vadd.f32 %v3236_v61, %v3199_v31  ;;  %v3547_v45 = vmul.f32 %v7698_v26, %v9259_v63  ;;  %v9263_v2 = vld [vmem:[#allocation147_spill] sm:$0xff]  ;;  %v9265_v61 = vld [vmem:[#allocation145_spill] sm:$0xff]  ;;  %v9268_v25 = vld [vmem:[#allocation32_spill] sm:$0xff] }
 0xa01   :  { %v3656_v11 = vadd.f32 %v7632_v30, %v3636_v46  ;;  %v3389_v24 = vadd.f32 %v3373_v55, %v3336_v32  ;;  %v7746_v20 = vadd.f32 %v3674_v36, %v7646_v37  ;;  %v3425_v42 = vadd.f32 %v3409_v5, %v3388_v33  ;;  %v9266_v32 = vld [vmem:[#allocation146_spill] sm:$0xff]  ;;  %v9296_v5 = vld [vmem:[#allocation80_spill] sm:$0xff] }
 0xa02   :  { %v3128_v0 = vmul.f32 %v7577_v52, %v7620_v49  ;;  %v3515_v60 = vmul.f32 %v7586_v43, %v3494_v54  ;;  %v3568_v37 = vmul.f32 %v7591_v21, %v3547_v45  ;;  %v3076_v49 = vmul.f32 %v7443_v48, %v9261_v57  ;;  %v9267_v36 = vld [vmem:[#allocation18_spill] sm:$0xff] }
 0xa03   :  { %9258 = vst [vmem:[#allocation34_spill] sm:$0xff] %v7746_v20  ;;  %v3675_v7 = vmul.f32 %v7640_v41, %v3656_v11  ;;  %v7753_v50 = vadd.f32 %v3410_v13, %v3389_v24  ;;  %v3478_v23 = vadd.f32 %v3462_v8, %v3425_v42  ;;  %v3077_v1 = vmul.f32 %v7443_v48, %v9262_v38  ;;  %v9269_v13 = vld [vmem:[#allocation133_spill] sm:$0xff]  ;;  %v9270_v24 = vld [vmem:[#allocation15_spill] sm:$0xff]  ;;  %v9271_v63 = vld [vmem:[#allocation10_spill] sm:$0xff] }
 0xa04   :  { %v7769_v31 = vmul.f32 %v7443_v48, %v9263_v2  ;;  %v3208_v16 = vmul.f32 %v7448_v29, %v9264_v27  ;;  %v7775_v46 = vmul.f32 %v7443_v48, %v9265_v61  ;;  %v7779_v55 = vmul.f32 %v7443_v48, %v9266_v32  ;;  %v9275_v38 = vld [vmem:[#allocation19_spill] sm:$0xff] }
 0xa05   :  { %v7756_v3 = vadd.f32 %v3675_v7, %v3128_v0  ;;  %v3531_v9 = vadd.f32 %v3515_v60, %v3478_v23  ;;  %v7783_v33 = vmul.f32 %v7443_v48, %v9267_v36  ;;  %v7787_v8 = vmul.f32 %v7533_v18, %v7448_v29  ;;  %v9272_v0 = vld [vmem:[#allocation24_spill] sm:$0xff]  ;;  %v9273_v60 = vld [vmem:[#allocation11_spill] sm:$0xff] }
 0xa06   :  { %v3541_v54 = vmul.f32 %v7453_v12, %v9268_v25  ;;  %v7793_v11 = vmul.f32 %v7443_v48, %v9269_v13  ;;  %v7797_v42 = vmul.f32 %v7443_v48, %v9270_v24  ;;  %v3293_v45 = vmul.f32 %v7476_v34, %v9271_v63  ;;  %v9276_v48 = vld [vmem:[#allocation29_spill] sm:$0xff]  ;;  %v9277_v32 = vld [vmem:[#allocation155_spill] sm:$0xff] }
 0xa07   :  { %9260 = vst [vmem:[#allocation134_spill] sm:$0xff] %v7756_v3  ;;  %v7761_v40 = vadd.f32 %v3568_v37, %v3531_v9  ;;  %v3346_v7 = vmul.f32 %v7470_v19, %v9272_v0  ;;  %v3435_v9 = vmul.f32 %v7476_v34, %v9273_v60  ;;  %v9274_v37 = vld [vmem:[#allocation14_spill] sm:$0xff]  ;;  %v3542_v2 = vmul.f32 %v7491_v62, %v9275_v38  ;;  %v9279_v13 = vld [vmem:[#allocation31_spill] sm:$0xff]  ;;  %v9280_v63 = vld [vmem:[#allocation25_spill] sm:$0xff] }
 0xa08   :  { %v3488_v57 = vmul.f32 %v7470_v19, %v9274_v37  ;;  %v3436_v61 = vmul.f32 %v7503_v39, %v9276_v48  ;;  %v7814_v36 = vmul.f32 %v7448_v29, %v9277_v32  ;;  %v7817_v25 = vmul.f32 %v7481_v4, %v3208_v16  ;;  %v9282_v37 = vld [vmem:[#allocation157_spill] sm:$0xff] }
 0xa09   :  { %v3489_v24 = vmul.f32 %v7499_v14, %v9279_v13  ;;  %v3594_v19 = vmul.f32 %v7503_v39, %v9195_v22  ;;  %v3595_v62 = vmul.f32 %v7548_v44, %v9280_v63  ;;  %v7827_v0 = vmul.f32 %v7533_v18, %v7453_v12 }
 0xa0a   :  { %9278 = vst [vmem:[#allocation22_spill] sm:$0xff] %v7814_v36  ;;  %v7830_v60 = vmul.f32 %v7591_v21, %v3541_v54  ;;  %v7834_v16 = vmul.f32 %v7476_v34, %v9282_v37  ;;  %v7837_v14 = vmul.f32 %v7508_v6, %v3293_v45  ;;  %v7840_v22 = vmul.f32 %v7524_v10, %v3346_v7  ;;  %v9295_v37 = vld [vmem:[#allocation139_spill] sm:$0xff]  ;;  %v9298_v36 = vld [vmem:[#allocation105_spill] sm:$0xff] }
 0xa0b   :  { %v7843_v39 = vmul.f32 %v7562_v58, %v3435_v9  ;;  %v7846_v44 = vmul.f32 %v7586_v43, %v3488_v57  ;;  %v7849_v54 = vmul.f32 %v7562_v58, %v3436_v61  ;;  %v7852_v34 = vmul.f32 %v7591_v21, %v3542_v2 }
 0xa0c   :  { %9281 = vst [vmem:[#allocation137_spill] sm:$0xff] %v7830_v60  ;;  %v7856_v48 = vmul.f32 %v7586_v43, %v3489_v24  ;;  %v7859_v7 = vmul.f32 %v7614_v35, %v3594_v19  ;;  %v7862_v9 = vmul.f32 %v7614_v35, %v3595_v62  ;;  %v7866_v57 = vmul.f32 %v7577_v52, %v7660_v15  ;;  %v9293_v19 = vld [vmem:[#allocation78_spill] sm:$0xff] }
 0xa0d   :  { %9283 = vst [vmem:[#allocation160_spill] sm:$0xff] %v7834_v16  ;;  %v7870_v61 = vmul.f32 %v7577_v52, %v7698_v26  ;;  %v9292_v32 = vrot.slane %v7698_v26, 1  ;;  %v9294_v62 = vld [vmem:[#allocation70_spill] sm:$0xff]  ;;  %v9297_v16 = vld [vmem:[#allocation121_spill] sm:$0xff] }
 0xa0e   :  { %9284 = vst [vmem:[#allocation138_spill] sm:$0xff] %v7843_v39 }
 0xa0f   :  { %9285 = vst [vmem:[#allocation21_spill] sm:$0xff] %v7846_v44 }
 0xa10   :  { %9286 = vst [vmem:[#allocation54_spill] sm:$0xff] %v7849_v54 }
 0xa11   :  { %9287 = vst [vmem:[#allocation35_spill] sm:$0xff] %v7852_v34 }
 0xa12   :  { %9289 = vst [vmem:[#allocation30_spill] sm:$0xff] %v7856_v48 }
 0xa13   :  { %9290 = vst [vmem:[#allocation27_spill] sm:$0xff] %v7859_v7 }
 0xa14   :  { %9291 = vst [vmem:[#allocation62_spill] sm:$0xff] %v7862_v9  ;;  %v9299_v9 = vld [vmem:[#allocation82_spill] sm:$0xff] }
 0xa1e   :  { %v3044_v23 = vpop.f32.mrf.mxu3 }
 0xa1f   :  { %v3095_v27 = vmul.f32 %v7441_v59, %v3044_v23 }
 0xa21   :  { %v3111_v23 = vadd.f32 %v3095_v27, %v3076_v49  ;;  %v9288_v27 = vld [vmem:[#allocation87_spill] sm:$0xff] }
 0xa23   :  { %v3147_v49 = vrot.slane %v3111_v23, 7  ;;  %v3268_v38 = vrot.slane %v3111_v23, 1  ;;  %v3216_v45 = vmul.f32 %v3111_v23, %v9288_v27 }
 0xa25   :  { %v3162_v2 = vsel %vm146_vm0, %v3146_v47, %v3147_v49  ;;  %v3283_v13 = vsel %vm412_vm1, %v9292_v32, %v3268_v38  ;;  %v3548_v47 = vmul.f32 %v3111_v23, %v9298_v36  ;;  %v3237_v7 = vmul.f32 %v7481_v4, %v3216_v45 }
 0xa26   :  { %v3046_v24 = vpop.f32.mrf.mxu3  ;;  %v3180_v63 = vmul.f32 %v3162_v2, %v9293_v19  ;;  %v3300_v15 = vmul.f32 %v3283_v13, %v9294_v62  ;;  %v3353_v27 = vmul.f32 %v3162_v2, %v9295_v37  ;;  %v3442_v20 = vmul.f32 %v3283_v13, %v9296_v5 }
 0xa27   :  { %v3096_v3 = vmul.f32 %v7441_v59, %v3046_v24  ;;  %v3495_v12 = vmul.f32 %v3162_v2, %v9297_v16  ;;  %v3600_v26 = vmul.f32 %v3283_v13, %v9299_v9  ;;  %v3411_v37 = vmul.f32 %v7533_v18, %v3111_v23 }
 0xa28   :  { %v3200_v32 = vmul.f32 %v7462_v17, %v3180_v63  ;;  %v3321_v19 = vmul.f32 %v7508_v6, %v3300_v15  ;;  %v3463_v62 = vmul.f32 %v7562_v58, %v3442_v20  ;;  %v3374_v24 = vmul.f32 %v7524_v10, %v3353_v27  ;;  %v9300_v15 = vld [vmem:[#allocation83_spill] sm:$0xff] }
 0xa29   :  { %v3112_v34 = vadd.f32 %v3096_v3, %v3077_v1  ;;  %v3621_v5 = vmul.f32 %v7614_v35, %v3600_v26  ;;  %v3516_v36 = vmul.f32 %v7586_v43, %v3495_v12  ;;  %v3569_v63 = vmul.f32 %v7591_v21, %v3548_v47 }
 0xa2a   :  { %v3479_v16 = vadd.f32 %v3463_v62, %v7753_v50  ;;  %v3253_v9 = vadd.f32 %v3237_v7, %v3200_v32  ;;  %v3337_v45 = vadd.f32 %v3321_v19, %v7743_v56  ;;  %v7900_v20 = vmul.f32 %v7577_v52, %v3111_v23  ;;  %v9301_v23 = vld [vmem:[#allocation88_spill] sm:$0xff]  ;;  %v9302_v19 = vld [vmem:[#allocation90_spill] sm:$0xff] }
 0xa2b   :  { %v3148_v2 = vrot.slane %v3112_v34, 7  ;;  %v3269_v13 = vrot.slane %v3112_v34, 1  ;;  %v3217_v3 = vmul.f32 %v3112_v34, %v9300_v15  ;;  %v3637_v26 = vadd.f32 %v3621_v5, %v7761_v40  ;;  %v9305_v15 = vld [vmem:[#allocation141_spill] sm:$0xff] }
 0xa2c   :  { %v3532_v1 = vadd.f32 %v3516_v36, %v3479_v16  ;;  %v3390_v27 = vadd.f32 %v3374_v24, %v3337_v45  ;;  %v3412_v50 = vmul.f32 %v7533_v18, %v3112_v34  ;;  %v7908_v56 = vmul.f32 %v7577_v52, %v3112_v34  ;;  %v9303_v36 = vld [vmem:[#allocation68_spill] sm:$0xff]  ;;  %v9304_v45 = vld [vmem:[#allocation81_spill] sm:$0xff] }
 0xa2d   :  { %v3282_v12 = vsel %vm412_vm1, %v3268_v38, %v3269_v13  ;;  %v3161_v7 = vsel %vm146_vm0, %v3147_v49, %v3148_v2  ;;  %v3657_v24 = vadd.f32 %v7632_v30, %v3637_v26 }
 0xa2e   :  { %v3049_v47 = vpop.f32.mrf.mxu3  ;;  %v3301_v32 = vmul.f32 %v3282_v12, %v9301_v23  ;;  %v3443_v62 = vmul.f32 %v3282_v12, %v9302_v19  ;;  %v3585_v16 = vadd.f32 %v3569_v63, %v3532_v1  ;;  %v3601_v40 = vmul.f32 %v3282_v12, %v9303_v36 }
 0xa2f   :  { %v3097_v5 = vmul.f32 %v7441_v59, %v3049_v47  ;;  %v3181_v38 = vmul.f32 %v3161_v7, %v9304_v45  ;;  %v3354_v60 = vmul.f32 %v3161_v7, %v9305_v15  ;;  %v3427_v44 = vadd.f32 %v3411_v37, %v3390_v27  ;;  %v9306_v45 = vld [vmem:[#allocation123_spill] sm:$0xff]  ;;  %v9307_v37 = vld [vmem:[#allocation93_spill] sm:$0xff] }
 0xa30   :  { %v3322_v48 = vmul.f32 %v7508_v6, %v3301_v32  ;;  %v3622_v49 = vmul.f32 %v7614_v35, %v3601_v40  ;;  %v3464_v23 = vmul.f32 %v7562_v58, %v3443_v62  ;;  %v3238_v19 = vmul.f32 %v7481_v4, %v3217_v3  ;;  %v9308_v62 = vld [vmem:[#allocation100_spill] sm:$0xff] }
 0xa31   :  { %v3113_v63 = vadd.f32 %v3097_v5, %v7775_v46  ;;  %v3676_v1 = vmul.f32 %v7640_v41, %v3657_v24  ;;  %v3375_v12 = vmul.f32 %v7524_v10, %v3354_v60  ;;  %v3496_v15 = vmul.f32 %v3161_v7, %v9306_v45 }
 0xa32   :  { %v3638_v26 = vadd.f32 %v3622_v49, %v3585_v16  ;;  %v3338_v47 = vadd.f32 %v3322_v48, %v3253_v9  ;;  %v3480_v36 = vadd.f32 %v3464_v23, %v3427_v44  ;;  %v3201_v40 = vmul.f32 %v7462_v17, %v3181_v38  ;;  %v9310_v16 = vld [vmem:[#allocation98_spill] sm:$0xff]  ;;  %v9312_v49 = vld [vmem:[#allocation107_spill] sm:$0xff] }
 0xa33   :  { %v3149_v54 = vrot.slane %v3113_v63, 7  ;;  %v3270_v32 = vrot.slane %v3113_v63, 1  ;;  %v3549_v27 = vmul.f32 %v3112_v34, %v9307_v37  ;;  %v3218_v39 = vmul.f32 %v3113_v63, %v9308_v62  ;;  %v9311_v38 = vld [vmem:[#allocation86_spill] sm:$0xff]  ;;  %v9316_v37 = vld [vmem:[#allocation143_spill] sm:$0xff] }
 0xa34   :  { %v3658_v3 = vadd.f32 %v7632_v30, %v3638_v26  ;;  %v7932_v46 = vadd.f32 %v3676_v1, %v7866_v57  ;;  %v3391_v5 = vadd.f32 %v3375_v12, %v3338_v47  ;;  %v7935_v60 = vmul.f32 %v7533_v18, %v3113_v63  ;;  %v9313_v26 = vld [vmem:[#allocation92_spill] sm:$0xff] }
 0xa35   :  { %v3160_v44 = vsel %vm146_vm0, %v3148_v2, %v3149_v54  ;;  %v3281_v48 = vsel %vm412_vm1, %v3269_v13, %v3270_v32  ;;  %v3517_v9 = vmul.f32 %v7586_v43, %v3496_v15  ;;  %v3550_v23 = vmul.f32 %v3113_v63, %v9312_v49  ;;  %v9314_v2 = vld [vmem:[#allocation116_spill] sm:$0xff] }
 0xa36   :  { %9309 = vst [vmem:[#allocation40_spill] sm:$0xff] %v7932_v46  ;;  %v3051_v34 = vpop.f32.mrf.mxu3  ;;  %v3677_v7 = vmul.f32 %v7640_v41, %v3658_v3  ;;  %v3182_v24 = vmul.f32 %v3160_v44, %v9310_v16  ;;  %v3302_v57 = vmul.f32 %v3281_v48, %v9311_v38  ;;  %v3428_v12 = vadd.f32 %v3412_v50, %v3391_v5 }
 0xa37   :  { %v3098_v1 = vmul.f32 %v7441_v59, %v3051_v34  ;;  %v3444_v47 = vmul.f32 %v3281_v48, %v9313_v26  ;;  %v3497_v45 = vmul.f32 %v3160_v44, %v9314_v2  ;;  %v3239_v13 = vmul.f32 %v7481_v4, %v3218_v39 }
 0xa38   :  { %v7951_v15 = vadd.f32 %v3677_v7, %v7870_v61  ;;  %v3355_v62 = vmul.f32 %v3160_v44, %v9316_v37  ;;  %v3533_v3 = vadd.f32 %v3517_v9, %v3480_v36  ;;  %v3202_v38 = vmul.f32 %v7462_v17, %v3182_v24  ;;  %v9317_v7 = vld [vmem:[#allocation94_spill] sm:$0xff]  ;;  %v9318_v24 = vld [vmem:[#allocation115_spill] sm:$0xff] }
 0xa39   :  { %v7955_v16 = vadd.f32 %v3098_v1, %v7779_v55  ;;  %v3323_v34 = vmul.f32 %v7508_v6, %v3302_v57  ;;  %v3465_v50 = vmul.f32 %v7562_v58, %v3444_v47  ;;  %v3518_v39 = vmul.f32 %v7586_v43, %v3497_v45 }
 0xa3a   :  { %9315 = vst [vmem:[#allocation37_spill] sm:$0xff] %v7951_v15  ;;  %v3570_v61 = vmul.f32 %v7591_v21, %v3549_v27  ;;  %v3602_v49 = vmul.f32 %v3281_v48, %v9317_v7  ;;  %v3571_v44 = vmul.f32 %v7591_v21, %v3550_v23  ;;  %v7969_v9 = vmul.f32 %v7577_v52, %v3113_v63  ;;  %v9319_v63 = vld [vmem:[#allocation102_spill] sm:$0xff]  ;;  %v9320_v7 = vld [vmem:[#allocation104_spill] sm:$0xff] }
 0xa3b   :  { %v3150_v36 = vrot.slane %v7955_v16, 7  ;;  %v3271_v55 = vrot.slane %v7955_v16, 1  ;;  %v3219_v57 = vmul.f32 %v7955_v16, %v9318_v24  ;;  %v3481_v1 = vadd.f32 %v3465_v50, %v3428_v12  ;;  %v9321_v12 = vld [vmem:[#allocation96_spill] sm:$0xff] }
 0xa3c   :  { %v3586_v26 = vadd.f32 %v3570_v61, %v3533_v3  ;;  %v3623_v47 = vmul.f32 %v7614_v35, %v3602_v49  ;;  %v3414_v27 = vmul.f32 %v7533_v18, %v7955_v16  ;;  %v3254_v23 = vadd.f32 %v3238_v19, %v3201_v40  ;;  %v9322_v49 = vld [vmem:[#allocation112_spill] sm:$0xff] }
 0xa3d   :  { %v3280_v48 = vsel %vm412_vm1, %v3270_v32, %v3271_v55  ;;  %v3159_v2 = vsel %vm146_vm0, %v3149_v54, %v3150_v36  ;;  %v3534_v24 = vadd.f32 %v3518_v39, %v3481_v1  ;;  %v3255_v15 = vadd.f32 %v3239_v13, %v3202_v38  ;;  %v9323_v1 = vld [vmem:[#allocation144_spill] sm:$0xff] }
 0xa3e   :  { %v3054_v45 = vpop.f32.mrf.mxu3  ;;  %v3303_v37 = vmul.f32 %v3280_v48, %v9319_v63  ;;  %v3445_v5 = vmul.f32 %v3280_v48, %v9320_v7  ;;  %v3603_v3 = vmul.f32 %v3280_v48, %v9321_v12  ;;  %v3639_v61 = vadd.f32 %v3623_v47, %v3586_v26 }
 0xa3f   :  { %v3099_v50 = vmul.f32 %v7441_v59, %v3054_v45  ;;  %v3183_v46 = vmul.f32 %v3159_v2, %v9322_v49  ;;  %v3587_v51 = vadd.f32 %v3571_v44, %v3534_v24  ;;  %v3339_v19 = vadd.f32 %v3323_v34, %v3254_v23  ;;  %v9324_v45 = vld [vmem:[#allocation28_spill] sm:$0xff] }
 0xa40   :  { %v3324_v32 = vmul.f32 %v7508_v6, %v3303_v37  ;;  %v3624_v54 = vmul.f32 %v7614_v35, %v3603_v3  ;;  %v3659_v63 = vadd.f32 %v7632_v30, %v3639_v61  ;;  %v7993_v39 = vmul.f32 %v7577_v52, %v7955_v16  ;;  %v4182_v3 = vld [vmem:[%s8454_s15] sm:$0xff] }
 0xa41   :  { %v7988_v40 = vadd.f32 %v3099_v50, %v7769_v31  ;;  %v3356_v26 = vmul.f32 %v3159_v2, %v9323_v1  ;;  %v7997_v47 = vmul.f32 %v7481_v4, %v3219_v57  ;;  %v3376_v44 = vmul.f32 %v7524_v10, %v3355_v62  ;;  %v4183_v57 = vld [vmem:[%s8454_s15 + $0x8] sm:$0xff]  ;;  %v9325_v49 = vld [vmem:[#allocation120_spill] sm:$0xff] }
 0xa42   :  { %v3640_v13 = vadd.f32 %v3624_v54, %v3587_v51  ;;  %v3340_v38 = vadd.f32 %v3324_v32, %v3255_v15  ;;  %v8003_v48 = vmul.f32 %v7462_v17, %v3183_v46  ;;  %v3466_v23 = vmul.f32 %v7562_v58, %v3445_v5  ;;  %3760 = vmatpush.bf16.msrb.mxu1 %v4183_v57  ;;  %v9326_v54 = vld [vmem:[#allocation59_spill] sm:$0xff] }
 0xa43   :  { %v3151_v34 = vrot.slane %v7988_v40, 7  ;;  %v3272_v31 = vrot.slane %v7988_v40, 1  ;;  %v3220_v37 = vmul.f32 %v7988_v40, %v9324_v45  ;;  %v3678_v15 = vmul.f32 %v7640_v41, %v3659_v63  ;;  %v9328_v45 = vld [vmem:[#allocation97_spill] sm:$0xff] }
 0xa44   :  { %v3660_v51 = vadd.f32 %v7632_v30, %v3640_v13  ;;  %v3392_v62 = vadd.f32 %v3376_v44, %v3339_v19  ;;  %v8015_v7 = vmul.f32 %v7533_v18, %v7988_v40  ;;  %v3377_v24 = vmul.f32 %v7524_v10, %v3356_v26 }
 0xa45   :  { %v3158_v46 = vsel %vm146_vm0, %v3150_v36, %v3151_v34  ;;  %v3279_v5 = vsel %vm412_vm1, %v3271_v55, %v3272_v31  ;;  %v8029_v61 = vadd.f32 %v3678_v15, %v7900_v20  ;;  %v3498_v36 = vmul.f32 %v3159_v2, %v9326_v54  ;;  %v9327_v55 = vld [vmem:[#allocation140_spill] sm:$0xff]  ;;  %v9329_v20 = vld [vmem:[#allocation106_spill] sm:$0xff] }
 0xa46   :  { %v3056_v12 = vpop.f32.mrf.mxu3  ;;  %v3679_v50 = vmul.f32 %v7640_v41, %v3660_v51  ;;  %v3184_v32 = vmul.f32 %v3158_v46, %v9325_v49  ;;  %v3304_v63 = vmul.f32 %v3279_v5, %v9327_v55  ;;  %v3393_v1 = vadd.f32 %v3377_v24, %v3340_v38  ;;  %v9330_v49 = vld [vmem:[#allocation118_spill] sm:$0xff]  ;;  %3761 = vmatpush.bf16.msrb.mxu1 %v4182_v3  ;;  %v9332_v24 = vld [vmem:[#allocation136_spill] sm:$0xff] }
 0xa47   :  { %v3100_v19 = vmul.f32 %v7441_v59, %v3056_v12  ;;  %v3429_v26 = vadd.f32 %v7935_v60, %v3392_v62  ;;  %v3241_v13 = vmul.f32 %v7481_v4, %v3220_v37  ;;  %v8041_v57 = vmul.f32 %v3158_v46, %v9328_v45  ;;  %v9331_v37 = vld [vmem:[#allocation109_spill] sm:$0xff]  ;;  %v9333_v55 = vld [vmem:[#allocation108_spill] sm:$0xff]  ;;  %v9334_v45 = vld [vmem:[#allocation110_spill] sm:$0xff] }
 0xa48   :  { %v8038_v44 = vadd.f32 %v3679_v50, %v7908_v56  ;;  %v3446_v51 = vmul.f32 %v3279_v5, %v9329_v20  ;;  %v3430_v2 = vadd.f32 %v3414_v27, %v3393_v1  ;;  %v3499_v54 = vmul.f32 %v3158_v46, %v9330_v49 }
 0xa49   :  { %v8045_v15 = vadd.f32 %v3100_v19, %v7793_v11  ;;  %v3482_v12 = vadd.f32 %v3466_v23, %v3429_v26  ;;  %v3519_v56 = vmul.f32 %v7586_v43, %v3498_v36  ;;  %v3551_v62 = vmul.f32 %v7955_v16, %v9331_v37 }
 0xa4a   :  { %v3706_v60 = vpack.c.bf16 %v8038_v44, %v8029_v61  ;;  %v3467_v38 = vmul.f32 %v7562_v58, %v3446_v51  ;;  %v3204_v27 = vmul.f32 %v7462_v17, %v3184_v32  ;;  %v3325_v23 = vmul.f32 %v7508_v6, %v3304_v63  ;;  %v9335_v51 = vld [vmem:[#allocation117_spill] sm:$0xff] }
 0xa4b   :  { %v3221_v50 = vmul.f32 %v8045_v15, %v9332_v24  ;;  %v3273_v11 = vrot.slane %v8045_v15, 1  ;;  %v3520_v3 = vmul.f32 %v7586_v43, %v3499_v54  ;;  %v3535_v19 = vadd.f32 %v3519_v56, %v3482_v12  ;;  %v9336_v56 = vld [vmem:[#allocation95_spill] sm:$0xff] }
 0xa4c   :  { %v3483_v46 = vadd.f32 %v3467_v38, %v3430_v2  ;;  %v3552_v1 = vmul.f32 %v7988_v40, %v9333_v55  ;;  %v3152_v36 = vrot.slane %v8045_v15, 7  ;;  %v3572_v26 = vmul.f32 %v7591_v21, %v3551_v62  ;;  %v9337_v24 = vld [vmem:[#allocation103_spill] sm:$0xff] }
 0xa4d   :  { %v3278_v16 = vsel %vm412_vm1, %v3272_v31, %v3273_v11  ;;  %v3604_v20 = vmul.f32 %v3279_v5, %v9334_v45  ;;  %v3416_v32 = vmul.f32 %v7533_v18, %v8045_v15  ;;  %v8075_v62 = vmul.f32 %v7481_v4, %v3221_v50 }
 0xa4e   :  { %v3059_v63 = vpop.f32.mrf.mxu3  ;;  %v3305_v2 = vmul.f32 %v3278_v16, %v9335_v51  ;;  %v3536_v49 = vadd.f32 %v3520_v3, %v3483_v46  ;;  %v3573_v12 = vmul.f32 %v7591_v21, %v3552_v1  ;;  %v3588_v38 = vadd.f32 %v3572_v26, %v3535_v19 }
 0xa4f   :  { %v3101_v54 = vmul.f32 %v7441_v59, %v3059_v63  ;;  %v3605_v37 = vmul.f32 %v3278_v16, %v9336_v56  ;;  %v3625_v31 = vmul.f32 %v7614_v35, %v3604_v20  ;;  %v3447_v55 = vmul.f32 %v3278_v16, %v9337_v24  ;;  %v9338_v63 = vld [vmem:[#allocation129_spill] sm:$0xff] }
 0xa50   :  { %v3326_v5 = vmul.f32 %v7508_v6, %v3305_v2  ;;  %v3589_v45 = vadd.f32 %v3573_v12, %v3536_v49  ;;  %v3157_v19 = vsel %vm146_vm0, %v3151_v34, %v3152_v36  ;;  %v8089_v50 = vmul.f32 %v7577_v52, %v7988_v40  ;;  %v9339_v49 = vld [vmem:[#allocation99_spill] sm:$0xff]  ;;  %v9340_v12 = vld [vmem:[#allocation130_spill] sm:$0xff] }
 0xa51   :  { %v8080_v51 = vadd.f32 %v3101_v54, %v7797_v42  ;;  %v3626_v46 = vmul.f32 %v7614_v35, %v3605_v37  ;;  %v3641_v3 = vadd.f32 %v3625_v31, %v3588_v38  ;;  %v8093_v1 = vmul.f32 %v7577_v52, %v8045_v15 }
 0xa52   :  { %v3256_v42 = vadd.f32 %v7997_v47, %v8003_v48  ;;  %v3257_v16 = vadd.f32 %v3241_v13, %v3204_v27  ;;  %v3185_v2 = vmul.f32 %v3157_v19, %v9338_v63  ;;  %v3358_v34 = vmul.f32 %v3157_v19, %v9339_v49 }
 0xa53   :  { %v3153_v26 = vrot.slane %v8080_v51, 7  ;;  %v3274_v20 = vrot.slane %v8080_v51, 1  ;;  %v3222_v40 = vmul.f32 %v8080_v51, %v9340_v12  ;;  %v3642_v54 = vadd.f32 %v3626_v46, %v3589_v45  ;;  %v9341_v45 = vld [vmem:[#allocation127_spill] sm:$0xff]  ;;  %v9343_v12 = vld [vmem:[#allocation148_spill] sm:$0xff] }
 0xa54   :  { %v3661_v38 = vadd.f32 %v7632_v30, %v3641_v3  ;;  %v3341_v56 = vadd.f32 %v3325_v23, %v3256_v42  ;;  %v8106_v37 = vmul.f32 %v7533_v18, %v8080_v51  ;;  %v3342_v13 = vadd.f32 %v3326_v5, %v3257_v16  ;;  %v9342_v3 = vld [vmem:[#allocation158_spill] sm:$0xff] }
 0xa55   :  { %v3156_v47 = vsel %vm146_vm0, %v3152_v36, %v3153_v26  ;;  %v3277_v48 = vsel %vm412_vm1, %v3273_v11, %v3274_v20  ;;  %v3662_v31 = vadd.f32 %v7632_v30, %v3642_v54  ;;  %v8118_v63 = vmul.f32 %v7462_v17, %v3185_v2 }
 0xa56   :  { %v3061_v27 = vpop.f32.mrf.mxu3  ;;  %v3680_v24 = vmul.f32 %v7640_v41, %v3661_v38  ;;  %v3186_v46 = vmul.f32 %v3156_v47, %v9341_v45  ;;  %v3306_v23 = vmul.f32 %v3277_v48, %v9342_v3  ;;  %v3378_v36 = vmul.f32 %v7524_v10, %v8041_v57 }
 0xa57   :  { %v3102_v42 = vmul.f32 %v7441_v59, %v3061_v27  ;;  %v3379_v11 = vmul.f32 %v7524_v10, %v3358_v34  ;;  %v3243_v5 = vmul.f32 %v7481_v4, %v3222_v40  ;;  %v3681_v16 = vmul.f32 %v7640_v41, %v3662_v31  ;;  %v9344_v27 = vld [vmem:[#allocation51_spill] sm:$0xff] }
 0xa58   :  { %v8126_v49 = vadd.f32 %v3680_v24, %v7969_v9  ;;  %v3359_v54 = vmul.f32 %v3156_v47, %v9343_v12  ;;  %v3394_v59 = vadd.f32 %v3378_v36, %v3341_v56  ;;  %v3448_v45 = vmul.f32 %v3277_v48, %v9344_v27  ;;  %v9345_v24 = vld [vmem:[#allocation13_spill] sm:$0xff]  ;;  %v9346_v56 = vld [vmem:[#allocation126_spill] sm:$0xff] }
 0xa59   :  { %v8130_v38 = vadd.f32 %v3102_v42, %v7783_v33  ;;  %v3395_v2 = vadd.f32 %v3379_v11, %v3342_v13  ;;  %v8134_v57 = vadd.f32 %v3681_v16, %v7993_v39  ;;  %v3206_v34 = vmul.f32 %v7462_v17, %v3186_v46  ;;  %v9350_v12 = vld [vmem:[#allocation17_spill] sm:$0xff] }
 0xa5a   :  { %v3327_v40 = vmul.f32 %v7508_v6, %v3306_v23  ;;  %v3468_v31 = vmul.f32 %v7562_v58, %v3447_v55  ;;  %v3500_v13 = vmul.f32 %v3157_v19, %v9346_v56  ;;  %v3431_v39 = vadd.f32 %v8015_v7, %v3394_v59  ;;  %v9349_v7 = vld [vmem:[#allocation76_spill] sm:$0xff]  ;;  %v9352_v27 = vld [vmem:[#allocation9_spill] sm:$0xff] }
 0xa5b   :  { %v3154_v9 = vrot.slane %v8130_v38, 7  ;;  %v3207_v3 = vmul.f32 %v8130_v38, %v9345_v24  ;;  %v3275_v33 = vrot.slane %v8130_v38, 1  ;;  %v3432_v36 = vadd.f32 %v3416_v32, %v3395_v2  ;;  %v9351_v2 = vld [vmem:[#allocation23_spill] sm:$0xff]  ;;  %v9353_v24 = vld [vmem:[#allocation12_spill] sm:$0xff] }
 0xa5c   :  { %v3469_v46 = vmul.f32 %v7562_v58, %v3448_v45  ;;  %v9347_v23 = vrot.slane %v7448_v29, 7  ;;  %v9348_v19 = vrot.slane %v7448_v29, 1  ;;  %v3501_v32 = vmul.f32 %v3156_v47, %v9349_v7  ;;  %v4454_v7 = vld [vmem:[%s8452_s13] ss:$0 sm:$0xff] }
 0xa5d   :  { %v8150_v55 = vsel %vm146_vm0, %v3153_v26, %v3154_v9  ;;  %v3276_v56 = vsel %vm412_vm1, %v3274_v20, %v3275_v33  ;;  %v3521_v42 = vmul.f32 %v7586_v43, %v3500_v13 }
 0xa5e   :  { %v8156_v11 = vsel %vm146_vm0, %v3154_v9, %v9347_v23  ;;  %v8162_v16 = vsel %vm412_vm1, %v3275_v33, %v9348_v19  ;;  %v3171_v59 = vmul.f32 %v8150_v55, %v9350_v12  ;;  %v3484_v23 = vadd.f32 %v3468_v31, %v3431_v39  ;;  %v9355_v39 = vld [vmem:[#allocation124_spill] sm:$0xff] }
 0xa5f   :  { %v3172_v26 = vmul.f32 %v8156_v11, %v9351_v2  ;;  %v3292_v45 = vmul.f32 %v8162_v16, %v9352_v27  ;;  %v3345_v9 = vmul.f32 %v8156_v11, %v9353_v24  ;;  %v3485_v19 = vadd.f32 %v3469_v46, %v3432_v36  ;;  %v9356_v46 = vld [vmem:[#allocation111_spill] sm:$0xff] }
 0xa60   :  { %v3191_v47 = vmul.f32 %v7462_v17, %v3171_v59  ;;  %v3228_v2 = vmul.f32 %v7481_v4, %v3207_v3  ;;  %v3418_v27 = vmul.f32 %v7533_v18, %v8130_v38  ;;  %v3307_v20 = vmul.f32 %v3276_v56, %v9354_v28  ;;  %v9357_v18 = vld [vmem:[#allocation128_spill] sm:$0xff] }
 0xa61   :  { %v3192_v12 = vmul.f32 %v4454_v7, %v3172_v26  ;;  %v3313_v24 = vmul.f32 %v7508_v6, %v3292_v45  ;;  %v3522_v31 = vmul.f32 %v7586_v43, %v3501_v32  ;;  %v3537_v33 = vadd.f32 %v3521_v42, %v3484_v23 }
 0xa62   :  { %v3244_v13 = vadd.f32 %v3228_v2, %v3191_v47  ;;  %v3553_v36 = vmul.f32 %v8045_v15, %v9355_v39  ;;  %v3554_v59 = vmul.f32 %v8080_v51, %v9356_v46  ;;  %v3366_v4 = vmul.f32 %v7524_v10, %v3345_v9  ;;  %v9358_v15 = vld [vmem:[#allocation150_spill] sm:$0xff] }
 0xa63   :  { %v3245_v17 = vadd.f32 %v7817_v25, %v3192_v12  ;;  %v3538_v3 = vadd.f32 %v3522_v31, %v3485_v19  ;;  %v3606_v26 = vmul.f32 %v3277_v48, %v9357_v18  ;;  %v3607_v45 = vmul.f32 %v3276_v56, %v9192_v53 }
 0xa64   :  { %v3329_v7 = vadd.f32 %v3313_v24, %v3244_v13  ;;  %v3574_v42 = vmul.f32 %v7591_v21, %v3553_v36  ;;  %v3575_v25 = vmul.f32 %v7591_v21, %v3554_v59  ;;  %v3328_v23 = vmul.f32 %v7508_v6, %v3307_v20  ;;  %v9359_v24 = vld [vmem:[#allocation149_spill] sm:$0xff]  ;;  %v9360_v36 = vld [vmem:[#allocation151_spill] sm:$0xff] }
 0xa65   :  { %v3330_v32 = vadd.f32 %v7837_v14, %v3245_v17  ;;  %v3449_v47 = vmul.f32 %v3276_v56, %v9358_v15  ;;  %v3627_v12 = vmul.f32 %v7614_v35, %v3606_v26  ;;  %v3628_v10 = vmul.f32 %v7614_v35, %v3607_v45  ;;  %v4455_v6 = vld [vmem:[%s8452_s13 + $0x3] ss:$0 sm:$0xff]  ;;  %v9364_v26 = vld [vmem:[#allocation30_spill] sm:$0xff] }
 0xa66   :  { %v3382_v9 = vadd.f32 %v3366_v4, %v3329_v7  ;;  %v3590_v19 = vadd.f32 %v3574_v42, %v3537_v33  ;;  %v3591_v53 = vadd.f32 %v3575_v25, %v3538_v3  ;;  %v3258_v14 = vadd.f32 %v8075_v62, %v8118_v63  ;;  %v9361_v63 = vld [vmem:[#allocation138_spill] sm:$0xff] }
 0xa67   :  { %v3383_v48 = vadd.f32 %v7840_v22, %v3330_v32  ;;  %v3259_v2 = vadd.f32 %v3243_v5, %v3206_v34  ;;  %v3360_v28 = vmul.f32 %v8150_v55, %v9359_v24  ;;  %v3380_v56 = vmul.f32 %v4455_v6, %v3359_v54  ;;  %v9362_v34 = vld [vmem:[#allocation54_spill] sm:$0xff] }
 0xa68   :  { %v3419_v20 = vadd.f32 %v7787_v8, %v3382_v9  ;;  %v3643_v13 = vadd.f32 %v3627_v12, %v3590_v19  ;;  %v3644_v22 = vadd.f32 %v3628_v10, %v3591_v53  ;;  %v3343_v33 = vadd.f32 %v3327_v40, %v3258_v14  ;;  %v9363_v40 = vld [vmem:[#allocation21_spill] sm:$0xff]  ;;  %v9366_v12 = vld [vmem:[#allocation152_spill] sm:$0xff] }
 0xa69   :  { %v3420_v31 = vadd.f32 %v7827_v0, %v3383_v48  ;;  %v3344_v17 = vadd.f32 %v3328_v23, %v3259_v2  ;;  %v3381_v39 = vmul.f32 %v4455_v6, %v3360_v28  ;;  %v3450_v62 = vmul.f32 %v8162_v16, %v9360_v36  ;;  %v9365_v23 = vld [vmem:[#allocation131_spill] sm:$0xff]  ;;  %v9370_v28 = vld [vmem:[#allocation62_spill] sm:$0xff] }
 0xa6a   :  { %v3472_v5 = vadd.f32 %v9361_v63, %v3419_v20  ;;  %v3663_v59 = vadd.f32 %v7632_v30, %v3643_v13  ;;  %v3664_v54 = vadd.f32 %v7632_v30, %v3644_v22  ;;  %v3396_v4 = vadd.f32 %v3380_v56, %v3343_v33  ;;  %v9371_v56 = vld [vmem:[#allocation154_spill] sm:$0xff]  ;;  %v9373_v22 = vld [vmem:[#allocation156_spill] sm:$0xff] }
 0xa6b   :  { %v3473_v46 = vadd.f32 %v9362_v34, %v3420_v31  ;;  %v3397_v8 = vadd.f32 %v3381_v39, %v3344_v17  ;;  %v3470_v0 = vmul.f32 %v7562_v58, %v3449_v47  ;;  %v3471_v3 = vmul.f32 %v7562_v58, %v3450_v62  ;;  %v9367_v47 = vld [vmem:[#allocation137_spill] sm:$0xff]  ;;  %v9368_v58 = vld [vmem:[#allocation35_spill] sm:$0xff]  ;;  %v9374_v63 = vld [vmem:[#allocation26_spill] sm:$0xff] }
 0xa6c   :  { %v3525_v18 = vadd.f32 %v9363_v40, %v3472_v5  ;;  %v3682_v7 = vmul.f32 %v7640_v41, %v3663_v59  ;;  %v3683_v32 = vmul.f32 %v7640_v41, %v3664_v54  ;;  %v3433_v42 = vadd.f32 %v8106_v37, %v3396_v4  ;;  %v4456_v39 = vld [vmem:[%s8452_s13 + $0x7] ss:$0 sm:$0xff]  ;;  %s4034_s13 = sshll.u32 %s8459_s20, 4  ;;  %s4524_s20 = smov [#allocation3]   ;;  %s4035_s13 = int_to_ptr.hbm [resolvable:$true] %s4034_s13 }
 0xa6d   :  { %v3526_v45 = vadd.f32 %v9364_v26, %v3473_v46  ;;  %v3434_v25 = vadd.f32 %v3418_v27, %v3397_v8  ;;  %v3502_v15 = vmul.f32 %v8150_v55, %v9365_v23  ;;  %v3503_v10 = vmul.f32 %v8156_v11, %v9366_v12  ;;  %v9369_v55 = vld [vmem:[#allocation27_spill] sm:$0xff]  ;;  %s4019_s28 = sshll.u32 %s4524_s20, 4  ;;  %s4020_s28 = int_to_ptr.vmem [resolvable:$true] %s4019_s28 }
 0xa6e   :  { %v3578_v9 = vadd.f32 %v9367_v47, %v3525_v18  ;;  %v8231_v19 = vadd.f32 %v3682_v7, %v8089_v50  ;;  %v8234_v53 = vadd.f32 %v3683_v32, %v8093_v1  ;;  %v3486_v14 = vadd.f32 %v3470_v0, %v3433_v42  ;;  %v9372_v1 = vld [vmem:[#allocation22_spill] sm:$0xff] }
 0xa6f   :  { %v3579_v48 = vadd.f32 %v9368_v58, %v3526_v45  ;;  %v3487_v2 = vadd.f32 %v3471_v3, %v3434_v25  ;;  %v3523_v37 = vmul.f32 %v7586_v43, %v3502_v15  ;;  %v3524_v27 = vmul.f32 %v7586_v43, %v3503_v10  ;;  %v9377_v15 = vld [vmem:[#allocation20_spill] sm:$0xff]  ;;  %v9380_v10 = vld [vmem:[#allocation34_spill] sm:$0xff] }
 0xa70   :  { %v3631_v24 = vadd.f32 %v9369_v55, %v3578_v9  ;;  %v3708_v6 = vpack.c.bf16 %v8234_v53, %v8231_v19  ;;  %v3555_v50 = vmul.f32 %v8130_v38, %v9371_v56  ;;  %v3577_v13 = vmul.f32 %v7591_v21, %v9372_v1  ;;  %v9375_v21 = vld [vmem:[#allocation160_spill] sm:$0xff] }
 0xa71   :  { %v3632_v11 = vadd.f32 %v9370_v28, %v3579_v48  ;;  %v3539_v20 = vadd.f32 %v3523_v37, %v3486_v14  ;;  %v3540_v31 = vadd.f32 %v3524_v27, %v3487_v2  ;;  %v3608_v33 = vmul.f32 %v8162_v16, %v9373_v22  ;;  %v4191_v9 = vld [vmem:[%s8456_s17 + $0x38] sm:$0xff]  ;;  %v4190_v48 = vld [vmem:[%s8456_s17 + $0x30] sm:$0xff]  ;;  %v4189_v14 = vld [vmem:[%s8456_s17 + $0x28] sm:$0xff] }
 0xa72   :  { %v3651_v43 = vadd.f32 %v7632_v30, %v3631_v24  ;;  %v3576_v36 = vmul.f32 %v4456_v39, %v3555_v50  ;;  %v3123_v62 = vmul.f32 %v7577_v52, %v7448_v29  ;;  %v3124_v5 = vmul.f32 %v7577_v52, %v9374_v63  ;;  %3895 = vmatpush.bf16.msra.mxu2 %v4191_v9  ;;  %v4187_v2 = vld [vmem:[%s8456_s17 + $0x18] sm:$0xff]  ;;  %v4186_v37 = vld [vmem:[%s8456_s17 + $0x10] sm:$0xff]  ;;  %v4185_v27 = vld [vmem:[%s8456_s17 + $0x8] sm:$0xff] }
 0xa73   :  { %v3652_v17 = vadd.f32 %v7632_v30, %v3632_v11  ;;  %v3593_v34 = vadd.f32 %v3577_v13, %v3540_v31  ;;  %v3630_v46 = vmul.f32 %v7614_v35, %v9375_v21  ;;  %v3629_v4 = vmul.f32 %v7614_v35, %v3608_v33  ;;  %v4184_v55 = vld [vmem:[%s8456_s17] sm:$0xff] }
 0xa74   :  { %v3670_v16 = vmul.f32 %v7640_v41, %v3651_v43  ;;  %v3592_v54 = vadd.f32 %v3576_v36, %v3539_v20  ;;  %v3138_v45 = vmul.f32 %v7577_v52, %v8130_v38  ;;  %v3137_v35 = vmul.f32 %v7577_v52, %v8080_v51  ;;  %v9379_v38 = vld [vmem:[#allocation134_spill] sm:$0xff]  ;;  %v9382_v52 = vld [vmem:[#allocation37_spill] sm:$0xff]  ;;  %v9383_v51 = vld [vmem:[#allocation40_spill] sm:$0xff] }
 0xa75   :  { %v3671_v59 = vmul.f32 %v7640_v41, %v3652_v17  ;;  %v3646_v8 = vadd.f32 %v3630_v46, %v3593_v34  ;;  %v9381_v47 = vpack.c.bf16 %v9379_v38, %v9380_v10  ;;  %v9385_v58 = vpack.c.bf16 %v8134_v57, %v8126_v49  ;;  %v4339_v28 = vld [vmem:[%s8455_s16] ss:$0 sm:$0xff] }
 0xa76   :  { %v8262_v0 = vadd.f32 %v3670_v16, %v3123_v62  ;;  %v3645_v29 = vadd.f32 %v3629_v4, %v3592_v54  ;;  %3896 = vmatpush.bf16.msra.mxu2 %v4190_v48 }
 0xa77   :  { %v8264_v3 = vadd.f32 %v3671_v59, %v3124_v5  ;;  %v3666_v40 = vadd.f32 %v7632_v30, %v3646_v8 }
 0xa78   :  { %v3665_v26 = vadd.f32 %v7632_v30, %v3645_v29  ;;  %v9376_v30 = vld [vmem:[#allocation125_spill] sm:$0xff] }
 0xa79   :  { %v3702_v18 = vpack.c.bf16 %v8264_v3, %v8262_v0  ;;  %v3685_v7 = vmul.f32 %v7640_v41, %v3666_v40  ;;  %v9378_v12 = vpack.c.bf16 %v9376_v30, %v9377_v15 }
 0xa7a   :  { %v3684_v32 = vmul.f32 %v7640_v41, %v3665_v26  ;;  %v9384_v41 = vpack.c.bf16 %v9382_v52, %v9383_v51  ;;  %3897 = vmatpush.bf16.msra.mxu2 %v4189_v14 }
 0xa7b   :  { %4136 = vmatmul.msk.bf16.vlgmr.msrb.gmra.mxu1 %vm1223_vm2, %v3702_v18  ;;  %v8277_v42 = vadd.f32 %v3685_v7, %v3138_v45 }
 0xa7c   :  { %v8279_v25 = vadd.f32 %v3684_v32, %v3137_v35 }
 0xa7e   :  { %v3709_v23 = vpack.c.bf16 %v8277_v42, %v8279_v25 }
 0xa8b   :  { %4137 = vmatmul.msk.bf16.gmra.mxu1 %vm1223_vm2, %v9378_v12 }
 0xa9b   :  { %4138 = vmatmul.msk.bf16.gmra.mxu1 %vm1223_vm2, %v9381_v47 }
 0xaab   :  { %4139 = vmatmul.msk.bf16.gmra.mxu1 %vm1223_vm2, %v9384_v41 }
 0xabb   :  { %4140 = vmatmul.msk.bf16.gmra.mxu1 %vm1223_vm2, %v3706_v60  ;;  %v4188_v60 = vld [vmem:[%s8456_s17 + $0x20] sm:$0xff] }
 0xabc   :  { %3898 = vmatpush.bf16.msra.mxu2 %v4188_v60 }
 0xac0   :  { %3899 = vmatpush.bf16.msra.mxu2 %v4187_v2 }
 0xac4   :  { %3900 = vmatpush.bf16.msra.mxu2 %v4186_v37 }
 0xac8   :  { %3901 = vmatpush.bf16.msra.mxu2 %v4185_v27 }
 0xacb   :  { %4141 = vmatmul.msk.bf16.gmra.mxu1 %vm1223_vm2, %v9385_v58 }
 0xacc   :  { %3902 = vmatpush.bf16.msra.mxu2 %v4184_v55 }
 0xadb   :  { %4142 = vmatmul.msk.bf16.gmra.mxu1 %vm1223_vm2, %v3708_v6 }
 0xaeb   :  { %4143 = vmatmul.msk.bf16.gmra.mxu1 %vm1223_vm2, %v3709_v23 }
 0xaf8   :  { %v3763_v24 = vpop.f32.mrf.mxu1 }
 0xaf9   :  { %v3764_v11 = vadd.f32 %v4339_v28, %v3763_v24 }
 0xafb   :  { %v3803_v50 = vmax.f32 %v3764_v11, 0.0 }
 0xb00   :  { %v3765_v6 = vpop.f32.mrf.mxu1 }
 0xb01   :  { %v3766_v56 = vadd.f32 %v4339_v28, %v3765_v6 }
 0xb03   :  { %v3804_v20 = vmax.f32 %v3766_v56, 0.0 }
 0xb05   :  { %v3819_v31 = vpack.c.bf16 %v3804_v20, %v3803_v50 }
 0xb07   :  { %3903 = vmatmul.bf16.vlgmr.msra.gmra.mxu2 %v3819_v31 }
 0xb08   :  { %v3768_v1 = vpop.f32.mrf.mxu1 }
 0xb09   :  { %v3769_v13 = vadd.f32 %v4339_v28, %v3768_v1 }
 0xb0b   :  { %v3805_v43 = vmax.f32 %v3769_v13, 0.0 }
 0xb10   :  { %v3770_v22 = vpop.f32.mrf.mxu1 }
 0xb11   :  { %v3771_v33 = vadd.f32 %v4339_v28, %v3770_v22  ;;  %v4053_v22 = vld [vmem:[%s8821_s23 + $0x3] sm:$0x1] }
 0xb13   :  { %v3806_v17 = vmax.f32 %v3771_v33, 0.0  ;;  %v8338_v33 = vld [vmem:[%s8457_s18] ss:$0 sm:$0xff] }
 0xb15   :  { %v3820_v39 = vpack.c.bf16 %v3806_v17, %v3805_v43  ;;  %v3944_v43 = vsub.f32 1.0, %v4053_v22  ;;  %v8343_v17 = vld [vmem:[%s8821_s23 + $0x3] ss:$0 sm:$0xff]  ;;  %s4522_s23 = smov 128  }
 0xb16   :  { %4040 = dma.vmem_to_hbm [thread:$0]  %s4033_s8, 512, %s4035_s13, [#allocation6], %s4522_s23, %s4522_s23, %s4523_s21  }
 0xb17   :  { %3908 = vmatmul.bf16.gmra.mxu2 %v3820_v39 }
 0xb18   :  { %v3773_v36 = vpop.f32.mrf.mxu1 }
 0xb19   :  { %v3774_v62 = vadd.f32 %v4339_v28, %v3773_v36  ;;  %v8346_v36 = vperm.slane %v3944_v43, 0 }
 0xb1b   :  { %v3807_v34 = vmax.f32 %v3774_v62, 0.0  ;;  %v3948_v62 = vmul.f32 %v8346_v36, %v8262_v0 }
 0xb20   :  { %v3775_v63 = vpop.f32.mrf.mxu1 }
 0xb21   :  { %v3776_v5 = vadd.f32 %v4339_v28, %v3775_v63 }
 0xb23   :  { %v3808_v21 = vmax.f32 %v3776_v5, 0.0 }
 0xb25   :  { %v3821_v46 = vpack.c.bf16 %v3808_v21, %v3807_v34  ;;  %v3949_v21 = vmul.f32 %v8346_v36, %v8264_v3  ;;  %v3951_v3 = vmul.f32 %v8346_v36, %v9376_v30  ;;  %v3953_v30 = vmul.f32 %v8346_v36, %v9379_v38 }
 0xb26   :  { %v3955_v38 = vmul.f32 %v8346_v36, %v9382_v52  ;;  %v3957_v52 = vmul.f32 %v8346_v36, %v8038_v44  ;;  %v3959_v44 = vmul.f32 %v8346_v36, %v8134_v57  ;;  %v3961_v57 = vmul.f32 %v8346_v36, %v8234_v53 }
 0xb27   :  { %3913 = vmatmul.bf16.gmra.mxu2 %v3821_v46  ;;  %v3963_v53 = vmul.f32 %v8346_v36, %v8277_v42 }
 0xb28   :  { %v3778_v16 = vpop.f32.mrf.mxu1 }
 0xb29   :  { %v3779_v59 = vadd.f32 %v4339_v28, %v3778_v16 }
 0xb2b   :  { %v3809_v8 = vmax.f32 %v3779_v59, 0.0 }
 0xb30   :  { %v3780_v54 = vpop.f32.mrf.mxu1 }
 0xb31   :  { %v3781_v4 = vadd.f32 %v4339_v28, %v3780_v54 }
 0xb33   :  { %v3810_v29 = vmax.f32 %v3781_v4, 0.0  ;;  %v3950_v4 = vmul.f32 %v8346_v36, %v9377_v15  ;;  %v3952_v15 = vmul.f32 %v8346_v36, %v9380_v10  ;;  %v3954_v10 = vmul.f32 %v8346_v36, %v9383_v51 }
 0xb34   :  { %v3956_v51 = vmul.f32 %v8346_v36, %v8029_v61  ;;  %v3958_v61 = vmul.f32 %v8346_v36, %v8126_v49  ;;  %v3960_v49 = vmul.f32 %v8346_v36, %v8231_v19  ;;  %v3962_v19 = vmul.f32 %v8346_v36, %v8279_v25 }
 0xb35   :  { %v3822_v40 = vpack.c.bf16 %v3810_v29, %v3809_v8 }
 0xb37   :  { %3918 = vmatmul.bf16.gmra.mxu2 %v3822_v40 }
 0xb38   :  { %v3783_v18 = vpop.f32.mrf.mxu1 }
 0xb39   :  { %v3784_v26 = vadd.f32 %v4339_v28, %v3783_v18 }
 0xb3b   :  { %v3811_v35 = vmax.f32 %v3784_v26, 0.0 }
 0xb40   :  { %v3785_v45 = vpop.f32.mrf.mxu1 }
 0xb41   :  { %v3786_v7 = vadd.f32 %v4339_v28, %v3785_v45 }
 0xb43   :  { %v3812_v32 = vmax.f32 %v3786_v7, 0.0 }
 0xb45   :  { %v3823_v23 = vpack.c.bf16 %v3812_v32, %v3811_v35 }
 0xb47   :  { %3923 = vmatmul.bf16.gmra.mxu2 %v3823_v23 }
 0xb48   :  { %v3788_v12 = vpop.f32.mrf.mxu1 }
 0xb49   :  { %v3789_v47 = vadd.f32 %v4339_v28, %v3788_v12 }
 0xb4b   :  { %v3813_v58 = vmax.f32 %v3789_v47, 0.0 }
 0xb50   :  { %v3790_v41 = vpop.f32.mrf.mxu1 }
 0xb51   :  { %v3791_v9 = vadd.f32 %v4339_v28, %v3790_v41 }
 0xb53   :  { %v3814_v48 = vmax.f32 %v3791_v9, 0.0 }
 0xb55   :  { %v3824_v14 = vpack.c.bf16 %v3814_v48, %v3813_v58 }
 0xb57   :  { %3928 = vmatmul.bf16.gmra.mxu2 %v3824_v14 }
 0xb58   :  { %v3793_v60 = vpop.f32.mrf.mxu1 }
 0xb59   :  { %v3794_v2 = vadd.f32 %v4339_v28, %v3793_v60 }
 0xb5b   :  { %v3815_v55 = vmax.f32 %v3794_v2, 0.0 }
 0xb60   :  { %v3795_v37 = vpop.f32.mrf.mxu1 }
 0xb61   :  { %v3796_v27 = vadd.f32 %v4339_v28, %v3795_v37 }
 0xb63   :  { %v3816_v24 = vmax.f32 %v3796_v27, 0.0 }
 0xb65   :  { %v3825_v11 = vpack.c.bf16 %v3816_v24, %v3815_v55 }
 0xb67   :  { %3933 = vmatmul.bf16.gmra.mxu2 %v3825_v11 }
 0xb68   :  { %v3798_v6 = vpop.f32.mrf.mxu1 }
 0xb69   :  { %v3799_v56 = vadd.f32 %v4339_v28, %v3798_v6 }
 0xb6b   :  { %v3817_v31 = vmax.f32 %v3799_v56, 0.0 }
 0xb70   :  { %v3800_v50 = vpop.f32.mrf.mxu1 }
 0xb71   :  { %v3801_v20 = vadd.f32 %v4339_v28, %v3800_v50 }
 0xb73   :  { %v3818_v1 = vmax.f32 %v3801_v20, 0.0 }
 0xb75   :  { %v3826_v13 = vpack.c.bf16 %v3818_v1, %v3817_v31 }
 0xb77   :  { %3938 = vmatmul.bf16.gmra.mxu2 %v3826_v13 }
 0xb8a   :  { %v3904_v28 = vpop.f32.mrf.mxu2 }
 0xb8b   :  { %v3905_v39 = vadd.f32 %v8338_v33, %v3904_v28 }
 0xb8d   :  { %v3967_v63 = vmul.f32 %v8343_v17, %v3905_v39 }
 0xb8f   :  { %v3983_v5 = vadd.f32 %v3967_v63, %v3948_v62 }
 0xb91   :  { %3999 = vst.msk [vmem:[#allocation3] sm:$0xff] %vm1223_vm2, %v3983_v5 }
 0xb92   :  { %v3906_v0 = vpop.f32.mrf.mxu2 }
 0xb93   :  { %v3907_v34 = vadd.f32 %v8338_v33, %v3906_v0 }
 0xb95   :  { %v3968_v46 = vmul.f32 %v8343_v17, %v3907_v34 }
 0xb97   :  { %v3984_v16 = vadd.f32 %v3968_v46, %v3949_v21 }
 0xb99   :  { %4000 = vst.msk [vmem:[#allocation3 + $0x8] sm:$0xff] %vm1223_vm2, %v3984_v16 }
 0xb9a   :  { %v3909_v59 = vpop.f32.mrf.mxu2 }
 0xb9b   :  { %v3910_v54 = vadd.f32 %v8338_v33, %v3909_v59 }
 0xb9d   :  { %v3969_v8 = vmul.f32 %v8343_v17, %v3910_v54 }
 0xb9f   :  { %v3985_v29 = vadd.f32 %v3969_v8, %v3950_v4 }
 0xba1   :  { %4001 = vst.msk [vmem:[#allocation3 + $0x10] sm:$0xff] %vm1223_vm2, %v3985_v29 }
 0xba2   :  { %v3911_v40 = vpop.f32.mrf.mxu2 }
 0xba3   :  { %v3912_v18 = vadd.f32 %v8338_v33, %v3911_v40 }
 0xba5   :  { %v3970_v26 = vmul.f32 %v8343_v17, %v3912_v18 }
 0xba7   :  { %v3986_v45 = vadd.f32 %v3970_v26, %v3951_v3 }
 0xba9   :  { %4002 = vst.msk [vmem:[#allocation3 + $0x18] sm:$0xff] %vm1223_vm2, %v3986_v45 }
 0xbaa   :  { %v3914_v7 = vpop.f32.mrf.mxu2 }
 0xbab   :  { %v3915_v35 = vadd.f32 %v8338_v33, %v3914_v7 }
 0xbad   :  { %v3971_v32 = vmul.f32 %v8343_v17, %v3915_v35 }
 0xbaf   :  { %v3987_v23 = vadd.f32 %v3971_v32, %v3952_v15 }
 0xbb1   :  { %4003 = vst.msk [vmem:[#allocation3 + $0x20] sm:$0xff] %vm1223_vm2, %v3987_v23 }
 0xbb2   :  { %v3916_v12 = vpop.f32.mrf.mxu2 }
 0xbb3   :  { %v3917_v47 = vadd.f32 %v8338_v33, %v3916_v12 }
 0xbb5   :  { %v3972_v41 = vmul.f32 %v8343_v17, %v3917_v47 }
 0xbb7   :  { %v3988_v9 = vadd.f32 %v3972_v41, %v3953_v30 }
 0xbb9   :  { %4004 = vst.msk [vmem:[#allocation3 + $0x28] sm:$0xff] %vm1223_vm2, %v3988_v9 }
 0xbba   :  { %v3919_v58 = vpop.f32.mrf.mxu2 }
 0xbbb   :  { %v3920_v48 = vadd.f32 %v8338_v33, %v3919_v58 }
 0xbbd   :  { %v3973_v14 = vmul.f32 %v8343_v17, %v3920_v48 }
 0xbbf   :  { %v3989_v60 = vadd.f32 %v3973_v14, %v3954_v10 }
 0xbc1   :  { %4005 = vst.msk [vmem:[#allocation3 + $0x30] sm:$0xff] %vm1223_vm2, %v3989_v60 }
 0xbc2   :  { %v3921_v2 = vpop.f32.mrf.mxu2 }
 0xbc3   :  { %v3922_v37 = vadd.f32 %v8338_v33, %v3921_v2 }
 0xbc5   :  { %v3974_v27 = vmul.f32 %v8343_v17, %v3922_v37 }
 0xbc7   :  { %v3990_v55 = vadd.f32 %v3974_v27, %v3955_v38 }
 0xbc9   :  { %4006 = vst.msk [vmem:[#allocation3 + $0x38] sm:$0xff] %vm1223_vm2, %v3990_v55 }
 0xbca   :  { %v3924_v24 = vpop.f32.mrf.mxu2 }
 0xbcb   :  { %v3925_v11 = vadd.f32 %v8338_v33, %v3924_v24 }
 0xbcd   :  { %v3975_v6 = vmul.f32 %v8343_v17, %v3925_v11 }
 0xbcf   :  { %v3991_v56 = vadd.f32 %v3975_v6, %v3956_v51 }
 0xbd1   :  { %4007 = vst.msk [vmem:[#allocation3 + $0x40] sm:$0xff] %vm1223_vm2, %v3991_v56 }
 0xbd2   :  { %v3926_v50 = vpop.f32.mrf.mxu2 }
 0xbd3   :  { %v3927_v20 = vadd.f32 %v8338_v33, %v3926_v50 }
 0xbd5   :  { %v3976_v31 = vmul.f32 %v8343_v17, %v3927_v20 }
 0xbd7   :  { %v3992_v1 = vadd.f32 %v3976_v31, %v3957_v52 }
 0xbd9   :  { %4008 = vst.msk [vmem:[#allocation3 + $0x48] sm:$0xff] %vm1223_vm2, %v3992_v1 }
 0xbda   :  { %v3929_v13 = vpop.f32.mrf.mxu2 }
 0xbdb   :  { %v3930_v22 = vadd.f32 %v8338_v33, %v3929_v13 }
 0xbdd   :  { %v3977_v43 = vmul.f32 %v8343_v17, %v3930_v22 }
 0xbdf   :  { %v3993_v28 = vadd.f32 %v3977_v43, %v3958_v61 }
 0xbe1   :  { %4009 = vst.msk [vmem:[#allocation3 + $0x50] sm:$0xff] %vm1223_vm2, %v3993_v28 }
 0xbe2   :  { %v3931_v39 = vpop.f32.mrf.mxu2 }
 0xbe3   :  { %v3932_v62 = vadd.f32 %v8338_v33, %v3931_v39 }
 0xbe5   :  { %v3978_v63 = vmul.f32 %v8343_v17, %v3932_v62 }
 0xbe7   :  { %v3994_v5 = vadd.f32 %v3978_v63, %v3959_v44 }
 0xbe9   :  { %4010 = vst.msk [vmem:[#allocation3 + $0x58] sm:$0xff] %vm1223_vm2, %v3994_v5 }
 0xbea   :  { %v3934_v0 = vpop.f32.mrf.mxu2 }
 0xbeb   :  { %v3935_v34 = vadd.f32 %v8338_v33, %v3934_v0 }
 0xbed   :  { %v3979_v21 = vmul.f32 %v8343_v17, %v3935_v34 }
 0xbef   :  { %v3995_v46 = vadd.f32 %v3979_v21, %v3960_v49 }
 0xbf1   :  { %4011 = vst.msk [vmem:[#allocation3 + $0x60] sm:$0xff] %vm1223_vm2, %v3995_v46 }
 0xbf2   :  { %v3936_v16 = vpop.f32.mrf.mxu2 }
 0xbf3   :  { %v3937_v59 = vadd.f32 %v8338_v33, %v3936_v16 }
 0xbf5   :  { %v3980_v54 = vmul.f32 %v8343_v17, %v3937_v59 }
 0xbf7   :  { %v3996_v4 = vadd.f32 %v3980_v54, %v3961_v57 }
 0xbf9   :  { %4012 = vst.msk [vmem:[#allocation3 + $0x68] sm:$0xff] %vm1223_vm2, %v3996_v4 }
 0xbfa   :  { %v3939_v8 = vpop.f32.mrf.mxu2 }
 0xbfb   :  { %v3940_v29 = vadd.f32 %v8338_v33, %v3939_v8 }
 0xbfd   :  { %v3981_v40 = vmul.f32 %v8343_v17, %v3940_v29 }
 0xbff   :  { %v3997_v18 = vadd.f32 %v3981_v40, %v3962_v19 }
 0xc01   :  { %4013 = vst.msk [vmem:[#allocation3 + $0x70] sm:$0xff] %vm1223_vm2, %v3997_v18 }
 0xc02   :  { %v3941_v3 = vpop.f32.mrf.mxu2 }
 0xc03   :  { %v3942_v26 = vadd.f32 %v8338_v33, %v3941_v3 }
 0xc05   :  { %v3982_v45 = vmul.f32 %v8343_v17, %v3942_v26 }
 0xc07   :  { %v3998_v25 = vadd.f32 %v3982_v45, %v3963_v53 }
 0xc09   :  { %4014 = vst.msk [vmem:[#allocation3 + $0x78] sm:$0xff] %vm1223_vm2, %v3998_v25 }
 0xc0a   :  { %4027 = dma.vmem_to_hbm [thread:$0]  %s4020_s28, 2048, %s4022_s10, [#allocation4], %s4522_s23, %s4522_s23, %s4523_s21  }
 0xc0b   :  { %4505 = dma.done.wait [#allocation4], 2048  }
 0xc0c   :  { %4506 = vsyncadd [#allocation4], 4294965248 }
 0xc0d   :  { %4507 = dma.done.wait [#allocation6], 512  }
 0xc0e   :  { %4508 = vsyncadd [#allocation6], 4294966784 }
 0xc0f   :  { %4049 = vsyncpa [#allocation4], 1 }
 0xc10   :  { %4050 = vsyncpa [#allocation6], 1 }

</bundles_post_ra>
